<compile_context>
chip_gen: v5e
topology: v5e:2x2
jax: 0.10.0
libtpu: 0.0.40
codegen_flags: <defaults>
</compile_context>

<pallas_src>
import functools
import math

import jax
import jax.numpy as jnp
from jax.experimental import pallas as pl
from jax.experimental.pallas import tpu as pltpu

# MXU input dtype (f32 accumulation is always used).  Set to jnp.float32 for exact f32 math.
_MM_DTYPE = jnp.bfloat16
# Explicit scoped-VMEM budget: safe on v5e/v6e (128 MiB phys) and v7x (64 MiB phys).
_VMEM_LIMIT = 32 * 1024 * 1024
_ROW_TILE = 512       # row tile for mem-bound row kernels (LN / projections)
_FFN_ROW_TILE = 256   # FFN keeps a smaller row tile ([tile, dff] intermediate)
_TQ_TILE = 512        # query tile for attention
_TK_TILE = 512        # key tile for attention (flash-style Lk blocking)


# ----------------------------- small helpers ---------------------------------

def _round_up(x, m):
    return (x + m - 1) // m * m


def _pick_tile(n, cap):
    """Return (tile, padded_n).  tile is either the full (8-rounded) extent or `cap`."""
    n_pad = _round_up(n, 8)
    if n_pad <= cap:
        return n_pad, n_pad
    return cap, _round_up(n, cap)


def _mm(a, b):
    """MXU matmul with bf16 operands and f32 accumulation."""
    return jnp.dot(a.astype(_MM_DTYPE), b.astype(_MM_DTYPE),
                   preferred_element_type=jnp.float32)


def _layernorm(x, g, b):
    mu = jnp.mean(x, axis=-1, keepdims=True)
    var = jnp.mean(jnp.square(x - mu), axis=-1, keepdims=True)
    return (x - mu) * jax.lax.rsqrt(var + 1e-5) * g + b


# ----------------------------- Pallas kernels ---------------------------------

def _qkv_self_kernel(x_ref, pos_ref, wqk_ref, bqk_ref, wv_ref, bv_ref,
                     q_ref, k_ref, v_ref):
    """Self-attention projections: q/k from (x+pos) with a fused [E,2E] matmul, v from x.

    Outputs are stored in bf16 (f32 accumulate, cast on store).  The 1/sqrt(dh) scale is
    pre-folded into the Q half of wqk/bqk.
    """
    x = x_ref[...]
    xp = x + pos_ref[...]
    E = q_ref.shape[-1]
    qk = _mm(xp, wqk_ref[...]) + bqk_ref[...]
    q_ref[...] = qk[:, :E].astype(q_ref.dtype)
    k_ref[...] = qk[:, E:].astype(k_ref.dtype)
    v_ref[...] = (_mm(x, wv_ref[...]) + bv_ref[...]).astype(v_ref.dtype)


def _q_proj_kernel(x_ref, pos_ref, w_ref, b_ref, q_ref):
    """Cross-attention query projection (scale pre-folded into w/b), bf16 output."""
    q_ref[...] = (_mm(x_ref[...] + pos_ref[...], w_ref[...]) + b_ref[...]).astype(q_ref.dtype)


def _kv_proj_kernel(x_ref, pos_ref, wk_ref, bk_ref, wv_ref, bv_ref, k_ref, v_ref):
    """Cross-attention key/value projections: k from (mem+pos), v from mem.  bf16 outputs."""
    x = x_ref[...]
    k_ref[...] = (_mm(x + pos_ref[...], wk_ref[...]) + bk_ref[...]).astype(k_ref.dtype)
    v_ref[...] = (_mm(x, wv_ref[...]) + bv_ref[...]).astype(v_ref.dtype)


def _ffn_res_ln_kernel(x_ref, w1_ref, b1_ref, w2_ref, b2_ref, g_ref, beta_ref, o_ref):
    """Fused: LayerNorm(x + W2 relu(W1 x + b1) + b2)."""
    x = x_ref[...]
    h = jnp.maximum(_mm(x, w1_ref[...]) + b1_ref[...], 0.0)
    y = x + _mm(h, w2_ref[...]) + b2_ref[...]
    o_ref[...] = _layernorm(y, g_ref[...], beta_ref[...])


def _ln_kernel(x_ref, g_ref, b_ref, o_ref):
    o_ref[...] = _layernorm(x_ref[...], g_ref[...], b_ref[...])


def _mha_small_fused_kernel(q_ref, k_ref, v_ref, bias_ref, res_ref,
                            wo_ref, bo_ref, g_ref, beta_ref, o_ref, *, nhead):
    """Single-key-tile attention + out-proj + residual + LayerNorm, all fused.

    q_ref/res_ref: [1, tq, E]; k_ref/v_ref: [1, Lk, E] (bf16); bias_ref: [1, 1, Lk] (f32).
    No online-softmax bookkeeping (whole key axis visible).  Output is lane-dense [1, tq, E].
    """
    q = q_ref[0]          # [tq, E]  bf16 (scale pre-folded)
    k = k_ref[0]          # [Lk, E]  bf16
    v = v_ref[0]          # [Lk, E]  bf16
    bias = bias_ref[0]    # [1, Lk]  f32
    E = q.shape[-1]
    dh = E // nhead

    outs = []
    for h in range(nhead):
        sl = slice(h * dh, (h + 1) * dh)
        s = jax.lax.dot_general(q[:, sl], k[:, sl], (((1,), (1,)), ((), ())),
                                preferred_element_type=jnp.float32)     # [tq, Lk]
        s = s + bias
        m = jnp.max(s, axis=-1, keepdims=True)
        p = jnp.exp(s - m)
        l = jnp.sum(p, axis=-1, keepdims=True)
        o = jnp.dot(p.astype(_MM_DTYPE), v[:, sl],
                    preferred_element_type=jnp.float32)                 # [tq, dh]
        outs.append(o * (1.0 / l))                                      # exact normalization
    attn = jnp.concatenate(outs, axis=-1)                               # [tq, E] f32

    y = res_ref[0] + _mm(attn, wo_ref[...]) + bo_ref[...]
    o_ref[0] = _layernorm(y, g_ref[...], beta_ref[...])


def _flash_mha_fused_kernel(q_ref, k_ref, v_ref, bias_ref, res_ref,
                            wo_ref, bo_ref, g_ref, beta_ref, o_ref,
                            m_sc, l_sc, acc_sc, *, nhead):
    """Flash-style MHA over (B, Lq-tile, Lk-tile) grid with fused out-proj/residual/LN.

    q_ref/res_ref: [1, tq, E]; k_ref/v_ref: [1, tk, E] (bf16); bias_ref: [1, 1, tk] (0/-1e9).
    Per-head accumulator acc_sc [nhead, tq, dh] is updated in place (no per-ki head concat);
    the head merge + out-projection + residual + LayerNorm run only in the ki==last epilogue.
    """
    ki = pl.program_id(2)

    @pl.when(ki == 0)
    def _():
        m_sc[...] = jnp.full_like(m_sc, -jnp.inf)
        l_sc[...] = jnp.zeros_like(l_sc)
        acc_sc[...] = jnp.zeros_like(acc_sc)

    q = q_ref[0]            # [tq, E] bf16 (scale pre-folded)
    k = k_ref[0]            # [tk, E] bf16
    v = v_ref[0]            # [tk, E] bf16
    bias = bias_ref[0]      # [1, tk] f32
    E = q.shape[-1]
    dh = E // nhead

    for h in range(nhead):
        sl = slice(h * dh, (h + 1) * dh)
        s = jax.lax.dot_general(q[:, sl], k[:, sl], (((1,), (1,)), ((), ())),
                                preferred_element_type=jnp.float32)     # [tq, tk]
        s = s + bias
        m_prev = m_sc[h]                                                # [tq, 1]
        m_new = jnp.maximum(m_prev, jnp.max(s, axis=-1, keepdims=True))
        alpha = jnp.exp(m_prev - m_new)
        p = jnp.exp(s - m_new)
        l_sc[h] = alpha * l_sc[h] + jnp.sum(p, axis=-1, keepdims=True)
        m_sc[h] = m_new
        acc_sc[h] = alpha * acc_sc[h] + jnp.dot(p.astype(_MM_DTYPE), v[:, sl],
                                                preferred_element_type=jnp.float32)

    @pl.when(ki == pl.num_programs(2) - 1)
    def _():
        outs = [acc_sc[h] * (1.0 / l_sc[h]) for h in range(nhead)]      # exact normalization
        attn = jnp.concatenate(outs, axis=-1)                           # [tq, E] f32
        y = res_ref[0] + _mm(attn, wo_ref[...]) + bo_ref[...]
        o_ref[0] = _layernorm(y, g_ref[...], beta_ref[...])


# ----------------------------- kernel wrappers ---------------------------------

def _row_tiled_call(kernel, row_inputs, const_inputs, out_dims,
                    out_dtypes=None, tile_cap=_ROW_TILE):
    """Run `kernel` tiled over the row (M) dimension of `row_inputs`.

    row_inputs: list of [M, K_i] f32 arrays tiled over rows.
    const_inputs: list of 2-D arrays (weights/biases) kept whole & VMEM-resident.
    out_dims: list of output channel counts; outputs are [M, d] with dtype out_dtypes[i].
    """
    M = row_inputs[0].shape[0]
    tile, Mp = _pick_tile(M, tile_cap)
    if Mp != M:
        # TODO(synk): mask the tail in-kernel instead of this pad/slice round-trip.
        row_inputs = [jnp.pad(a, ((0, Mp - M), (0, 0))) for a in row_inputs]
    if out_dtypes is None:
        out_dtypes = [jnp.float32] * len(out_dims)

    in_specs = [pl.BlockSpec((tile, a.shape[1]), lambda i: (i, 0)) for a in row_inputs]
    in_specs += [pl.BlockSpec(c.shape, lambda i: (0, 0)) for c in const_inputs]

    multi = len(out_dims) > 1
    out_shape = tuple(jax.ShapeDtypeStruct((Mp, d), dt)
                      for d, dt in zip(out_dims, out_dtypes))
    out_specs = tuple(pl.BlockSpec((tile, d), lambda i: (i, 0)) for d in out_dims)
    if not multi:
        out_shape, out_specs = out_shape[0], out_specs[0]

    outs = pl.pallas_call(
        kernel,
        grid=(Mp // tile,),
        in_specs=in_specs,
        out_specs=out_specs,
        out_shape=out_shape,
        compiler_params=pltpu.CompilerParams(
            dimension_semantics=("parallel",),
            vmem_limit_bytes=_VMEM_LIMIT),
    )(*row_inputs, *const_inputs)

    if not multi:
        outs = (outs,)
    if Mp != M:
        outs = tuple(o[:M] for o in outs)
    return outs if multi else outs[0]


def mha_out_res_ln(q, k, v, bias, residual, w_o, b_o, gamma, beta, nhead):
    """Fused MHA + out-projection + residual + LayerNorm.

    q/k/v: bf16 [B, L, E]; bias: f32 [B, 1, Lk]; residual: f32 [B, Lq, E].
    Returns f32 [B, Lq, E] = LayerNorm(residual + OutProj(MHA(q, k, v))).
    """
    B, Lq, E = q.shape
    Lk = k.shape[1]
    dh = E // nhead

    tq, Lqp = _pick_tile(Lq, _TQ_TILE)
    tk, Lkp = _pick_tile(Lk, _TK_TILE)

    if Lqp != Lq:
        q = jnp.pad(q, ((0, 0), (0, Lqp - Lq), (0, 0)))
        residual = jnp.pad(residual, ((0, 0), (0, Lqp - Lq), (0, 0)))
    if Lkp != Lk:
        k = jnp.pad(k, ((0, 0), (0, Lkp - Lk), (0, 0)))
        v = jnp.pad(v, ((0, 0), (0, Lkp - Lk), (0, 0)))
        bias = jnp.pad(bias, ((0, 0), (0, 0), (0, Lkp - Lk)), constant_values=-1e9)

    single_k_tile = (Lkp == tk)

    if single_k_tile:
        # Fast path: whole key axis in one tile -> no online softmax, no ki grid axis.
        grid = (B, Lqp // tq)
        qi_map = lambda b, qi: (b, qi, 0)
        kv_map = lambda b, qi: (b, 0, 0)
        bias_map = lambda b, qi: (b, 0, 0)
        w_map = lambda b, qi: (0, 0)
        kernel = functools.partial(_mha_small_fused_kernel, nhead=nhead)
        scratch = []
        dim_sem = ("parallel", "parallel")
    else:
        grid = (B, Lqp // tq, Lkp // tk)          # reduction axis (ki) last
        qi_map = lambda b, qi, ki: (b, qi, 0)
        kv_map = lambda b, qi, ki: (b, ki, 0)
        bias_map = lambda b, qi, ki: (b, 0, ki)
        w_map = lambda b, qi, ki: (0, 0)
        kernel = functools.partial(_flash_mha_fused_kernel, nhead=nhead)
        scratch = [pltpu.VMEM((nhead, tq, 1), jnp.float32),    # running max (per head)
                   pltpu.VMEM((nhead, tq, 1), jnp.float32),    # running sum (per head)
                   pltpu.VMEM((nhead, tq, dh), jnp.float32)]   # per-head accumulator
        dim_sem = ("parallel", "parallel", "arbitrary")

    out = pl.pallas_call(
        kernel,
        grid=grid,
        in_specs=[
            pl.BlockSpec((1, tq, E), qi_map),        # q (bf16)
            pl.BlockSpec((1, tk, E), kv_map),        # k (bf16)
            pl.BlockSpec((1, tk, E), kv_map),        # v (bf16)
            pl.BlockSpec((1, 1, tk), bias_map),      # key-padding bias (f32)
            pl.BlockSpec((1, tq, E), qi_map),        # residual (f32)
            pl.BlockSpec(w_o.shape, w_map),          # out-proj weight (bf16, VMEM-resident)
            pl.BlockSpec(b_o.shape, w_map),
            pl.BlockSpec(gamma.shape, w_map),
            pl.BlockSpec(beta.shape, w_map),
        ],
        out_specs=pl.BlockSpec((1, tq, E), qi_map),
        out_shape=jax.ShapeDtypeStruct((B, Lqp, E), jnp.float32),
        scratch_shapes=scratch,
        compiler_params=pltpu.CompilerParams(
            dimension_semantics=dim_sem,
            vmem_limit_bytes=_VMEM_LIMIT),
    )(q, k, v, bias, residual, w_o, b_o, gamma, beta)

    if Lqp != Lq:
        out = out[:, :Lq]
    return out


def _attn_bias(key_padding_mask, B, Lk):
    if key_padding_mask is None:
        return jnp.zeros((B, 1, Lk), jnp.float32)
    return jnp.where(key_padding_mask, -1e9, 0.0).astype(jnp.float32).reshape(B, 1, Lk)


# ----------------------------- transformer pieces ---------------------------------

def self_attn_res_ln(x, pos, p_attn, gamma, beta, nhead, key_padding_mask=None):
    """LayerNorm(x + OutProj(MHA(q=k=x+pos, v=x))).  x, pos: [B, L, E]."""
    B, L, E = x.shape
    x2 = x.reshape(B * L, E)
    pos2 = pos.reshape(B * L, E)
    q2, k2, v2 = _row_tiled_call(
        _qkv_self_kernel, [x2, pos2],
        [p_attn['w_qk'], p_attn['b_qk'], p_attn['w_v'], p_attn['b_v']],
        [E, E, E], out_dtypes=[_MM_DTYPE] * 3)
    bias = _attn_bias(key_padding_mask, B, L)
    return mha_out_res_ln(q2.reshape(B, L, E), k2.reshape(B, L, E), v2.reshape(B, L, E),
                          bias, x, p_attn['w_o'], p_attn['b_o'], gamma, beta, nhead)


def cross_attn_res_ln(x, query_pos, mem, mem_pos, p_attn, gamma, beta, nhead,
                      key_padding_mask=None):
    """LayerNorm(x + OutProj(MHA(q=x+qpos, k=mem+pos, v=mem)))."""
    B, Lq, E = x.shape
    Lk = mem.shape[1]
    x2 = x.reshape(B * Lq, E)
    qp2 = query_pos.reshape(B * Lq, E)
    q2 = _row_tiled_call(_q_proj_kernel, [x2, qp2],
                         [p_attn['w_q'], p_attn['b_q']], [E], out_dtypes=[_MM_DTYPE])
    m2 = mem.reshape(B * Lk, E)
    mp2 = mem_pos.reshape(B * Lk, E)
    k2, v2 = _row_tiled_call(
        _kv_proj_kernel, [m2, mp2],
        [p_attn['w_k'], p_attn['b_k'], p_attn['w_v'], p_attn['b_v']],
        [E, E], out_dtypes=[_MM_DTYPE] * 2)
    bias = _attn_bias(key_padding_mask, B, Lk)
    return mha_out_res_ln(q2.reshape(B, Lq, E), k2.reshape(B, Lk, E), v2.reshape(B, Lk, E),
                          bias, x, p_attn['w_o'], p_attn['b_o'], gamma, beta, nhead)


def ffn_res_ln(x, p, gamma, beta):
    B, L, E = x.shape
    out = _row_tiled_call(
        _ffn_res_ln_kernel, [x.reshape(B * L, E)],
        [p['w1'], p['b1'], p['w2'], p['b2'], gamma, beta], [E],
        tile_cap=_FFN_ROW_TILE)
    return out.reshape(B, L, E)


def layer_norm(x, gamma, beta):
    B, L, E = x.shape
    out = _row_tiled_call(_ln_kernel, [x.reshape(B * L, E)], [gamma, beta], [E])
    return out.reshape(B, L, E)


def encoder_layer_forward(p, src, mask, pos, nhead):
    # forward_post (normalize_before=False)
    src = self_attn_res_ln(src, pos, p['self_attn'], p['norm1_w'], p['norm1_b'],
                           nhead, key_padding_mask=mask)
    src = ffn_res_ln(src, p, p['norm2_w'], p['norm2_b'])
    return src


def encoder_forward(p, src, mask, pos, nhead):
    out = src
    for lp in p['layers']:
        out = encoder_layer_forward(lp, out, mask, pos, nhead)
    return out   # encoder norm is None (normalize_before=False)


def decoder_layer_forward(p, tgt, memory, mem_mask, pos, query_pos, nhead):
    # forward_post (normalize_before=False)
    tgt = self_attn_res_ln(tgt, query_pos, p['self_attn'],
                           p['norm1_w'], p['norm1_b'], nhead, key_padding_mask=None)
    tgt = cross_attn_res_ln(tgt, query_pos, memory, pos, p['cross_attn'],
                            p['norm2_w'], p['norm2_b'], nhead,
                            key_padding_mask=mem_mask)
    tgt = ffn_res_ln(tgt, p, p['norm3_w'], p['norm3_b'])
    return tgt


def decoder_forward(p, tgt, memory, mem_mask, pos, query_pos, nhead):
    # return_intermediate=True, final norm is shared -> stack LN(output) per layer.
    out = tgt
    inter = []
    for lp in p['layers']:
        out = decoder_layer_forward(lp, out, memory, mem_mask, pos, query_pos, nhead)
        inter.append(layer_norm(out, p['norm_w'], p['norm_b']))
    return jnp.stack(inter)   # [num_layers, B, L, E]


def sep_transformer_forward(params, src, mask, query_embed, pos_embed, nhead):
    bs, c, h, w = src.shape
    hw = h * w
    # Convert NCHW -> batch-major [B, HW, C] once at the boundary.
    src_f = src.reshape(bs, c, hw).transpose(0, 2, 1)
    pos_f = pos_embed.reshape(bs, c, hw).transpose(0, 2, 1)
    mask_f = mask.reshape(bs, hw)
    nq = query_embed.shape[0]
    ho_query = jnp.broadcast_to(query_embed[None, :, :], (bs, nq, c))

    memory = encoder_forward(params['encoder'], src_f, mask_f, pos_f, nhead)  # [B, HW, C]

    ho_tgt = jnp.zeros_like(ho_query)
    ho_out = decoder_forward(params['ho_decoder'], ho_tgt, memory, mask_f, pos_f,
                             ho_query, nhead)                 # [L, B, nq, C]
    pair = nq // 2
    h_out = ho_out[:, :, :pair]                               # [L, B, pair, C]
    obj_out = ho_out[:, :, pair:]                             # [L, B, pair, C]

    verb_query = h_out[-1] + obj_out[-1]                      # [B, pair, C]
    verb_tgt = jnp.zeros_like(verb_query)
    verb_out = decoder_forward(params['verb_decoder'], verb_tgt, memory, mask_f, pos_f,
                               verb_query, nhead)             # [L, B, pair, C]

    mem_out = memory.transpose(0, 2, 1).reshape(bs, c, h, w)  # NCHW
    return h_out, obj_out, verb_out, mem_out


# ----------------------------- parameter init ---------------------------------

def _xavier_uniform(key, shape):
    fan_out, fan_in = shape[0], shape[1]
    limit = math.sqrt(6.0 / (fan_in + fan_out))
    return jax.random.uniform(key, shape, jnp.float32, -limit, limit)


def make_mha_params(key, d_model, nhead, *, split_qk):
    """Pre-split, pre-transposed (and bf16-cast) nn.MultiheadAttention parameters.

    The 1/sqrt(dh) attention scale is folded into the Q projection (weights + bias), matching
    PyTorch's `q = linear(query) * scaling` while keeping it free inside the attention kernel.
    """
    E = d_model
    dh = E // nhead
    scale = 1.0 / math.sqrt(dh)
    k1, k2 = jax.random.split(key)
    in_w = _xavier_uniform(k1, (3 * E, E))        # torch in_proj_weight layout [3E, E]
    in_b = jnp.zeros((3 * E,), jnp.float32)
    out_w = _xavier_uniform(k2, (E, E))

    wq_t = in_w[:E].T * scale                     # [E, E], scale folded
    bq = in_b[:E] * scale
    wk_t = in_w[E:2 * E].T
    bk = in_b[E:2 * E]
    wv_t = in_w[2 * E:].T
    bv = in_b[2 * E:]

    p = {'w_o': out_w.T.astype(_MM_DTYPE), 'b_o': jnp.zeros((1, E), jnp.float32)}
    if split_qk:    # self-attention: q/k share the (x+pos) input -> fused [E, 2E] weight
        p['w_qk'] = jnp.concatenate([wq_t, wk_t], axis=1).astype(_MM_DTYPE)
        p['b_qk'] = jnp.concatenate([bq, bk]).reshape(1, 2 * E)
        p['w_v'] = wv_t.astype(_MM_DTYPE)
        p['b_v'] = bv.reshape(1, E)
    else:           # cross-attention: q from tgt, k/v from memory
        p['w_q'] = wq_t.astype(_MM_DTYPE)
        p['b_q'] = bq.reshape(1, E)
        p['w_k'] = wk_t.astype(_MM_DTYPE)
        p['b_k'] = bk.reshape(1, E)
        p['w_v'] = wv_t.astype(_MM_DTYPE)
        p['b_v'] = bv.reshape(1, E)
    return p


def _ln_params(d_model):
    return jnp.ones((1, d_model), jnp.float32), jnp.zeros((1, d_model), jnp.float32)


def make_encoder_layer(key, d_model, nhead, dff):
    k1, k2, k3 = jax.random.split(key, 3)
    n1w, n1b = _ln_params(d_model)
    n2w, n2b = _ln_params(d_model)
    return {
        'self_attn': make_mha_params(k1, d_model, nhead, split_qk=True),
        'w1': _xavier_uniform(k2, (dff, d_model)).T.astype(_MM_DTYPE),   # [E, F]
        'b1': jnp.zeros((1, dff), jnp.float32),
        'w2': _xavier_uniform(k3, (d_model, dff)).T.astype(_MM_DTYPE),   # [F, E]
        'b2': jnp.zeros((1, d_model), jnp.float32),
        'norm1_w': n1w, 'norm1_b': n1b,
        'norm2_w': n2w, 'norm2_b': n2b,
    }


def make_decoder_layer(key, d_model, nhead, dff):
    k1, k2, k3, k4 = jax.random.split(key, 4)
    n1w, n1b = _ln_params(d_model)
    n2w, n2b = _ln_params(d_model)
    n3w, n3b = _ln_params(d_model)
    return {
        'self_attn': make_mha_params(k1, d_model, nhead, split_qk=True),
        'cross_attn': make_mha_params(k2, d_model, nhead, split_qk=False),
        'w1': _xavier_uniform(k3, (dff, d_model)).T.astype(_MM_DTYPE),
        'b1': jnp.zeros((1, dff), jnp.float32),
        'w2': _xavier_uniform(k4, (d_model, dff)).T.astype(_MM_DTYPE),
        'b2': jnp.zeros((1, d_model), jnp.float32),
        'norm1_w': n1w, 'norm1_b': n1b,
        'norm2_w': n2w, 'norm2_b': n2b,
        'norm3_w': n3w, 'norm3_b': n3b,
    }


def make_params(key, d_model, nhead, dff, num_enc, num_dec):
    keys = jax.random.split(key, 3)
    enc_keys = jax.random.split(keys[0], num_enc)
    ho_keys = jax.random.split(keys[1], num_dec)
    verb_keys = jax.random.split(keys[2], num_dec)
    ho_nw, ho_nb = _ln_params(d_model)
    vb_nw, vb_nb = _ln_params(d_model)
    return {
        'encoder': {'layers': [make_encoder_layer(k, d_model, nhead, dff) for k in enc_keys]},
        'ho_decoder': {
            'layers': [make_decoder_layer(k, d_model, nhead, dff) for k in ho_keys],
            'norm_w': ho_nw, 'norm_b': ho_nb,
        },
        'verb_decoder': {
            'layers': [make_decoder_layer(k, d_model, nhead, dff) for k in verb_keys],
            'norm_w': vb_nw, 'norm_b': vb_nb,
        },
    }


# ----------------------------- main ---------------------------------

if __name__ == "__main__":
    d_model = 32
    nhead = 4
    num_enc = 2
    num_dec = 2
    dff = 64
    bs, h, w = 2, 4, 4
    num_queries = 8   # even -> ho_pair_num = 4

    root = jax.random.PRNGKey(0)
    k_param, k_src, k_q, k_pos = jax.random.split(root, 4)

    params = make_params(k_param, d_model, nhead, dff, num_enc, num_dec)

    src = jax.random.normal(k_src, (bs, d_model, h, w), jnp.float32)
    pos_embed = jax.random.normal(k_pos, (bs, d_model, h, w), jnp.float32)
    query_embed = jax.random.normal(k_q, (num_queries, d_model), jnp.float32)
    # key_padding_mask: True = padded position (mask out the last column of the feature map)
    mask = jnp.zeros((bs, h, w), jnp.bool_).at[:, :, -1].set(True)

    fwd = jax.jit(functools.partial(sep_transformer_forward, nhead=nhead))
    h_out, obj_out, verb_out, mem_out = fwd(params, src, mask, query_embed, pos_embed)

    for t in (h_out, obj_out, verb_out, mem_out):
        jax.block_until_ready(t)

    assert h_out.shape == (num_dec, bs, num_queries // 2, d_model)
    assert obj_out.shape == (num_dec, bs, num_queries // 2, d_model)
    assert verb_out.shape == (num_dec, bs, num_queries // 2, d_model)
    assert mem_out.shape == (bs, d_model, h, w)
    print("KERNEL_OK")
</pallas_src>

<mosaic_0001>
module attributes {stable_mosaic.version = 11 : i64} {
  func.func @_qkv_self_kernel(%arg0: i32, %arg1: memref<32x32xf32, #tpu.memory_space<vmem>>, %arg2: memref<32x32xf32, #tpu.memory_space<vmem>>, %arg3: memref<32x64xbf16, #tpu.memory_space<vmem>>, %arg4: memref<1x64xf32, #tpu.memory_space<vmem>>, %arg5: memref<32x32xbf16, #tpu.memory_space<vmem>>, %arg6: memref<1x32xf32, #tpu.memory_space<vmem>>, %arg7: memref<32x32xbf16, #tpu.memory_space<vmem>>, %arg8: memref<32x32xbf16, #tpu.memory_space<vmem>>, %arg9: memref<32x32xbf16, #tpu.memory_space<vmem>>) attributes {dimension_semantics = [#tpu.dimension_semantics<parallel>], iteration_bounds = array<i64: 1>, scalar_prefetch = 0 : i64, scratch_operands = 0 : i64, tpu.core_type = #tpu.core_type<tc>, window_params = [{transform_indices = @transform_0, window_bounds = array<i64: 32, 32>}, {transform_indices = @transform_1, window_bounds = array<i64: 32, 32>}, {pipeline_mode = #tpu.pipeline_mode<synchronous>, transform_indices = @transform_2, window_bounds = array<i64: 32, 64>}, {pipeline_mode = #tpu.pipeline_mode<synchronous>, transform_indices = @transform_3, window_bounds = array<i64: 1, 64>}, {pipeline_mode = #tpu.pipeline_mode<synchronous>, transform_indices = @transform_4, window_bounds = array<i64: 32, 32>}, {pipeline_mode = #tpu.pipeline_mode<synchronous>, transform_indices = @transform_5, window_bounds = array<i64: 1, 32>}, {transform_indices = @transform_6, window_bounds = array<i64: 32, 32>}, {transform_indices = @transform_7, window_bounds = array<i64: 32, 32>}, {transform_indices = @transform_8, window_bounds = array<i64: 32, 32>}]} {
    %c0 = arith.constant 0 : index
    %c0_0 = arith.constant 0 : index
    %0 = vector.load %arg1[%c0, %c0_0] : memref<32x32xf32, #tpu.memory_space<vmem>>, vector<32x32xf32>
    %c0_1 = arith.constant 0 : index
    %c0_2 = arith.constant 0 : index
    %1 = vector.load %arg2[%c0_1, %c0_2] : memref<32x32xf32, #tpu.memory_space<vmem>>, vector<32x32xf32>
    %2 = arith.addf %0, %1 : vector<32x32xf32>
    %c0_3 = arith.constant 0 : index
    %c0_4 = arith.constant 0 : index
    %3 = vector.load %arg3[%c0_3, %c0_4] : memref<32x64xbf16, #tpu.memory_space<vmem>>, vector<32x64xbf16>
    %4 = arith.truncf %2 : vector<32x32xf32> to vector<32x32xbf16>
    %cst = arith.constant dense<0.000000e+00> : vector<32x64xf32>
    %5 = tpu.matmul %4, %3, %cst {dimension_numbers = #tpu.dot_dimension_numbers<[1], [0], [0], [1], [0, 0, 1, 1], [], []>} : vector<32x32xbf16>, vector<32x64xbf16>, vector<32x64xf32> -> vector<32x64xf32>
    %c0_5 = arith.constant 0 : index
    %c0_6 = arith.constant 0 : index
    %6 = vector.load %arg4[%c0_5, %c0_6] : memref<1x64xf32, #tpu.memory_space<vmem>>, vector<1x64xf32>
    %7 = vector.broadcast %6 : vector<1x64xf32> to vector<32x64xf32>
    %8 = arith.addf %5, %7 : vector<32x64xf32>
    %9 = vector.extract_strided_slice %8 {offsets = [0, 0], sizes = [32, 32], strides = [1, 1]} : vector<32x64xf32> to vector<32x32xf32>
    %10 = arith.truncf %9 : vector<32x32xf32> to vector<32x32xbf16>
    %c0_7 = arith.constant 0 : index
    %c0_8 = arith.constant 0 : index
    %11 = vector.load %arg7[%c0_7, %c0_8] : memref<32x32xbf16, #tpu.memory_space<vmem>>, vector<32x32xbf16>
    tpu.vector_store %arg7[%c0_7, %c0_8], %10 {strides = array<i32>} : memref<32x32xbf16, #tpu.memory_space<vmem>>, vector<32x32xbf16>,
    %12 = vector.extract_strided_slice %8 {offsets = [0, 32], sizes = [32, 32], strides = [1, 1]} : vector<32x64xf32> to vector<32x32xf32>
    %13 = arith.truncf %12 : vector<32x32xf32> to vector<32x32xbf16>
    %c0_9 = arith.constant 0 : index
    %c0_10 = arith.constant 0 : index
    %14 = vector.load %arg8[%c0_9, %c0_10] : memref<32x32xbf16, #tpu.memory_space<vmem>>, vector<32x32xbf16>
    tpu.vector_store %arg8[%c0_9, %c0_10], %13 {strides = array<i32>} : memref<32x32xbf16, #tpu.memory_space<vmem>>, vector<32x32xbf16>,
    %c0_11 = arith.constant 0 : index
    %c0_12 = arith.constant 0 : index
    %15 = vector.load %arg5[%c0_11, %c0_12] : memref<32x32xbf16, #tpu.memory_space<vmem>>, vector<32x32xbf16>
    %16 = arith.truncf %0 : vector<32x32xf32> to vector<32x32xbf16>
    %cst_13 = arith.constant dense<0.000000e+00> : vector<32x32xf32>
    %17 = tpu.matmul %16, %15, %cst_13 {dimension_numbers = #tpu.dot_dimension_numbers<[1], [0], [0], [1], [0, 0, 1, 1], [], []>} : vector<32x32xbf16>, vector<32x32xbf16>, vector<32x32xf32> -> vector<32x32xf32>
    %c0_14 = arith.constant 0 : index
    %c0_15 = arith.constant 0 : index
    %18 = vector.load %arg6[%c0_14, %c0_15] : memref<1x32xf32, #tpu.memory_space<vmem>>, vector<1x32xf32>
    %19 = vector.broadcast %18 : vector<1x32xf32> to vector<32x32xf32>
    %20 = arith.addf %17, %19 : vector<32x32xf32>
    %21 = arith.truncf %20 : vector<32x32xf32> to vector<32x32xbf16>
    %c0_16 = arith.constant 0 : index
    %c0_17 = arith.constant 0 : index
    %22 = vector.load %arg9[%c0_16, %c0_17] : memref<32x32xbf16, #tpu.memory_space<vmem>>, vector<32x32xbf16>
    tpu.vector_store %arg9[%c0_16, %c0_17], %21 {strides = array<i32>} : memref<32x32xbf16, #tpu.memory_space<vmem>>, vector<32x32xbf16>,
    return
  }
  func.func @transform_0(%arg0: i32) -> (i32, i32) {
    %c0_i32 = arith.constant 0 : i32
    %c0_i32_0 = arith.constant 0 : i32
    return %arg0, %c0_i32 : i32, i32
  }
  func.func @transform_1(%arg0: i32) -> (i32, i32) {
    %c0_i32 = arith.constant 0 : i32
    %c0_i32_0 = arith.constant 0 : i32
    return %arg0, %c0_i32 : i32, i32
  }
  func.func @transform_2(%arg0: i32) -> (i32, i32) {
    %c0_i32 = arith.constant 0 : i32
    %c0_i32_0 = arith.constant 0 : i32
    %c0_i32_1 = arith.constant 0 : i32
    return %c0_i32, %c0_i32_0 : i32, i32
  }
  func.func @transform_3(%arg0: i32) -> (i32, i32) {
    %c0_i32 = arith.constant 0 : i32
    %c0_i32_0 = arith.constant 0 : i32
    %c0_i32_1 = arith.constant 0 : i32
    return %c0_i32, %c0_i32_0 : i32, i32
  }
  func.func @transform_4(%arg0: i32) -> (i32, i32) {
    %c0_i32 = arith.constant 0 : i32
    %c0_i32_0 = arith.constant 0 : i32
    %c0_i32_1 = arith.constant 0 : i32
    return %c0_i32, %c0_i32_0 : i32, i32
  }
  func.func @transform_5(%arg0: i32) -> (i32, i32) {
    %c0_i32 = arith.constant 0 : i32
    %c0_i32_0 = arith.constant 0 : i32
    %c0_i32_1 = arith.constant 0 : i32
    return %c0_i32, %c0_i32_0 : i32, i32
  }
  func.func @transform_6(%arg0: i32) -> (i32, i32) {
    %c0_i32 = arith.constant 0 : i32
    %c0_i32_0 = arith.constant 0 : i32
    return %arg0, %c0_i32 : i32, i32
  }
  func.func @transform_7(%arg0: i32) -> (i32, i32) {
    %c0_i32 = arith.constant 0 : i32
    %c0_i32_0 = arith.constant 0 : i32
    return %arg0, %c0_i32 : i32, i32
  }
  func.func @transform_8(%arg0: i32) -> (i32, i32) {
    %c0_i32 = arith.constant 0 : i32
    %c0_i32_0 = arith.constant 0 : i32
    return %arg0, %c0_i32 : i32, i32
  }
}

module attributes {stable_mosaic.version = 11 : i64} {
  func.func @_mha_small_fused_kernel(%arg0: i32, %arg1: i32, %arg2: memref<1x16x32xbf16, #tpu.memory_space<vmem>>, %arg3: memref<1x16x32xbf16, #tpu.memory_space<vmem>>, %arg4: memref<1x16x32xbf16, #tpu.memory_space<vmem>>, %arg5: memref<1x1x16xf32, #tpu.memory_space<vmem>>, %arg6: memref<1x16x32xf32, #tpu.memory_space<vmem>>, %arg7: memref<32x32xbf16, #tpu.memory_space<vmem>>, %arg8: memref<1x32xf32, #tpu.memory_space<vmem>>, %arg9: memref<1x32xf32, #tpu.memory_space<vmem>>, %arg10: memref<1x32xf32, #tpu.memory_space<vmem>>, %arg11: memref<1x16x32xf32, #tpu.memory_space<vmem>>) attributes {dimension_semantics = [#tpu.dimension_semantics<parallel>, #tpu.dimension_semantics<parallel>], iteration_bounds = array<i64: 2, 1>, scalar_prefetch = 0 : i64, scratch_operands = 0 : i64, tpu.core_type = #tpu.core_type<tc>, window_params = [{transform_indices = @transform_0, window_bounds = array<i64: 1, 16, 32>}, {transform_indices = @transform_1, window_bounds = array<i64: 1, 16, 32>}, {transform_indices = @transform_2, window_bounds = array<i64: 1, 16, 32>}, {transform_indices = @transform_3, window_bounds = array<i64: 1, 1, 16>}, {transform_indices = @transform_4, window_bounds = array<i64: 1, 16, 32>}, {pipeline_mode = #tpu.pipeline_mode<synchronous>, transform_indices = @transform_5, window_bounds = array<i64: 32, 32>}, {pipeline_mode = #tpu.pipeline_mode<synchronous>, transform_indices = @transform_6, window_bounds = array<i64: 1, 32>}, {pipeline_mode = #tpu.pipeline_mode<synchronous>, transform_indices = @transform_7, window_bounds = array<i64: 1, 32>}, {pipeline_mode = #tpu.pipeline_mode<synchronous>, transform_indices = @transform_8, window_bounds = array<i64: 1, 32>}, {transform_indices = @transform_9, window_bounds = array<i64: 1, 16, 32>}]} {
    %c0 = arith.constant 0 : index
    %c0_0 = arith.constant 0 : index
    %c0_1 = arith.constant 0 : index
    %0 = vector.load %arg2[%c0, %c0_0, %c0_1] : memref<1x16x32xbf16, #tpu.memory_space<vmem>>, vector<1x16x32xbf16>
    %1 = vector.shape_cast %0 : vector<1x16x32xbf16> to vector<16x32xbf16>
    %c0_2 = arith.constant 0 : index
    %c0_3 = arith.constant 0 : index
    %c0_4 = arith.constant 0 : index
    %2 = vector.load %arg3[%c0_2, %c0_3, %c0_4] : memref<1x16x32xbf16, #tpu.memory_space<vmem>>, vector<1x16x32xbf16>
    %3 = vector.shape_cast %2 : vector<1x16x32xbf16> to vector<16x32xbf16>
    %c0_5 = arith.constant 0 : index
    %c0_6 = arith.constant 0 : index
    %c0_7 = arith.constant 0 : index
    %4 = vector.load %arg4[%c0_5, %c0_6, %c0_7] : memref<1x16x32xbf16, #tpu.memory_space<vmem>>, vector<1x16x32xbf16>
    %5 = vector.shape_cast %4 : vector<1x16x32xbf16> to vector<16x32xbf16>
    %c0_8 = arith.constant 0 : index
    %c0_9 = arith.constant 0 : index
    %c0_10 = arith.constant 0 : index
    %6 = vector.load %arg5[%c0_8, %c0_9, %c0_10] : memref<1x1x16xf32, #tpu.memory_space<vmem>>, vector<1x1x16xf32>
    %7 = vector.shape_cast %6 : vector<1x1x16xf32> to vector<1x16xf32>
    %8 = vector.extract_strided_slice %1 {offsets = [0, 0], sizes = [16, 8], strides = [1, 1]} : vector<16x32xbf16> to vector<16x8xbf16>
    %9 = vector.extract_strided_slice %3 {offsets = [0, 0], sizes = [16, 8], strides = [1, 1]} : vector<16x32xbf16> to vector<16x8xbf16>
    %cst = arith.constant dense<0.000000e+00> : vector<16x16xf32>
    %10 = tpu.matmul %8, %9, %cst {dimension_numbers = #tpu.dot_dimension_numbers<[1], [1], [0], [0], [0, 0, 1, 0], [], []>} : vector<16x8xbf16>, vector<16x8xbf16>, vector<16x16xf32> -> vector<16x16xf32>
    %11 = vector.broadcast %7 : vector<1x16xf32> to vector<16x16xf32>
    %12 = arith.addf %10, %11 : vector<16x16xf32>
    %cst_11 = arith.constant dense<0xFF800000> : vector<16xf32>
    %13 = vector.multi_reduction <maximumf>, %12, %cst_11 [1] : vector<16x16xf32> to vector<16xf32>
    %14 = vector.shape_cast %13 : vector<16xf32> to vector<16x1xf32>
    %15 = vector.broadcast %14 : vector<16x1xf32> to vector<16x16xf32>
    %16 = arith.subf %12, %15 : vector<16x16xf32>
    %17 = math.exp %16 : vector<16x16xf32>
    %cst_12 = arith.constant dense<0.000000e+00> : vector<16xf32>
    %18 = vector.multi_reduction <add>, %17, %cst_12 [1] : vector<16x16xf32> to vector<16xf32>
    %19 = vector.shape_cast %18 : vector<16xf32> to vector<16x1xf32>
    %20 = arith.truncf %17 : vector<16x16xf32> to vector<16x16xbf16>
    %21 = vector.extract_strided_slice %5 {offsets = [0, 0], sizes = [16, 8], strides = [1, 1]} : vector<16x32xbf16> to vector<16x8xbf16>
    %cst_13 = arith.constant dense<0.000000e+00> : vector<16x8xf32>
    %22 = tpu.matmul %20, %21, %cst_13 {dimension_numbers = #tpu.dot_dimension_numbers<[1], [0], [0], [1], [0, 0, 1, 1], [], []>} : vector<16x16xbf16>, vector<16x8xbf16>, vector<16x8xf32> -> vector<16x8xf32>
    %cst_14 = arith.constant 1.000000e+00 : f32
    %23 = vector.broadcast %cst_14 : f32 to vector<16x1xf32>
    %24 = arith.divf %23, %19 : vector<16x1xf32>
    %25 = vector.broadcast %24 : vector<16x1xf32> to vector<16x8xf32>
    %26 = arith.mulf %22, %25 : vector<16x8xf32>
    %27 = vector.extract_strided_slice %1 {offsets = [0, 8], sizes = [16, 8], strides = [1, 1]} : vector<16x32xbf16> to vector<16x8xbf16>
    %28 = vector.extract_strided_slice %3 {offsets = [0, 8], sizes = [16, 8], strides = [1, 1]} : vector<16x32xbf16> to vector<16x8xbf16>
    %cst_15 = arith.constant dense<0.000000e+00> : vector<16x16xf32>
    %29 = tpu.matmul %27, %28, %cst_15 {dimension_numbers = #tpu.dot_dimension_numbers<[1], [1], [0], [0], [0, 0, 1, 0], [], []>} : vector<16x8xbf16>, vector<16x8xbf16>, vector<16x16xf32> -> vector<16x16xf32>
    %30 = vector.broadcast %7 : vector<1x16xf32> to vector<16x16xf32>
    %31 = arith.addf %29, %30 : vector<16x16xf32>
    %cst_16 = arith.constant dense<0xFF800000> : vector<16xf32>
    %32 = vector.multi_reduction <maximumf>, %31, %cst_16 [1] : vector<16x16xf32> to vector<16xf32>
    %33 = vector.shape_cast %32 : vector<16xf32> to vector<16x1xf32>
    %34 = vector.broadcast %33 : vector<16x1xf32> to vector<16x16xf32>
    %35 = arith.subf %31, %34 : vector<16x16xf32>
    %36 = math.exp %35 : vector<16x16xf32>
    %cst_17 = arith.constant dense<0.000000e+00> : vector<16xf32>
    %37 = vector.multi_reduction <add>, %36, %cst_17 [1] : vector<16x16xf32> to vector<16xf32>
    %38 = vector.shape_cast %37 : vector<16xf32> to vector<16x1xf32>
    %39 = arith.truncf %36 : vector<16x16xf32> to vector<16x16xbf16>
    %40 = vector.extract_strided_slice %5 {offsets = [0, 8], sizes = [16, 8], strides = [1, 1]} : vector<16x32xbf16> to vector<16x8xbf16>
    %cst_18 = arith.constant dense<0.000000e+00> : vector<16x8xf32>
    %41 = tpu.matmul %39, %40, %cst_18 {dimension_numbers = #tpu.dot_dimension_numbers<[1], [0], [0], [1], [0, 0, 1, 1], [], []>} : vector<16x16xbf16>, vector<16x8xbf16>, vector<16x8xf32> -> vector<16x8xf32>
    %cst_19 = arith.constant 1.000000e+00 : f32
    %42 = vector.broadcast %cst_19 : f32 to vector<16x1xf32>
    %43 = arith.divf %42, %38 : vector<16x1xf32>
    %44 = vector.broadcast %43 : vector<16x1xf32> to vector<16x8xf32>
    %45 = arith.mulf %41, %44 : vector<16x8xf32>
    %46 = vector.extract_strided_slice %1 {offsets = [0, 16], sizes = [16, 8], strides = [1, 1]} : vector<16x32xbf16> to vector<16x8xbf16>
    %47 = vector.extract_strided_slice %3 {offsets = [0, 16], sizes = [16, 8], strides = [1, 1]} : vector<16x32xbf16> to vector<16x8xbf16>
    %cst_20 = arith.constant dense<0.000000e+00> : vector<16x16xf32>
    %48 = tpu.matmul %46, %47, %cst_20 {dimension_numbers = #tpu.dot_dimension_numbers<[1], [1], [0], [0], [0, 0, 1, 0], [], []>} : vector<16x8xbf16>, vector<16x8xbf16>, vector<16x16xf32> -> vector<16x16xf32>
    %49 = vector.broadcast %7 : vector<1x16xf32> to vector<16x16xf32>
    %50 = arith.addf %48, %49 : vector<16x16xf32>
    %cst_21 = arith.constant dense<0xFF800000> : vector<16xf32>
    %51 = vector.multi_reduction <maximumf>, %50, %cst_21 [1] : vector<16x16xf32> to vector<16xf32>
    %52 = vector.shape_cast %51 : vector<16xf32> to vector<16x1xf32>
    %53 = vector.broadcast %52 : vector<16x1xf32> to vector<16x16xf32>
    %54 = arith.subf %50, %53 : vector<16x16xf32>
    %55 = math.exp %54 : vector<16x16xf32>
    %cst_22 = arith.constant dense<0.000000e+00> : vector<16xf32>
    %56 = vector.multi_reduction <add>, %55, %cst_22 [1] : vector<16x16xf32> to vector<16xf32>
    %57 = vector.shape_cast %56 : vector<16xf32> to vector<16x1xf32>
    %58 = arith.truncf %55 : vector<16x16xf32> to vector<16x16xbf16>
    %59 = vector.extract_strided_slice %5 {offsets = [0, 16], sizes = [16, 8], strides = [1, 1]} : vector<16x32xbf16> to vector<16x8xbf16>
    %cst_23 = arith.constant dense<0.000000e+00> : vector<16x8xf32>
    %60 = tpu.matmul %58, %59, %cst_23 {dimension_numbers = #tpu.dot_dimension_numbers<[1], [0], [0], [1], [0, 0, 1, 1], [], []>} : vector<16x16xbf16>, vector<16x8xbf16>, vector<16x8xf32> -> vector<16x8xf32>
    %cst_24 = arith.constant 1.000000e+00 : f32
    %61 = vector.broadcast %cst_24 : f32 to vector<16x1xf32>
    %62 = arith.divf %61, %57 : vector<16x1xf32>
    %63 = vector.broadcast %62 : vector<16x1xf32> to vector<16x8xf32>
    %64 = arith.mulf %60, %63 : vector<16x8xf32>
    %65 = vector.extract_strided_slice %1 {offsets = [0, 24], sizes = [16, 8], strides = [1, 1]} : vector<16x32xbf16> to vector<16x8xbf16>
    %66 = vector.extract_strided_slice %3 {offsets = [0, 24], sizes = [16, 8], strides = [1, 1]} : vector<16x32xbf16> to vector<16x8xbf16>
    %cst_25 = arith.constant dense<0.000000e+00> : vector<16x16xf32>
    %67 = tpu.matmul %65, %66, %cst_25 {dimension_numbers = #tpu.dot_dimension_numbers<[1], [1], [0], [0], [0, 0, 1, 0], [], []>} : vector<16x8xbf16>, vector<16x8xbf16>, vector<16x16xf32> -> vector<16x16xf32>
    %68 = vector.broadcast %7 : vector<1x16xf32> to vector<16x16xf32>
    %69 = arith.addf %67, %68 : vector<16x16xf32>
    %cst_26 = arith.constant dense<0xFF800000> : vector<16xf32>
    %70 = vector.multi_reduction <maximumf>, %69, %cst_26 [1] : vector<16x16xf32> to vector<16xf32>
    %71 = vector.shape_cast %70 : vector<16xf32> to vector<16x1xf32>
    %72 = vector.broadcast %71 : vector<16x1xf32> to vector<16x16xf32>
    %73 = arith.subf %69, %72 : vector<16x16xf32>
    %74 = math.exp %73 : vector<16x16xf32>
    %cst_27 = arith.constant dense<0.000000e+00> : vector<16xf32>
    %75 = vector.multi_reduction <add>, %74, %cst_27 [1] : vector<16x16xf32> to vector<16xf32>
    %76 = vector.shape_cast %75 : vector<16xf32> to vector<16x1xf32>
    %77 = arith.truncf %74 : vector<16x16xf32> to vector<16x16xbf16>
    %78 = vector.extract_strided_slice %5 {offsets = [0, 24], sizes = [16, 8], strides = [1, 1]} : vector<16x32xbf16> to vector<16x8xbf16>
    %cst_28 = arith.constant dense<0.000000e+00> : vector<16x8xf32>
    %79 = tpu.matmul %77, %78, %cst_28 {dimension_numbers = #tpu.dot_dimension_numbers<[1], [0], [0], [1], [0, 0, 1, 1], [], []>} : vector<16x16xbf16>, vector<16x8xbf16>, vector<16x8xf32> -> vector<16x8xf32>
    %cst_29 = arith.constant 1.000000e+00 : f32
    %80 = vector.broadcast %cst_29 : f32 to vector<16x1xf32>
    %81 = arith.divf %80, %76 : vector<16x1xf32>
    %82 = vector.broadcast %81 : vector<16x1xf32> to vector<16x8xf32>
    %83 = arith.mulf %79, %82 : vector<16x8xf32>
    %84 = tpu.concatenate %26, %45, %64, %83 in 1 : vector<16x8xf32>, vector<16x8xf32>, vector<16x8xf32>, vector<16x8xf32> -> vector<16x32xf32>
    %c0_30 = arith.constant 0 : index
    %c0_31 = arith.constant 0 : index
    %c0_32 = arith.constant 0 : index
    %85 = vector.load %arg6[%c0_30, %c0_31, %c0_32] : memref<1x16x32xf32, #tpu.memory_space<vmem>>, vector<1x16x32xf32>
    %86 = vector.shape_cast %85 : vector<1x16x32xf32> to vector<16x32xf32>
    %c0_33 = arith.constant 0 : index
    %c0_34 = arith.constant 0 : index
    %87 = vector.load %arg7[%c0_33, %c0_34] : memref<32x32xbf16, #tpu.memory_space<vmem>>, vector<32x32xbf16>
    %88 = arith.truncf %84 : vector<16x32xf32> to vector<16x32xbf16>
    %cst_35 = arith.constant dense<0.000000e+00> : vector<16x32xf32>
    %89 = tpu.matmul %88, %87, %cst_35 {dimension_numbers = #tpu.dot_dimension_numbers<[1], [0], [0], [1], [0, 0, 1, 1], [], []>} : vector<16x32xbf16>, vector<32x32xbf16>, vector<16x32xf32> -> vector<16x32xf32>
    %90 = arith.addf %86, %89 : vector<16x32xf32>
    %c0_36 = arith.constant 0 : index
    %c0_37 = arith.constant 0 : index
    %91 = vector.load %arg8[%c0_36, %c0_37] : memref<1x32xf32, #tpu.memory_space<vmem>>, vector<1x32xf32>
    %92 = vector.broadcast %91 : vector<1x32xf32> to vector<16x32xf32>
    %93 = arith.addf %90, %92 : vector<16x32xf32>
    %c0_38 = arith.constant 0 : index
    %c0_39 = arith.constant 0 : index
    %94 = vector.load %arg9[%c0_38, %c0_39] : memref<1x32xf32, #tpu.memory_space<vmem>>, vector<1x32xf32>
    %c0_40 = arith.constant 0 : index
    %c0_41 = arith.constant 0 : index
    %95 = vector.load %arg10[%c0_40, %c0_41] : memref<1x32xf32, #tpu.memory_space<vmem>>, vector<1x32xf32>
    %cst_42 = arith.constant dense<0.000000e+00> : vector<16xf32>
    %96 = vector.multi_reduction <add>, %93, %cst_42 [1] : vector<16x32xf32> to vector<16xf32>
    %97 = vector.shape_cast %96 : vector<16xf32> to vector<16x1xf32>
    %cst_43 = arith.constant 3.200000e+01 : f32
    %98 = vector.broadcast %cst_43 : f32 to vector<16x1xf32>
    %99 = arith.divf %97, %98 : vector<16x1xf32>
    %100 = vector.broadcast %99 : vector<16x1xf32> to vector<16x32xf32>
    %101 = arith.subf %93, %100 : vector<16x32xf32>
    %102 = arith.mulf %101, %101 : vector<16x32xf32>
    %cst_44 = arith.constant dense<0.000000e+00> : vector<16xf32>
    %103 = vector.multi_reduction <add>, %102, %cst_44 [1] : vector<16x32xf32> to vector<16xf32>
    %104 = vector.shape_cast %103 : vector<16xf32> to vector<16x1xf32>
    %cst_45 = arith.constant 3.200000e+01 : f32
    %105 = vector.broadcast %cst_45 : f32 to vector<16x1xf32>
    %106 = arith.divf %104, %105 : vector<16x1xf32>
    %107 = vector.broadcast %99 : vector<16x1xf32> to vector<16x32xf32>
    %108 = arith.subf %93, %107 : vector<16x32xf32>
    %cst_46 = arith.constant 9.99999974E-6 : f32
    %109 = vector.broadcast %cst_46 : f32 to vector<16x1xf32>
    %110 = arith.addf %106, %109 : vector<16x1xf32>
    %111 = math.rsqrt %110 : vector<16x1xf32>
    %112 = vector.broadcast %111 : vector<16x1xf32> to vector<16x32xf32>
    %113 = arith.mulf %108, %112 : vector<16x32xf32>
    %114 = vector.broadcast %94 : vector<1x32xf32> to vector<16x32xf32>
    %115 = arith.mulf %113, %114 : vector<16x32xf32>
    %116 = vector.broadcast %95 : vector<1x32xf32> to vector<16x32xf32>
    %117 = arith.addf %115, %116 : vector<16x32xf32>
    %c0_47 = arith.constant 0 : index
    %c0_48 = arith.constant 0 : index
    %c0_49 = arith.constant 0 : index
    %118 = vector.load %arg11[%c0_47, %c0_48, %c0_49] : memref<1x16x32xf32, #tpu.memory_space<vmem>>, vector<1x16x32xf32>
    %119 = vector.shape_cast %118 : vector<1x16x32xf32> to vector<16x32xf32>
    %120 = vector.shape_cast %117 : vector<16x32xf32> to vector<1x16x32xf32>
    tpu.vector_store %arg11[%c0_47, %c0_48, %c0_49], %120 {strides = array<i32>} : memref<1x16x32xf32, #tpu.memory_space<vmem>>, vector<1x16x32xf32>,
    return
  }
  func.func @transform_0(%arg0: i32, %arg1: i32) -> (i32, i32, i32) {
    %c0_i32 = arith.constant 0 : i32
    %c0_i32_0 = arith.constant 0 : i32
    return %arg0, %arg1, %c0_i32 : i32, i32, i32
  }
  func.func @transform_1(%arg0: i32, %arg1: i32) -> (i32, i32, i32) {
    %c0_i32 = arith.constant 0 : i32
    %c0_i32_0 = arith.constant 0 : i32
    %c0_i32_1 = arith.constant 0 : i32
    return %arg0, %c0_i32, %c0_i32_0 : i32, i32, i32
  }
  func.func @transform_2(%arg0: i32, %arg1: i32) -> (i32, i32, i32) {
    %c0_i32 = arith.constant 0 : i32
    %c0_i32_0 = arith.constant 0 : i32
    %c0_i32_1 = arith.constant 0 : i32
    return %arg0, %c0_i32, %c0_i32_0 : i32, i32, i32
  }
  func.func @transform_3(%arg0: i32, %arg1: i32) -> (i32, i32, i32) {
    %c0_i32 = arith.constant 0 : i32
    %c0_i32_0 = arith.constant 0 : i32
    %c0_i32_1 = arith.constant 0 : i32
    return %arg0, %c0_i32, %c0_i32_0 : i32, i32, i32
  }
  func.func @transform_4(%arg0: i32, %arg1: i32) -> (i32, i32, i32) {
    %c0_i32 = arith.constant 0 : i32
    %c0_i32_0 = arith.constant 0 : i32
    return %arg0, %arg1, %c0_i32 : i32, i32, i32
  }
  func.func @transform_5(%arg0: i32, %arg1: i32) -> (i32, i32) {
    %c0_i32 = arith.constant 0 : i32
    %c0_i32_0 = arith.constant 0 : i32
    %c0_i32_1 = arith.constant 0 : i32
    return %c0_i32, %c0_i32_0 : i32, i32
  }
  func.func @transform_6(%arg0: i32, %arg1: i32) -> (i32, i32) {
    %c0_i32 = arith.constant 0 : i32
    %c0_i32_0 = arith.constant 0 : i32
    %c0_i32_1 = arith.constant 0 : i32
    return %c0_i32, %c0_i32_0 : i32, i32
  }
  func.func @transform_7(%arg0: i32, %arg1: i32) -> (i32, i32) {
    %c0_i32 = arith.constant 0 : i32
    %c0_i32_0 = arith.constant 0 : i32
    %c0_i32_1 = arith.constant 0 : i32
    return %c0_i32, %c0_i32_0 : i32, i32
  }
  func.func @transform_8(%arg0: i32, %arg1: i32) -> (i32, i32) {
    %c0_i32 = arith.constant 0 : i32
    %c0_i32_0 = arith.constant 0 : i32
    %c0_i32_1 = arith.constant 0 : i32
    return %c0_i32, %c0_i32_0 : i32, i32
  }
  func.func @transform_9(%arg0: i32, %arg1: i32) -> (i32, i32, i32) {
    %c0_i32 = arith.constant 0 : i32
    %c0_i32_0 = arith.constant 0 : i32
    return %arg0, %arg1, %c0_i32 : i32, i32, i32
  }
}

module attributes {stable_mosaic.version = 11 : i64} {
  func.func @_ffn_res_ln_kernel(%arg0: i32, %arg1: memref<32x32xf32, #tpu.memory_space<vmem>>, %arg2: memref<32x64xbf16, #tpu.memory_space<vmem>>, %arg3: memref<1x64xf32, #tpu.memory_space<vmem>>, %arg4: memref<64x32xbf16, #tpu.memory_space<vmem>>, %arg5: memref<1x32xf32, #tpu.memory_space<vmem>>, %arg6: memref<1x32xf32, #tpu.memory_space<vmem>>, %arg7: memref<1x32xf32, #tpu.memory_space<vmem>>, %arg8: memref<32x32xf32, #tpu.memory_space<vmem>>) attributes {dimension_semantics = [#tpu.dimension_semantics<parallel>], iteration_bounds = array<i64: 1>, scalar_prefetch = 0 : i64, scratch_operands = 0 : i64, tpu.core_type = #tpu.core_type<tc>, window_params = [{transform_indices = @transform_0, window_bounds = array<i64: 32, 32>}, {pipeline_mode = #tpu.pipeline_mode<synchronous>, transform_indices = @transform_1, window_bounds = array<i64: 32, 64>}, {pipeline_mode = #tpu.pipeline_mode<synchronous>, transform_indices = @transform_2, window_bounds = array<i64: 1, 64>}, {pipeline_mode = #tpu.pipeline_mode<synchronous>, transform_indices = @transform_3, window_bounds = array<i64: 64, 32>}, {pipeline_mode = #tpu.pipeline_mode<synchronous>, transform_indices = @transform_4, window_bounds = array<i64: 1, 32>}, {pipeline_mode = #tpu.pipeline_mode<synchronous>, transform_indices = @transform_5, window_bounds = array<i64: 1, 32>}, {pipeline_mode = #tpu.pipeline_mode<synchronous>, transform_indices = @transform_6, window_bounds = array<i64: 1, 32>}, {transform_indices = @transform_7, window_bounds = array<i64: 32, 32>}]} {
    %c0 = arith.constant 0 : index
    %c0_0 = arith.constant 0 : index
    %0 = vector.load %arg1[%c0, %c0_0] : memref<32x32xf32, #tpu.memory_space<vmem>>, vector<32x32xf32>
    %c0_1 = arith.constant 0 : index
    %c0_2 = arith.constant 0 : index
    %1 = vector.load %arg2[%c0_1, %c0_2] : memref<32x64xbf16, #tpu.memory_space<vmem>>, vector<32x64xbf16>
    %2 = arith.truncf %0 : vector<32x32xf32> to vector<32x32xbf16>
    %cst = arith.constant dense<0.000000e+00> : vector<32x64xf32>
    %3 = tpu.matmul %2, %1, %cst {dimension_numbers = #tpu.dot_dimension_numbers<[1], [0], [0], [1], [0, 0, 1, 1], [], []>} : vector<32x32xbf16>, vector<32x64xbf16>, vector<32x64xf32> -> vector<32x64xf32>
    %c0_3 = arith.constant 0 : index
    %c0_4 = arith.constant 0 : index
    %4 = vector.load %arg3[%c0_3, %c0_4] : memref<1x64xf32, #tpu.memory_space<vmem>>, vector<1x64xf32>
    %5 = vector.broadcast %4 : vector<1x64xf32> to vector<32x64xf32>
    %6 = arith.addf %3, %5 : vector<32x64xf32>
    %cst_5 = arith.constant 0.000000e+00 : f32
    %7 = vector.broadcast %cst_5 : f32 to vector<32x64xf32>
    %8 = arith.maximumf %6, %7 : vector<32x64xf32>
    %c0_6 = arith.constant 0 : index
    %c0_7 = arith.constant 0 : index
    %9 = vector.load %arg4[%c0_6, %c0_7] : memref<64x32xbf16, #tpu.memory_space<vmem>>, vector<64x32xbf16>
    %10 = arith.truncf %8 : vector<32x64xf32> to vector<32x64xbf16>
    %cst_8 = arith.constant dense<0.000000e+00> : vector<32x32xf32>
    %11 = tpu.matmul %10, %9, %cst_8 {dimension_numbers = #tpu.dot_dimension_numbers<[1], [0], [0], [1], [0, 0, 1, 1], [], []>} : vector<32x64xbf16>, vector<64x32xbf16>, vector<32x32xf32> -> vector<32x32xf32>
    %12 = arith.addf %0, %11 : vector<32x32xf32>
    %c0_9 = arith.constant 0 : index
    %c0_10 = arith.constant 0 : index
    %13 = vector.load %arg5[%c0_9, %c0_10] : memref<1x32xf32, #tpu.memory_space<vmem>>, vector<1x32xf32>
    %14 = vector.broadcast %13 : vector<1x32xf32> to vector<32x32xf32>
    %15 = arith.addf %12, %14 : vector<32x32xf32>
    %c0_11 = arith.constant 0 : index
    %c0_12 = arith.constant 0 : index
    %16 = vector.load %arg6[%c0_11, %c0_12] : memref<1x32xf32, #tpu.memory_space<vmem>>, vector<1x32xf32>
    %c0_13 = arith.constant 0 : index
    %c0_14 = arith.constant 0 : index
    %17 = vector.load %arg7[%c0_13, %c0_14] : memref<1x32xf32, #tpu.memory_space<vmem>>, vector<1x32xf32>
    %cst_15 = arith.constant dense<0.000000e+00> : vector<32xf32>
    %18 = vector.multi_reduction <add>, %15, %cst_15 [1] : vector<32x32xf32> to vector<32xf32>
    %19 = vector.shape_cast %18 : vector<32xf32> to vector<32x1xf32>
    %cst_16 = arith.constant 3.200000e+01 : f32
    %20 = vector.broadcast %cst_16 : f32 to vector<32x1xf32>
    %21 = arith.divf %19, %20 : vector<32x1xf32>
    %22 = vector.broadcast %21 : vector<32x1xf32> to vector<32x32xf32>
    %23 = arith.subf %15, %22 : vector<32x32xf32>
    %24 = arith.mulf %23, %23 : vector<32x32xf32>
    %cst_17 = arith.constant dense<0.000000e+00> : vector<32xf32>
    %25 = vector.multi_reduction <add>, %24, %cst_17 [1] : vector<32x32xf32> to vector<32xf32>
    %26 = vector.shape_cast %25 : vector<32xf32> to vector<32x1xf32>
    %cst_18 = arith.constant 3.200000e+01 : f32
    %27 = vector.broadcast %cst_18 : f32 to vector<32x1xf32>
    %28 = arith.divf %26, %27 : vector<32x1xf32>
    %29 = vector.broadcast %21 : vector<32x1xf32> to vector<32x32xf32>
    %30 = arith.subf %15, %29 : vector<32x32xf32>
    %cst_19 = arith.constant 9.99999974E-6 : f32
    %31 = vector.broadcast %cst_19 : f32 to vector<32x1xf32>
    %32 = arith.addf %28, %31 : vector<32x1xf32>
    %33 = math.rsqrt %32 : vector<32x1xf32>
    %34 = vector.broadcast %33 : vector<32x1xf32> to vector<32x32xf32>
    %35 = arith.mulf %30, %34 : vector<32x32xf32>
    %36 = vector.broadcast %16 : vector<1x32xf32> to vector<32x32xf32>
    %37 = arith.mulf %35, %36 : vector<32x32xf32>
    %38 = vector.broadcast %17 : vector<1x32xf32> to vector<32x32xf32>
    %39 = arith.addf %37, %38 : vector<32x32xf32>
    %c0_20 = arith.constant 0 : index
    %c0_21 = arith.constant 0 : index
    %40 = vector.load %arg8[%c0_20, %c0_21] : memref<32x32xf32, #tpu.memory_space<vmem>>, vector<32x32xf32>
    tpu.vector_store %arg8[%c0_20, %c0_21], %39 {strides = array<i32>} : memref<32x32xf32, #tpu.memory_space<vmem>>, vector<32x32xf32>,
    return
  }
  func.func @transform_0(%arg0: i32) -> (i32, i32) {
    %c0_i32 = arith.constant 0 : i32
    %c0_i32_0 = arith.constant 0 : i32
    return %arg0, %c0_i32 : i32, i32
  }
  func.func @transform_1(%arg0: i32) -> (i32, i32) {
    %c0_i32 = arith.constant 0 : i32
    %c0_i32_0 = arith.constant 0 : i32
    %c0_i32_1 = arith.constant 0 : i32
    return %c0_i32, %c0_i32_0 : i32, i32
  }
  func.func @transform_2(%arg0: i32) -> (i32, i32) {
    %c0_i32 = arith.constant 0 : i32
    %c0_i32_0 = arith.constant 0 : i32
    %c0_i32_1 = arith.constant 0 : i32
    return %c0_i32, %c0_i32_0 : i32, i32
  }
  func.func @transform_3(%arg0: i32) -> (i32, i32) {
    %c0_i32 = arith.constant 0 : i32
    %c0_i32_0 = arith.constant 0 : i32
    %c0_i32_1 = arith.constant 0 : i32
    return %c0_i32, %c0_i32_0 : i32, i32
  }
  func.func @transform_4(%arg0: i32) -> (i32, i32) {
    %c0_i32 = arith.constant 0 : i32
    %c0_i32_0 = arith.constant 0 : i32
    %c0_i32_1 = arith.constant 0 : i32
    return %c0_i32, %c0_i32_0 : i32, i32
  }
  func.func @transform_5(%arg0: i32) -> (i32, i32) {
    %c0_i32 = arith.constant 0 : i32
    %c0_i32_0 = arith.constant 0 : i32
    %c0_i32_1 = arith.constant 0 : i32
    return %c0_i32, %c0_i32_0 : i32, i32
  }
  func.func @transform_6(%arg0: i32) -> (i32, i32) {
    %c0_i32 = arith.constant 0 : i32
    %c0_i32_0 = arith.constant 0 : i32
    %c0_i32_1 = arith.constant 0 : i32
    return %c0_i32, %c0_i32_0 : i32, i32
  }
  func.func @transform_7(%arg0: i32) -> (i32, i32) {
    %c0_i32 = arith.constant 0 : i32
    %c0_i32_0 = arith.constant 0 : i32
    return %arg0, %c0_i32 : i32, i32
  }
}

module attributes {stable_mosaic.version = 11 : i64} {
  func.func @_qkv_self_kernel(%arg0: i32, %arg1: memref<32x32xf32, #tpu.memory_space<vmem>>, %arg2: memref<32x32xf32, #tpu.memory_space<vmem>>, %arg3: memref<32x64xbf16, #tpu.memory_space<vmem>>, %arg4: memref<1x64xf32, #tpu.memory_space<vmem>>, %arg5: memref<32x32xbf16, #tpu.memory_space<vmem>>, %arg6: memref<1x32xf32, #tpu.memory_space<vmem>>, %arg7: memref<32x32xbf16, #tpu.memory_space<vmem>>, %arg8: memref<32x32xbf16, #tpu.memory_space<vmem>>, %arg9: memref<32x32xbf16, #tpu.memory_space<vmem>>) attributes {dimension_semantics = [#tpu.dimension_semantics<parallel>], iteration_bounds = array<i64: 1>, scalar_prefetch = 0 : i64, scratch_operands = 0 : i64, tpu.core_type = #tpu.core_type<tc>, window_params = [{transform_indices = @transform_0, window_bounds = array<i64: 32, 32>}, {transform_indices = @transform_1, window_bounds = array<i64: 32, 32>}, {pipeline_mode = #tpu.pipeline_mode<synchronous>, transform_indices = @transform_2, window_bounds = array<i64: 32, 64>}, {pipeline_mode = #tpu.pipeline_mode<synchronous>, transform_indices = @transform_3, window_bounds = array<i64: 1, 64>}, {pipeline_mode = #tpu.pipeline_mode<synchronous>, transform_indices = @transform_4, window_bounds = array<i64: 32, 32>}, {pipeline_mode = #tpu.pipeline_mode<synchronous>, transform_indices = @transform_5, window_bounds = array<i64: 1, 32>}, {transform_indices = @transform_6, window_bounds = array<i64: 32, 32>}, {transform_indices = @transform_7, window_bounds = array<i64: 32, 32>}, {transform_indices = @transform_8, window_bounds = array<i64: 32, 32>}]} {
    %c0 = arith.constant 0 : index
    %c0_0 = arith.constant 0 : index
    %0 = vector.load %arg1[%c0, %c0_0] : memref<32x32xf32, #tpu.memory_space<vmem>>, vector<32x32xf32>
    %c0_1 = arith.constant 0 : index
    %c0_2 = arith.constant 0 : index
    %1 = vector.load %arg2[%c0_1, %c0_2] : memref<32x32xf32, #tpu.memory_space<vmem>>, vector<32x32xf32>
    %2 = arith.addf %0, %1 : vector<32x32xf32>
    %c0_3 = arith.constant 0 : index
    %c0_4 = arith.constant 0 : index
    %3 = vector.load %arg3[%c0_3, %c0_4] : memref<32x64xbf16, #tpu.memory_space<vmem>>, vector<32x64xbf16>
    %4 = arith.truncf %2 : vector<32x32xf32> to vector<32x32xbf16>
    %cst = arith.constant dense<0.000000e+00> : vector<32x64xf32>
    %5 = tpu.matmul %4, %3, %cst {dimension_numbers = #tpu.dot_dimension_numbers<[1], [0], [0], [1], [0, 0, 1, 1], [], []>} : vector<32x32xbf16>, vector<32x64xbf16>, vector<32x64xf32> -> vector<32x64xf32>
    %c0_5 = arith.constant 0 : index
    %c0_6 = arith.constant 0 : index
    %6 = vector.load %arg4[%c0_5, %c0_6] : memref<1x64xf32, #tpu.memory_space<vmem>>, vector<1x64xf32>
    %7 = vector.broadcast %6 : vector<1x64xf32> to vector<32x64xf32>
    %8 = arith.addf %5, %7 : vector<32x64xf32>
    %9 = vector.extract_strided_slice %8 {offsets = [0, 0], sizes = [32, 32], strides = [1, 1]} : vector<32x64xf32> to vector<32x32xf32>
    %10 = arith.truncf %9 : vector<32x32xf32> to vector<32x32xbf16>
    %c0_7 = arith.constant 0 : index
    %c0_8 = arith.constant 0 : index
    %11 = vector.load %arg7[%c0_7, %c0_8] : memref<32x32xbf16, #tpu.memory_space<vmem>>, vector<32x32xbf16>
    tpu.vector_store %arg7[%c0_7, %c0_8], %10 {strides = array<i32>} : memref<32x32xbf16, #tpu.memory_space<vmem>>, vector<32x32xbf16>,
    %12 = vector.extract_strided_slice %8 {offsets = [0, 32], sizes = [32, 32], strides = [1, 1]} : vector<32x64xf32> to vector<32x32xf32>
    %13 = arith.truncf %12 : vector<32x32xf32> to vector<32x32xbf16>
    %c0_9 = arith.constant 0 : index
    %c0_10 = arith.constant 0 : index
    %14 = vector.load %arg8[%c0_9, %c0_10] : memref<32x32xbf16, #tpu.memory_space<vmem>>, vector<32x32xbf16>
    tpu.vector_store %arg8[%c0_9, %c0_10], %13 {strides = array<i32>} : memref<32x32xbf16, #tpu.memory_space<vmem>>, vector<32x32xbf16>,
    %c0_11 = arith.constant 0 : index
    %c0_12 = arith.constant 0 : index
    %15 = vector.load %arg5[%c0_11, %c0_12] : memref<32x32xbf16, #tpu.memory_space<vmem>>, vector<32x32xbf16>
    %16 = arith.truncf %0 : vector<32x32xf32> to vector<32x32xbf16>
    %cst_13 = arith.constant dense<0.000000e+00> : vector<32x32xf32>
    %17 = tpu.matmul %16, %15, %cst_13 {dimension_numbers = #tpu.dot_dimension_numbers<[1], [0], [0], [1], [0, 0, 1, 1], [], []>} : vector<32x32xbf16>, vector<32x32xbf16>, vector<32x32xf32> -> vector<32x32xf32>
    %c0_14 = arith.constant 0 : index
    %c0_15 = arith.constant 0 : index
    %18 = vector.load %arg6[%c0_14, %c0_15] : memref<1x32xf32, #tpu.memory_space<vmem>>, vector<1x32xf32>
    %19 = vector.broadcast %18 : vector<1x32xf32> to vector<32x32xf32>
    %20 = arith.addf %17, %19 : vector<32x32xf32>
    %21 = arith.truncf %20 : vector<32x32xf32> to vector<32x32xbf16>
    %c0_16 = arith.constant 0 : index
    %c0_17 = arith.constant 0 : index
    %22 = vector.load %arg9[%c0_16, %c0_17] : memref<32x32xbf16, #tpu.memory_space<vmem>>, vector<32x32xbf16>
    tpu.vector_store %arg9[%c0_16, %c0_17], %21 {strides = array<i32>} : memref<32x32xbf16, #tpu.memory_space<vmem>>, vector<32x32xbf16>,
    return
  }
  func.func @transform_0(%arg0: i32) -> (i32, i32) {
    %c0_i32 = arith.constant 0 : i32
    %c0_i32_0 = arith.constant 0 : i32
    return %arg0, %c0_i32 : i32, i32
  }
  func.func @transform_1(%arg0: i32) -> (i32, i32) {
    %c0_i32 = arith.constant 0 : i32
    %c0_i32_0 = arith.constant 0 : i32
    return %arg0, %c0_i32 : i32, i32
  }
  func.func @transform_2(%arg0: i32) -> (i32, i32) {
    %c0_i32 = arith.constant 0 : i32
    %c0_i32_0 = arith.constant 0 : i32
    %c0_i32_1 = arith.constant 0 : i32
    return %c0_i32, %c0_i32_0 : i32, i32
  }
  func.func @transform_3(%arg0: i32) -> (i32, i32) {
    %c0_i32 = arith.constant 0 : i32
    %c0_i32_0 = arith.constant 0 : i32
    %c0_i32_1 = arith.constant 0 : i32
    return %c0_i32, %c0_i32_0 : i32, i32
  }
  func.func @transform_4(%arg0: i32) -> (i32, i32) {
    %c0_i32 = arith.constant 0 : i32
    %c0_i32_0 = arith.constant 0 : i32
    %c0_i32_1 = arith.constant 0 : i32
    return %c0_i32, %c0_i32_0 : i32, i32
  }
  func.func @transform_5(%arg0: i32) -> (i32, i32) {
    %c0_i32 = arith.constant 0 : i32
    %c0_i32_0 = arith.constant 0 : i32
    %c0_i32_1 = arith.constant 0 : i32
    return %c0_i32, %c0_i32_0 : i32, i32
  }
  func.func @transform_6(%arg0: i32) -> (i32, i32) {
    %c0_i32 = arith.constant 0 : i32
    %c0_i32_0 = arith.constant 0 : i32
    return %arg0, %c0_i32 : i32, i32
  }
  func.func @transform_7(%arg0: i32) -> (i32, i32) {
    %c0_i32 = arith.constant 0 : i32
    %c0_i32_0 = arith.constant 0 : i32
    return %arg0, %c0_i32 : i32, i32
  }
  func.func @transform_8(%arg0: i32) -> (i32, i32) {
    %c0_i32 = arith.constant 0 : i32
    %c0_i32_0 = arith.constant 0 : i32
    return %arg0, %c0_i32 : i32, i32
  }
}

module attributes {stable_mosaic.version = 11 : i64} {
  func.func @_kv_proj_kernel(%arg0: i32, %arg1: memref<32x32xf32, #tpu.memory_space<vmem>>, %arg2: memref<32x32xf32, #tpu.memory_space<vmem>>, %arg3: memref<32x32xbf16, #tpu.memory_space<vmem>>, %arg4: memref<1x32xf32, #tpu.memory_space<vmem>>, %arg5: memref<32x32xbf16, #tpu.memory_space<vmem>>, %arg6: memref<1x32xf32, #tpu.memory_space<vmem>>, %arg7: memref<32x32xbf16, #tpu.memory_space<vmem>>, %arg8: memref<32x32xbf16, #tpu.memory_space<vmem>>) attributes {dimension_semantics = [#tpu.dimension_semantics<parallel>], iteration_bounds = array<i64: 1>, scalar_prefetch = 0 : i64, scratch_operands = 0 : i64, tpu.core_type = #tpu.core_type<tc>, window_params = [{transform_indices = @transform_0, window_bounds = array<i64: 32, 32>}, {transform_indices = @transform_1, window_bounds = array<i64: 32, 32>}, {pipeline_mode = #tpu.pipeline_mode<synchronous>, transform_indices = @transform_2, window_bounds = array<i64: 32, 32>}, {pipeline_mode = #tpu.pipeline_mode<synchronous>, transform_indices = @transform_3, window_bounds = array<i64: 1, 32>}, {pipeline_mode = #tpu.pipeline_mode<synchronous>, transform_indices = @transform_4, window_bounds = array<i64: 32, 32>}, {pipeline_mode = #tpu.pipeline_mode<synchronous>, transform_indices = @transform_5, window_bounds = array<i64: 1, 32>}, {transform_indices = @transform_6, window_bounds = array<i64: 32, 32>}, {transform_indices = @transform_7, window_bounds = array<i64: 32, 32>}]} {
    %c0 = arith.constant 0 : index
    %c0_0 = arith.constant 0 : index
    %0 = vector.load %arg1[%c0, %c0_0] : memref<32x32xf32, #tpu.memory_space<vmem>>, vector<32x32xf32>
    %c0_1 = arith.constant 0 : index
    %c0_2 = arith.constant 0 : index
    %1 = vector.load %arg2[%c0_1, %c0_2] : memref<32x32xf32, #tpu.memory_space<vmem>>, vector<32x32xf32>
    %2 = arith.addf %0, %1 : vector<32x32xf32>
    %c0_3 = arith.constant 0 : index
    %c0_4 = arith.constant 0 : index
    %3 = vector.load %arg3[%c0_3, %c0_4] : memref<32x32xbf16, #tpu.memory_space<vmem>>, vector<32x32xbf16>
    %4 = arith.truncf %2 : vector<32x32xf32> to vector<32x32xbf16>
    %cst = arith.constant dense<0.000000e+00> : vector<32x32xf32>
    %5 = tpu.matmul %4, %3, %cst {dimension_numbers = #tpu.dot_dimension_numbers<[1], [0], [0], [1], [0, 0, 1, 1], [], []>} : vector<32x32xbf16>, vector<32x32xbf16>, vector<32x32xf32> -> vector<32x32xf32>
    %c0_5 = arith.constant 0 : index
    %c0_6 = arith.constant 0 : index
    %6 = vector.load %arg4[%c0_5, %c0_6] : memref<1x32xf32, #tpu.memory_space<vmem>>, vector<1x32xf32>
    %7 = vector.broadcast %6 : vector<1x32xf32> to vector<32x32xf32>
    %8 = arith.addf %5, %7 : vector<32x32xf32>
    %9 = arith.truncf %8 : vector<32x32xf32> to vector<32x32xbf16>
    %c0_7 = arith.constant 0 : index
    %c0_8 = arith.constant 0 : index
    %10 = vector.load %arg7[%c0_7, %c0_8] : memref<32x32xbf16, #tpu.memory_space<vmem>>, vector<32x32xbf16>
    tpu.vector_store %arg7[%c0_7, %c0_8], %9 {strides = array<i32>} : memref<32x32xbf16, #tpu.memory_space<vmem>>, vector<32x32xbf16>,
    %c0_9 = arith.constant 0 : index
    %c0_10 = arith.constant 0 : index
    %11 = vector.load %arg5[%c0_9, %c0_10] : memref<32x32xbf16, #tpu.memory_space<vmem>>, vector<32x32xbf16>
    %12 = arith.truncf %0 : vector<32x32xf32> to vector<32x32xbf16>
    %cst_11 = arith.constant dense<0.000000e+00> : vector<32x32xf32>
    %13 = tpu.matmul %12, %11, %cst_11 {dimension_numbers = #tpu.dot_dimension_numbers<[1], [0], [0], [1], [0, 0, 1, 1], [], []>} : vector<32x32xbf16>, vector<32x32xbf16>, vector<32x32xf32> -> vector<32x32xf32>
    %c0_12 = arith.constant 0 : index
    %c0_13 = arith.constant 0 : index
    %14 = vector.load %arg6[%c0_12, %c0_13] : memref<1x32xf32, #tpu.memory_space<vmem>>, vector<1x32xf32>
    %15 = vector.broadcast %14 : vector<1x32xf32> to vector<32x32xf32>
    %16 = arith.addf %13, %15 : vector<32x32xf32>
    %17 = arith.truncf %16 : vector<32x32xf32> to vector<32x32xbf16>
    %c0_14 = arith.constant 0 : index
    %c0_15 = arith.constant 0 : index
    %18 = vector.load %arg8[%c0_14, %c0_15] : memref<32x32xbf16, #tpu.memory_space<vmem>>, vector<32x32xbf16>
    tpu.vector_store %arg8[%c0_14, %c0_15], %17 {strides = array<i32>} : memref<32x32xbf16, #tpu.memory_space<vmem>>, vector<32x32xbf16>,
    return
  }
  func.func @transform_0(%arg0: i32) -> (i32, i32) {
    %c0_i32 = arith.constant 0 : i32
    %c0_i32_0 = arith.constant 0 : i32
    return %arg0, %c0_i32 : i32, i32
  }
  func.func @transform_1(%arg0: i32) -> (i32, i32) {
    %c0_i32 = arith.constant 0 : i32
    %c0_i32_0 = arith.constant 0 : i32
    return %arg0, %c0_i32 : i32, i32
  }
  func.func @transform_2(%arg0: i32) -> (i32, i32) {
    %c0_i32 = arith.constant 0 : i32
    %c0_i32_0 = arith.constant 0 : i32
    %c0_i32_1 = arith.constant 0 : i32
    return %c0_i32, %c0_i32_0 : i32, i32
  }
  func.func @transform_3(%arg0: i32) -> (i32, i32) {
    %c0_i32 = arith.constant 0 : i32
    %c0_i32_0 = arith.constant 0 : i32
    %c0_i32_1 = arith.constant 0 : i32
    return %c0_i32, %c0_i32_0 : i32, i32
  }
  func.func @transform_4(%arg0: i32) -> (i32, i32) {
    %c0_i32 = arith.constant 0 : i32
    %c0_i32_0 = arith.constant 0 : i32
    %c0_i32_1 = arith.constant 0 : i32
    return %c0_i32, %c0_i32_0 : i32, i32
  }
  func.func @transform_5(%arg0: i32) -> (i32, i32) {
    %c0_i32 = arith.constant 0 : i32
    %c0_i32_0 = arith.constant 0 : i32
    %c0_i32_1 = arith.constant 0 : i32
    return %c0_i32, %c0_i32_0 : i32, i32
  }
  func.func @transform_6(%arg0: i32) -> (i32, i32) {
    %c0_i32 = arith.constant 0 : i32
    %c0_i32_0 = arith.constant 0 : i32
    return %arg0, %c0_i32 : i32, i32
  }
  func.func @transform_7(%arg0: i32) -> (i32, i32) {
    %c0_i32 = arith.constant 0 : i32
    %c0_i32_0 = arith.constant 0 : i32
    return %arg0, %c0_i32 : i32, i32
  }
}

module attributes {stable_mosaic.version = 11 : i64} {
  func.func @_mha_small_fused_kernel(%arg0: i32, %arg1: i32, %arg2: memref<1x16x32xbf16, #tpu.memory_space<vmem>>, %arg3: memref<1x16x32xbf16, #tpu.memory_space<vmem>>, %arg4: memref<1x16x32xbf16, #tpu.memory_space<vmem>>, %arg5: memref<1x1x16xf32, #tpu.memory_space<vmem>>, %arg6: memref<1x16x32xf32, #tpu.memory_space<vmem>>, %arg7: memref<32x32xbf16, #tpu.memory_space<vmem>>, %arg8: memref<1x32xf32, #tpu.memory_space<vmem>>, %arg9: memref<1x32xf32, #tpu.memory_space<vmem>>, %arg10: memref<1x32xf32, #tpu.memory_space<vmem>>, %arg11: memref<1x16x32xf32, #tpu.memory_space<vmem>>) attributes {dimension_semantics = [#tpu.dimension_semantics<parallel>, #tpu.dimension_semantics<parallel>], iteration_bounds = array<i64: 2, 1>, scalar_prefetch = 0 : i64, scratch_operands = 0 : i64, tpu.core_type = #tpu.core_type<tc>, window_params = [{transform_indices = @transform_0, window_bounds = array<i64: 1, 16, 32>}, {transform_indices = @transform_1, window_bounds = array<i64: 1, 16, 32>}, {transform_indices = @transform_2, window_bounds = array<i64: 1, 16, 32>}, {transform_indices = @transform_3, window_bounds = array<i64: 1, 1, 16>}, {transform_indices = @transform_4, window_bounds = array<i64: 1, 16, 32>}, {pipeline_mode = #tpu.pipeline_mode<synchronous>, transform_indices = @transform_5, window_bounds = array<i64: 32, 32>}, {pipeline_mode = #tpu.pipeline_mode<synchronous>, transform_indices = @transform_6, window_bounds = array<i64: 1, 32>}, {pipeline_mode = #tpu.pipeline_mode<synchronous>, transform_indices = @transform_7, window_bounds = array<i64: 1, 32>}, {pipeline_mode = #tpu.pipeline_mode<synchronous>, transform_indices = @transform_8, window_bounds = array<i64: 1, 32>}, {transform_indices = @transform_9, window_bounds = array<i64: 1, 16, 32>}]} {
    %c0 = arith.constant 0 : index
    %c0_0 = arith.constant 0 : index
    %c0_1 = arith.constant 0 : index
    %0 = vector.load %arg2[%c0, %c0_0, %c0_1] : memref<1x16x32xbf16, #tpu.memory_space<vmem>>, vector<1x16x32xbf16>
    %1 = vector.shape_cast %0 : vector<1x16x32xbf16> to vector<16x32xbf16>
    %c0_2 = arith.constant 0 : index
    %c0_3 = arith.constant 0 : index
    %c0_4 = arith.constant 0 : index
    %2 = vector.load %arg3[%c0_2, %c0_3, %c0_4] : memref<1x16x32xbf16, #tpu.memory_space<vmem>>, vector<1x16x32xbf16>
    %3 = vector.shape_cast %2 : vector<1x16x32xbf16> to vector<16x32xbf16>
    %c0_5 = arith.constant 0 : index
    %c0_6 = arith.constant 0 : index
    %c0_7 = arith.constant 0 : index
    %4 = vector.load %arg4[%c0_5, %c0_6, %c0_7] : memref<1x16x32xbf16, #tpu.memory_space<vmem>>, vector<1x16x32xbf16>
    %5 = vector.shape_cast %4 : vector<1x16x32xbf16> to vector<16x32xbf16>
    %c0_8 = arith.constant 0 : index
    %c0_9 = arith.constant 0 : index
    %c0_10 = arith.constant 0 : index
    %6 = vector.load %arg5[%c0_8, %c0_9, %c0_10] : memref<1x1x16xf32, #tpu.memory_space<vmem>>, vector<1x1x16xf32>
    %7 = vector.shape_cast %6 : vector<1x1x16xf32> to vector<1x16xf32>
    %8 = vector.extract_strided_slice %1 {offsets = [0, 0], sizes = [16, 8], strides = [1, 1]} : vector<16x32xbf16> to vector<16x8xbf16>
    %9 = vector.extract_strided_slice %3 {offsets = [0, 0], sizes = [16, 8], strides = [1, 1]} : vector<16x32xbf16> to vector<16x8xbf16>
    %cst = arith.constant dense<0.000000e+00> : vector<16x16xf32>
    %10 = tpu.matmul %8, %9, %cst {dimension_numbers = #tpu.dot_dimension_numbers<[1], [1], [0], [0], [0, 0, 1, 0], [], []>} : vector<16x8xbf16>, vector<16x8xbf16>, vector<16x16xf32> -> vector<16x16xf32>
    %11 = vector.broadcast %7 : vector<1x16xf32> to vector<16x16xf32>
    %12 = arith.addf %10, %11 : vector<16x16xf32>
    %cst_11 = arith.constant dense<0xFF800000> : vector<16xf32>
    %13 = vector.multi_reduction <maximumf>, %12, %cst_11 [1] : vector<16x16xf32> to vector<16xf32>
    %14 = vector.shape_cast %13 : vector<16xf32> to vector<16x1xf32>
    %15 = vector.broadcast %14 : vector<16x1xf32> to vector<16x16xf32>
    %16 = arith.subf %12, %15 : vector<16x16xf32>
    %17 = math.exp %16 : vector<16x16xf32>
    %cst_12 = arith.constant dense<0.000000e+00> : vector<16xf32>
    %18 = vector.multi_reduction <add>, %17, %cst_12 [1] : vector<16x16xf32> to vector<16xf32>
    %19 = vector.shape_cast %18 : vector<16xf32> to vector<16x1xf32>
    %20 = arith.truncf %17 : vector<16x16xf32> to vector<16x16xbf16>
    %21 = vector.extract_strided_slice %5 {offsets = [0, 0], sizes = [16, 8], strides = [1, 1]} : vector<16x32xbf16> to vector<16x8xbf16>
    %cst_13 = arith.constant dense<0.000000e+00> : vector<16x8xf32>
    %22 = tpu.matmul %20, %21, %cst_13 {dimension_numbers = #tpu.dot_dimension_numbers<[1], [0], [0], [1], [0, 0, 1, 1], [], []>} : vector<16x16xbf16>, vector<16x8xbf16>, vector<16x8xf32> -> vector<16x8xf32>
    %cst_14 = arith.constant 1.000000e+00 : f32
    %23 = vector.broadcast %cst_14 : f32 to vector<16x1xf32>
    %24 = arith.divf %23, %19 : vector<16x1xf32>
    %25 = vector.broadcast %24 : vector<16x1xf32> to vector<16x8xf32>
    %26 = arith.mulf %22, %25 : vector<16x8xf32>
    %27 = vector.extract_strided_slice %1 {offsets = [0, 8], sizes = [16, 8], strides = [1, 1]} : vector<16x32xbf16> to vector<16x8xbf16>
    %28 = vector.extract_strided_slice %3 {offsets = [0, 8], sizes = [16, 8], strides = [1, 1]} : vector<16x32xbf16> to vector<16x8xbf16>
    %cst_15 = arith.constant dense<0.000000e+00> : vector<16x16xf32>
    %29 = tpu.matmul %27, %28, %cst_15 {dimension_numbers = #tpu.dot_dimension_numbers<[1], [1], [0], [0], [0, 0, 1, 0], [], []>} : vector<16x8xbf16>, vector<16x8xbf16>, vector<16x16xf32> -> vector<16x16xf32>
    %30 = vector.broadcast %7 : vector<1x16xf32> to vector<16x16xf32>
    %31 = arith.addf %29, %30 : vector<16x16xf32>
    %cst_16 = arith.constant dense<0xFF800000> : vector<16xf32>
    %32 = vector.multi_reduction <maximumf>, %31, %cst_16 [1] : vector<16x16xf32> to vector<16xf32>
    %33 = vector.shape_cast %32 : vector<16xf32> to vector<16x1xf32>
    %34 = vector.broadcast %33 : vector<16x1xf32> to vector<16x16xf32>
    %35 = arith.subf %31, %34 : vector<16x16xf32>
    %36 = math.exp %35 : vector<16x16xf32>
    %cst_17 = arith.constant dense<0.000000e+00> : vector<16xf32>
    %37 = vector.multi_reduction <add>, %36, %cst_17 [1] : vector<16x16xf32> to vector<16xf32>
    %38 = vector.shape_cast %37 : vector<16xf32> to vector<16x1xf32>
    %39 = arith.truncf %36 : vector<16x16xf32> to vector<16x16xbf16>
    %40 = vector.extract_strided_slice %5 {offsets = [0, 8], sizes = [16, 8], strides = [1, 1]} : vector<16x32xbf16> to vector<16x8xbf16>
    %cst_18 = arith.constant dense<0.000000e+00> : vector<16x8xf32>
    %41 = tpu.matmul %39, %40, %cst_18 {dimension_numbers = #tpu.dot_dimension_numbers<[1], [0], [0], [1], [0, 0, 1, 1], [], []>} : vector<16x16xbf16>, vector<16x8xbf16>, vector<16x8xf32> -> vector<16x8xf32>
    %cst_19 = arith.constant 1.000000e+00 : f32
    %42 = vector.broadcast %cst_19 : f32 to vector<16x1xf32>
    %43 = arith.divf %42, %38 : vector<16x1xf32>
    %44 = vector.broadcast %43 : vector<16x1xf32> to vector<16x8xf32>
    %45 = arith.mulf %41, %44 : vector<16x8xf32>
    %46 = vector.extract_strided_slice %1 {offsets = [0, 16], sizes = [16, 8], strides = [1, 1]} : vector<16x32xbf16> to vector<16x8xbf16>
    %47 = vector.extract_strided_slice %3 {offsets = [0, 16], sizes = [16, 8], strides = [1, 1]} : vector<16x32xbf16> to vector<16x8xbf16>
    %cst_20 = arith.constant dense<0.000000e+00> : vector<16x16xf32>
    %48 = tpu.matmul %46, %47, %cst_20 {dimension_numbers = #tpu.dot_dimension_numbers<[1], [1], [0], [0], [0, 0, 1, 0], [], []>} : vector<16x8xbf16>, vector<16x8xbf16>, vector<16x16xf32> -> vector<16x16xf32>
    %49 = vector.broadcast %7 : vector<1x16xf32> to vector<16x16xf32>
    %50 = arith.addf %48, %49 : vector<16x16xf32>
    %cst_21 = arith.constant dense<0xFF800000> : vector<16xf32>
    %51 = vector.multi_reduction <maximumf>, %50, %cst_21 [1] : vector<16x16xf32> to vector<16xf32>
    %52 = vector.shape_cast %51 : vector<16xf32> to vector<16x1xf32>
    %53 = vector.broadcast %52 : vector<16x1xf32> to vector<16x16xf32>
    %54 = arith.subf %50, %53 : vector<16x16xf32>
    %55 = math.exp %54 : vector<16x16xf32>
    %cst_22 = arith.constant dense<0.000000e+00> : vector<16xf32>
    %56 = vector.multi_reduction <add>, %55, %cst_22 [1] : vector<16x16xf32> to vector<16xf32>
    %57 = vector.shape_cast %56 : vector<16xf32> to vector<16x1xf32>
    %58 = arith.truncf %55 : vector<16x16xf32> to vector<16x16xbf16>
    %59 = vector.extract_strided_slice %5 {offsets = [0, 16], sizes = [16, 8], strides = [1, 1]} : vector<16x32xbf16> to vector<16x8xbf16>
    %cst_23 = arith.constant dense<0.000000e+00> : vector<16x8xf32>
    %60 = tpu.matmul %58, %59, %cst_23 {dimension_numbers = #tpu.dot_dimension_numbers<[1], [0], [0], [1], [0, 0, 1, 1], [], []>} : vector<16x16xbf16>, vector<16x8xbf16>, vector<16x8xf32> -> vector<16x8xf32>
    %cst_24 = arith.constant 1.000000e+00 : f32
    %61 = vector.broadcast %cst_24 : f32 to vector<16x1xf32>
    %62 = arith.divf %61, %57 : vector<16x1xf32>
    %63 = vector.broadcast %62 : vector<16x1xf32> to vector<16x8xf32>
    %64 = arith.mulf %60, %63 : vector<16x8xf32>
    %65 = vector.extract_strided_slice %1 {offsets = [0, 24], sizes = [16, 8], strides = [1, 1]} : vector<16x32xbf16> to vector<16x8xbf16>
    %66 = vector.extract_strided_slice %3 {offsets = [0, 24], sizes = [16, 8], strides = [1, 1]} : vector<16x32xbf16> to vector<16x8xbf16>
    %cst_25 = arith.constant dense<0.000000e+00> : vector<16x16xf32>
    %67 = tpu.matmul %65, %66, %cst_25 {dimension_numbers = #tpu.dot_dimension_numbers<[1], [1], [0], [0], [0, 0, 1, 0], [], []>} : vector<16x8xbf16>, vector<16x8xbf16>, vector<16x16xf32> -> vector<16x16xf32>
    %68 = vector.broadcast %7 : vector<1x16xf32> to vector<16x16xf32>
    %69 = arith.addf %67, %68 : vector<16x16xf32>
    %cst_26 = arith.constant dense<0xFF800000> : vector<16xf32>
    %70 = vector.multi_reduction <maximumf>, %69, %cst_26 [1] : vector<16x16xf32> to vector<16xf32>
    %71 = vector.shape_cast %70 : vector<16xf32> to vector<16x1xf32>
    %72 = vector.broadcast %71 : vector<16x1xf32> to vector<16x16xf32>
    %73 = arith.subf %69, %72 : vector<16x16xf32>
    %74 = math.exp %73 : vector<16x16xf32>
    %cst_27 = arith.constant dense<0.000000e+00> : vector<16xf32>
    %75 = vector.multi_reduction <add>, %74, %cst_27 [1] : vector<16x16xf32> to vector<16xf32>
    %76 = vector.shape_cast %75 : vector<16xf32> to vector<16x1xf32>
    %77 = arith.truncf %74 : vector<16x16xf32> to vector<16x16xbf16>
    %78 = vector.extract_strided_slice %5 {offsets = [0, 24], sizes = [16, 8], strides = [1, 1]} : vector<16x32xbf16> to vector<16x8xbf16>
    %cst_28 = arith.constant dense<0.000000e+00> : vector<16x8xf32>
    %79 = tpu.matmul %77, %78, %cst_28 {dimension_numbers = #tpu.dot_dimension_numbers<[1], [0], [0], [1], [0, 0, 1, 1], [], []>} : vector<16x16xbf16>, vector<16x8xbf16>, vector<16x8xf32> -> vector<16x8xf32>
    %cst_29 = arith.constant 1.000000e+00 : f32
    %80 = vector.broadcast %cst_29 : f32 to vector<16x1xf32>
    %81 = arith.divf %80, %76 : vector<16x1xf32>
    %82 = vector.broadcast %81 : vector<16x1xf32> to vector<16x8xf32>
    %83 = arith.mulf %79, %82 : vector<16x8xf32>
    %84 = tpu.concatenate %26, %45, %64, %83 in 1 : vector<16x8xf32>, vector<16x8xf32>, vector<16x8xf32>, vector<16x8xf32> -> vector<16x32xf32>
    %c0_30 = arith.constant 0 : index
    %c0_31 = arith.constant 0 : index
    %c0_32 = arith.constant 0 : index
    %85 = vector.load %arg6[%c0_30, %c0_31, %c0_32] : memref<1x16x32xf32, #tpu.memory_space<vmem>>, vector<1x16x32xf32>
    %86 = vector.shape_cast %85 : vector<1x16x32xf32> to vector<16x32xf32>
    %c0_33 = arith.constant 0 : index
    %c0_34 = arith.constant 0 : index
    %87 = vector.load %arg7[%c0_33, %c0_34] : memref<32x32xbf16, #tpu.memory_space<vmem>>, vector<32x32xbf16>
    %88 = arith.truncf %84 : vector<16x32xf32> to vector<16x32xbf16>
    %cst_35 = arith.constant dense<0.000000e+00> : vector<16x32xf32>
    %89 = tpu.matmul %88, %87, %cst_35 {dimension_numbers = #tpu.dot_dimension_numbers<[1], [0], [0], [1], [0, 0, 1, 1], [], []>} : vector<16x32xbf16>, vector<32x32xbf16>, vector<16x32xf32> -> vector<16x32xf32>
    %90 = arith.addf %86, %89 : vector<16x32xf32>
    %c0_36 = arith.constant 0 : index
    %c0_37 = arith.constant 0 : index
    %91 = vector.load %arg8[%c0_36, %c0_37] : memref<1x32xf32, #tpu.memory_space<vmem>>, vector<1x32xf32>
    %92 = vector.broadcast %91 : vector<1x32xf32> to vector<16x32xf32>
    %93 = arith.addf %90, %92 : vector<16x32xf32>
    %c0_38 = arith.constant 0 : index
    %c0_39 = arith.constant 0 : index
    %94 = vector.load %arg9[%c0_38, %c0_39] : memref<1x32xf32, #tpu.memory_space<vmem>>, vector<1x32xf32>
    %c0_40 = arith.constant 0 : index
    %c0_41 = arith.constant 0 : index
    %95 = vector.load %arg10[%c0_40, %c0_41] : memref<1x32xf32, #tpu.memory_space<vmem>>, vector<1x32xf32>
    %cst_42 = arith.constant dense<0.000000e+00> : vector<16xf32>
    %96 = vector.multi_reduction <add>, %93, %cst_42 [1] : vector<16x32xf32> to vector<16xf32>
    %97 = vector.shape_cast %96 : vector<16xf32> to vector<16x1xf32>
    %cst_43 = arith.constant 3.200000e+01 : f32
    %98 = vector.broadcast %cst_43 : f32 to vector<16x1xf32>
    %99 = arith.divf %97, %98 : vector<16x1xf32>
    %100 = vector.broadcast %99 : vector<16x1xf32> to vector<16x32xf32>
    %101 = arith.subf %93, %100 : vector<16x32xf32>
    %102 = arith.mulf %101, %101 : vector<16x32xf32>
    %cst_44 = arith.constant dense<0.000000e+00> : vector<16xf32>
    %103 = vector.multi_reduction <add>, %102, %cst_44 [1] : vector<16x32xf32> to vector<16xf32>
    %104 = vector.shape_cast %103 : vector<16xf32> to vector<16x1xf32>
    %cst_45 = arith.constant 3.200000e+01 : f32
    %105 = vector.broadcast %cst_45 : f32 to vector<16x1xf32>
    %106 = arith.divf %104, %105 : vector<16x1xf32>
    %107 = vector.broadcast %99 : vector<16x1xf32> to vector<16x32xf32>
    %108 = arith.subf %93, %107 : vector<16x32xf32>
    %cst_46 = arith.constant 9.99999974E-6 : f32
    %109 = vector.broadcast %cst_46 : f32 to vector<16x1xf32>
    %110 = arith.addf %106, %109 : vector<16x1xf32>
    %111 = math.rsqrt %110 : vector<16x1xf32>
    %112 = vector.broadcast %111 : vector<16x1xf32> to vector<16x32xf32>
    %113 = arith.mulf %108, %112 : vector<16x32xf32>
    %114 = vector.broadcast %94 : vector<1x32xf32> to vector<16x32xf32>
    %115 = arith.mulf %113, %114 : vector<16x32xf32>
    %116 = vector.broadcast %95 : vector<1x32xf32> to vector<16x32xf32>
    %117 = arith.addf %115, %116 : vector<16x32xf32>
    %c0_47 = arith.constant 0 : index
    %c0_48 = arith.constant 0 : index
    %c0_49 = arith.constant 0 : index
    %118 = vector.load %arg11[%c0_47, %c0_48, %c0_49] : memref<1x16x32xf32, #tpu.memory_space<vmem>>, vector<1x16x32xf32>
    %119 = vector.shape_cast %118 : vector<1x16x32xf32> to vector<16x32xf32>
    %120 = vector.shape_cast %117 : vector<16x32xf32> to vector<1x16x32xf32>
    tpu.vector_store %arg11[%c0_47, %c0_48, %c0_49], %120 {strides = array<i32>} : memref<1x16x32xf32, #tpu.memory_space<vmem>>, vector<1x16x32xf32>,
    return
  }
  func.func @transform_0(%arg0: i32, %arg1: i32) -> (i32, i32, i32) {
    %c0_i32 = arith.constant 0 : i32
    %c0_i32_0 = arith.constant 0 : i32
    return %arg0, %arg1, %c0_i32 : i32, i32, i32
  }
  func.func @transform_1(%arg0: i32, %arg1: i32) -> (i32, i32, i32) {
    %c0_i32 = arith.constant 0 : i32
    %c0_i32_0 = arith.constant 0 : i32
    %c0_i32_1 = arith.constant 0 : i32
    return %arg0, %c0_i32, %c0_i32_0 : i32, i32, i32
  }
  func.func @transform_2(%arg0: i32, %arg1: i32) -> (i32, i32, i32) {
    %c0_i32 = arith.constant 0 : i32
    %c0_i32_0 = arith.constant 0 : i32
    %c0_i32_1 = arith.constant 0 : i32
    return %arg0, %c0_i32, %c0_i32_0 : i32, i32, i32
  }
  func.func @transform_3(%arg0: i32, %arg1: i32) -> (i32, i32, i32) {
    %c0_i32 = arith.constant 0 : i32
    %c0_i32_0 = arith.constant 0 : i32
    %c0_i32_1 = arith.constant 0 : i32
    return %arg0, %c0_i32, %c0_i32_0 : i32, i32, i32
  }
  func.func @transform_4(%arg0: i32, %arg1: i32) -> (i32, i32, i32) {
    %c0_i32 = arith.constant 0 : i32
    %c0_i32_0 = arith.constant 0 : i32
    return %arg0, %arg1, %c0_i32 : i32, i32, i32
  }
  func.func @transform_5(%arg0: i32, %arg1: i32) -> (i32, i32) {
    %c0_i32 = arith.constant 0 : i32
    %c0_i32_0 = arith.constant 0 : i32
    %c0_i32_1 = arith.constant 0 : i32
    return %c0_i32, %c0_i32_0 : i32, i32
  }
  func.func @transform_6(%arg0: i32, %arg1: i32) -> (i32, i32) {
    %c0_i32 = arith.constant 0 : i32
    %c0_i32_0 = arith.constant 0 : i32
    %c0_i32_1 = arith.constant 0 : i32
    return %c0_i32, %c0_i32_0 : i32, i32
  }
  func.func @transform_7(%arg0: i32, %arg1: i32) -> (i32, i32) {
    %c0_i32 = arith.constant 0 : i32
    %c0_i32_0 = arith.constant 0 : i32
    %c0_i32_1 = arith.constant 0 : i32
    return %c0_i32, %c0_i32_0 : i32, i32
  }
  func.func @transform_8(%arg0: i32, %arg1: i32) -> (i32, i32) {
    %c0_i32 = arith.constant 0 : i32
    %c0_i32_0 = arith.constant 0 : i32
    %c0_i32_1 = arith.constant 0 : i32
    return %c0_i32, %c0_i32_0 : i32, i32
  }
  func.func @transform_9(%arg0: i32, %arg1: i32) -> (i32, i32, i32) {
    %c0_i32 = arith.constant 0 : i32
    %c0_i32_0 = arith.constant 0 : i32
    return %arg0, %arg1, %c0_i32 : i32, i32, i32
  }
}

module attributes {stable_mosaic.version = 11 : i64} {
  func.func @_qkv_self_kernel(%arg0: i32, %arg1: memref<16x32xf32, #tpu.memory_space<vmem>>, %arg2: memref<16x32xf32, #tpu.memory_space<vmem>>, %arg3: memref<32x64xbf16, #tpu.memory_space<vmem>>, %arg4: memref<1x64xf32, #tpu.memory_space<vmem>>, %arg5: memref<32x32xbf16, #tpu.memory_space<vmem>>, %arg6: memref<1x32xf32, #tpu.memory_space<vmem>>, %arg7: memref<16x32xbf16, #tpu.memory_space<vmem>>, %arg8: memref<16x32xbf16, #tpu.memory_space<vmem>>, %arg9: memref<16x32xbf16, #tpu.memory_space<vmem>>) attributes {dimension_semantics = [#tpu.dimension_semantics<parallel>], iteration_bounds = array<i64: 1>, scalar_prefetch = 0 : i64, scratch_operands = 0 : i64, tpu.core_type = #tpu.core_type<tc>, window_params = [{transform_indices = @transform_0, window_bounds = array<i64: 16, 32>}, {transform_indices = @transform_1, window_bounds = array<i64: 16, 32>}, {pipeline_mode = #tpu.pipeline_mode<synchronous>, transform_indices = @transform_2, window_bounds = array<i64: 32, 64>}, {pipeline_mode = #tpu.pipeline_mode<synchronous>, transform_indices = @transform_3, window_bounds = array<i64: 1, 64>}, {pipeline_mode = #tpu.pipeline_mode<synchronous>, transform_indices = @transform_4, window_bounds = array<i64: 32, 32>}, {pipeline_mode = #tpu.pipeline_mode<synchronous>, transform_indices = @transform_5, window_bounds = array<i64: 1, 32>}, {transform_indices = @transform_6, window_bounds = array<i64: 16, 32>}, {transform_indices = @transform_7, window_bounds = array<i64: 16, 32>}, {transform_indices = @transform_8, window_bounds = array<i64: 16, 32>}]} {
    %c0 = arith.constant 0 : index
    %c0_0 = arith.constant 0 : index
    %0 = vector.load %arg1[%c0, %c0_0] : memref<16x32xf32, #tpu.memory_space<vmem>>, vector<16x32xf32>
    %c0_1 = arith.constant 0 : index
    %c0_2 = arith.constant 0 : index
    %1 = vector.load %arg2[%c0_1, %c0_2] : memref<16x32xf32, #tpu.memory_space<vmem>>, vector<16x32xf32>
    %2 = arith.addf %0, %1 : vector<16x32xf32>
    %c0_3 = arith.constant 0 : index
    %c0_4 = arith.constant 0 : index
    %3 = vector.load %arg3[%c0_3, %c0_4] : memref<32x64xbf16, #tpu.memory_space<vmem>>, vector<32x64xbf16>
    %4 = arith.truncf %2 : vector<16x32xf32> to vector<16x32xbf16>
    %cst = arith.constant dense<0.000000e+00> : vector<16x64xf32>
    %5 = tpu.matmul %4, %3, %cst {dimension_numbers = #tpu.dot_dimension_numbers<[1], [0], [0], [1], [0, 0, 1, 1], [], []>} : vector<16x32xbf16>, vector<32x64xbf16>, vector<16x64xf32> -> vector<16x64xf32>
    %c0_5 = arith.constant 0 : index
    %c0_6 = arith.constant 0 : index
    %6 = vector.load %arg4[%c0_5, %c0_6] : memref<1x64xf32, #tpu.memory_space<vmem>>, vector<1x64xf32>
    %7 = vector.broadcast %6 : vector<1x64xf32> to vector<16x64xf32>
    %8 = arith.addf %5, %7 : vector<16x64xf32>
    %9 = vector.extract_strided_slice %8 {offsets = [0, 0], sizes = [16, 32], strides = [1, 1]} : vector<16x64xf32> to vector<16x32xf32>
    %10 = arith.truncf %9 : vector<16x32xf32> to vector<16x32xbf16>
    %c0_7 = arith.constant 0 : index
    %c0_8 = arith.constant 0 : index
    %11 = vector.load %arg7[%c0_7, %c0_8] : memref<16x32xbf16, #tpu.memory_space<vmem>>, vector<16x32xbf16>
    tpu.vector_store %arg7[%c0_7, %c0_8], %10 {strides = array<i32>} : memref<16x32xbf16, #tpu.memory_space<vmem>>, vector<16x32xbf16>,
    %12 = vector.extract_strided_slice %8 {offsets = [0, 32], sizes = [16, 32], strides = [1, 1]} : vector<16x64xf32> to vector<16x32xf32>
    %13 = arith.truncf %12 : vector<16x32xf32> to vector<16x32xbf16>
    %c0_9 = arith.constant 0 : index
    %c0_10 = arith.constant 0 : index
    %14 = vector.load %arg8[%c0_9, %c0_10] : memref<16x32xbf16, #tpu.memory_space<vmem>>, vector<16x32xbf16>
    tpu.vector_store %arg8[%c0_9, %c0_10], %13 {strides = array<i32>} : memref<16x32xbf16, #tpu.memory_space<vmem>>, vector<16x32xbf16>,
    %c0_11 = arith.constant 0 : index
    %c0_12 = arith.constant 0 : index
    %15 = vector.load %arg5[%c0_11, %c0_12] : memref<32x32xbf16, #tpu.memory_space<vmem>>, vector<32x32xbf16>
    %16 = arith.truncf %0 : vector<16x32xf32> to vector<16x32xbf16>
    %cst_13 = arith.constant dense<0.000000e+00> : vector<16x32xf32>
    %17 = tpu.matmul %16, %15, %cst_13 {dimension_numbers = #tpu.dot_dimension_numbers<[1], [0], [0], [1], [0, 0, 1, 1], [], []>} : vector<16x32xbf16>, vector<32x32xbf16>, vector<16x32xf32> -> vector<16x32xf32>
    %c0_14 = arith.constant 0 : index
    %c0_15 = arith.constant 0 : index
    %18 = vector.load %arg6[%c0_14, %c0_15] : memref<1x32xf32, #tpu.memory_space<vmem>>, vector<1x32xf32>
    %19 = vector.broadcast %18 : vector<1x32xf32> to vector<16x32xf32>
    %20 = arith.addf %17, %19 : vector<16x32xf32>
    %21 = arith.truncf %20 : vector<16x32xf32> to vector<16x32xbf16>
    %c0_16 = arith.constant 0 : index
    %c0_17 = arith.constant 0 : index
    %22 = vector.load %arg9[%c0_16, %c0_17] : memref<16x32xbf16, #tpu.memory_space<vmem>>, vector<16x32xbf16>
    tpu.vector_store %arg9[%c0_16, %c0_17], %21 {strides = array<i32>} : memref<16x32xbf16, #tpu.memory_space<vmem>>, vector<16x32xbf16>,
    return
  }
  func.func @transform_0(%arg0: i32) -> (i32, i32) {
    %c0_i32 = arith.constant 0 : i32
    %c0_i32_0 = arith.constant 0 : i32
    return %arg0, %c0_i32 : i32, i32
  }
  func.func @transform_1(%arg0: i32) -> (i32, i32) {
    %c0_i32 = arith.constant 0 : i32
    %c0_i32_0 = arith.constant 0 : i32
    return %arg0, %c0_i32 : i32, i32
  }
  func.func @transform_2(%arg0: i32) -> (i32, i32) {
    %c0_i32 = arith.constant 0 : i32
    %c0_i32_0 = arith.constant 0 : i32
    %c0_i32_1 = arith.constant 0 : i32
    return %c0_i32, %c0_i32_0 : i32, i32
  }
  func.func @transform_3(%arg0: i32) -> (i32, i32) {
    %c0_i32 = arith.constant 0 : i32
    %c0_i32_0 = arith.constant 0 : i32
    %c0_i32_1 = arith.constant 0 : i32
    return %c0_i32, %c0_i32_0 : i32, i32
  }
  func.func @transform_4(%arg0: i32) -> (i32, i32) {
    %c0_i32 = arith.constant 0 : i32
    %c0_i32_0 = arith.constant 0 : i32
    %c0_i32_1 = arith.constant 0 : i32
    return %c0_i32, %c0_i32_0 : i32, i32
  }
  func.func @transform_5(%arg0: i32) -> (i32, i32) {
    %c0_i32 = arith.constant 0 : i32
    %c0_i32_0 = arith.constant 0 : i32
    %c0_i32_1 = arith.constant 0 : i32
    return %c0_i32, %c0_i32_0 : i32, i32
  }
  func.func @transform_6(%arg0: i32) -> (i32, i32) {
    %c0_i32 = arith.constant 0 : i32
    %c0_i32_0 = arith.constant 0 : i32
    return %arg0, %c0_i32 : i32, i32
  }
  func.func @transform_7(%arg0: i32) -> (i32, i32) {
    %c0_i32 = arith.constant 0 : i32
    %c0_i32_0 = arith.constant 0 : i32
    return %arg0, %c0_i32 : i32, i32
  }
  func.func @transform_8(%arg0: i32) -> (i32, i32) {
    %c0_i32 = arith.constant 0 : i32
    %c0_i32_0 = arith.constant 0 : i32
    return %arg0, %c0_i32 : i32, i32
  }
}

module attributes {stable_mosaic.version = 11 : i64} {
  func.func @_mha_small_fused_kernel(%arg0: i32, %arg1: i32, %arg2: memref<1x8x32xbf16, #tpu.memory_space<vmem>>, %arg3: memref<1x8x32xbf16, #tpu.memory_space<vmem>>, %arg4: memref<1x8x32xbf16, #tpu.memory_space<vmem>>, %arg5: memref<1x1x8xf32, #tpu.memory_space<vmem>>, %arg6: memref<1x8x32xf32, #tpu.memory_space<vmem>>, %arg7: memref<32x32xbf16, #tpu.memory_space<vmem>>, %arg8: memref<1x32xf32, #tpu.memory_space<vmem>>, %arg9: memref<1x32xf32, #tpu.memory_space<vmem>>, %arg10: memref<1x32xf32, #tpu.memory_space<vmem>>, %arg11: memref<1x8x32xf32, #tpu.memory_space<vmem>>) attributes {dimension_semantics = [#tpu.dimension_semantics<parallel>, #tpu.dimension_semantics<parallel>], iteration_bounds = array<i64: 2, 1>, scalar_prefetch = 0 : i64, scratch_operands = 0 : i64, tpu.core_type = #tpu.core_type<tc>, window_params = [{transform_indices = @transform_0, window_bounds = array<i64: 1, 8, 32>}, {transform_indices = @transform_1, window_bounds = array<i64: 1, 8, 32>}, {transform_indices = @transform_2, window_bounds = array<i64: 1, 8, 32>}, {transform_indices = @transform_3, window_bounds = array<i64: 1, 1, 8>}, {transform_indices = @transform_4, window_bounds = array<i64: 1, 8, 32>}, {pipeline_mode = #tpu.pipeline_mode<synchronous>, transform_indices = @transform_5, window_bounds = array<i64: 32, 32>}, {pipeline_mode = #tpu.pipeline_mode<synchronous>, transform_indices = @transform_6, window_bounds = array<i64: 1, 32>}, {pipeline_mode = #tpu.pipeline_mode<synchronous>, transform_indices = @transform_7, window_bounds = array<i64: 1, 32>}, {pipeline_mode = #tpu.pipeline_mode<synchronous>, transform_indices = @transform_8, window_bounds = array<i64: 1, 32>}, {transform_indices = @transform_9, window_bounds = array<i64: 1, 8, 32>}]} {
    %c0 = arith.constant 0 : index
    %c0_0 = arith.constant 0 : index
    %c0_1 = arith.constant 0 : index
    %0 = vector.load %arg2[%c0, %c0_0, %c0_1] : memref<1x8x32xbf16, #tpu.memory_space<vmem>>, vector<1x8x32xbf16>
    %1 = vector.shape_cast %0 : vector<1x8x32xbf16> to vector<8x32xbf16>
    %c0_2 = arith.constant 0 : index
    %c0_3 = arith.constant 0 : index
    %c0_4 = arith.constant 0 : index
    %2 = vector.load %arg3[%c0_2, %c0_3, %c0_4] : memref<1x8x32xbf16, #tpu.memory_space<vmem>>, vector<1x8x32xbf16>
    %3 = vector.shape_cast %2 : vector<1x8x32xbf16> to vector<8x32xbf16>
    %c0_5 = arith.constant 0 : index
    %c0_6 = arith.constant 0 : index
    %c0_7 = arith.constant 0 : index
    %4 = vector.load %arg4[%c0_5, %c0_6, %c0_7] : memref<1x8x32xbf16, #tpu.memory_space<vmem>>, vector<1x8x32xbf16>
    %5 = vector.shape_cast %4 : vector<1x8x32xbf16> to vector<8x32xbf16>
    %c0_8 = arith.constant 0 : index
    %c0_9 = arith.constant 0 : index
    %c0_10 = arith.constant 0 : index
    %6 = vector.load %arg5[%c0_8, %c0_9, %c0_10] : memref<1x1x8xf32, #tpu.memory_space<vmem>>, vector<1x1x8xf32>
    %7 = vector.shape_cast %6 : vector<1x1x8xf32> to vector<1x8xf32>
    %8 = vector.extract_strided_slice %1 {offsets = [0, 0], sizes = [8, 8], strides = [1, 1]} : vector<8x32xbf16> to vector<8x8xbf16>
    %9 = vector.extract_strided_slice %3 {offsets = [0, 0], sizes = [8, 8], strides = [1, 1]} : vector<8x32xbf16> to vector<8x8xbf16>
    %cst = arith.constant dense<0.000000e+00> : vector<8x8xf32>
    %10 = tpu.matmul %8, %9, %cst {dimension_numbers = #tpu.dot_dimension_numbers<[1], [1], [0], [0], [0, 0, 1, 0], [], []>} : vector<8x8xbf16>, vector<8x8xbf16>, vector<8x8xf32> -> vector<8x8xf32>
    %11 = vector.broadcast %7 : vector<1x8xf32> to vector<8x8xf32>
    %12 = arith.addf %10, %11 : vector<8x8xf32>
    %cst_11 = arith.constant dense<0xFF800000> : vector<8xf32>
    %13 = vector.multi_reduction <maximumf>, %12, %cst_11 [1] : vector<8x8xf32> to vector<8xf32>
    %14 = vector.shape_cast %13 : vector<8xf32> to vector<8x1xf32>
    %15 = vector.broadcast %14 : vector<8x1xf32> to vector<8x8xf32>
    %16 = arith.subf %12, %15 : vector<8x8xf32>
    %17 = math.exp %16 : vector<8x8xf32>
    %cst_12 = arith.constant dense<0.000000e+00> : vector<8xf32>
    %18 = vector.multi_reduction <add>, %17, %cst_12 [1] : vector<8x8xf32> to vector<8xf32>
    %19 = vector.shape_cast %18 : vector<8xf32> to vector<8x1xf32>
    %20 = arith.truncf %17 : vector<8x8xf32> to vector<8x8xbf16>
    %21 = vector.extract_strided_slice %5 {offsets = [0, 0], sizes = [8, 8], strides = [1, 1]} : vector<8x32xbf16> to vector<8x8xbf16>
    %cst_13 = arith.constant dense<0.000000e+00> : vector<8x8xf32>
    %22 = tpu.matmul %20, %21, %cst_13 {dimension_numbers = #tpu.dot_dimension_numbers<[1], [0], [0], [1], [0, 0, 1, 1], [], []>} : vector<8x8xbf16>, vector<8x8xbf16>, vector<8x8xf32> -> vector<8x8xf32>
    %cst_14 = arith.constant 1.000000e+00 : f32
    %23 = vector.broadcast %cst_14 : f32 to vector<8x1xf32>
    %24 = arith.divf %23, %19 : vector<8x1xf32>
    %25 = vector.broadcast %24 : vector<8x1xf32> to vector<8x8xf32>
    %26 = arith.mulf %22, %25 : vector<8x8xf32>
    %27 = vector.extract_strided_slice %1 {offsets = [0, 8], sizes = [8, 8], strides = [1, 1]} : vector<8x32xbf16> to vector<8x8xbf16>
    %28 = vector.extract_strided_slice %3 {offsets = [0, 8], sizes = [8, 8], strides = [1, 1]} : vector<8x32xbf16> to vector<8x8xbf16>
    %cst_15 = arith.constant dense<0.000000e+00> : vector<8x8xf32>
    %29 = tpu.matmul %27, %28, %cst_15 {dimension_numbers = #tpu.dot_dimension_numbers<[1], [1], [0], [0], [0, 0, 1, 0], [], []>} : vector<8x8xbf16>, vector<8x8xbf16>, vector<8x8xf32> -> vector<8x8xf32>
    %30 = vector.broadcast %7 : vector<1x8xf32> to vector<8x8xf32>
    %31 = arith.addf %29, %30 : vector<8x8xf32>
    %cst_16 = arith.constant dense<0xFF800000> : vector<8xf32>
    %32 = vector.multi_reduction <maximumf>, %31, %cst_16 [1] : vector<8x8xf32> to vector<8xf32>
    %33 = vector.shape_cast %32 : vector<8xf32> to vector<8x1xf32>
    %34 = vector.broadcast %33 : vector<8x1xf32> to vector<8x8xf32>
    %35 = arith.subf %31, %34 : vector<8x8xf32>
    %36 = math.exp %35 : vector<8x8xf32>
    %cst_17 = arith.constant dense<0.000000e+00> : vector<8xf32>
    %37 = vector.multi_reduction <add>, %36, %cst_17 [1] : vector<8x8xf32> to vector<8xf32>
    %38 = vector.shape_cast %37 : vector<8xf32> to vector<8x1xf32>
    %39 = arith.truncf %36 : vector<8x8xf32> to vector<8x8xbf16>
    %40 = vector.extract_strided_slice %5 {offsets = [0, 8], sizes = [8, 8], strides = [1, 1]} : vector<8x32xbf16> to vector<8x8xbf16>
    %cst_18 = arith.constant dense<0.000000e+00> : vector<8x8xf32>
    %41 = tpu.matmul %39, %40, %cst_18 {dimension_numbers = #tpu.dot_dimension_numbers<[1], [0], [0], [1], [0, 0, 1, 1], [], []>} : vector<8x8xbf16>, vector<8x8xbf16>, vector<8x8xf32> -> vector<8x8xf32>
    %cst_19 = arith.constant 1.000000e+00 : f32
    %42 = vector.broadcast %cst_19 : f32 to vector<8x1xf32>
    %43 = arith.divf %42, %38 : vector<8x1xf32>
    %44 = vector.broadcast %43 : vector<8x1xf32> to vector<8x8xf32>
    %45 = arith.mulf %41, %44 : vector<8x8xf32>
    %46 = vector.extract_strided_slice %1 {offsets = [0, 16], sizes = [8, 8], strides = [1, 1]} : vector<8x32xbf16> to vector<8x8xbf16>
    %47 = vector.extract_strided_slice %3 {offsets = [0, 16], sizes = [8, 8], strides = [1, 1]} : vector<8x32xbf16> to vector<8x8xbf16>
    %cst_20 = arith.constant dense<0.000000e+00> : vector<8x8xf32>
    %48 = tpu.matmul %46, %47, %cst_20 {dimension_numbers = #tpu.dot_dimension_numbers<[1], [1], [0], [0], [0, 0, 1, 0], [], []>} : vector<8x8xbf16>, vector<8x8xbf16>, vector<8x8xf32> -> vector<8x8xf32>
    %49 = vector.broadcast %7 : vector<1x8xf32> to vector<8x8xf32>
    %50 = arith.addf %48, %49 : vector<8x8xf32>
    %cst_21 = arith.constant dense<0xFF800000> : vector<8xf32>
    %51 = vector.multi_reduction <maximumf>, %50, %cst_21 [1] : vector<8x8xf32> to vector<8xf32>
    %52 = vector.shape_cast %51 : vector<8xf32> to vector<8x1xf32>
    %53 = vector.broadcast %52 : vector<8x1xf32> to vector<8x8xf32>
    %54 = arith.subf %50, %53 : vector<8x8xf32>
    %55 = math.exp %54 : vector<8x8xf32>
    %cst_22 = arith.constant dense<0.000000e+00> : vector<8xf32>
    %56 = vector.multi_reduction <add>, %55, %cst_22 [1] : vector<8x8xf32> to vector<8xf32>
    %57 = vector.shape_cast %56 : vector<8xf32> to vector<8x1xf32>
    %58 = arith.truncf %55 : vector<8x8xf32> to vector<8x8xbf16>
    %59 = vector.extract_strided_slice %5 {offsets = [0, 16], sizes = [8, 8], strides = [1, 1]} : vector<8x32xbf16> to vector<8x8xbf16>
    %cst_23 = arith.constant dense<0.000000e+00> : vector<8x8xf32>
    %60 = tpu.matmul %58, %59, %cst_23 {dimension_numbers = #tpu.dot_dimension_numbers<[1], [0], [0], [1], [0, 0, 1, 1], [], []>} : vector<8x8xbf16>, vector<8x8xbf16>, vector<8x8xf32> -> vector<8x8xf32>
    %cst_24 = arith.constant 1.000000e+00 : f32
    %61 = vector.broadcast %cst_24 : f32 to vector<8x1xf32>
    %62 = arith.divf %61, %57 : vector<8x1xf32>
    %63 = vector.broadcast %62 : vector<8x1xf32> to vector<8x8xf32>
    %64 = arith.mulf %60, %63 : vector<8x8xf32>
    %65 = vector.extract_strided_slice %1 {offsets = [0, 24], sizes = [8, 8], strides = [1, 1]} : vector<8x32xbf16> to vector<8x8xbf16>
    %66 = vector.extract_strided_slice %3 {offsets = [0, 24], sizes = [8, 8], strides = [1, 1]} : vector<8x32xbf16> to vector<8x8xbf16>
    %cst_25 = arith.constant dense<0.000000e+00> : vector<8x8xf32>
    %67 = tpu.matmul %65, %66, %cst_25 {dimension_numbers = #tpu.dot_dimension_numbers<[1], [1], [0], [0], [0, 0, 1, 0], [], []>} : vector<8x8xbf16>, vector<8x8xbf16>, vector<8x8xf32> -> vector<8x8xf32>
    %68 = vector.broadcast %7 : vector<1x8xf32> to vector<8x8xf32>
    %69 = arith.addf %67, %68 : vector<8x8xf32>
    %cst_26 = arith.constant dense<0xFF800000> : vector<8xf32>
    %70 = vector.multi_reduction <maximumf>, %69, %cst_26 [1] : vector<8x8xf32> to vector<8xf32>
    %71 = vector.shape_cast %70 : vector<8xf32> to vector<8x1xf32>
    %72 = vector.broadcast %71 : vector<8x1xf32> to vector<8x8xf32>
    %73 = arith.subf %69, %72 : vector<8x8xf32>
    %74 = math.exp %73 : vector<8x8xf32>
    %cst_27 = arith.constant dense<0.000000e+00> : vector<8xf32>
    %75 = vector.multi_reduction <add>, %74, %cst_27 [1] : vector<8x8xf32> to vector<8xf32>
    %76 = vector.shape_cast %75 : vector<8xf32> to vector<8x1xf32>
    %77 = arith.truncf %74 : vector<8x8xf32> to vector<8x8xbf16>
    %78 = vector.extract_strided_slice %5 {offsets = [0, 24], sizes = [8, 8], strides = [1, 1]} : vector<8x32xbf16> to vector<8x8xbf16>
    %cst_28 = arith.constant dense<0.000000e+00> : vector<8x8xf32>
    %79 = tpu.matmul %77, %78, %cst_28 {dimension_numbers = #tpu.dot_dimension_numbers<[1], [0], [0], [1], [0, 0, 1, 1], [], []>} : vector<8x8xbf16>, vector<8x8xbf16>, vector<8x8xf32> -> vector<8x8xf32>
    %cst_29 = arith.constant 1.000000e+00 : f32
    %80 = vector.broadcast %cst_29 : f32 to vector<8x1xf32>
    %81 = arith.divf %80, %76 : vector<8x1xf32>
    %82 = vector.broadcast %81 : vector<8x1xf32> to vector<8x8xf32>
    %83 = arith.mulf %79, %82 : vector<8x8xf32>
    %84 = tpu.concatenate %26, %45, %64, %83 in 1 : vector<8x8xf32>, vector<8x8xf32>, vector<8x8xf32>, vector<8x8xf32> -> vector<8x32xf32>
    %c0_30 = arith.constant 0 : index
    %c0_31 = arith.constant 0 : index
    %c0_32 = arith.constant 0 : index
    %85 = vector.load %arg6[%c0_30, %c0_31, %c0_32] : memref<1x8x32xf32, #tpu.memory_space<vmem>>, vector<1x8x32xf32>
    %86 = vector.shape_cast %85 : vector<1x8x32xf32> to vector<8x32xf32>
    %c0_33 = arith.constant 0 : index
    %c0_34 = arith.constant 0 : index
    %87 = vector.load %arg7[%c0_33, %c0_34] : memref<32x32xbf16, #tpu.memory_space<vmem>>, vector<32x32xbf16>
    %88 = arith.truncf %84 : vector<8x32xf32> to vector<8x32xbf16>
    %cst_35 = arith.constant dense<0.000000e+00> : vector<8x32xf32>
    %89 = tpu.matmul %88, %87, %cst_35 {dimension_numbers = #tpu.dot_dimension_numbers<[1], [0], [0], [1], [0, 0, 1, 1], [], []>} : vector<8x32xbf16>, vector<32x32xbf16>, vector<8x32xf32> -> vector<8x32xf32>
    %90 = arith.addf %86, %89 : vector<8x32xf32>
    %c0_36 = arith.constant 0 : index
    %c0_37 = arith.constant 0 : index
    %91 = vector.load %arg8[%c0_36, %c0_37] : memref<1x32xf32, #tpu.memory_space<vmem>>, vector<1x32xf32>
    %92 = vector.broadcast %91 : vector<1x32xf32> to vector<8x32xf32>
    %93 = arith.addf %90, %92 : vector<8x32xf32>
    %c0_38 = arith.constant 0 : index
    %c0_39 = arith.constant 0 : index
    %94 = vector.load %arg9[%c0_38, %c0_39] : memref<1x32xf32, #tpu.memory_space<vmem>>, vector<1x32xf32>
    %c0_40 = arith.constant 0 : index
    %c0_41 = arith.constant 0 : index
    %95 = vector.load %arg10[%c0_40, %c0_41] : memref<1x32xf32, #tpu.memory_space<vmem>>, vector<1x32xf32>
    %cst_42 = arith.constant dense<0.000000e+00> : vector<8xf32>
    %96 = vector.multi_reduction <add>, %93, %cst_42 [1] : vector<8x32xf32> to vector<8xf32>
    %97 = vector.shape_cast %96 : vector<8xf32> to vector<8x1xf32>
    %cst_43 = arith.constant 3.200000e+01 : f32
    %98 = vector.broadcast %cst_43 : f32 to vector<8x1xf32>
    %99 = arith.divf %97, %98 : vector<8x1xf32>
    %100 = vector.broadcast %99 : vector<8x1xf32> to vector<8x32xf32>
    %101 = arith.subf %93, %100 : vector<8x32xf32>
    %102 = arith.mulf %101, %101 : vector<8x32xf32>
    %cst_44 = arith.constant dense<0.000000e+00> : vector<8xf32>
    %103 = vector.multi_reduction <add>, %102, %cst_44 [1] : vector<8x32xf32> to vector<8xf32>
    %104 = vector.shape_cast %103 : vector<8xf32> to vector<8x1xf32>
    %cst_45 = arith.constant 3.200000e+01 : f32
    %105 = vector.broadcast %cst_45 : f32 to vector<8x1xf32>
    %106 = arith.divf %104, %105 : vector<8x1xf32>
    %107 = vector.broadcast %99 : vector<8x1xf32> to vector<8x32xf32>
    %108 = arith.subf %93, %107 : vector<8x32xf32>
    %cst_46 = arith.constant 9.99999974E-6 : f32
    %109 = vector.broadcast %cst_46 : f32 to vector<8x1xf32>
    %110 = arith.addf %106, %109 : vector<8x1xf32>
    %111 = math.rsqrt %110 : vector<8x1xf32>
    %112 = vector.broadcast %111 : vector<8x1xf32> to vector<8x32xf32>
    %113 = arith.mulf %108, %112 : vector<8x32xf32>
    %114 = vector.broadcast %94 : vector<1x32xf32> to vector<8x32xf32>
    %115 = arith.mulf %113, %114 : vector<8x32xf32>
    %116 = vector.broadcast %95 : vector<1x32xf32> to vector<8x32xf32>
    %117 = arith.addf %115, %116 : vector<8x32xf32>
    %c0_47 = arith.constant 0 : index
    %c0_48 = arith.constant 0 : index
    %c0_49 = arith.constant 0 : index
    %118 = vector.load %arg11[%c0_47, %c0_48, %c0_49] : memref<1x8x32xf32, #tpu.memory_space<vmem>>, vector<1x8x32xf32>
    %119 = vector.shape_cast %118 : vector<1x8x32xf32> to vector<8x32xf32>
    %120 = vector.shape_cast %117 : vector<8x32xf32> to vector<1x8x32xf32>
    tpu.vector_store %arg11[%c0_47, %c0_48, %c0_49], %120 {strides = array<i32>} : memref<1x8x32xf32, #tpu.memory_space<vmem>>, vector<1x8x32xf32>,
    return
  }
  func.func @transform_0(%arg0: i32, %arg1: i32) -> (i32, i32, i32) {
    %c0_i32 = arith.constant 0 : i32
    %c0_i32_0 = arith.constant 0 : i32
    return %arg0, %arg1, %c0_i32 : i32, i32, i32
  }
  func.func @transform_1(%arg0: i32, %arg1: i32) -> (i32, i32, i32) {
    %c0_i32 = arith.constant 0 : i32
    %c0_i32_0 = arith.constant 0 : i32
    %c0_i32_1 = arith.constant 0 : i32
    return %arg0, %c0_i32, %c0_i32_0 : i32, i32, i32
  }
  func.func @transform_2(%arg0: i32, %arg1: i32) -> (i32, i32, i32) {
    %c0_i32 = arith.constant 0 : i32
    %c0_i32_0 = arith.constant 0 : i32
    %c0_i32_1 = arith.constant 0 : i32
    return %arg0, %c0_i32, %c0_i32_0 : i32, i32, i32
  }
  func.func @transform_3(%arg0: i32, %arg1: i32) -> (i32, i32, i32) {
    %c0_i32 = arith.constant 0 : i32
    %c0_i32_0 = arith.constant 0 : i32
    %c0_i32_1 = arith.constant 0 : i32
    return %arg0, %c0_i32, %c0_i32_0 : i32, i32, i32
  }
  func.func @transform_4(%arg0: i32, %arg1: i32) -> (i32, i32, i32) {
    %c0_i32 = arith.constant 0 : i32
    %c0_i32_0 = arith.constant 0 : i32
    return %arg0, %arg1, %c0_i32 : i32, i32, i32
  }
  func.func @transform_5(%arg0: i32, %arg1: i32) -> (i32, i32) {
    %c0_i32 = arith.constant 0 : i32
    %c0_i32_0 = arith.constant 0 : i32
    %c0_i32_1 = arith.constant 0 : i32
    return %c0_i32, %c0_i32_0 : i32, i32
  }
  func.func @transform_6(%arg0: i32, %arg1: i32) -> (i32, i32) {
    %c0_i32 = arith.constant 0 : i32
    %c0_i32_0 = arith.constant 0 : i32
    %c0_i32_1 = arith.constant 0 : i32
    return %c0_i32, %c0_i32_0 : i32, i32
  }
  func.func @transform_7(%arg0: i32, %arg1: i32) -> (i32, i32) {
    %c0_i32 = arith.constant 0 : i32
    %c0_i32_0 = arith.constant 0 : i32
    %c0_i32_1 = arith.constant 0 : i32
    return %c0_i32, %c0_i32_0 : i32, i32
  }
  func.func @transform_8(%arg0: i32, %arg1: i32) -> (i32, i32) {
    %c0_i32 = arith.constant 0 : i32
    %c0_i32_0 = arith.constant 0 : i32
    %c0_i32_1 = arith.constant 0 : i32
    return %c0_i32, %c0_i32_0 : i32, i32
  }
  func.func @transform_9(%arg0: i32, %arg1: i32) -> (i32, i32, i32) {
    %c0_i32 = arith.constant 0 : i32
    %c0_i32_0 = arith.constant 0 : i32
    return %arg0, %arg1, %c0_i32 : i32, i32, i32
  }
}

module attributes {stable_mosaic.version = 11 : i64} {
  func.func @_q_proj_kernel(%arg0: i32, %arg1: memref<16x32xf32, #tpu.memory_space<vmem>>, %arg2: memref<16x32xf32, #tpu.memory_space<vmem>>, %arg3: memref<32x32xbf16, #tpu.memory_space<vmem>>, %arg4: memref<1x32xf32, #tpu.memory_space<vmem>>, %arg5: memref<16x32xbf16, #tpu.memory_space<vmem>>) attributes {dimension_semantics = [#tpu.dimension_semantics<parallel>], iteration_bounds = array<i64: 1>, scalar_prefetch = 0 : i64, scratch_operands = 0 : i64, tpu.core_type = #tpu.core_type<tc>, window_params = [{transform_indices = @transform_0, window_bounds = array<i64: 16, 32>}, {transform_indices = @transform_1, window_bounds = array<i64: 16, 32>}, {pipeline_mode = #tpu.pipeline_mode<synchronous>, transform_indices = @transform_2, window_bounds = array<i64: 32, 32>}, {pipeline_mode = #tpu.pipeline_mode<synchronous>, transform_indices = @transform_3, window_bounds = array<i64: 1, 32>}, {transform_indices = @transform_4, window_bounds = array<i64: 16, 32>}]} {
    %c0 = arith.constant 0 : index
    %c0_0 = arith.constant 0 : index
    %0 = vector.load %arg1[%c0, %c0_0] : memref<16x32xf32, #tpu.memory_space<vmem>>, vector<16x32xf32>
    %c0_1 = arith.constant 0 : index
    %c0_2 = arith.constant 0 : index
    %1 = vector.load %arg2[%c0_1, %c0_2] : memref<16x32xf32, #tpu.memory_space<vmem>>, vector<16x32xf32>
    %2 = arith.addf %0, %1 : vector<16x32xf32>
    %c0_3 = arith.constant 0 : index
    %c0_4 = arith.constant 0 : index
    %3 = vector.load %arg3[%c0_3, %c0_4] : memref<32x32xbf16, #tpu.memory_space<vmem>>, vector<32x32xbf16>
    %4 = arith.truncf %2 : vector<16x32xf32> to vector<16x32xbf16>
    %cst = arith.constant dense<0.000000e+00> : vector<16x32xf32>
    %5 = tpu.matmul %4, %3, %cst {dimension_numbers = #tpu.dot_dimension_numbers<[1], [0], [0], [1], [0, 0, 1, 1], [], []>} : vector<16x32xbf16>, vector<32x32xbf16>, vector<16x32xf32> -> vector<16x32xf32>
    %c0_5 = arith.constant 0 : index
    %c0_6 = arith.constant 0 : index
    %6 = vector.load %arg4[%c0_5, %c0_6] : memref<1x32xf32, #tpu.memory_space<vmem>>, vector<1x32xf32>
    %7 = vector.broadcast %6 : vector<1x32xf32> to vector<16x32xf32>
    %8 = arith.addf %5, %7 : vector<16x32xf32>
    %9 = arith.truncf %8 : vector<16x32xf32> to vector<16x32xbf16>
    %c0_7 = arith.constant 0 : index
    %c0_8 = arith.constant 0 : index
    %10 = vector.load %arg5[%c0_7, %c0_8] : memref<16x32xbf16, #tpu.memory_space<vmem>>, vector<16x32xbf16>
    tpu.vector_store %arg5[%c0_7, %c0_8], %9 {strides = array<i32>} : memref<16x32xbf16, #tpu.memory_space<vmem>>, vector<16x32xbf16>,
    return
  }
  func.func @transform_0(%arg0: i32) -> (i32, i32) {
    %c0_i32 = arith.constant 0 : i32
    %c0_i32_0 = arith.constant 0 : i32
    return %arg0, %c0_i32 : i32, i32
  }
  func.func @transform_1(%arg0: i32) -> (i32, i32) {
    %c0_i32 = arith.constant 0 : i32
    %c0_i32_0 = arith.constant 0 : i32
    return %arg0, %c0_i32 : i32, i32
  }
  func.func @transform_2(%arg0: i32) -> (i32, i32) {
    %c0_i32 = arith.constant 0 : i32
    %c0_i32_0 = arith.constant 0 : i32
    %c0_i32_1 = arith.constant 0 : i32
    return %c0_i32, %c0_i32_0 : i32, i32
  }
  func.func @transform_3(%arg0: i32) -> (i32, i32) {
    %c0_i32 = arith.constant 0 : i32
    %c0_i32_0 = arith.constant 0 : i32
    %c0_i32_1 = arith.constant 0 : i32
    return %c0_i32, %c0_i32_0 : i32, i32
  }
  func.func @transform_4(%arg0: i32) -> (i32, i32) {
    %c0_i32 = arith.constant 0 : i32
    %c0_i32_0 = arith.constant 0 : i32
    return %arg0, %c0_i32 : i32, i32
  }
}

module attributes {stable_mosaic.version = 11 : i64} {
  func.func @_mha_small_fused_kernel(%arg0: i32, %arg1: i32, %arg2: memref<1x8x32xbf16, #tpu.memory_space<vmem>>, %arg3: memref<1x16x32xbf16, #tpu.memory_space<vmem>>, %arg4: memref<1x16x32xbf16, #tpu.memory_space<vmem>>, %arg5: memref<1x1x16xf32, #tpu.memory_space<vmem>>, %arg6: memref<1x8x32xf32, #tpu.memory_space<vmem>>, %arg7: memref<32x32xbf16, #tpu.memory_space<vmem>>, %arg8: memref<1x32xf32, #tpu.memory_space<vmem>>, %arg9: memref<1x32xf32, #tpu.memory_space<vmem>>, %arg10: memref<1x32xf32, #tpu.memory_space<vmem>>, %arg11: memref<1x8x32xf32, #tpu.memory_space<vmem>>) attributes {dimension_semantics = [#tpu.dimension_semantics<parallel>, #tpu.dimension_semantics<parallel>], iteration_bounds = array<i64: 2, 1>, scalar_prefetch = 0 : i64, scratch_operands = 0 : i64, tpu.core_type = #tpu.core_type<tc>, window_params = [{transform_indices = @transform_0, window_bounds = array<i64: 1, 8, 32>}, {transform_indices = @transform_1, window_bounds = array<i64: 1, 16, 32>}, {transform_indices = @transform_2, window_bounds = array<i64: 1, 16, 32>}, {transform_indices = @transform_3, window_bounds = array<i64: 1, 1, 16>}, {transform_indices = @transform_4, window_bounds = array<i64: 1, 8, 32>}, {pipeline_mode = #tpu.pipeline_mode<synchronous>, transform_indices = @transform_5, window_bounds = array<i64: 32, 32>}, {pipeline_mode = #tpu.pipeline_mode<synchronous>, transform_indices = @transform_6, window_bounds = array<i64: 1, 32>}, {pipeline_mode = #tpu.pipeline_mode<synchronous>, transform_indices = @transform_7, window_bounds = array<i64: 1, 32>}, {pipeline_mode = #tpu.pipeline_mode<synchronous>, transform_indices = @transform_8, window_bounds = array<i64: 1, 32>}, {transform_indices = @transform_9, window_bounds = array<i64: 1, 8, 32>}]} {
    %c0 = arith.constant 0 : index
    %c0_0 = arith.constant 0 : index
    %c0_1 = arith.constant 0 : index
    %0 = vector.load %arg2[%c0, %c0_0, %c0_1] : memref<1x8x32xbf16, #tpu.memory_space<vmem>>, vector<1x8x32xbf16>
    %1 = vector.shape_cast %0 : vector<1x8x32xbf16> to vector<8x32xbf16>
    %c0_2 = arith.constant 0 : index
    %c0_3 = arith.constant 0 : index
    %c0_4 = arith.constant 0 : index
    %2 = vector.load %arg3[%c0_2, %c0_3, %c0_4] : memref<1x16x32xbf16, #tpu.memory_space<vmem>>, vector<1x16x32xbf16>
    %3 = vector.shape_cast %2 : vector<1x16x32xbf16> to vector<16x32xbf16>
    %c0_5 = arith.constant 0 : index
    %c0_6 = arith.constant 0 : index
    %c0_7 = arith.constant 0 : index
    %4 = vector.load %arg4[%c0_5, %c0_6, %c0_7] : memref<1x16x32xbf16, #tpu.memory_space<vmem>>, vector<1x16x32xbf16>
    %5 = vector.shape_cast %4 : vector<1x16x32xbf16> to vector<16x32xbf16>
    %c0_8 = arith.constant 0 : index
    %c0_9 = arith.constant 0 : index
    %c0_10 = arith.constant 0 : index
    %6 = vector.load %arg5[%c0_8, %c0_9, %c0_10] : memref<1x1x16xf32, #tpu.memory_space<vmem>>, vector<1x1x16xf32>
    %7 = vector.shape_cast %6 : vector<1x1x16xf32> to vector<1x16xf32>
    %8 = vector.extract_strided_slice %1 {offsets = [0, 0], sizes = [8, 8], strides = [1, 1]} : vector<8x32xbf16> to vector<8x8xbf16>
    %9 = vector.extract_strided_slice %3 {offsets = [0, 0], sizes = [16, 8], strides = [1, 1]} : vector<16x32xbf16> to vector<16x8xbf16>
    %cst = arith.constant dense<0.000000e+00> : vector<8x16xf32>
    %10 = tpu.matmul %8, %9, %cst {dimension_numbers = #tpu.dot_dimension_numbers<[1], [1], [0], [0], [0, 0, 1, 0], [], []>} : vector<8x8xbf16>, vector<16x8xbf16>, vector<8x16xf32> -> vector<8x16xf32>
    %11 = vector.broadcast %7 : vector<1x16xf32> to vector<8x16xf32>
    %12 = arith.addf %10, %11 : vector<8x16xf32>
    %cst_11 = arith.constant dense<0xFF800000> : vector<8xf32>
    %13 = vector.multi_reduction <maximumf>, %12, %cst_11 [1] : vector<8x16xf32> to vector<8xf32>
    %14 = vector.shape_cast %13 : vector<8xf32> to vector<8x1xf32>
    %15 = vector.broadcast %14 : vector<8x1xf32> to vector<8x16xf32>
    %16 = arith.subf %12, %15 : vector<8x16xf32>
    %17 = math.exp %16 : vector<8x16xf32>
    %cst_12 = arith.constant dense<0.000000e+00> : vector<8xf32>
    %18 = vector.multi_reduction <add>, %17, %cst_12 [1] : vector<8x16xf32> to vector<8xf32>
    %19 = vector.shape_cast %18 : vector<8xf32> to vector<8x1xf32>
    %20 = arith.truncf %17 : vector<8x16xf32> to vector<8x16xbf16>
    %21 = vector.extract_strided_slice %5 {offsets = [0, 0], sizes = [16, 8], strides = [1, 1]} : vector<16x32xbf16> to vector<16x8xbf16>
    %cst_13 = arith.constant dense<0.000000e+00> : vector<8x8xf32>
    %22 = tpu.matmul %20, %21, %cst_13 {dimension_numbers = #tpu.dot_dimension_numbers<[1], [0], [0], [1], [0, 0, 1, 1], [], []>} : vector<8x16xbf16>, vector<16x8xbf16>, vector<8x8xf32> -> vector<8x8xf32>
    %cst_14 = arith.constant 1.000000e+00 : f32
    %23 = vector.broadcast %cst_14 : f32 to vector<8x1xf32>
    %24 = arith.divf %23, %19 : vector<8x1xf32>
    %25 = vector.broadcast %24 : vector<8x1xf32> to vector<8x8xf32>
    %26 = arith.mulf %22, %25 : vector<8x8xf32>
    %27 = vector.extract_strided_slice %1 {offsets = [0, 8], sizes = [8, 8], strides = [1, 1]} : vector<8x32xbf16> to vector<8x8xbf16>
    %28 = vector.extract_strided_slice %3 {offsets = [0, 8], sizes = [16, 8], strides = [1, 1]} : vector<16x32xbf16> to vector<16x8xbf16>
    %cst_15 = arith.constant dense<0.000000e+00> : vector<8x16xf32>
    %29 = tpu.matmul %27, %28, %cst_15 {dimension_numbers = #tpu.dot_dimension_numbers<[1], [1], [0], [0], [0, 0, 1, 0], [], []>} : vector<8x8xbf16>, vector<16x8xbf16>, vector<8x16xf32> -> vector<8x16xf32>
    %30 = vector.broadcast %7 : vector<1x16xf32> to vector<8x16xf32>
    %31 = arith.addf %29, %30 : vector<8x16xf32>
    %cst_16 = arith.constant dense<0xFF800000> : vector<8xf32>
    %32 = vector.multi_reduction <maximumf>, %31, %cst_16 [1] : vector<8x16xf32> to vector<8xf32>
    %33 = vector.shape_cast %32 : vector<8xf32> to vector<8x1xf32>
    %34 = vector.broadcast %33 : vector<8x1xf32> to vector<8x16xf32>
    %35 = arith.subf %31, %34 : vector<8x16xf32>
    %36 = math.exp %35 : vector<8x16xf32>
    %cst_17 = arith.constant dense<0.000000e+00> : vector<8xf32>
    %37 = vector.multi_reduction <add>, %36, %cst_17 [1] : vector<8x16xf32> to vector<8xf32>
    %38 = vector.shape_cast %37 : vector<8xf32> to vector<8x1xf32>
    %39 = arith.truncf %36 : vector<8x16xf32> to vector<8x16xbf16>
    %40 = vector.extract_strided_slice %5 {offsets = [0, 8], sizes = [16, 8], strides = [1, 1]} : vector<16x32xbf16> to vector<16x8xbf16>
    %cst_18 = arith.constant dense<0.000000e+00> : vector<8x8xf32>
    %41 = tpu.matmul %39, %40, %cst_18 {dimension_numbers = #tpu.dot_dimension_numbers<[1], [0], [0], [1], [0, 0, 1, 1], [], []>} : vector<8x16xbf16>, vector<16x8xbf16>, vector<8x8xf32> -> vector<8x8xf32>
    %cst_19 = arith.constant 1.000000e+00 : f32
    %42 = vector.broadcast %cst_19 : f32 to vector<8x1xf32>
    %43 = arith.divf %42, %38 : vector<8x1xf32>
    %44 = vector.broadcast %43 : vector<8x1xf32> to vector<8x8xf32>
    %45 = arith.mulf %41, %44 : vector<8x8xf32>
    %46 = vector.extract_strided_slice %1 {offsets = [0, 16], sizes = [8, 8], strides = [1, 1]} : vector<8x32xbf16> to vector<8x8xbf16>
    %47 = vector.extract_strided_slice %3 {offsets = [0, 16], sizes = [16, 8], strides = [1, 1]} : vector<16x32xbf16> to vector<16x8xbf16>
    %cst_20 = arith.constant dense<0.000000e+00> : vector<8x16xf32>
    %48 = tpu.matmul %46, %47, %cst_20 {dimension_numbers = #tpu.dot_dimension_numbers<[1], [1], [0], [0], [0, 0, 1, 0], [], []>} : vector<8x8xbf16>, vector<16x8xbf16>, vector<8x16xf32> -> vector<8x16xf32>
    %49 = vector.broadcast %7 : vector<1x16xf32> to vector<8x16xf32>
    %50 = arith.addf %48, %49 : vector<8x16xf32>
    %cst_21 = arith.constant dense<0xFF800000> : vector<8xf32>
    %51 = vector.multi_reduction <maximumf>, %50, %cst_21 [1] : vector<8x16xf32> to vector<8xf32>
    %52 = vector.shape_cast %51 : vector<8xf32> to vector<8x1xf32>
    %53 = vector.broadcast %52 : vector<8x1xf32> to vector<8x16xf32>
    %54 = arith.subf %50, %53 : vector<8x16xf32>
    %55 = math.exp %54 : vector<8x16xf32>
    %cst_22 = arith.constant dense<0.000000e+00> : vector<8xf32>
    %56 = vector.multi_reduction <add>, %55, %cst_22 [1] : vector<8x16xf32> to vector<8xf32>
    %57 = vector.shape_cast %56 : vector<8xf32> to vector<8x1xf32>
    %58 = arith.truncf %55 : vector<8x16xf32> to vector<8x16xbf16>
    %59 = vector.extract_strided_slice %5 {offsets = [0, 16], sizes = [16, 8], strides = [1, 1]} : vector<16x32xbf16> to vector<16x8xbf16>
    %cst_23 = arith.constant dense<0.000000e+00> : vector<8x8xf32>
    %60 = tpu.matmul %58, %59, %cst_23 {dimension_numbers = #tpu.dot_dimension_numbers<[1], [0], [0], [1], [0, 0, 1, 1], [], []>} : vector<8x16xbf16>, vector<16x8xbf16>, vector<8x8xf32> -> vector<8x8xf32>
    %cst_24 = arith.constant 1.000000e+00 : f32
    %61 = vector.broadcast %cst_24 : f32 to vector<8x1xf32>
    %62 = arith.divf %61, %57 : vector<8x1xf32>
    %63 = vector.broadcast %62 : vector<8x1xf32> to vector<8x8xf32>
    %64 = arith.mulf %60, %63 : vector<8x8xf32>
    %65 = vector.extract_strided_slice %1 {offsets = [0, 24], sizes = [8, 8], strides = [1, 1]} : vector<8x32xbf16> to vector<8x8xbf16>
    %66 = vector.extract_strided_slice %3 {offsets = [0, 24], sizes = [16, 8], strides = [1, 1]} : vector<16x32xbf16> to vector<16x8xbf16>
    %cst_25 = arith.constant dense<0.000000e+00> : vector<8x16xf32>
    %67 = tpu.matmul %65, %66, %cst_25 {dimension_numbers = #tpu.dot_dimension_numbers<[1], [1], [0], [0], [0, 0, 1, 0], [], []>} : vector<8x8xbf16>, vector<16x8xbf16>, vector<8x16xf32> -> vector<8x16xf32>
    %68 = vector.broadcast %7 : vector<1x16xf32> to vector<8x16xf32>
    %69 = arith.addf %67, %68 : vector<8x16xf32>
    %cst_26 = arith.constant dense<0xFF800000> : vector<8xf32>
    %70 = vector.multi_reduction <maximumf>, %69, %cst_26 [1] : vector<8x16xf32> to vector<8xf32>
    %71 = vector.shape_cast %70 : vector<8xf32> to vector<8x1xf32>
    %72 = vector.broadcast %71 : vector<8x1xf32> to vector<8x16xf32>
    %73 = arith.subf %69, %72 : vector<8x16xf32>
    %74 = math.exp %73 : vector<8x16xf32>
    %cst_27 = arith.constant dense<0.000000e+00> : vector<8xf32>
    %75 = vector.multi_reduction <add>, %74, %cst_27 [1] : vector<8x16xf32> to vector<8xf32>
    %76 = vector.shape_cast %75 : vector<8xf32> to vector<8x1xf32>
    %77 = arith.truncf %74 : vector<8x16xf32> to vector<8x16xbf16>
    %78 = vector.extract_strided_slice %5 {offsets = [0, 24], sizes = [16, 8], strides = [1, 1]} : vector<16x32xbf16> to vector<16x8xbf16>
    %cst_28 = arith.constant dense<0.000000e+00> : vector<8x8xf32>
    %79 = tpu.matmul %77, %78, %cst_28 {dimension_numbers = #tpu.dot_dimension_numbers<[1], [0], [0], [1], [0, 0, 1, 1], [], []>} : vector<8x16xbf16>, vector<16x8xbf16>, vector<8x8xf32> -> vector<8x8xf32>
    %cst_29 = arith.constant 1.000000e+00 : f32
    %80 = vector.broadcast %cst_29 : f32 to vector<8x1xf32>
    %81 = arith.divf %80, %76 : vector<8x1xf32>
    %82 = vector.broadcast %81 : vector<8x1xf32> to vector<8x8xf32>
    %83 = arith.mulf %79, %82 : vector<8x8xf32>
    %84 = tpu.concatenate %26, %45, %64, %83 in 1 : vector<8x8xf32>, vector<8x8xf32>, vector<8x8xf32>, vector<8x8xf32> -> vector<8x32xf32>
    %c0_30 = arith.constant 0 : index
    %c0_31 = arith.constant 0 : index
    %c0_32 = arith.constant 0 : index
    %85 = vector.load %arg6[%c0_30, %c0_31, %c0_32] : memref<1x8x32xf32, #tpu.memory_space<vmem>>, vector<1x8x32xf32>
    %86 = vector.shape_cast %85 : vector<1x8x32xf32> to vector<8x32xf32>
    %c0_33 = arith.constant 0 : index
    %c0_34 = arith.constant 0 : index
    %87 = vector.load %arg7[%c0_33, %c0_34] : memref<32x32xbf16, #tpu.memory_space<vmem>>, vector<32x32xbf16>
    %88 = arith.truncf %84 : vector<8x32xf32> to vector<8x32xbf16>
    %cst_35 = arith.constant dense<0.000000e+00> : vector<8x32xf32>
    %89 = tpu.matmul %88, %87, %cst_35 {dimension_numbers = #tpu.dot_dimension_numbers<[1], [0], [0], [1], [0, 0, 1, 1], [], []>} : vector<8x32xbf16>, vector<32x32xbf16>, vector<8x32xf32> -> vector<8x32xf32>
    %90 = arith.addf %86, %89 : vector<8x32xf32>
    %c0_36 = arith.constant 0 : index
    %c0_37 = arith.constant 0 : index
    %91 = vector.load %arg8[%c0_36, %c0_37] : memref<1x32xf32, #tpu.memory_space<vmem>>, vector<1x32xf32>
    %92 = vector.broadcast %91 : vector<1x32xf32> to vector<8x32xf32>
    %93 = arith.addf %90, %92 : vector<8x32xf32>
    %c0_38 = arith.constant 0 : index
    %c0_39 = arith.constant 0 : index
    %94 = vector.load %arg9[%c0_38, %c0_39] : memref<1x32xf32, #tpu.memory_space<vmem>>, vector<1x32xf32>
    %c0_40 = arith.constant 0 : index
    %c0_41 = arith.constant 0 : index
    %95 = vector.load %arg10[%c0_40, %c0_41] : memref<1x32xf32, #tpu.memory_space<vmem>>, vector<1x32xf32>
    %cst_42 = arith.constant dense<0.000000e+00> : vector<8xf32>
    %96 = vector.multi_reduction <add>, %93, %cst_42 [1] : vector<8x32xf32> to vector<8xf32>
    %97 = vector.shape_cast %96 : vector<8xf32> to vector<8x1xf32>
    %cst_43 = arith.constant 3.200000e+01 : f32
    %98 = vector.broadcast %cst_43 : f32 to vector<8x1xf32>
    %99 = arith.divf %97, %98 : vector<8x1xf32>
    %100 = vector.broadcast %99 : vector<8x1xf32> to vector<8x32xf32>
    %101 = arith.subf %93, %100 : vector<8x32xf32>
    %102 = arith.mulf %101, %101 : vector<8x32xf32>
    %cst_44 = arith.constant dense<0.000000e+00> : vector<8xf32>
    %103 = vector.multi_reduction <add>, %102, %cst_44 [1] : vector<8x32xf32> to vector<8xf32>
    %104 = vector.shape_cast %103 : vector<8xf32> to vector<8x1xf32>
    %cst_45 = arith.constant 3.200000e+01 : f32
    %105 = vector.broadcast %cst_45 : f32 to vector<8x1xf32>
    %106 = arith.divf %104, %105 : vector<8x1xf32>
    %107 = vector.broadcast %99 : vector<8x1xf32> to vector<8x32xf32>
    %108 = arith.subf %93, %107 : vector<8x32xf32>
    %cst_46 = arith.constant 9.99999974E-6 : f32
    %109 = vector.broadcast %cst_46 : f32 to vector<8x1xf32>
    %110 = arith.addf %106, %109 : vector<8x1xf32>
    %111 = math.rsqrt %110 : vector<8x1xf32>
    %112 = vector.broadcast %111 : vector<8x1xf32> to vector<8x32xf32>
    %113 = arith.mulf %108, %112 : vector<8x32xf32>
    %114 = vector.broadcast %94 : vector<1x32xf32> to vector<8x32xf32>
    %115 = arith.mulf %113, %114 : vector<8x32xf32>
    %116 = vector.broadcast %95 : vector<1x32xf32> to vector<8x32xf32>
    %117 = arith.addf %115, %116 : vector<8x32xf32>
    %c0_47 = arith.constant 0 : index
    %c0_48 = arith.constant 0 : index
    %c0_49 = arith.constant 0 : index
    %118 = vector.load %arg11[%c0_47, %c0_48, %c0_49] : memref<1x8x32xf32, #tpu.memory_space<vmem>>, vector<1x8x32xf32>
    %119 = vector.shape_cast %118 : vector<1x8x32xf32> to vector<8x32xf32>
    %120 = vector.shape_cast %117 : vector<8x32xf32> to vector<1x8x32xf32>
    tpu.vector_store %arg11[%c0_47, %c0_48, %c0_49], %120 {strides = array<i32>} : memref<1x8x32xf32, #tpu.memory_space<vmem>>, vector<1x8x32xf32>,
    return
  }
  func.func @transform_0(%arg0: i32, %arg1: i32) -> (i32, i32, i32) {
    %c0_i32 = arith.constant 0 : i32
    %c0_i32_0 = arith.constant 0 : i32
    return %arg0, %arg1, %c0_i32 : i32, i32, i32
  }
  func.func @transform_1(%arg0: i32, %arg1: i32) -> (i32, i32, i32) {
    %c0_i32 = arith.constant 0 : i32
    %c0_i32_0 = arith.constant 0 : i32
    %c0_i32_1 = arith.constant 0 : i32
    return %arg0, %c0_i32, %c0_i32_0 : i32, i32, i32
  }
  func.func @transform_2(%arg0: i32, %arg1: i32) -> (i32, i32, i32) {
    %c0_i32 = arith.constant 0 : i32
    %c0_i32_0 = arith.constant 0 : i32
    %c0_i32_1 = arith.constant 0 : i32
    return %arg0, %c0_i32, %c0_i32_0 : i32, i32, i32
  }
  func.func @transform_3(%arg0: i32, %arg1: i32) -> (i32, i32, i32) {
    %c0_i32 = arith.constant 0 : i32
    %c0_i32_0 = arith.constant 0 : i32
    %c0_i32_1 = arith.constant 0 : i32
    return %arg0, %c0_i32, %c0_i32_0 : i32, i32, i32
  }
  func.func @transform_4(%arg0: i32, %arg1: i32) -> (i32, i32, i32) {
    %c0_i32 = arith.constant 0 : i32
    %c0_i32_0 = arith.constant 0 : i32
    return %arg0, %arg1, %c0_i32 : i32, i32, i32
  }
  func.func @transform_5(%arg0: i32, %arg1: i32) -> (i32, i32) {
    %c0_i32 = arith.constant 0 : i32
    %c0_i32_0 = arith.constant 0 : i32
    %c0_i32_1 = arith.constant 0 : i32
    return %c0_i32, %c0_i32_0 : i32, i32
  }
  func.func @transform_6(%arg0: i32, %arg1: i32) -> (i32, i32) {
    %c0_i32 = arith.constant 0 : i32
    %c0_i32_0 = arith.constant 0 : i32
    %c0_i32_1 = arith.constant 0 : i32
    return %c0_i32, %c0_i32_0 : i32, i32
  }
  func.func @transform_7(%arg0: i32, %arg1: i32) -> (i32, i32) {
    %c0_i32 = arith.constant 0 : i32
    %c0_i32_0 = arith.constant 0 : i32
    %c0_i32_1 = arith.constant 0 : i32
    return %c0_i32, %c0_i32_0 : i32, i32
  }
  func.func @transform_8(%arg0: i32, %arg1: i32) -> (i32, i32) {
    %c0_i32 = arith.constant 0 : i32
    %c0_i32_0 = arith.constant 0 : i32
    %c0_i32_1 = arith.constant 0 : i32
    return %c0_i32, %c0_i32_0 : i32, i32
  }
  func.func @transform_9(%arg0: i32, %arg1: i32) -> (i32, i32, i32) {
    %c0_i32 = arith.constant 0 : i32
    %c0_i32_0 = arith.constant 0 : i32
    return %arg0, %arg1, %c0_i32 : i32, i32, i32
  }
}

module attributes {stable_mosaic.version = 11 : i64} {
  func.func @_mha_small_fused_kernel(%arg0: i32, %arg1: i32, %arg2: memref<1x8x32xbf16, #tpu.memory_space<vmem>>, %arg3: memref<1x8x32xbf16, #tpu.memory_space<vmem>>, %arg4: memref<1x8x32xbf16, #tpu.memory_space<vmem>>, %arg5: memref<1x1x8xf32, #tpu.memory_space<vmem>>, %arg6: memref<1x8x32xf32, #tpu.memory_space<vmem>>, %arg7: memref<32x32xbf16, #tpu.memory_space<vmem>>, %arg8: memref<1x32xf32, #tpu.memory_space<vmem>>, %arg9: memref<1x32xf32, #tpu.memory_space<vmem>>, %arg10: memref<1x32xf32, #tpu.memory_space<vmem>>, %arg11: memref<1x8x32xf32, #tpu.memory_space<vmem>>) attributes {dimension_semantics = [#tpu.dimension_semantics<parallel>, #tpu.dimension_semantics<parallel>], iteration_bounds = array<i64: 2, 1>, scalar_prefetch = 0 : i64, scratch_operands = 0 : i64, tpu.core_type = #tpu.core_type<tc>, window_params = [{transform_indices = @transform_0, window_bounds = array<i64: 1, 8, 32>}, {transform_indices = @transform_1, window_bounds = array<i64: 1, 8, 32>}, {transform_indices = @transform_2, window_bounds = array<i64: 1, 8, 32>}, {transform_indices = @transform_3, window_bounds = array<i64: 1, 1, 8>}, {transform_indices = @transform_4, window_bounds = array<i64: 1, 8, 32>}, {pipeline_mode = #tpu.pipeline_mode<synchronous>, transform_indices = @transform_5, window_bounds = array<i64: 32, 32>}, {pipeline_mode = #tpu.pipeline_mode<synchronous>, transform_indices = @transform_6, window_bounds = array<i64: 1, 32>}, {pipeline_mode = #tpu.pipeline_mode<synchronous>, transform_indices = @transform_7, window_bounds = array<i64: 1, 32>}, {pipeline_mode = #tpu.pipeline_mode<synchronous>, transform_indices = @transform_8, window_bounds = array<i64: 1, 32>}, {transform_indices = @transform_9, window_bounds = array<i64: 1, 8, 32>}]} {
    %c0 = arith.constant 0 : index
    %c0_0 = arith.constant 0 : index
    %c0_1 = arith.constant 0 : index
    %0 = vector.load %arg2[%c0, %c0_0, %c0_1] : memref<1x8x32xbf16, #tpu.memory_space<vmem>>, vector<1x8x32xbf16>
    %1 = vector.shape_cast %0 : vector<1x8x32xbf16> to vector<8x32xbf16>
    %c0_2 = arith.constant 0 : index
    %c0_3 = arith.constant 0 : index
    %c0_4 = arith.constant 0 : index
    %2 = vector.load %arg3[%c0_2, %c0_3, %c0_4] : memref<1x8x32xbf16, #tpu.memory_space<vmem>>, vector<1x8x32xbf16>
    %3 = vector.shape_cast %2 : vector<1x8x32xbf16> to vector<8x32xbf16>
    %c0_5 = arith.constant 0 : index
    %c0_6 = arith.constant 0 : index
    %c0_7 = arith.constant 0 : index
    %4 = vector.load %arg4[%c0_5, %c0_6, %c0_7] : memref<1x8x32xbf16, #tpu.memory_space<vmem>>, vector<1x8x32xbf16>
    %5 = vector.shape_cast %4 : vector<1x8x32xbf16> to vector<8x32xbf16>
    %c0_8 = arith.constant 0 : index
    %c0_9 = arith.constant 0 : index
    %c0_10 = arith.constant 0 : index
    %6 = vector.load %arg5[%c0_8, %c0_9, %c0_10] : memref<1x1x8xf32, #tpu.memory_space<vmem>>, vector<1x1x8xf32>
    %7 = vector.shape_cast %6 : vector<1x1x8xf32> to vector<1x8xf32>
    %8 = vector.extract_strided_slice %1 {offsets = [0, 0], sizes = [8, 8], strides = [1, 1]} : vector<8x32xbf16> to vector<8x8xbf16>
    %9 = vector.extract_strided_slice %3 {offsets = [0, 0], sizes = [8, 8], strides = [1, 1]} : vector<8x32xbf16> to vector<8x8xbf16>
    %cst = arith.constant dense<0.000000e+00> : vector<8x8xf32>
    %10 = tpu.matmul %8, %9, %cst {dimension_numbers = #tpu.dot_dimension_numbers<[1], [1], [0], [0], [0, 0, 1, 0], [], []>} : vector<8x8xbf16>, vector<8x8xbf16>, vector<8x8xf32> -> vector<8x8xf32>
    %11 = vector.broadcast %7 : vector<1x8xf32> to vector<8x8xf32>
    %12 = arith.addf %10, %11 : vector<8x8xf32>
    %cst_11 = arith.constant dense<0xFF800000> : vector<8xf32>
    %13 = vector.multi_reduction <maximumf>, %12, %cst_11 [1] : vector<8x8xf32> to vector<8xf32>
    %14 = vector.shape_cast %13 : vector<8xf32> to vector<8x1xf32>
    %15 = vector.broadcast %14 : vector<8x1xf32> to vector<8x8xf32>
    %16 = arith.subf %12, %15 : vector<8x8xf32>
    %17 = math.exp %16 : vector<8x8xf32>
    %cst_12 = arith.constant dense<0.000000e+00> : vector<8xf32>
    %18 = vector.multi_reduction <add>, %17, %cst_12 [1] : vector<8x8xf32> to vector<8xf32>
    %19 = vector.shape_cast %18 : vector<8xf32> to vector<8x1xf32>
    %20 = arith.truncf %17 : vector<8x8xf32> to vector<8x8xbf16>
    %21 = vector.extract_strided_slice %5 {offsets = [0, 0], sizes = [8, 8], strides = [1, 1]} : vector<8x32xbf16> to vector<8x8xbf16>
    %cst_13 = arith.constant dense<0.000000e+00> : vector<8x8xf32>
    %22 = tpu.matmul %20, %21, %cst_13 {dimension_numbers = #tpu.dot_dimension_numbers<[1], [0], [0], [1], [0, 0, 1, 1], [], []>} : vector<8x8xbf16>, vector<8x8xbf16>, vector<8x8xf32> -> vector<8x8xf32>
    %cst_14 = arith.constant 1.000000e+00 : f32
    %23 = vector.broadcast %cst_14 : f32 to vector<8x1xf32>
    %24 = arith.divf %23, %19 : vector<8x1xf32>
    %25 = vector.broadcast %24 : vector<8x1xf32> to vector<8x8xf32>
    %26 = arith.mulf %22, %25 : vector<8x8xf32>
    %27 = vector.extract_strided_slice %1 {offsets = [0, 8], sizes = [8, 8], strides = [1, 1]} : vector<8x32xbf16> to vector<8x8xbf16>
    %28 = vector.extract_strided_slice %3 {offsets = [0, 8], sizes = [8, 8], strides = [1, 1]} : vector<8x32xbf16> to vector<8x8xbf16>
    %cst_15 = arith.constant dense<0.000000e+00> : vector<8x8xf32>
    %29 = tpu.matmul %27, %28, %cst_15 {dimension_numbers = #tpu.dot_dimension_numbers<[1], [1], [0], [0], [0, 0, 1, 0], [], []>} : vector<8x8xbf16>, vector<8x8xbf16>, vector<8x8xf32> -> vector<8x8xf32>
    %30 = vector.broadcast %7 : vector<1x8xf32> to vector<8x8xf32>
    %31 = arith.addf %29, %30 : vector<8x8xf32>
    %cst_16 = arith.constant dense<0xFF800000> : vector<8xf32>
    %32 = vector.multi_reduction <maximumf>, %31, %cst_16 [1] : vector<8x8xf32> to vector<8xf32>
    %33 = vector.shape_cast %32 : vector<8xf32> to vector<8x1xf32>
    %34 = vector.broadcast %33 : vector<8x1xf32> to vector<8x8xf32>
    %35 = arith.subf %31, %34 : vector<8x8xf32>
    %36 = math.exp %35 : vector<8x8xf32>
    %cst_17 = arith.constant dense<0.000000e+00> : vector<8xf32>
    %37 = vector.multi_reduction <add>, %36, %cst_17 [1] : vector<8x8xf32> to vector<8xf32>
    %38 = vector.shape_cast %37 : vector<8xf32> to vector<8x1xf32>
    %39 = arith.truncf %36 : vector<8x8xf32> to vector<8x8xbf16>
    %40 = vector.extract_strided_slice %5 {offsets = [0, 8], sizes = [8, 8], strides = [1, 1]} : vector<8x32xbf16> to vector<8x8xbf16>
    %cst_18 = arith.constant dense<0.000000e+00> : vector<8x8xf32>
    %41 = tpu.matmul %39, %40, %cst_18 {dimension_numbers = #tpu.dot_dimension_numbers<[1], [0], [0], [1], [0, 0, 1, 1], [], []>} : vector<8x8xbf16>, vector<8x8xbf16>, vector<8x8xf32> -> vector<8x8xf32>
    %cst_19 = arith.constant 1.000000e+00 : f32
    %42 = vector.broadcast %cst_19 : f32 to vector<8x1xf32>
    %43 = arith.divf %42, %38 : vector<8x1xf32>
    %44 = vector.broadcast %43 : vector<8x1xf32> to vector<8x8xf32>
    %45 = arith.mulf %41, %44 : vector<8x8xf32>
    %46 = vector.extract_strided_slice %1 {offsets = [0, 16], sizes = [8, 8], strides = [1, 1]} : vector<8x32xbf16> to vector<8x8xbf16>
    %47 = vector.extract_strided_slice %3 {offsets = [0, 16], sizes = [8, 8], strides = [1, 1]} : vector<8x32xbf16> to vector<8x8xbf16>
    %cst_20 = arith.constant dense<0.000000e+00> : vector<8x8xf32>
    %48 = tpu.matmul %46, %47, %cst_20 {dimension_numbers = #tpu.dot_dimension_numbers<[1], [1], [0], [0], [0, 0, 1, 0], [], []>} : vector<8x8xbf16>, vector<8x8xbf16>, vector<8x8xf32> -> vector<8x8xf32>
    %49 = vector.broadcast %7 : vector<1x8xf32> to vector<8x8xf32>
    %50 = arith.addf %48, %49 : vector<8x8xf32>
    %cst_21 = arith.constant dense<0xFF800000> : vector<8xf32>
    %51 = vector.multi_reduction <maximumf>, %50, %cst_21 [1] : vector<8x8xf32> to vector<8xf32>
    %52 = vector.shape_cast %51 : vector<8xf32> to vector<8x1xf32>
    %53 = vector.broadcast %52 : vector<8x1xf32> to vector<8x8xf32>
    %54 = arith.subf %50, %53 : vector<8x8xf32>
    %55 = math.exp %54 : vector<8x8xf32>
    %cst_22 = arith.constant dense<0.000000e+00> : vector<8xf32>
    %56 = vector.multi_reduction <add>, %55, %cst_22 [1] : vector<8x8xf32> to vector<8xf32>
    %57 = vector.shape_cast %56 : vector<8xf32> to vector<8x1xf32>
    %58 = arith.truncf %55 : vector<8x8xf32> to vector<8x8xbf16>
    %59 = vector.extract_strided_slice %5 {offsets = [0, 16], sizes = [8, 8], strides = [1, 1]} : vector<8x32xbf16> to vector<8x8xbf16>
    %cst_23 = arith.constant dense<0.000000e+00> : vector<8x8xf32>
    %60 = tpu.matmul %58, %59, %cst_23 {dimension_numbers = #tpu.dot_dimension_numbers<[1], [0], [0], [1], [0, 0, 1, 1], [], []>} : vector<8x8xbf16>, vector<8x8xbf16>, vector<8x8xf32> -> vector<8x8xf32>
    %cst_24 = arith.constant 1.000000e+00 : f32
    %61 = vector.broadcast %cst_24 : f32 to vector<8x1xf32>
    %62 = arith.divf %61, %57 : vector<8x1xf32>
    %63 = vector.broadcast %62 : vector<8x1xf32> to vector<8x8xf32>
    %64 = arith.mulf %60, %63 : vector<8x8xf32>
    %65 = vector.extract_strided_slice %1 {offsets = [0, 24], sizes = [8, 8], strides = [1, 1]} : vector<8x32xbf16> to vector<8x8xbf16>
    %66 = vector.extract_strided_slice %3 {offsets = [0, 24], sizes = [8, 8], strides = [1, 1]} : vector<8x32xbf16> to vector<8x8xbf16>
    %cst_25 = arith.constant dense<0.000000e+00> : vector<8x8xf32>
    %67 = tpu.matmul %65, %66, %cst_25 {dimension_numbers = #tpu.dot_dimension_numbers<[1], [1], [0], [0], [0, 0, 1, 0], [], []>} : vector<8x8xbf16>, vector<8x8xbf16>, vector<8x8xf32> -> vector<8x8xf32>
    %68 = vector.broadcast %7 : vector<1x8xf32> to vector<8x8xf32>
    %69 = arith.addf %67, %68 : vector<8x8xf32>
    %cst_26 = arith.constant dense<0xFF800000> : vector<8xf32>
    %70 = vector.multi_reduction <maximumf>, %69, %cst_26 [1] : vector<8x8xf32> to vector<8xf32>
    %71 = vector.shape_cast %70 : vector<8xf32> to vector<8x1xf32>
    %72 = vector.broadcast %71 : vector<8x1xf32> to vector<8x8xf32>
    %73 = arith.subf %69, %72 : vector<8x8xf32>
    %74 = math.exp %73 : vector<8x8xf32>
    %cst_27 = arith.constant dense<0.000000e+00> : vector<8xf32>
    %75 = vector.multi_reduction <add>, %74, %cst_27 [1] : vector<8x8xf32> to vector<8xf32>
    %76 = vector.shape_cast %75 : vector<8xf32> to vector<8x1xf32>
    %77 = arith.truncf %74 : vector<8x8xf32> to vector<8x8xbf16>
    %78 = vector.extract_strided_slice %5 {offsets = [0, 24], sizes = [8, 8], strides = [1, 1]} : vector<8x32xbf16> to vector<8x8xbf16>
    %cst_28 = arith.constant dense<0.000000e+00> : vector<8x8xf32>
    %79 = tpu.matmul %77, %78, %cst_28 {dimension_numbers = #tpu.dot_dimension_numbers<[1], [0], [0], [1], [0, 0, 1, 1], [], []>} : vector<8x8xbf16>, vector<8x8xbf16>, vector<8x8xf32> -> vector<8x8xf32>
    %cst_29 = arith.constant 1.000000e+00 : f32
    %80 = vector.broadcast %cst_29 : f32 to vector<8x1xf32>
    %81 = arith.divf %80, %76 : vector<8x1xf32>
    %82 = vector.broadcast %81 : vector<8x1xf32> to vector<8x8xf32>
    %83 = arith.mulf %79, %82 : vector<8x8xf32>
    %84 = tpu.concatenate %26, %45, %64, %83 in 1 : vector<8x8xf32>, vector<8x8xf32>, vector<8x8xf32>, vector<8x8xf32> -> vector<8x32xf32>
    %c0_30 = arith.constant 0 : index
    %c0_31 = arith.constant 0 : index
    %c0_32 = arith.constant 0 : index
    %85 = vector.load %arg6[%c0_30, %c0_31, %c0_32] : memref<1x8x32xf32, #tpu.memory_space<vmem>>, vector<1x8x32xf32>
    %86 = vector.shape_cast %85 : vector<1x8x32xf32> to vector<8x32xf32>
    %c0_33 = arith.constant 0 : index
    %c0_34 = arith.constant 0 : index
    %87 = vector.load %arg7[%c0_33, %c0_34] : memref<32x32xbf16, #tpu.memory_space<vmem>>, vector<32x32xbf16>
    %88 = arith.truncf %84 : vector<8x32xf32> to vector<8x32xbf16>
    %cst_35 = arith.constant dense<0.000000e+00> : vector<8x32xf32>
    %89 = tpu.matmul %88, %87, %cst_35 {dimension_numbers = #tpu.dot_dimension_numbers<[1], [0], [0], [1], [0, 0, 1, 1], [], []>} : vector<8x32xbf16>, vector<32x32xbf16>, vector<8x32xf32> -> vector<8x32xf32>
    %90 = arith.addf %86, %89 : vector<8x32xf32>
    %c0_36 = arith.constant 0 : index
    %c0_37 = arith.constant 0 : index
    %91 = vector.load %arg8[%c0_36, %c0_37] : memref<1x32xf32, #tpu.memory_space<vmem>>, vector<1x32xf32>
    %92 = vector.broadcast %91 : vector<1x32xf32> to vector<8x32xf32>
    %93 = arith.addf %90, %92 : vector<8x32xf32>
    %c0_38 = arith.constant 0 : index
    %c0_39 = arith.constant 0 : index
    %94 = vector.load %arg9[%c0_38, %c0_39] : memref<1x32xf32, #tpu.memory_space<vmem>>, vector<1x32xf32>
    %c0_40 = arith.constant 0 : index
    %c0_41 = arith.constant 0 : index
    %95 = vector.load %arg10[%c0_40, %c0_41] : memref<1x32xf32, #tpu.memory_space<vmem>>, vector<1x32xf32>
    %cst_42 = arith.constant dense<0.000000e+00> : vector<8xf32>
    %96 = vector.multi_reduction <add>, %93, %cst_42 [1] : vector<8x32xf32> to vector<8xf32>
    %97 = vector.shape_cast %96 : vector<8xf32> to vector<8x1xf32>
    %cst_43 = arith.constant 3.200000e+01 : f32
    %98 = vector.broadcast %cst_43 : f32 to vector<8x1xf32>
    %99 = arith.divf %97, %98 : vector<8x1xf32>
    %100 = vector.broadcast %99 : vector<8x1xf32> to vector<8x32xf32>
    %101 = arith.subf %93, %100 : vector<8x32xf32>
    %102 = arith.mulf %101, %101 : vector<8x32xf32>
    %cst_44 = arith.constant dense<0.000000e+00> : vector<8xf32>
    %103 = vector.multi_reduction <add>, %102, %cst_44 [1] : vector<8x32xf32> to vector<8xf32>
    %104 = vector.shape_cast %103 : vector<8xf32> to vector<8x1xf32>
    %cst_45 = arith.constant 3.200000e+01 : f32
    %105 = vector.broadcast %cst_45 : f32 to vector<8x1xf32>
    %106 = arith.divf %104, %105 : vector<8x1xf32>
    %107 = vector.broadcast %99 : vector<8x1xf32> to vector<8x32xf32>
    %108 = arith.subf %93, %107 : vector<8x32xf32>
    %cst_46 = arith.constant 9.99999974E-6 : f32
    %109 = vector.broadcast %cst_46 : f32 to vector<8x1xf32>
    %110 = arith.addf %106, %109 : vector<8x1xf32>
    %111 = math.rsqrt %110 : vector<8x1xf32>
    %112 = vector.broadcast %111 : vector<8x1xf32> to vector<8x32xf32>
    %113 = arith.mulf %108, %112 : vector<8x32xf32>
    %114 = vector.broadcast %94 : vector<1x32xf32> to vector<8x32xf32>
    %115 = arith.mulf %113, %114 : vector<8x32xf32>
    %116 = vector.broadcast %95 : vector<1x32xf32> to vector<8x32xf32>
    %117 = arith.addf %115, %116 : vector<8x32xf32>
    %c0_47 = arith.constant 0 : index
    %c0_48 = arith.constant 0 : index
    %c0_49 = arith.constant 0 : index
    %118 = vector.load %arg11[%c0_47, %c0_48, %c0_49] : memref<1x8x32xf32, #tpu.memory_space<vmem>>, vector<1x8x32xf32>
    %119 = vector.shape_cast %118 : vector<1x8x32xf32> to vector<8x32xf32>
    %120 = vector.shape_cast %117 : vector<8x32xf32> to vector<1x8x32xf32>
    tpu.vector_store %arg11[%c0_47, %c0_48, %c0_49], %120 {strides = array<i32>} : memref<1x8x32xf32, #tpu.memory_space<vmem>>, vector<1x8x32xf32>,
    return
  }
  func.func @transform_0(%arg0: i32, %arg1: i32) -> (i32, i32, i32) {
    %c0_i32 = arith.constant 0 : i32
    %c0_i32_0 = arith.constant 0 : i32
    return %arg0, %arg1, %c0_i32 : i32, i32, i32
  }
  func.func @transform_1(%arg0: i32, %arg1: i32) -> (i32, i32, i32) {
    %c0_i32 = arith.constant 0 : i32
    %c0_i32_0 = arith.constant 0 : i32
    %c0_i32_1 = arith.constant 0 : i32
    return %arg0, %c0_i32, %c0_i32_0 : i32, i32, i32
  }
  func.func @transform_2(%arg0: i32, %arg1: i32) -> (i32, i32, i32) {
    %c0_i32 = arith.constant 0 : i32
    %c0_i32_0 = arith.constant 0 : i32
    %c0_i32_1 = arith.constant 0 : i32
    return %arg0, %c0_i32, %c0_i32_0 : i32, i32, i32
  }
  func.func @transform_3(%arg0: i32, %arg1: i32) -> (i32, i32, i32) {
    %c0_i32 = arith.constant 0 : i32
    %c0_i32_0 = arith.constant 0 : i32
    %c0_i32_1 = arith.constant 0 : i32
    return %arg0, %c0_i32, %c0_i32_0 : i32, i32, i32
  }
  func.func @transform_4(%arg0: i32, %arg1: i32) -> (i32, i32, i32) {
    %c0_i32 = arith.constant 0 : i32
    %c0_i32_0 = arith.constant 0 : i32
    return %arg0, %arg1, %c0_i32 : i32, i32, i32
  }
  func.func @transform_5(%arg0: i32, %arg1: i32) -> (i32, i32) {
    %c0_i32 = arith.constant 0 : i32
    %c0_i32_0 = arith.constant 0 : i32
    %c0_i32_1 = arith.constant 0 : i32
    return %c0_i32, %c0_i32_0 : i32, i32
  }
  func.func @transform_6(%arg0: i32, %arg1: i32) -> (i32, i32) {
    %c0_i32 = arith.constant 0 : i32
    %c0_i32_0 = arith.constant 0 : i32
    %c0_i32_1 = arith.constant 0 : i32
    return %c0_i32, %c0_i32_0 : i32, i32
  }
  func.func @transform_7(%arg0: i32, %arg1: i32) -> (i32, i32) {
    %c0_i32 = arith.constant 0 : i32
    %c0_i32_0 = arith.constant 0 : i32
    %c0_i32_1 = arith.constant 0 : i32
    return %c0_i32, %c0_i32_0 : i32, i32
  }
  func.func @transform_8(%arg0: i32, %arg1: i32) -> (i32, i32) {
    %c0_i32 = arith.constant 0 : i32
    %c0_i32_0 = arith.constant 0 : i32
    %c0_i32_1 = arith.constant 0 : i32
    return %c0_i32, %c0_i32_0 : i32, i32
  }
  func.func @transform_9(%arg0: i32, %arg1: i32) -> (i32, i32, i32) {
    %c0_i32 = arith.constant 0 : i32
    %c0_i32_0 = arith.constant 0 : i32
    return %arg0, %arg1, %c0_i32 : i32, i32, i32
  }
}

module attributes {stable_mosaic.version = 11 : i64} {
  func.func @_q_proj_kernel(%arg0: i32, %arg1: memref<16x32xf32, #tpu.memory_space<vmem>>, %arg2: memref<16x32xf32, #tpu.memory_space<vmem>>, %arg3: memref<32x32xbf16, #tpu.memory_space<vmem>>, %arg4: memref<1x32xf32, #tpu.memory_space<vmem>>, %arg5: memref<16x32xbf16, #tpu.memory_space<vmem>>) attributes {dimension_semantics = [#tpu.dimension_semantics<parallel>], iteration_bounds = array<i64: 1>, scalar_prefetch = 0 : i64, scratch_operands = 0 : i64, tpu.core_type = #tpu.core_type<tc>, window_params = [{transform_indices = @transform_0, window_bounds = array<i64: 16, 32>}, {transform_indices = @transform_1, window_bounds = array<i64: 16, 32>}, {pipeline_mode = #tpu.pipeline_mode<synchronous>, transform_indices = @transform_2, window_bounds = array<i64: 32, 32>}, {pipeline_mode = #tpu.pipeline_mode<synchronous>, transform_indices = @transform_3, window_bounds = array<i64: 1, 32>}, {transform_indices = @transform_4, window_bounds = array<i64: 16, 32>}]} {
    %c0 = arith.constant 0 : index
    %c0_0 = arith.constant 0 : index
    %0 = vector.load %arg1[%c0, %c0_0] : memref<16x32xf32, #tpu.memory_space<vmem>>, vector<16x32xf32>
    %c0_1 = arith.constant 0 : index
    %c0_2 = arith.constant 0 : index
    %1 = vector.load %arg2[%c0_1, %c0_2] : memref<16x32xf32, #tpu.memory_space<vmem>>, vector<16x32xf32>
    %2 = arith.addf %0, %1 : vector<16x32xf32>
    %c0_3 = arith.constant 0 : index
    %c0_4 = arith.constant 0 : index
    %3 = vector.load %arg3[%c0_3, %c0_4] : memref<32x32xbf16, #tpu.memory_space<vmem>>, vector<32x32xbf16>
    %4 = arith.truncf %2 : vector<16x32xf32> to vector<16x32xbf16>
    %cst = arith.constant dense<0.000000e+00> : vector<16x32xf32>
    %5 = tpu.matmul %4, %3, %cst {dimension_numbers = #tpu.dot_dimension_numbers<[1], [0], [0], [1], [0, 0, 1, 1], [], []>} : vector<16x32xbf16>, vector<32x32xbf16>, vector<16x32xf32> -> vector<16x32xf32>
    %c0_5 = arith.constant 0 : index
    %c0_6 = arith.constant 0 : index
    %6 = vector.load %arg4[%c0_5, %c0_6] : memref<1x32xf32, #tpu.memory_space<vmem>>, vector<1x32xf32>
    %7 = vector.broadcast %6 : vector<1x32xf32> to vector<16x32xf32>
    %8 = arith.addf %5, %7 : vector<16x32xf32>
    %9 = arith.truncf %8 : vector<16x32xf32> to vector<16x32xbf16>
    %c0_7 = arith.constant 0 : index
    %c0_8 = arith.constant 0 : index
    %10 = vector.load %arg5[%c0_7, %c0_8] : memref<16x32xbf16, #tpu.memory_space<vmem>>, vector<16x32xbf16>
    tpu.vector_store %arg5[%c0_7, %c0_8], %9 {strides = array<i32>} : memref<16x32xbf16, #tpu.memory_space<vmem>>, vector<16x32xbf16>,
    return
  }
  func.func @transform_0(%arg0: i32) -> (i32, i32) {
    %c0_i32 = arith.constant 0 : i32
    %c0_i32_0 = arith.constant 0 : i32
    return %arg0, %c0_i32 : i32, i32
  }
  func.func @transform_1(%arg0: i32) -> (i32, i32) {
    %c0_i32 = arith.constant 0 : i32
    %c0_i32_0 = arith.constant 0 : i32
    return %arg0, %c0_i32 : i32, i32
  }
  func.func @transform_2(%arg0: i32) -> (i32, i32) {
    %c0_i32 = arith.constant 0 : i32
    %c0_i32_0 = arith.constant 0 : i32
    %c0_i32_1 = arith.constant 0 : i32
    return %c0_i32, %c0_i32_0 : i32, i32
  }
  func.func @transform_3(%arg0: i32) -> (i32, i32) {
    %c0_i32 = arith.constant 0 : i32
    %c0_i32_0 = arith.constant 0 : i32
    %c0_i32_1 = arith.constant 0 : i32
    return %c0_i32, %c0_i32_0 : i32, i32
  }
  func.func @transform_4(%arg0: i32) -> (i32, i32) {
    %c0_i32 = arith.constant 0 : i32
    %c0_i32_0 = arith.constant 0 : i32
    return %arg0, %c0_i32 : i32, i32
  }
}

module attributes {stable_mosaic.version = 11 : i64} {
  func.func @_ffn_res_ln_kernel(%arg0: i32, %arg1: memref<16x32xf32, #tpu.memory_space<vmem>>, %arg2: memref<32x64xbf16, #tpu.memory_space<vmem>>, %arg3: memref<1x64xf32, #tpu.memory_space<vmem>>, %arg4: memref<64x32xbf16, #tpu.memory_space<vmem>>, %arg5: memref<1x32xf32, #tpu.memory_space<vmem>>, %arg6: memref<1x32xf32, #tpu.memory_space<vmem>>, %arg7: memref<1x32xf32, #tpu.memory_space<vmem>>, %arg8: memref<16x32xf32, #tpu.memory_space<vmem>>) attributes {dimension_semantics = [#tpu.dimension_semantics<parallel>], iteration_bounds = array<i64: 1>, scalar_prefetch = 0 : i64, scratch_operands = 0 : i64, tpu.core_type = #tpu.core_type<tc>, window_params = [{transform_indices = @transform_0, window_bounds = array<i64: 16, 32>}, {pipeline_mode = #tpu.pipeline_mode<synchronous>, transform_indices = @transform_1, window_bounds = array<i64: 32, 64>}, {pipeline_mode = #tpu.pipeline_mode<synchronous>, transform_indices = @transform_2, window_bounds = array<i64: 1, 64>}, {pipeline_mode = #tpu.pipeline_mode<synchronous>, transform_indices = @transform_3, window_bounds = array<i64: 64, 32>}, {pipeline_mode = #tpu.pipeline_mode<synchronous>, transform_indices = @transform_4, window_bounds = array<i64: 1, 32>}, {pipeline_mode = #tpu.pipeline_mode<synchronous>, transform_indices = @transform_5, window_bounds = array<i64: 1, 32>}, {pipeline_mode = #tpu.pipeline_mode<synchronous>, transform_indices = @transform_6, window_bounds = array<i64: 1, 32>}, {transform_indices = @transform_7, window_bounds = array<i64: 16, 32>}]} {
    %c0 = arith.constant 0 : index
    %c0_0 = arith.constant 0 : index
    %0 = vector.load %arg1[%c0, %c0_0] : memref<16x32xf32, #tpu.memory_space<vmem>>, vector<16x32xf32>
    %c0_1 = arith.constant 0 : index
    %c0_2 = arith.constant 0 : index
    %1 = vector.load %arg2[%c0_1, %c0_2] : memref<32x64xbf16, #tpu.memory_space<vmem>>, vector<32x64xbf16>
    %2 = arith.truncf %0 : vector<16x32xf32> to vector<16x32xbf16>
    %cst = arith.constant dense<0.000000e+00> : vector<16x64xf32>
    %3 = tpu.matmul %2, %1, %cst {dimension_numbers = #tpu.dot_dimension_numbers<[1], [0], [0], [1], [0, 0, 1, 1], [], []>} : vector<16x32xbf16>, vector<32x64xbf16>, vector<16x64xf32> -> vector<16x64xf32>
    %c0_3 = arith.constant 0 : index
    %c0_4 = arith.constant 0 : index
    %4 = vector.load %arg3[%c0_3, %c0_4] : memref<1x64xf32, #tpu.memory_space<vmem>>, vector<1x64xf32>
    %5 = vector.broadcast %4 : vector<1x64xf32> to vector<16x64xf32>
    %6 = arith.addf %3, %5 : vector<16x64xf32>
    %cst_5 = arith.constant 0.000000e+00 : f32
    %7 = vector.broadcast %cst_5 : f32 to vector<16x64xf32>
    %8 = arith.maximumf %6, %7 : vector<16x64xf32>
    %c0_6 = arith.constant 0 : index
    %c0_7 = arith.constant 0 : index
    %9 = vector.load %arg4[%c0_6, %c0_7] : memref<64x32xbf16, #tpu.memory_space<vmem>>, vector<64x32xbf16>
    %10 = arith.truncf %8 : vector<16x64xf32> to vector<16x64xbf16>
    %cst_8 = arith.constant dense<0.000000e+00> : vector<16x32xf32>
    %11 = tpu.matmul %10, %9, %cst_8 {dimension_numbers = #tpu.dot_dimension_numbers<[1], [0], [0], [1], [0, 0, 1, 1], [], []>} : vector<16x64xbf16>, vector<64x32xbf16>, vector<16x32xf32> -> vector<16x32xf32>
    %12 = arith.addf %0, %11 : vector<16x32xf32>
    %c0_9 = arith.constant 0 : index
    %c0_10 = arith.constant 0 : index
    %13 = vector.load %arg5[%c0_9, %c0_10] : memref<1x32xf32, #tpu.memory_space<vmem>>, vector<1x32xf32>
    %14 = vector.broadcast %13 : vector<1x32xf32> to vector<16x32xf32>
    %15 = arith.addf %12, %14 : vector<16x32xf32>
    %c0_11 = arith.constant 0 : index
    %c0_12 = arith.constant 0 : index
    %16 = vector.load %arg6[%c0_11, %c0_12] : memref<1x32xf32, #tpu.memory_space<vmem>>, vector<1x32xf32>
    %c0_13 = arith.constant 0 : index
    %c0_14 = arith.constant 0 : index
    %17 = vector.load %arg7[%c0_13, %c0_14] : memref<1x32xf32, #tpu.memory_space<vmem>>, vector<1x32xf32>
    %cst_15 = arith.constant dense<0.000000e+00> : vector<16xf32>
    %18 = vector.multi_reduction <add>, %15, %cst_15 [1] : vector<16x32xf32> to vector<16xf32>
    %19 = vector.shape_cast %18 : vector<16xf32> to vector<16x1xf32>
    %cst_16 = arith.constant 3.200000e+01 : f32
    %20 = vector.broadcast %cst_16 : f32 to vector<16x1xf32>
    %21 = arith.divf %19, %20 : vector<16x1xf32>
    %22 = vector.broadcast %21 : vector<16x1xf32> to vector<16x32xf32>
    %23 = arith.subf %15, %22 : vector<16x32xf32>
    %24 = arith.mulf %23, %23 : vector<16x32xf32>
    %cst_17 = arith.constant dense<0.000000e+00> : vector<16xf32>
    %25 = vector.multi_reduction <add>, %24, %cst_17 [1] : vector<16x32xf32> to vector<16xf32>
    %26 = vector.shape_cast %25 : vector<16xf32> to vector<16x1xf32>
    %cst_18 = arith.constant 3.200000e+01 : f32
    %27 = vector.broadcast %cst_18 : f32 to vector<16x1xf32>
    %28 = arith.divf %26, %27 : vector<16x1xf32>
    %29 = vector.broadcast %21 : vector<16x1xf32> to vector<16x32xf32>
    %30 = arith.subf %15, %29 : vector<16x32xf32>
    %cst_19 = arith.constant 9.99999974E-6 : f32
    %31 = vector.broadcast %cst_19 : f32 to vector<16x1xf32>
    %32 = arith.addf %28, %31 : vector<16x1xf32>
    %33 = math.rsqrt %32 : vector<16x1xf32>
    %34 = vector.broadcast %33 : vector<16x1xf32> to vector<16x32xf32>
    %35 = arith.mulf %30, %34 : vector<16x32xf32>
    %36 = vector.broadcast %16 : vector<1x32xf32> to vector<16x32xf32>
    %37 = arith.mulf %35, %36 : vector<16x32xf32>
    %38 = vector.broadcast %17 : vector<1x32xf32> to vector<16x32xf32>
    %39 = arith.addf %37, %38 : vector<16x32xf32>
    %c0_20 = arith.constant 0 : index
    %c0_21 = arith.constant 0 : index
    %40 = vector.load %arg8[%c0_20, %c0_21] : memref<16x32xf32, #tpu.memory_space<vmem>>, vector<16x32xf32>
    tpu.vector_store %arg8[%c0_20, %c0_21], %39 {strides = array<i32>} : memref<16x32xf32, #tpu.memory_space<vmem>>, vector<16x32xf32>,
    return
  }
  func.func @transform_0(%arg0: i32) -> (i32, i32) {
    %c0_i32 = arith.constant 0 : i32
    %c0_i32_0 = arith.constant 0 : i32
    return %arg0, %c0_i32 : i32, i32
  }
  func.func @transform_1(%arg0: i32) -> (i32, i32) {
    %c0_i32 = arith.constant 0 : i32
    %c0_i32_0 = arith.constant 0 : i32
    %c0_i32_1 = arith.constant 0 : i32
    return %c0_i32, %c0_i32_0 : i32, i32
  }
  func.func @transform_2(%arg0: i32) -> (i32, i32) {
    %c0_i32 = arith.constant 0 : i32
    %c0_i32_0 = arith.constant 0 : i32
    %c0_i32_1 = arith.constant 0 : i32
    return %c0_i32, %c0_i32_0 : i32, i32
  }
  func.func @transform_3(%arg0: i32) -> (i32, i32) {
    %c0_i32 = arith.constant 0 : i32
    %c0_i32_0 = arith.constant 0 : i32
    %c0_i32_1 = arith.constant 0 : i32
    return %c0_i32, %c0_i32_0 : i32, i32
  }
  func.func @transform_4(%arg0: i32) -> (i32, i32) {
    %c0_i32 = arith.constant 0 : i32
    %c0_i32_0 = arith.constant 0 : i32
    %c0_i32_1 = arith.constant 0 : i32
    return %c0_i32, %c0_i32_0 : i32, i32
  }
  func.func @transform_5(%arg0: i32) -> (i32, i32) {
    %c0_i32 = arith.constant 0 : i32
    %c0_i32_0 = arith.constant 0 : i32
    %c0_i32_1 = arith.constant 0 : i32
    return %c0_i32, %c0_i32_0 : i32, i32
  }
  func.func @transform_6(%arg0: i32) -> (i32, i32) {
    %c0_i32 = arith.constant 0 : i32
    %c0_i32_0 = arith.constant 0 : i32
    %c0_i32_1 = arith.constant 0 : i32
    return %c0_i32, %c0_i32_0 : i32, i32
  }
  func.func @transform_7(%arg0: i32) -> (i32, i32) {
    %c0_i32 = arith.constant 0 : i32
    %c0_i32_0 = arith.constant 0 : i32
    return %arg0, %c0_i32 : i32, i32
  }
}

module attributes {stable_mosaic.version = 11 : i64} {
  func.func @_kv_proj_kernel(%arg0: i32, %arg1: memref<32x32xf32, #tpu.memory_space<vmem>>, %arg2: memref<32x32xf32, #tpu.memory_space<vmem>>, %arg3: memref<32x32xbf16, #tpu.memory_space<vmem>>, %arg4: memref<1x32xf32, #tpu.memory_space<vmem>>, %arg5: memref<32x32xbf16, #tpu.memory_space<vmem>>, %arg6: memref<1x32xf32, #tpu.memory_space<vmem>>, %arg7: memref<32x32xbf16, #tpu.memory_space<vmem>>, %arg8: memref<32x32xbf16, #tpu.memory_space<vmem>>) attributes {dimension_semantics = [#tpu.dimension_semantics<parallel>], iteration_bounds = array<i64: 1>, scalar_prefetch = 0 : i64, scratch_operands = 0 : i64, tpu.core_type = #tpu.core_type<tc>, window_params = [{transform_indices = @transform_0, window_bounds = array<i64: 32, 32>}, {transform_indices = @transform_1, window_bounds = array<i64: 32, 32>}, {pipeline_mode = #tpu.pipeline_mode<synchronous>, transform_indices = @transform_2, window_bounds = array<i64: 32, 32>}, {pipeline_mode = #tpu.pipeline_mode<synchronous>, transform_indices = @transform_3, window_bounds = array<i64: 1, 32>}, {pipeline_mode = #tpu.pipeline_mode<synchronous>, transform_indices = @transform_4, window_bounds = array<i64: 32, 32>}, {pipeline_mode = #tpu.pipeline_mode<synchronous>, transform_indices = @transform_5, window_bounds = array<i64: 1, 32>}, {transform_indices = @transform_6, window_bounds = array<i64: 32, 32>}, {transform_indices = @transform_7, window_bounds = array<i64: 32, 32>}]} {
    %c0 = arith.constant 0 : index
    %c0_0 = arith.constant 0 : index
    %0 = vector.load %arg1[%c0, %c0_0] : memref<32x32xf32, #tpu.memory_space<vmem>>, vector<32x32xf32>
    %c0_1 = arith.constant 0 : index
    %c0_2 = arith.constant 0 : index
    %1 = vector.load %arg2[%c0_1, %c0_2] : memref<32x32xf32, #tpu.memory_space<vmem>>, vector<32x32xf32>
    %2 = arith.addf %0, %1 : vector<32x32xf32>
    %c0_3 = arith.constant 0 : index
    %c0_4 = arith.constant 0 : index
    %3 = vector.load %arg3[%c0_3, %c0_4] : memref<32x32xbf16, #tpu.memory_space<vmem>>, vector<32x32xbf16>
    %4 = arith.truncf %2 : vector<32x32xf32> to vector<32x32xbf16>
    %cst = arith.constant dense<0.000000e+00> : vector<32x32xf32>
    %5 = tpu.matmul %4, %3, %cst {dimension_numbers = #tpu.dot_dimension_numbers<[1], [0], [0], [1], [0, 0, 1, 1], [], []>} : vector<32x32xbf16>, vector<32x32xbf16>, vector<32x32xf32> -> vector<32x32xf32>
    %c0_5 = arith.constant 0 : index
    %c0_6 = arith.constant 0 : index
    %6 = vector.load %arg4[%c0_5, %c0_6] : memref<1x32xf32, #tpu.memory_space<vmem>>, vector<1x32xf32>
    %7 = vector.broadcast %6 : vector<1x32xf32> to vector<32x32xf32>
    %8 = arith.addf %5, %7 : vector<32x32xf32>
    %9 = arith.truncf %8 : vector<32x32xf32> to vector<32x32xbf16>
    %c0_7 = arith.constant 0 : index
    %c0_8 = arith.constant 0 : index
    %10 = vector.load %arg7[%c0_7, %c0_8] : memref<32x32xbf16, #tpu.memory_space<vmem>>, vector<32x32xbf16>
    tpu.vector_store %arg7[%c0_7, %c0_8], %9 {strides = array<i32>} : memref<32x32xbf16, #tpu.memory_space<vmem>>, vector<32x32xbf16>,
    %c0_9 = arith.constant 0 : index
    %c0_10 = arith.constant 0 : index
    %11 = vector.load %arg5[%c0_9, %c0_10] : memref<32x32xbf16, #tpu.memory_space<vmem>>, vector<32x32xbf16>
    %12 = arith.truncf %0 : vector<32x32xf32> to vector<32x32xbf16>
    %cst_11 = arith.constant dense<0.000000e+00> : vector<32x32xf32>
    %13 = tpu.matmul %12, %11, %cst_11 {dimension_numbers = #tpu.dot_dimension_numbers<[1], [0], [0], [1], [0, 0, 1, 1], [], []>} : vector<32x32xbf16>, vector<32x32xbf16>, vector<32x32xf32> -> vector<32x32xf32>
    %c0_12 = arith.constant 0 : index
    %c0_13 = arith.constant 0 : index
    %14 = vector.load %arg6[%c0_12, %c0_13] : memref<1x32xf32, #tpu.memory_space<vmem>>, vector<1x32xf32>
    %15 = vector.broadcast %14 : vector<1x32xf32> to vector<32x32xf32>
    %16 = arith.addf %13, %15 : vector<32x32xf32>
    %17 = arith.truncf %16 : vector<32x32xf32> to vector<32x32xbf16>
    %c0_14 = arith.constant 0 : index
    %c0_15 = arith.constant 0 : index
    %18 = vector.load %arg8[%c0_14, %c0_15] : memref<32x32xbf16, #tpu.memory_space<vmem>>, vector<32x32xbf16>
    tpu.vector_store %arg8[%c0_14, %c0_15], %17 {strides = array<i32>} : memref<32x32xbf16, #tpu.memory_space<vmem>>, vector<32x32xbf16>,
    return
  }
  func.func @transform_0(%arg0: i32) -> (i32, i32) {
    %c0_i32 = arith.constant 0 : i32
    %c0_i32_0 = arith.constant 0 : i32
    return %arg0, %c0_i32 : i32, i32
  }
  func.func @transform_1(%arg0: i32) -> (i32, i32) {
    %c0_i32 = arith.constant 0 : i32
    %c0_i32_0 = arith.constant 0 : i32
    return %arg0, %c0_i32 : i32, i32
  }
  func.func @transform_2(%arg0: i32) -> (i32, i32) {
    %c0_i32 = arith.constant 0 : i32
    %c0_i32_0 = arith.constant 0 : i32
    %c0_i32_1 = arith.constant 0 : i32
    return %c0_i32, %c0_i32_0 : i32, i32
  }
  func.func @transform_3(%arg0: i32) -> (i32, i32) {
    %c0_i32 = arith.constant 0 : i32
    %c0_i32_0 = arith.constant 0 : i32
    %c0_i32_1 = arith.constant 0 : i32
    return %c0_i32, %c0_i32_0 : i32, i32
  }
  func.func @transform_4(%arg0: i32) -> (i32, i32) {
    %c0_i32 = arith.constant 0 : i32
    %c0_i32_0 = arith.constant 0 : i32
    %c0_i32_1 = arith.constant 0 : i32
    return %c0_i32, %c0_i32_0 : i32, i32
  }
  func.func @transform_5(%arg0: i32) -> (i32, i32) {
    %c0_i32 = arith.constant 0 : i32
    %c0_i32_0 = arith.constant 0 : i32
    %c0_i32_1 = arith.constant 0 : i32
    return %c0_i32, %c0_i32_0 : i32, i32
  }
  func.func @transform_6(%arg0: i32) -> (i32, i32) {
    %c0_i32 = arith.constant 0 : i32
    %c0_i32_0 = arith.constant 0 : i32
    return %arg0, %c0_i32 : i32, i32
  }
  func.func @transform_7(%arg0: i32) -> (i32, i32) {
    %c0_i32 = arith.constant 0 : i32
    %c0_i32_0 = arith.constant 0 : i32
    return %arg0, %c0_i32 : i32, i32
  }
}

module attributes {stable_mosaic.version = 11 : i64} {
  func.func @_mha_small_fused_kernel(%arg0: i32, %arg1: i32, %arg2: memref<1x8x32xbf16, #tpu.memory_space<vmem>>, %arg3: memref<1x16x32xbf16, #tpu.memory_space<vmem>>, %arg4: memref<1x16x32xbf16, #tpu.memory_space<vmem>>, %arg5: memref<1x1x16xf32, #tpu.memory_space<vmem>>, %arg6: memref<1x8x32xf32, #tpu.memory_space<vmem>>, %arg7: memref<32x32xbf16, #tpu.memory_space<vmem>>, %arg8: memref<1x32xf32, #tpu.memory_space<vmem>>, %arg9: memref<1x32xf32, #tpu.memory_space<vmem>>, %arg10: memref<1x32xf32, #tpu.memory_space<vmem>>, %arg11: memref<1x8x32xf32, #tpu.memory_space<vmem>>) attributes {dimension_semantics = [#tpu.dimension_semantics<parallel>, #tpu.dimension_semantics<parallel>], iteration_bounds = array<i64: 2, 1>, scalar_prefetch = 0 : i64, scratch_operands = 0 : i64, tpu.core_type = #tpu.core_type<tc>, window_params = [{transform_indices = @transform_0, window_bounds = array<i64: 1, 8, 32>}, {transform_indices = @transform_1, window_bounds = array<i64: 1, 16, 32>}, {transform_indices = @transform_2, window_bounds = array<i64: 1, 16, 32>}, {transform_indices = @transform_3, window_bounds = array<i64: 1, 1, 16>}, {transform_indices = @transform_4, window_bounds = array<i64: 1, 8, 32>}, {pipeline_mode = #tpu.pipeline_mode<synchronous>, transform_indices = @transform_5, window_bounds = array<i64: 32, 32>}, {pipeline_mode = #tpu.pipeline_mode<synchronous>, transform_indices = @transform_6, window_bounds = array<i64: 1, 32>}, {pipeline_mode = #tpu.pipeline_mode<synchronous>, transform_indices = @transform_7, window_bounds = array<i64: 1, 32>}, {pipeline_mode = #tpu.pipeline_mode<synchronous>, transform_indices = @transform_8, window_bounds = array<i64: 1, 32>}, {transform_indices = @transform_9, window_bounds = array<i64: 1, 8, 32>}]} {
    %c0 = arith.constant 0 : index
    %c0_0 = arith.constant 0 : index
    %c0_1 = arith.constant 0 : index
    %0 = vector.load %arg2[%c0, %c0_0, %c0_1] : memref<1x8x32xbf16, #tpu.memory_space<vmem>>, vector<1x8x32xbf16>
    %1 = vector.shape_cast %0 : vector<1x8x32xbf16> to vector<8x32xbf16>
    %c0_2 = arith.constant 0 : index
    %c0_3 = arith.constant 0 : index
    %c0_4 = arith.constant 0 : index
    %2 = vector.load %arg3[%c0_2, %c0_3, %c0_4] : memref<1x16x32xbf16, #tpu.memory_space<vmem>>, vector<1x16x32xbf16>
    %3 = vector.shape_cast %2 : vector<1x16x32xbf16> to vector<16x32xbf16>
    %c0_5 = arith.constant 0 : index
    %c0_6 = arith.constant 0 : index
    %c0_7 = arith.constant 0 : index
    %4 = vector.load %arg4[%c0_5, %c0_6, %c0_7] : memref<1x16x32xbf16, #tpu.memory_space<vmem>>, vector<1x16x32xbf16>
    %5 = vector.shape_cast %4 : vector<1x16x32xbf16> to vector<16x32xbf16>
    %c0_8 = arith.constant 0 : index
    %c0_9 = arith.constant 0 : index
    %c0_10 = arith.constant 0 : index
    %6 = vector.load %arg5[%c0_8, %c0_9, %c0_10] : memref<1x1x16xf32, #tpu.memory_space<vmem>>, vector<1x1x16xf32>
    %7 = vector.shape_cast %6 : vector<1x1x16xf32> to vector<1x16xf32>
    %8 = vector.extract_strided_slice %1 {offsets = [0, 0], sizes = [8, 8], strides = [1, 1]} : vector<8x32xbf16> to vector<8x8xbf16>
    %9 = vector.extract_strided_slice %3 {offsets = [0, 0], sizes = [16, 8], strides = [1, 1]} : vector<16x32xbf16> to vector<16x8xbf16>
    %cst = arith.constant dense<0.000000e+00> : vector<8x16xf32>
    %10 = tpu.matmul %8, %9, %cst {dimension_numbers = #tpu.dot_dimension_numbers<[1], [1], [0], [0], [0, 0, 1, 0], [], []>} : vector<8x8xbf16>, vector<16x8xbf16>, vector<8x16xf32> -> vector<8x16xf32>
    %11 = vector.broadcast %7 : vector<1x16xf32> to vector<8x16xf32>
    %12 = arith.addf %10, %11 : vector<8x16xf32>
    %cst_11 = arith.constant dense<0xFF800000> : vector<8xf32>
    %13 = vector.multi_reduction <maximumf>, %12, %cst_11 [1] : vector<8x16xf32> to vector<8xf32>
    %14 = vector.shape_cast %13 : vector<8xf32> to vector<8x1xf32>
    %15 = vector.broadcast %14 : vector<8x1xf32> to vector<8x16xf32>
    %16 = arith.subf %12, %15 : vector<8x16xf32>
    %17 = math.exp %16 : vector<8x16xf32>
    %cst_12 = arith.constant dense<0.000000e+00> : vector<8xf32>
    %18 = vector.multi_reduction <add>, %17, %cst_12 [1] : vector<8x16xf32> to vector<8xf32>
    %19 = vector.shape_cast %18 : vector<8xf32> to vector<8x1xf32>
    %20 = arith.truncf %17 : vector<8x16xf32> to vector<8x16xbf16>
    %21 = vector.extract_strided_slice %5 {offsets = [0, 0], sizes = [16, 8], strides = [1, 1]} : vector<16x32xbf16> to vector<16x8xbf16>
    %cst_13 = arith.constant dense<0.000000e+00> : vector<8x8xf32>
    %22 = tpu.matmul %20, %21, %cst_13 {dimension_numbers = #tpu.dot_dimension_numbers<[1], [0], [0], [1], [0, 0, 1, 1], [], []>} : vector<8x16xbf16>, vector<16x8xbf16>, vector<8x8xf32> -> vector<8x8xf32>
    %cst_14 = arith.constant 1.000000e+00 : f32
    %23 = vector.broadcast %cst_14 : f32 to vector<8x1xf32>
    %24 = arith.divf %23, %19 : vector<8x1xf32>
    %25 = vector.broadcast %24 : vector<8x1xf32> to vector<8x8xf32>
    %26 = arith.mulf %22, %25 : vector<8x8xf32>
    %27 = vector.extract_strided_slice %1 {offsets = [0, 8], sizes = [8, 8], strides = [1, 1]} : vector<8x32xbf16> to vector<8x8xbf16>
    %28 = vector.extract_strided_slice %3 {offsets = [0, 8], sizes = [16, 8], strides = [1, 1]} : vector<16x32xbf16> to vector<16x8xbf16>
    %cst_15 = arith.constant dense<0.000000e+00> : vector<8x16xf32>
    %29 = tpu.matmul %27, %28, %cst_15 {dimension_numbers = #tpu.dot_dimension_numbers<[1], [1], [0], [0], [0, 0, 1, 0], [], []>} : vector<8x8xbf16>, vector<16x8xbf16>, vector<8x16xf32> -> vector<8x16xf32>
    %30 = vector.broadcast %7 : vector<1x16xf32> to vector<8x16xf32>
    %31 = arith.addf %29, %30 : vector<8x16xf32>
    %cst_16 = arith.constant dense<0xFF800000> : vector<8xf32>
    %32 = vector.multi_reduction <maximumf>, %31, %cst_16 [1] : vector<8x16xf32> to vector<8xf32>
    %33 = vector.shape_cast %32 : vector<8xf32> to vector<8x1xf32>
    %34 = vector.broadcast %33 : vector<8x1xf32> to vector<8x16xf32>
    %35 = arith.subf %31, %34 : vector<8x16xf32>
    %36 = math.exp %35 : vector<8x16xf32>
    %cst_17 = arith.constant dense<0.000000e+00> : vector<8xf32>
    %37 = vector.multi_reduction <add>, %36, %cst_17 [1] : vector<8x16xf32> to vector<8xf32>
    %38 = vector.shape_cast %37 : vector<8xf32> to vector<8x1xf32>
    %39 = arith.truncf %36 : vector<8x16xf32> to vector<8x16xbf16>
    %40 = vector.extract_strided_slice %5 {offsets = [0, 8], sizes = [16, 8], strides = [1, 1]} : vector<16x32xbf16> to vector<16x8xbf16>
    %cst_18 = arith.constant dense<0.000000e+00> : vector<8x8xf32>
    %41 = tpu.matmul %39, %40, %cst_18 {dimension_numbers = #tpu.dot_dimension_numbers<[1], [0], [0], [1], [0, 0, 1, 1], [], []>} : vector<8x16xbf16>, vector<16x8xbf16>, vector<8x8xf32> -> vector<8x8xf32>
    %cst_19 = arith.constant 1.000000e+00 : f32
    %42 = vector.broadcast %cst_19 : f32 to vector<8x1xf32>
    %43 = arith.divf %42, %38 : vector<8x1xf32>
    %44 = vector.broadcast %43 : vector<8x1xf32> to vector<8x8xf32>
    %45 = arith.mulf %41, %44 : vector<8x8xf32>
    %46 = vector.extract_strided_slice %1 {offsets = [0, 16], sizes = [8, 8], strides = [1, 1]} : vector<8x32xbf16> to vector<8x8xbf16>
    %47 = vector.extract_strided_slice %3 {offsets = [0, 16], sizes = [16, 8], strides = [1, 1]} : vector<16x32xbf16> to vector<16x8xbf16>
    %cst_20 = arith.constant dense<0.000000e+00> : vector<8x16xf32>
    %48 = tpu.matmul %46, %47, %cst_20 {dimension_numbers = #tpu.dot_dimension_numbers<[1], [1], [0], [0], [0, 0, 1, 0], [], []>} : vector<8x8xbf16>, vector<16x8xbf16>, vector<8x16xf32> -> vector<8x16xf32>
    %49 = vector.broadcast %7 : vector<1x16xf32> to vector<8x16xf32>
    %50 = arith.addf %48, %49 : vector<8x16xf32>
    %cst_21 = arith.constant dense<0xFF800000> : vector<8xf32>
    %51 = vector.multi_reduction <maximumf>, %50, %cst_21 [1] : vector<8x16xf32> to vector<8xf32>
    %52 = vector.shape_cast %51 : vector<8xf32> to vector<8x1xf32>
    %53 = vector.broadcast %52 : vector<8x1xf32> to vector<8x16xf32>
    %54 = arith.subf %50, %53 : vector<8x16xf32>
    %55 = math.exp %54 : vector<8x16xf32>
    %cst_22 = arith.constant dense<0.000000e+00> : vector<8xf32>
    %56 = vector.multi_reduction <add>, %55, %cst_22 [1] : vector<8x16xf32> to vector<8xf32>
    %57 = vector.shape_cast %56 : vector<8xf32> to vector<8x1xf32>
    %58 = arith.truncf %55 : vector<8x16xf32> to vector<8x16xbf16>
    %59 = vector.extract_strided_slice %5 {offsets = [0, 16], sizes = [16, 8], strides = [1, 1]} : vector<16x32xbf16> to vector<16x8xbf16>
    %cst_23 = arith.constant dense<0.000000e+00> : vector<8x8xf32>
    %60 = tpu.matmul %58, %59, %cst_23 {dimension_numbers = #tpu.dot_dimension_numbers<[1], [0], [0], [1], [0, 0, 1, 1], [], []>} : vector<8x16xbf16>, vector<16x8xbf16>, vector<8x8xf32> -> vector<8x8xf32>
    %cst_24 = arith.constant 1.000000e+00 : f32
    %61 = vector.broadcast %cst_24 : f32 to vector<8x1xf32>
    %62 = arith.divf %61, %57 : vector<8x1xf32>
    %63 = vector.broadcast %62 : vector<8x1xf32> to vector<8x8xf32>
    %64 = arith.mulf %60, %63 : vector<8x8xf32>
    %65 = vector.extract_strided_slice %1 {offsets = [0, 24], sizes = [8, 8], strides = [1, 1]} : vector<8x32xbf16> to vector<8x8xbf16>
    %66 = vector.extract_strided_slice %3 {offsets = [0, 24], sizes = [16, 8], strides = [1, 1]} : vector<16x32xbf16> to vector<16x8xbf16>
    %cst_25 = arith.constant dense<0.000000e+00> : vector<8x16xf32>
    %67 = tpu.matmul %65, %66, %cst_25 {dimension_numbers = #tpu.dot_dimension_numbers<[1], [1], [0], [0], [0, 0, 1, 0], [], []>} : vector<8x8xbf16>, vector<16x8xbf16>, vector<8x16xf32> -> vector<8x16xf32>
    %68 = vector.broadcast %7 : vector<1x16xf32> to vector<8x16xf32>
    %69 = arith.addf %67, %68 : vector<8x16xf32>
    %cst_26 = arith.constant dense<0xFF800000> : vector<8xf32>
    %70 = vector.multi_reduction <maximumf>, %69, %cst_26 [1] : vector<8x16xf32> to vector<8xf32>
    %71 = vector.shape_cast %70 : vector<8xf32> to vector<8x1xf32>
    %72 = vector.broadcast %71 : vector<8x1xf32> to vector<8x16xf32>
    %73 = arith.subf %69, %72 : vector<8x16xf32>
    %74 = math.exp %73 : vector<8x16xf32>
    %cst_27 = arith.constant dense<0.000000e+00> : vector<8xf32>
    %75 = vector.multi_reduction <add>, %74, %cst_27 [1] : vector<8x16xf32> to vector<8xf32>
    %76 = vector.shape_cast %75 : vector<8xf32> to vector<8x1xf32>
    %77 = arith.truncf %74 : vector<8x16xf32> to vector<8x16xbf16>
    %78 = vector.extract_strided_slice %5 {offsets = [0, 24], sizes = [16, 8], strides = [1, 1]} : vector<16x32xbf16> to vector<16x8xbf16>
    %cst_28 = arith.constant dense<0.000000e+00> : vector<8x8xf32>
    %79 = tpu.matmul %77, %78, %cst_28 {dimension_numbers = #tpu.dot_dimension_numbers<[1], [0], [0], [1], [0, 0, 1, 1], [], []>} : vector<8x16xbf16>, vector<16x8xbf16>, vector<8x8xf32> -> vector<8x8xf32>
    %cst_29 = arith.constant 1.000000e+00 : f32
    %80 = vector.broadcast %cst_29 : f32 to vector<8x1xf32>
    %81 = arith.divf %80, %76 : vector<8x1xf32>
    %82 = vector.broadcast %81 : vector<8x1xf32> to vector<8x8xf32>
    %83 = arith.mulf %79, %82 : vector<8x8xf32>
    %84 = tpu.concatenate %26, %45, %64, %83 in 1 : vector<8x8xf32>, vector<8x8xf32>, vector<8x8xf32>, vector<8x8xf32> -> vector<8x32xf32>
    %c0_30 = arith.constant 0 : index
    %c0_31 = arith.constant 0 : index
    %c0_32 = arith.constant 0 : index
    %85 = vector.load %arg6[%c0_30, %c0_31, %c0_32] : memref<1x8x32xf32, #tpu.memory_space<vmem>>, vector<1x8x32xf32>
    %86 = vector.shape_cast %85 : vector<1x8x32xf32> to vector<8x32xf32>
    %c0_33 = arith.constant 0 : index
    %c0_34 = arith.constant 0 : index
    %87 = vector.load %arg7[%c0_33, %c0_34] : memref<32x32xbf16, #tpu.memory_space<vmem>>, vector<32x32xbf16>
    %88 = arith.truncf %84 : vector<8x32xf32> to vector<8x32xbf16>
    %cst_35 = arith.constant dense<0.000000e+00> : vector<8x32xf32>
    %89 = tpu.matmul %88, %87, %cst_35 {dimension_numbers = #tpu.dot_dimension_numbers<[1], [0], [0], [1], [0, 0, 1, 1], [], []>} : vector<8x32xbf16>, vector<32x32xbf16>, vector<8x32xf32> -> vector<8x32xf32>
    %90 = arith.addf %86, %89 : vector<8x32xf32>
    %c0_36 = arith.constant 0 : index
    %c0_37 = arith.constant 0 : index
    %91 = vector.load %arg8[%c0_36, %c0_37] : memref<1x32xf32, #tpu.memory_space<vmem>>, vector<1x32xf32>
    %92 = vector.broadcast %91 : vector<1x32xf32> to vector<8x32xf32>
    %93 = arith.addf %90, %92 : vector<8x32xf32>
    %c0_38 = arith.constant 0 : index
    %c0_39 = arith.constant 0 : index
    %94 = vector.load %arg9[%c0_38, %c0_39] : memref<1x32xf32, #tpu.memory_space<vmem>>, vector<1x32xf32>
    %c0_40 = arith.constant 0 : index
    %c0_41 = arith.constant 0 : index
    %95 = vector.load %arg10[%c0_40, %c0_41] : memref<1x32xf32, #tpu.memory_space<vmem>>, vector<1x32xf32>
    %cst_42 = arith.constant dense<0.000000e+00> : vector<8xf32>
    %96 = vector.multi_reduction <add>, %93, %cst_42 [1] : vector<8x32xf32> to vector<8xf32>
    %97 = vector.shape_cast %96 : vector<8xf32> to vector<8x1xf32>
    %cst_43 = arith.constant 3.200000e+01 : f32
    %98 = vector.broadcast %cst_43 : f32 to vector<8x1xf32>
    %99 = arith.divf %97, %98 : vector<8x1xf32>
    %100 = vector.broadcast %99 : vector<8x1xf32> to vector<8x32xf32>
    %101 = arith.subf %93, %100 : vector<8x32xf32>
    %102 = arith.mulf %101, %101 : vector<8x32xf32>
    %cst_44 = arith.constant dense<0.000000e+00> : vector<8xf32>
    %103 = vector.multi_reduction <add>, %102, %cst_44 [1] : vector<8x32xf32> to vector<8xf32>
    %104 = vector.shape_cast %103 : vector<8xf32> to vector<8x1xf32>
    %cst_45 = arith.constant 3.200000e+01 : f32
    %105 = vector.broadcast %cst_45 : f32 to vector<8x1xf32>
    %106 = arith.divf %104, %105 : vector<8x1xf32>
    %107 = vector.broadcast %99 : vector<8x1xf32> to vector<8x32xf32>
    %108 = arith.subf %93, %107 : vector<8x32xf32>
    %cst_46 = arith.constant 9.99999974E-6 : f32
    %109 = vector.broadcast %cst_46 : f32 to vector<8x1xf32>
    %110 = arith.addf %106, %109 : vector<8x1xf32>
    %111 = math.rsqrt %110 : vector<8x1xf32>
    %112 = vector.broadcast %111 : vector<8x1xf32> to vector<8x32xf32>
    %113 = arith.mulf %108, %112 : vector<8x32xf32>
    %114 = vector.broadcast %94 : vector<1x32xf32> to vector<8x32xf32>
    %115 = arith.mulf %113, %114 : vector<8x32xf32>
    %116 = vector.broadcast %95 : vector<1x32xf32> to vector<8x32xf32>
    %117 = arith.addf %115, %116 : vector<8x32xf32>
    %c0_47 = arith.constant 0 : index
    %c0_48 = arith.constant 0 : index
    %c0_49 = arith.constant 0 : index
    %118 = vector.load %arg11[%c0_47, %c0_48, %c0_49] : memref<1x8x32xf32, #tpu.memory_space<vmem>>, vector<1x8x32xf32>
    %119 = vector.shape_cast %118 : vector<1x8x32xf32> to vector<8x32xf32>
    %120 = vector.shape_cast %117 : vector<8x32xf32> to vector<1x8x32xf32>
    tpu.vector_store %arg11[%c0_47, %c0_48, %c0_49], %120 {strides = array<i32>} : memref<1x8x32xf32, #tpu.memory_space<vmem>>, vector<1x8x32xf32>,
    return
  }
  func.func @transform_0(%arg0: i32, %arg1: i32) -> (i32, i32, i32) {
    %c0_i32 = arith.constant 0 : i32
    %c0_i32_0 = arith.constant 0 : i32
    return %arg0, %arg1, %c0_i32 : i32, i32, i32
  }
  func.func @transform_1(%arg0: i32, %arg1: i32) -> (i32, i32, i32) {
    %c0_i32 = arith.constant 0 : i32
    %c0_i32_0 = arith.constant 0 : i32
    %c0_i32_1 = arith.constant 0 : i32
    return %arg0, %c0_i32, %c0_i32_0 : i32, i32, i32
  }
  func.func @transform_2(%arg0: i32, %arg1: i32) -> (i32, i32, i32) {
    %c0_i32 = arith.constant 0 : i32
    %c0_i32_0 = arith.constant 0 : i32
    %c0_i32_1 = arith.constant 0 : i32
    return %arg0, %c0_i32, %c0_i32_0 : i32, i32, i32
  }
  func.func @transform_3(%arg0: i32, %arg1: i32) -> (i32, i32, i32) {
    %c0_i32 = arith.constant 0 : i32
    %c0_i32_0 = arith.constant 0 : i32
    %c0_i32_1 = arith.constant 0 : i32
    return %arg0, %c0_i32, %c0_i32_0 : i32, i32, i32
  }
  func.func @transform_4(%arg0: i32, %arg1: i32) -> (i32, i32, i32) {
    %c0_i32 = arith.constant 0 : i32
    %c0_i32_0 = arith.constant 0 : i32
    return %arg0, %arg1, %c0_i32 : i32, i32, i32
  }
  func.func @transform_5(%arg0: i32, %arg1: i32) -> (i32, i32) {
    %c0_i32 = arith.constant 0 : i32
    %c0_i32_0 = arith.constant 0 : i32
    %c0_i32_1 = arith.constant 0 : i32
    return %c0_i32, %c0_i32_0 : i32, i32
  }
  func.func @transform_6(%arg0: i32, %arg1: i32) -> (i32, i32) {
    %c0_i32 = arith.constant 0 : i32
    %c0_i32_0 = arith.constant 0 : i32
    %c0_i32_1 = arith.constant 0 : i32
    return %c0_i32, %c0_i32_0 : i32, i32
  }
  func.func @transform_7(%arg0: i32, %arg1: i32) -> (i32, i32) {
    %c0_i32 = arith.constant 0 : i32
    %c0_i32_0 = arith.constant 0 : i32
    %c0_i32_1 = arith.constant 0 : i32
    return %c0_i32, %c0_i32_0 : i32, i32
  }
  func.func @transform_8(%arg0: i32, %arg1: i32) -> (i32, i32) {
    %c0_i32 = arith.constant 0 : i32
    %c0_i32_0 = arith.constant 0 : i32
    %c0_i32_1 = arith.constant 0 : i32
    return %c0_i32, %c0_i32_0 : i32, i32
  }
  func.func @transform_9(%arg0: i32, %arg1: i32) -> (i32, i32, i32) {
    %c0_i32 = arith.constant 0 : i32
    %c0_i32_0 = arith.constant 0 : i32
    return %arg0, %arg1, %c0_i32 : i32, i32, i32
  }
}

module attributes {stable_mosaic.version = 11 : i64} {
  func.func @_ln_kernel(%arg0: i32, %arg1: memref<16x32xf32, #tpu.memory_space<vmem>>, %arg2: memref<1x32xf32, #tpu.memory_space<vmem>>, %arg3: memref<1x32xf32, #tpu.memory_space<vmem>>, %arg4: memref<16x32xf32, #tpu.memory_space<vmem>>) attributes {dimension_semantics = [#tpu.dimension_semantics<parallel>], iteration_bounds = array<i64: 1>, scalar_prefetch = 0 : i64, scratch_operands = 0 : i64, tpu.core_type = #tpu.core_type<tc>, window_params = [{transform_indices = @transform_0, window_bounds = array<i64: 16, 32>}, {pipeline_mode = #tpu.pipeline_mode<synchronous>, transform_indices = @transform_1, window_bounds = array<i64: 1, 32>}, {pipeline_mode = #tpu.pipeline_mode<synchronous>, transform_indices = @transform_2, window_bounds = array<i64: 1, 32>}, {transform_indices = @transform_3, window_bounds = array<i64: 16, 32>}]} {
    %c0 = arith.constant 0 : index
    %c0_0 = arith.constant 0 : index
    %0 = vector.load %arg1[%c0, %c0_0] : memref<16x32xf32, #tpu.memory_space<vmem>>, vector<16x32xf32>
    %c0_1 = arith.constant 0 : index
    %c0_2 = arith.constant 0 : index
    %1 = vector.load %arg2[%c0_1, %c0_2] : memref<1x32xf32, #tpu.memory_space<vmem>>, vector<1x32xf32>
    %c0_3 = arith.constant 0 : index
    %c0_4 = arith.constant 0 : index
    %2 = vector.load %arg3[%c0_3, %c0_4] : memref<1x32xf32, #tpu.memory_space<vmem>>, vector<1x32xf32>
    %cst = arith.constant dense<0.000000e+00> : vector<16xf32>
    %3 = vector.multi_reduction <add>, %0, %cst [1] : vector<16x32xf32> to vector<16xf32>
    %4 = vector.shape_cast %3 : vector<16xf32> to vector<16x1xf32>
    %cst_5 = arith.constant 3.200000e+01 : f32
    %5 = vector.broadcast %cst_5 : f32 to vector<16x1xf32>
    %6 = arith.divf %4, %5 : vector<16x1xf32>
    %7 = vector.broadcast %6 : vector<16x1xf32> to vector<16x32xf32>
    %8 = arith.subf %0, %7 : vector<16x32xf32>
    %9 = arith.mulf %8, %8 : vector<16x32xf32>
    %cst_6 = arith.constant dense<0.000000e+00> : vector<16xf32>
    %10 = vector.multi_reduction <add>, %9, %cst_6 [1] : vector<16x32xf32> to vector<16xf32>
    %11 = vector.shape_cast %10 : vector<16xf32> to vector<16x1xf32>
    %cst_7 = arith.constant 3.200000e+01 : f32
    %12 = vector.broadcast %cst_7 : f32 to vector<16x1xf32>
    %13 = arith.divf %11, %12 : vector<16x1xf32>
    %14 = vector.broadcast %6 : vector<16x1xf32> to vector<16x32xf32>
    %15 = arith.subf %0, %14 : vector<16x32xf32>
    %cst_8 = arith.constant 9.99999974E-6 : f32
    %16 = vector.broadcast %cst_8 : f32 to vector<16x1xf32>
    %17 = arith.addf %13, %16 : vector<16x1xf32>
    %18 = math.rsqrt %17 : vector<16x1xf32>
    %19 = vector.broadcast %18 : vector<16x1xf32> to vector<16x32xf32>
    %20 = arith.mulf %15, %19 : vector<16x32xf32>
    %21 = vector.broadcast %1 : vector<1x32xf32> to vector<16x32xf32>
    %22 = arith.mulf %20, %21 : vector<16x32xf32>
    %23 = vector.broadcast %2 : vector<1x32xf32> to vector<16x32xf32>
    %24 = arith.addf %22, %23 : vector<16x32xf32>
    %c0_9 = arith.constant 0 : index
    %c0_10 = arith.constant 0 : index
    %25 = vector.load %arg4[%c0_9, %c0_10] : memref<16x32xf32, #tpu.memory_space<vmem>>, vector<16x32xf32>
    tpu.vector_store %arg4[%c0_9, %c0_10], %24 {strides = array<i32>} : memref<16x32xf32, #tpu.memory_space<vmem>>, vector<16x32xf32>,
    return
  }
  func.func @transform_0(%arg0: i32) -> (i32, i32) {
    %c0_i32 = arith.constant 0 : i32
    %c0_i32_0 = arith.constant 0 : i32
    return %arg0, %c0_i32 : i32, i32
  }
  func.func @transform_1(%arg0: i32) -> (i32, i32) {
    %c0_i32 = arith.constant 0 : i32
    %c0_i32_0 = arith.constant 0 : i32
    %c0_i32_1 = arith.constant 0 : i32
    return %c0_i32, %c0_i32_0 : i32, i32
  }
  func.func @transform_2(%arg0: i32) -> (i32, i32) {
    %c0_i32 = arith.constant 0 : i32
    %c0_i32_0 = arith.constant 0 : i32
    %c0_i32_1 = arith.constant 0 : i32
    return %c0_i32, %c0_i32_0 : i32, i32
  }
  func.func @transform_3(%arg0: i32) -> (i32, i32) {
    %c0_i32 = arith.constant 0 : i32
    %c0_i32_0 = arith.constant 0 : i32
    return %arg0, %c0_i32 : i32, i32
  }
}

module attributes {stable_mosaic.version = 11 : i64} {
  func.func @_qkv_self_kernel(%arg0: i32, %arg1: memref<8x32xf32, #tpu.memory_space<vmem>>, %arg2: memref<8x32xf32, #tpu.memory_space<vmem>>, %arg3: memref<32x64xbf16, #tpu.memory_space<vmem>>, %arg4: memref<1x64xf32, #tpu.memory_space<vmem>>, %arg5: memref<32x32xbf16, #tpu.memory_space<vmem>>, %arg6: memref<1x32xf32, #tpu.memory_space<vmem>>, %arg7: memref<8x32xbf16, #tpu.memory_space<vmem>>, %arg8: memref<8x32xbf16, #tpu.memory_space<vmem>>, %arg9: memref<8x32xbf16, #tpu.memory_space<vmem>>) attributes {dimension_semantics = [#tpu.dimension_semantics<parallel>], iteration_bounds = array<i64: 1>, scalar_prefetch = 0 : i64, scratch_operands = 0 : i64, tpu.core_type = #tpu.core_type<tc>, window_params = [{transform_indices = @transform_0, window_bounds = array<i64: 8, 32>}, {transform_indices = @transform_1, window_bounds = array<i64: 8, 32>}, {pipeline_mode = #tpu.pipeline_mode<synchronous>, transform_indices = @transform_2, window_bounds = array<i64: 32, 64>}, {pipeline_mode = #tpu.pipeline_mode<synchronous>, transform_indices = @transform_3, window_bounds = array<i64: 1, 64>}, {pipeline_mode = #tpu.pipeline_mode<synchronous>, transform_indices = @transform_4, window_bounds = array<i64: 32, 32>}, {pipeline_mode = #tpu.pipeline_mode<synchronous>, transform_indices = @transform_5, window_bounds = array<i64: 1, 32>}, {transform_indices = @transform_6, window_bounds = array<i64: 8, 32>}, {transform_indices = @transform_7, window_bounds = array<i64: 8, 32>}, {transform_indices = @transform_8, window_bounds = array<i64: 8, 32>}]} {
    %c0 = arith.constant 0 : index
    %c0_0 = arith.constant 0 : index
    %0 = vector.load %arg1[%c0, %c0_0] : memref<8x32xf32, #tpu.memory_space<vmem>>, vector<8x32xf32>
    %c0_1 = arith.constant 0 : index
    %c0_2 = arith.constant 0 : index
    %1 = vector.load %arg2[%c0_1, %c0_2] : memref<8x32xf32, #tpu.memory_space<vmem>>, vector<8x32xf32>
    %2 = arith.addf %0, %1 : vector<8x32xf32>
    %c0_3 = arith.constant 0 : index
    %c0_4 = arith.constant 0 : index
    %3 = vector.load %arg3[%c0_3, %c0_4] : memref<32x64xbf16, #tpu.memory_space<vmem>>, vector<32x64xbf16>
    %4 = arith.truncf %2 : vector<8x32xf32> to vector<8x32xbf16>
    %cst = arith.constant dense<0.000000e+00> : vector<8x64xf32>
    %5 = tpu.matmul %4, %3, %cst {dimension_numbers = #tpu.dot_dimension_numbers<[1], [0], [0], [1], [0, 0, 1, 1], [], []>} : vector<8x32xbf16>, vector<32x64xbf16>, vector<8x64xf32> -> vector<8x64xf32>
    %c0_5 = arith.constant 0 : index
    %c0_6 = arith.constant 0 : index
    %6 = vector.load %arg4[%c0_5, %c0_6] : memref<1x64xf32, #tpu.memory_space<vmem>>, vector<1x64xf32>
    %7 = vector.broadcast %6 : vector<1x64xf32> to vector<8x64xf32>
    %8 = arith.addf %5, %7 : vector<8x64xf32>
    %9 = vector.extract_strided_slice %8 {offsets = [0, 0], sizes = [8, 32], strides = [1, 1]} : vector<8x64xf32> to vector<8x32xf32>
    %10 = arith.truncf %9 : vector<8x32xf32> to vector<8x32xbf16>
    %c0_7 = arith.constant 0 : index
    %c0_8 = arith.constant 0 : index
    %11 = vector.load %arg7[%c0_7, %c0_8] : memref<8x32xbf16, #tpu.memory_space<vmem>>, vector<8x32xbf16>
    tpu.vector_store %arg7[%c0_7, %c0_8], %10 {strides = array<i32>} : memref<8x32xbf16, #tpu.memory_space<vmem>>, vector<8x32xbf16>,
    %12 = vector.extract_strided_slice %8 {offsets = [0, 32], sizes = [8, 32], strides = [1, 1]} : vector<8x64xf32> to vector<8x32xf32>
    %13 = arith.truncf %12 : vector<8x32xf32> to vector<8x32xbf16>
    %c0_9 = arith.constant 0 : index
    %c0_10 = arith.constant 0 : index
    %14 = vector.load %arg8[%c0_9, %c0_10] : memref<8x32xbf16, #tpu.memory_space<vmem>>, vector<8x32xbf16>
    tpu.vector_store %arg8[%c0_9, %c0_10], %13 {strides = array<i32>} : memref<8x32xbf16, #tpu.memory_space<vmem>>, vector<8x32xbf16>,
    %c0_11 = arith.constant 0 : index
    %c0_12 = arith.constant 0 : index
    %15 = vector.load %arg5[%c0_11, %c0_12] : memref<32x32xbf16, #tpu.memory_space<vmem>>, vector<32x32xbf16>
    %16 = arith.truncf %0 : vector<8x32xf32> to vector<8x32xbf16>
    %cst_13 = arith.constant dense<0.000000e+00> : vector<8x32xf32>
    %17 = tpu.matmul %16, %15, %cst_13 {dimension_numbers = #tpu.dot_dimension_numbers<[1], [0], [0], [1], [0, 0, 1, 1], [], []>} : vector<8x32xbf16>, vector<32x32xbf16>, vector<8x32xf32> -> vector<8x32xf32>
    %c0_14 = arith.constant 0 : index
    %c0_15 = arith.constant 0 : index
    %18 = vector.load %arg6[%c0_14, %c0_15] : memref<1x32xf32, #tpu.memory_space<vmem>>, vector<1x32xf32>
    %19 = vector.broadcast %18 : vector<1x32xf32> to vector<8x32xf32>
    %20 = arith.addf %17, %19 : vector<8x32xf32>
    %21 = arith.truncf %20 : vector<8x32xf32> to vector<8x32xbf16>
    %c0_16 = arith.constant 0 : index
    %c0_17 = arith.constant 0 : index
    %22 = vector.load %arg9[%c0_16, %c0_17] : memref<8x32xbf16, #tpu.memory_space<vmem>>, vector<8x32xbf16>
    tpu.vector_store %arg9[%c0_16, %c0_17], %21 {strides = array<i32>} : memref<8x32xbf16, #tpu.memory_space<vmem>>, vector<8x32xbf16>,
    return
  }
  func.func @transform_0(%arg0: i32) -> (i32, i32) {
    %c0_i32 = arith.constant 0 : i32
    %c0_i32_0 = arith.constant 0 : i32
    return %arg0, %c0_i32 : i32, i32
  }
  func.func @transform_1(%arg0: i32) -> (i32, i32) {
    %c0_i32 = arith.constant 0 : i32
    %c0_i32_0 = arith.constant 0 : i32
    return %arg0, %c0_i32 : i32, i32
  }
  func.func @transform_2(%arg0: i32) -> (i32, i32) {
    %c0_i32 = arith.constant 0 : i32
    %c0_i32_0 = arith.constant 0 : i32
    %c0_i32_1 = arith.constant 0 : i32
    return %c0_i32, %c0_i32_0 : i32, i32
  }
  func.func @transform_3(%arg0: i32) -> (i32, i32) {
    %c0_i32 = arith.constant 0 : i32
    %c0_i32_0 = arith.constant 0 : i32
    %c0_i32_1 = arith.constant 0 : i32
    return %c0_i32, %c0_i32_0 : i32, i32
  }
  func.func @transform_4(%arg0: i32) -> (i32, i32) {
    %c0_i32 = arith.constant 0 : i32
    %c0_i32_0 = arith.constant 0 : i32
    %c0_i32_1 = arith.constant 0 : i32
    return %c0_i32, %c0_i32_0 : i32, i32
  }
  func.func @transform_5(%arg0: i32) -> (i32, i32) {
    %c0_i32 = arith.constant 0 : i32
    %c0_i32_0 = arith.constant 0 : i32
    %c0_i32_1 = arith.constant 0 : i32
    return %c0_i32, %c0_i32_0 : i32, i32
  }
  func.func @transform_6(%arg0: i32) -> (i32, i32) {
    %c0_i32 = arith.constant 0 : i32
    %c0_i32_0 = arith.constant 0 : i32
    return %arg0, %c0_i32 : i32, i32
  }
  func.func @transform_7(%arg0: i32) -> (i32, i32) {
    %c0_i32 = arith.constant 0 : i32
    %c0_i32_0 = arith.constant 0 : i32
    return %arg0, %c0_i32 : i32, i32
  }
  func.func @transform_8(%arg0: i32) -> (i32, i32) {
    %c0_i32 = arith.constant 0 : i32
    %c0_i32_0 = arith.constant 0 : i32
    return %arg0, %c0_i32 : i32, i32
  }
}

module attributes {stable_mosaic.version = 11 : i64} {
  func.func @_q_proj_kernel(%arg0: i32, %arg1: memref<8x32xf32, #tpu.memory_space<vmem>>, %arg2: memref<8x32xf32, #tpu.memory_space<vmem>>, %arg3: memref<32x32xbf16, #tpu.memory_space<vmem>>, %arg4: memref<1x32xf32, #tpu.memory_space<vmem>>, %arg5: memref<8x32xbf16, #tpu.memory_space<vmem>>) attributes {dimension_semantics = [#tpu.dimension_semantics<parallel>], iteration_bounds = array<i64: 1>, scalar_prefetch = 0 : i64, scratch_operands = 0 : i64, tpu.core_type = #tpu.core_type<tc>, window_params = [{transform_indices = @transform_0, window_bounds = array<i64: 8, 32>}, {transform_indices = @transform_1, window_bounds = array<i64: 8, 32>}, {pipeline_mode = #tpu.pipeline_mode<synchronous>, transform_indices = @transform_2, window_bounds = array<i64: 32, 32>}, {pipeline_mode = #tpu.pipeline_mode<synchronous>, transform_indices = @transform_3, window_bounds = array<i64: 1, 32>}, {transform_indices = @transform_4, window_bounds = array<i64: 8, 32>}]} {
    %c0 = arith.constant 0 : index
    %c0_0 = arith.constant 0 : index
    %0 = vector.load %arg1[%c0, %c0_0] : memref<8x32xf32, #tpu.memory_space<vmem>>, vector<8x32xf32>
    %c0_1 = arith.constant 0 : index
    %c0_2 = arith.constant 0 : index
    %1 = vector.load %arg2[%c0_1, %c0_2] : memref<8x32xf32, #tpu.memory_space<vmem>>, vector<8x32xf32>
    %2 = arith.addf %0, %1 : vector<8x32xf32>
    %c0_3 = arith.constant 0 : index
    %c0_4 = arith.constant 0 : index
    %3 = vector.load %arg3[%c0_3, %c0_4] : memref<32x32xbf16, #tpu.memory_space<vmem>>, vector<32x32xbf16>
    %4 = arith.truncf %2 : vector<8x32xf32> to vector<8x32xbf16>
    %cst = arith.constant dense<0.000000e+00> : vector<8x32xf32>
    %5 = tpu.matmul %4, %3, %cst {dimension_numbers = #tpu.dot_dimension_numbers<[1], [0], [0], [1], [0, 0, 1, 1], [], []>} : vector<8x32xbf16>, vector<32x32xbf16>, vector<8x32xf32> -> vector<8x32xf32>
    %c0_5 = arith.constant 0 : index
    %c0_6 = arith.constant 0 : index
    %6 = vector.load %arg4[%c0_5, %c0_6] : memref<1x32xf32, #tpu.memory_space<vmem>>, vector<1x32xf32>
    %7 = vector.broadcast %6 : vector<1x32xf32> to vector<8x32xf32>
    %8 = arith.addf %5, %7 : vector<8x32xf32>
    %9 = arith.truncf %8 : vector<8x32xf32> to vector<8x32xbf16>
    %c0_7 = arith.constant 0 : index
    %c0_8 = arith.constant 0 : index
    %10 = vector.load %arg5[%c0_7, %c0_8] : memref<8x32xbf16, #tpu.memory_space<vmem>>, vector<8x32xbf16>
    tpu.vector_store %arg5[%c0_7, %c0_8], %9 {strides = array<i32>} : memref<8x32xbf16, #tpu.memory_space<vmem>>, vector<8x32xbf16>,
    return
  }
  func.func @transform_0(%arg0: i32) -> (i32, i32) {
    %c0_i32 = arith.constant 0 : i32
    %c0_i32_0 = arith.constant 0 : i32
    return %arg0, %c0_i32 : i32, i32
  }
  func.func @transform_1(%arg0: i32) -> (i32, i32) {
    %c0_i32 = arith.constant 0 : i32
    %c0_i32_0 = arith.constant 0 : i32
    return %arg0, %c0_i32 : i32, i32
  }
  func.func @transform_2(%arg0: i32) -> (i32, i32) {
    %c0_i32 = arith.constant 0 : i32
    %c0_i32_0 = arith.constant 0 : i32
    %c0_i32_1 = arith.constant 0 : i32
    return %c0_i32, %c0_i32_0 : i32, i32
  }
  func.func @transform_3(%arg0: i32) -> (i32, i32) {
    %c0_i32 = arith.constant 0 : i32
    %c0_i32_0 = arith.constant 0 : i32
    %c0_i32_1 = arith.constant 0 : i32
    return %c0_i32, %c0_i32_0 : i32, i32
  }
  func.func @transform_4(%arg0: i32) -> (i32, i32) {
    %c0_i32 = arith.constant 0 : i32
    %c0_i32_0 = arith.constant 0 : i32
    return %arg0, %c0_i32 : i32, i32
  }
}

module attributes {stable_mosaic.version = 11 : i64} {
  func.func @_mha_small_fused_kernel(%arg0: i32, %arg1: i32, %arg2: memref<1x8x32xbf16, #tpu.memory_space<vmem>>, %arg3: memref<1x16x32xbf16, #tpu.memory_space<vmem>>, %arg4: memref<1x16x32xbf16, #tpu.memory_space<vmem>>, %arg5: memref<1x1x16xf32, #tpu.memory_space<vmem>>, %arg6: memref<1x8x32xf32, #tpu.memory_space<vmem>>, %arg7: memref<32x32xbf16, #tpu.memory_space<vmem>>, %arg8: memref<1x32xf32, #tpu.memory_space<vmem>>, %arg9: memref<1x32xf32, #tpu.memory_space<vmem>>, %arg10: memref<1x32xf32, #tpu.memory_space<vmem>>, %arg11: memref<1x8x32xf32, #tpu.memory_space<vmem>>) attributes {dimension_semantics = [#tpu.dimension_semantics<parallel>, #tpu.dimension_semantics<parallel>], iteration_bounds = array<i64: 2, 1>, scalar_prefetch = 0 : i64, scratch_operands = 0 : i64, tpu.core_type = #tpu.core_type<tc>, window_params = [{transform_indices = @transform_0, window_bounds = array<i64: 1, 8, 32>}, {transform_indices = @transform_1, window_bounds = array<i64: 1, 16, 32>}, {transform_indices = @transform_2, window_bounds = array<i64: 1, 16, 32>}, {transform_indices = @transform_3, window_bounds = array<i64: 1, 1, 16>}, {transform_indices = @transform_4, window_bounds = array<i64: 1, 8, 32>}, {pipeline_mode = #tpu.pipeline_mode<synchronous>, transform_indices = @transform_5, window_bounds = array<i64: 32, 32>}, {pipeline_mode = #tpu.pipeline_mode<synchronous>, transform_indices = @transform_6, window_bounds = array<i64: 1, 32>}, {pipeline_mode = #tpu.pipeline_mode<synchronous>, transform_indices = @transform_7, window_bounds = array<i64: 1, 32>}, {pipeline_mode = #tpu.pipeline_mode<synchronous>, transform_indices = @transform_8, window_bounds = array<i64: 1, 32>}, {transform_indices = @transform_9, window_bounds = array<i64: 1, 8, 32>}]} {
    %c0 = arith.constant 0 : index
    %c0_0 = arith.constant 0 : index
    %c0_1 = arith.constant 0 : index
    %0 = vector.load %arg2[%c0, %c0_0, %c0_1] : memref<1x8x32xbf16, #tpu.memory_space<vmem>>, vector<1x8x32xbf16>
    %1 = vector.shape_cast %0 : vector<1x8x32xbf16> to vector<8x32xbf16>
    %c0_2 = arith.constant 0 : index
    %c0_3 = arith.constant 0 : index
    %c0_4 = arith.constant 0 : index
    %2 = vector.load %arg3[%c0_2, %c0_3, %c0_4] : memref<1x16x32xbf16, #tpu.memory_space<vmem>>, vector<1x16x32xbf16>
    %3 = vector.shape_cast %2 : vector<1x16x32xbf16> to vector<16x32xbf16>
    %c0_5 = arith.constant 0 : index
    %c0_6 = arith.constant 0 : index
    %c0_7 = arith.constant 0 : index
    %4 = vector.load %arg4[%c0_5, %c0_6, %c0_7] : memref<1x16x32xbf16, #tpu.memory_space<vmem>>, vector<1x16x32xbf16>
    %5 = vector.shape_cast %4 : vector<1x16x32xbf16> to vector<16x32xbf16>
    %c0_8 = arith.constant 0 : index
    %c0_9 = arith.constant 0 : index
    %c0_10 = arith.constant 0 : index
    %6 = vector.load %arg5[%c0_8, %c0_9, %c0_10] : memref<1x1x16xf32, #tpu.memory_space<vmem>>, vector<1x1x16xf32>
    %7 = vector.shape_cast %6 : vector<1x1x16xf32> to vector<1x16xf32>
    %8 = vector.extract_strided_slice %1 {offsets = [0, 0], sizes = [8, 8], strides = [1, 1]} : vector<8x32xbf16> to vector<8x8xbf16>
    %9 = vector.extract_strided_slice %3 {offsets = [0, 0], sizes = [16, 8], strides = [1, 1]} : vector<16x32xbf16> to vector<16x8xbf16>
    %cst = arith.constant dense<0.000000e+00> : vector<8x16xf32>
    %10 = tpu.matmul %8, %9, %cst {dimension_numbers = #tpu.dot_dimension_numbers<[1], [1], [0], [0], [0, 0, 1, 0], [], []>} : vector<8x8xbf16>, vector<16x8xbf16>, vector<8x16xf32> -> vector<8x16xf32>
    %11 = vector.broadcast %7 : vector<1x16xf32> to vector<8x16xf32>
    %12 = arith.addf %10, %11 : vector<8x16xf32>
    %cst_11 = arith.constant dense<0xFF800000> : vector<8xf32>
    %13 = vector.multi_reduction <maximumf>, %12, %cst_11 [1] : vector<8x16xf32> to vector<8xf32>
    %14 = vector.shape_cast %13 : vector<8xf32> to vector<8x1xf32>
    %15 = vector.broadcast %14 : vector<8x1xf32> to vector<8x16xf32>
    %16 = arith.subf %12, %15 : vector<8x16xf32>
    %17 = math.exp %16 : vector<8x16xf32>
    %cst_12 = arith.constant dense<0.000000e+00> : vector<8xf32>
    %18 = vector.multi_reduction <add>, %17, %cst_12 [1] : vector<8x16xf32> to vector<8xf32>
    %19 = vector.shape_cast %18 : vector<8xf32> to vector<8x1xf32>
    %20 = arith.truncf %17 : vector<8x16xf32> to vector<8x16xbf16>
    %21 = vector.extract_strided_slice %5 {offsets = [0, 0], sizes = [16, 8], strides = [1, 1]} : vector<16x32xbf16> to vector<16x8xbf16>
    %cst_13 = arith.constant dense<0.000000e+00> : vector<8x8xf32>
    %22 = tpu.matmul %20, %21, %cst_13 {dimension_numbers = #tpu.dot_dimension_numbers<[1], [0], [0], [1], [0, 0, 1, 1], [], []>} : vector<8x16xbf16>, vector<16x8xbf16>, vector<8x8xf32> -> vector<8x8xf32>
    %cst_14 = arith.constant 1.000000e+00 : f32
    %23 = vector.broadcast %cst_14 : f32 to vector<8x1xf32>
    %24 = arith.divf %23, %19 : vector<8x1xf32>
    %25 = vector.broadcast %24 : vector<8x1xf32> to vector<8x8xf32>
    %26 = arith.mulf %22, %25 : vector<8x8xf32>
    %27 = vector.extract_strided_slice %1 {offsets = [0, 8], sizes = [8, 8], strides = [1, 1]} : vector<8x32xbf16> to vector<8x8xbf16>
    %28 = vector.extract_strided_slice %3 {offsets = [0, 8], sizes = [16, 8], strides = [1, 1]} : vector<16x32xbf16> to vector<16x8xbf16>
    %cst_15 = arith.constant dense<0.000000e+00> : vector<8x16xf32>
    %29 = tpu.matmul %27, %28, %cst_15 {dimension_numbers = #tpu.dot_dimension_numbers<[1], [1], [0], [0], [0, 0, 1, 0], [], []>} : vector<8x8xbf16>, vector<16x8xbf16>, vector<8x16xf32> -> vector<8x16xf32>
    %30 = vector.broadcast %7 : vector<1x16xf32> to vector<8x16xf32>
    %31 = arith.addf %29, %30 : vector<8x16xf32>
    %cst_16 = arith.constant dense<0xFF800000> : vector<8xf32>
    %32 = vector.multi_reduction <maximumf>, %31, %cst_16 [1] : vector<8x16xf32> to vector<8xf32>
    %33 = vector.shape_cast %32 : vector<8xf32> to vector<8x1xf32>
    %34 = vector.broadcast %33 : vector<8x1xf32> to vector<8x16xf32>
    %35 = arith.subf %31, %34 : vector<8x16xf32>
    %36 = math.exp %35 : vector<8x16xf32>
    %cst_17 = arith.constant dense<0.000000e+00> : vector<8xf32>
    %37 = vector.multi_reduction <add>, %36, %cst_17 [1] : vector<8x16xf32> to vector<8xf32>
    %38 = vector.shape_cast %37 : vector<8xf32> to vector<8x1xf32>
    %39 = arith.truncf %36 : vector<8x16xf32> to vector<8x16xbf16>
    %40 = vector.extract_strided_slice %5 {offsets = [0, 8], sizes = [16, 8], strides = [1, 1]} : vector<16x32xbf16> to vector<16x8xbf16>
    %cst_18 = arith.constant dense<0.000000e+00> : vector<8x8xf32>
    %41 = tpu.matmul %39, %40, %cst_18 {dimension_numbers = #tpu.dot_dimension_numbers<[1], [0], [0], [1], [0, 0, 1, 1], [], []>} : vector<8x16xbf16>, vector<16x8xbf16>, vector<8x8xf32> -> vector<8x8xf32>
    %cst_19 = arith.constant 1.000000e+00 : f32
    %42 = vector.broadcast %cst_19 : f32 to vector<8x1xf32>
    %43 = arith.divf %42, %38 : vector<8x1xf32>
    %44 = vector.broadcast %43 : vector<8x1xf32> to vector<8x8xf32>
    %45 = arith.mulf %41, %44 : vector<8x8xf32>
    %46 = vector.extract_strided_slice %1 {offsets = [0, 16], sizes = [8, 8], strides = [1, 1]} : vector<8x32xbf16> to vector<8x8xbf16>
    %47 = vector.extract_strided_slice %3 {offsets = [0, 16], sizes = [16, 8], strides = [1, 1]} : vector<16x32xbf16> to vector<16x8xbf16>
    %cst_20 = arith.constant dense<0.000000e+00> : vector<8x16xf32>
    %48 = tpu.matmul %46, %47, %cst_20 {dimension_numbers = #tpu.dot_dimension_numbers<[1], [1], [0], [0], [0, 0, 1, 0], [], []>} : vector<8x8xbf16>, vector<16x8xbf16>, vector<8x16xf32> -> vector<8x16xf32>
    %49 = vector.broadcast %7 : vector<1x16xf32> to vector<8x16xf32>
    %50 = arith.addf %48, %49 : vector<8x16xf32>
    %cst_21 = arith.constant dense<0xFF800000> : vector<8xf32>
    %51 = vector.multi_reduction <maximumf>, %50, %cst_21 [1] : vector<8x16xf32> to vector<8xf32>
    %52 = vector.shape_cast %51 : vector<8xf32> to vector<8x1xf32>
    %53 = vector.broadcast %52 : vector<8x1xf32> to vector<8x16xf32>
    %54 = arith.subf %50, %53 : vector<8x16xf32>
    %55 = math.exp %54 : vector<8x16xf32>
    %cst_22 = arith.constant dense<0.000000e+00> : vector<8xf32>
    %56 = vector.multi_reduction <add>, %55, %cst_22 [1] : vector<8x16xf32> to vector<8xf32>
    %57 = vector.shape_cast %56 : vector<8xf32> to vector<8x1xf32>
    %58 = arith.truncf %55 : vector<8x16xf32> to vector<8x16xbf16>
    %59 = vector.extract_strided_slice %5 {offsets = [0, 16], sizes = [16, 8], strides = [1, 1]} : vector<16x32xbf16> to vector<16x8xbf16>
    %cst_23 = arith.constant dense<0.000000e+00> : vector<8x8xf32>
    %60 = tpu.matmul %58, %59, %cst_23 {dimension_numbers = #tpu.dot_dimension_numbers<[1], [0], [0], [1], [0, 0, 1, 1], [], []>} : vector<8x16xbf16>, vector<16x8xbf16>, vector<8x8xf32> -> vector<8x8xf32>
    %cst_24 = arith.constant 1.000000e+00 : f32
    %61 = vector.broadcast %cst_24 : f32 to vector<8x1xf32>
    %62 = arith.divf %61, %57 : vector<8x1xf32>
    %63 = vector.broadcast %62 : vector<8x1xf32> to vector<8x8xf32>
    %64 = arith.mulf %60, %63 : vector<8x8xf32>
    %65 = vector.extract_strided_slice %1 {offsets = [0, 24], sizes = [8, 8], strides = [1, 1]} : vector<8x32xbf16> to vector<8x8xbf16>
    %66 = vector.extract_strided_slice %3 {offsets = [0, 24], sizes = [16, 8], strides = [1, 1]} : vector<16x32xbf16> to vector<16x8xbf16>
    %cst_25 = arith.constant dense<0.000000e+00> : vector<8x16xf32>
    %67 = tpu.matmul %65, %66, %cst_25 {dimension_numbers = #tpu.dot_dimension_numbers<[1], [1], [0], [0], [0, 0, 1, 0], [], []>} : vector<8x8xbf16>, vector<16x8xbf16>, vector<8x16xf32> -> vector<8x16xf32>
    %68 = vector.broadcast %7 : vector<1x16xf32> to vector<8x16xf32>
    %69 = arith.addf %67, %68 : vector<8x16xf32>
    %cst_26 = arith.constant dense<0xFF800000> : vector<8xf32>
    %70 = vector.multi_reduction <maximumf>, %69, %cst_26 [1] : vector<8x16xf32> to vector<8xf32>
    %71 = vector.shape_cast %70 : vector<8xf32> to vector<8x1xf32>
    %72 = vector.broadcast %71 : vector<8x1xf32> to vector<8x16xf32>
    %73 = arith.subf %69, %72 : vector<8x16xf32>
    %74 = math.exp %73 : vector<8x16xf32>
    %cst_27 = arith.constant dense<0.000000e+00> : vector<8xf32>
    %75 = vector.multi_reduction <add>, %74, %cst_27 [1] : vector<8x16xf32> to vector<8xf32>
    %76 = vector.shape_cast %75 : vector<8xf32> to vector<8x1xf32>
    %77 = arith.truncf %74 : vector<8x16xf32> to vector<8x16xbf16>
    %78 = vector.extract_strided_slice %5 {offsets = [0, 24], sizes = [16, 8], strides = [1, 1]} : vector<16x32xbf16> to vector<16x8xbf16>
    %cst_28 = arith.constant dense<0.000000e+00> : vector<8x8xf32>
    %79 = tpu.matmul %77, %78, %cst_28 {dimension_numbers = #tpu.dot_dimension_numbers<[1], [0], [0], [1], [0, 0, 1, 1], [], []>} : vector<8x16xbf16>, vector<16x8xbf16>, vector<8x8xf32> -> vector<8x8xf32>
    %cst_29 = arith.constant 1.000000e+00 : f32
    %80 = vector.broadcast %cst_29 : f32 to vector<8x1xf32>
    %81 = arith.divf %80, %76 : vector<8x1xf32>
    %82 = vector.broadcast %81 : vector<8x1xf32> to vector<8x8xf32>
    %83 = arith.mulf %79, %82 : vector<8x8xf32>
    %84 = tpu.concatenate %26, %45, %64, %83 in 1 : vector<8x8xf32>, vector<8x8xf32>, vector<8x8xf32>, vector<8x8xf32> -> vector<8x32xf32>
    %c0_30 = arith.constant 0 : index
    %c0_31 = arith.constant 0 : index
    %c0_32 = arith.constant 0 : index
    %85 = vector.load %arg6[%c0_30, %c0_31, %c0_32] : memref<1x8x32xf32, #tpu.memory_space<vmem>>, vector<1x8x32xf32>
    %86 = vector.shape_cast %85 : vector<1x8x32xf32> to vector<8x32xf32>
    %c0_33 = arith.constant 0 : index
    %c0_34 = arith.constant 0 : index
    %87 = vector.load %arg7[%c0_33, %c0_34] : memref<32x32xbf16, #tpu.memory_space<vmem>>, vector<32x32xbf16>
    %88 = arith.truncf %84 : vector<8x32xf32> to vector<8x32xbf16>
    %cst_35 = arith.constant dense<0.000000e+00> : vector<8x32xf32>
    %89 = tpu.matmul %88, %87, %cst_35 {dimension_numbers = #tpu.dot_dimension_numbers<[1], [0], [0], [1], [0, 0, 1, 1], [], []>} : vector<8x32xbf16>, vector<32x32xbf16>, vector<8x32xf32> -> vector<8x32xf32>
    %90 = arith.addf %86, %89 : vector<8x32xf32>
    %c0_36 = arith.constant 0 : index
    %c0_37 = arith.constant 0 : index
    %91 = vector.load %arg8[%c0_36, %c0_37] : memref<1x32xf32, #tpu.memory_space<vmem>>, vector<1x32xf32>
    %92 = vector.broadcast %91 : vector<1x32xf32> to vector<8x32xf32>
    %93 = arith.addf %90, %92 : vector<8x32xf32>
    %c0_38 = arith.constant 0 : index
    %c0_39 = arith.constant 0 : index
    %94 = vector.load %arg9[%c0_38, %c0_39] : memref<1x32xf32, #tpu.memory_space<vmem>>, vector<1x32xf32>
    %c0_40 = arith.constant 0 : index
    %c0_41 = arith.constant 0 : index
    %95 = vector.load %arg10[%c0_40, %c0_41] : memref<1x32xf32, #tpu.memory_space<vmem>>, vector<1x32xf32>
    %cst_42 = arith.constant dense<0.000000e+00> : vector<8xf32>
    %96 = vector.multi_reduction <add>, %93, %cst_42 [1] : vector<8x32xf32> to vector<8xf32>
    %97 = vector.shape_cast %96 : vector<8xf32> to vector<8x1xf32>
    %cst_43 = arith.constant 3.200000e+01 : f32
    %98 = vector.broadcast %cst_43 : f32 to vector<8x1xf32>
    %99 = arith.divf %97, %98 : vector<8x1xf32>
    %100 = vector.broadcast %99 : vector<8x1xf32> to vector<8x32xf32>
    %101 = arith.subf %93, %100 : vector<8x32xf32>
    %102 = arith.mulf %101, %101 : vector<8x32xf32>
    %cst_44 = arith.constant dense<0.000000e+00> : vector<8xf32>
    %103 = vector.multi_reduction <add>, %102, %cst_44 [1] : vector<8x32xf32> to vector<8xf32>
    %104 = vector.shape_cast %103 : vector<8xf32> to vector<8x1xf32>
    %cst_45 = arith.constant 3.200000e+01 : f32
    %105 = vector.broadcast %cst_45 : f32 to vector<8x1xf32>
    %106 = arith.divf %104, %105 : vector<8x1xf32>
    %107 = vector.broadcast %99 : vector<8x1xf32> to vector<8x32xf32>
    %108 = arith.subf %93, %107 : vector<8x32xf32>
    %cst_46 = arith.constant 9.99999974E-6 : f32
    %109 = vector.broadcast %cst_46 : f32 to vector<8x1xf32>
    %110 = arith.addf %106, %109 : vector<8x1xf32>
    %111 = math.rsqrt %110 : vector<8x1xf32>
    %112 = vector.broadcast %111 : vector<8x1xf32> to vector<8x32xf32>
    %113 = arith.mulf %108, %112 : vector<8x32xf32>
    %114 = vector.broadcast %94 : vector<1x32xf32> to vector<8x32xf32>
    %115 = arith.mulf %113, %114 : vector<8x32xf32>
    %116 = vector.broadcast %95 : vector<1x32xf32> to vector<8x32xf32>
    %117 = arith.addf %115, %116 : vector<8x32xf32>
    %c0_47 = arith.constant 0 : index
    %c0_48 = arith.constant 0 : index
    %c0_49 = arith.constant 0 : index
    %118 = vector.load %arg11[%c0_47, %c0_48, %c0_49] : memref<1x8x32xf32, #tpu.memory_space<vmem>>, vector<1x8x32xf32>
    %119 = vector.shape_cast %118 : vector<1x8x32xf32> to vector<8x32xf32>
    %120 = vector.shape_cast %117 : vector<8x32xf32> to vector<1x8x32xf32>
    tpu.vector_store %arg11[%c0_47, %c0_48, %c0_49], %120 {strides = array<i32>} : memref<1x8x32xf32, #tpu.memory_space<vmem>>, vector<1x8x32xf32>,
    return
  }
  func.func @transform_0(%arg0: i32, %arg1: i32) -> (i32, i32, i32) {
    %c0_i32 = arith.constant 0 : i32
    %c0_i32_0 = arith.constant 0 : i32
    return %arg0, %arg1, %c0_i32 : i32, i32, i32
  }
  func.func @transform_1(%arg0: i32, %arg1: i32) -> (i32, i32, i32) {
    %c0_i32 = arith.constant 0 : i32
    %c0_i32_0 = arith.constant 0 : i32
    %c0_i32_1 = arith.constant 0 : i32
    return %arg0, %c0_i32, %c0_i32_0 : i32, i32, i32
  }
  func.func @transform_2(%arg0: i32, %arg1: i32) -> (i32, i32, i32) {
    %c0_i32 = arith.constant 0 : i32
    %c0_i32_0 = arith.constant 0 : i32
    %c0_i32_1 = arith.constant 0 : i32
    return %arg0, %c0_i32, %c0_i32_0 : i32, i32, i32
  }
  func.func @transform_3(%arg0: i32, %arg1: i32) -> (i32, i32, i32) {
    %c0_i32 = arith.constant 0 : i32
    %c0_i32_0 = arith.constant 0 : i32
    %c0_i32_1 = arith.constant 0 : i32
    return %arg0, %c0_i32, %c0_i32_0 : i32, i32, i32
  }
  func.func @transform_4(%arg0: i32, %arg1: i32) -> (i32, i32, i32) {
    %c0_i32 = arith.constant 0 : i32
    %c0_i32_0 = arith.constant 0 : i32
    return %arg0, %arg1, %c0_i32 : i32, i32, i32
  }
  func.func @transform_5(%arg0: i32, %arg1: i32) -> (i32, i32) {
    %c0_i32 = arith.constant 0 : i32
    %c0_i32_0 = arith.constant 0 : i32
    %c0_i32_1 = arith.constant 0 : i32
    return %c0_i32, %c0_i32_0 : i32, i32
  }
  func.func @transform_6(%arg0: i32, %arg1: i32) -> (i32, i32) {
    %c0_i32 = arith.constant 0 : i32
    %c0_i32_0 = arith.constant 0 : i32
    %c0_i32_1 = arith.constant 0 : i32
    return %c0_i32, %c0_i32_0 : i32, i32
  }
  func.func @transform_7(%arg0: i32, %arg1: i32) -> (i32, i32) {
    %c0_i32 = arith.constant 0 : i32
    %c0_i32_0 = arith.constant 0 : i32
    %c0_i32_1 = arith.constant 0 : i32
    return %c0_i32, %c0_i32_0 : i32, i32
  }
  func.func @transform_8(%arg0: i32, %arg1: i32) -> (i32, i32) {
    %c0_i32 = arith.constant 0 : i32
    %c0_i32_0 = arith.constant 0 : i32
    %c0_i32_1 = arith.constant 0 : i32
    return %c0_i32, %c0_i32_0 : i32, i32
  }
  func.func @transform_9(%arg0: i32, %arg1: i32) -> (i32, i32, i32) {
    %c0_i32 = arith.constant 0 : i32
    %c0_i32_0 = arith.constant 0 : i32
    return %arg0, %arg1, %c0_i32 : i32, i32, i32
  }
}

module attributes {stable_mosaic.version = 11 : i64} {
  func.func @_ffn_res_ln_kernel(%arg0: i32, %arg1: memref<8x32xf32, #tpu.memory_space<vmem>>, %arg2: memref<32x64xbf16, #tpu.memory_space<vmem>>, %arg3: memref<1x64xf32, #tpu.memory_space<vmem>>, %arg4: memref<64x32xbf16, #tpu.memory_space<vmem>>, %arg5: memref<1x32xf32, #tpu.memory_space<vmem>>, %arg6: memref<1x32xf32, #tpu.memory_space<vmem>>, %arg7: memref<1x32xf32, #tpu.memory_space<vmem>>, %arg8: memref<8x32xf32, #tpu.memory_space<vmem>>) attributes {dimension_semantics = [#tpu.dimension_semantics<parallel>], iteration_bounds = array<i64: 1>, scalar_prefetch = 0 : i64, scratch_operands = 0 : i64, tpu.core_type = #tpu.core_type<tc>, window_params = [{transform_indices = @transform_0, window_bounds = array<i64: 8, 32>}, {pipeline_mode = #tpu.pipeline_mode<synchronous>, transform_indices = @transform_1, window_bounds = array<i64: 32, 64>}, {pipeline_mode = #tpu.pipeline_mode<synchronous>, transform_indices = @transform_2, window_bounds = array<i64: 1, 64>}, {pipeline_mode = #tpu.pipeline_mode<synchronous>, transform_indices = @transform_3, window_bounds = array<i64: 64, 32>}, {pipeline_mode = #tpu.pipeline_mode<synchronous>, transform_indices = @transform_4, window_bounds = array<i64: 1, 32>}, {pipeline_mode = #tpu.pipeline_mode<synchronous>, transform_indices = @transform_5, window_bounds = array<i64: 1, 32>}, {pipeline_mode = #tpu.pipeline_mode<synchronous>, transform_indices = @transform_6, window_bounds = array<i64: 1, 32>}, {transform_indices = @transform_7, window_bounds = array<i64: 8, 32>}]} {
    %c0 = arith.constant 0 : index
    %c0_0 = arith.constant 0 : index
    %0 = vector.load %arg1[%c0, %c0_0] : memref<8x32xf32, #tpu.memory_space<vmem>>, vector<8x32xf32>
    %c0_1 = arith.constant 0 : index
    %c0_2 = arith.constant 0 : index
    %1 = vector.load %arg2[%c0_1, %c0_2] : memref<32x64xbf16, #tpu.memory_space<vmem>>, vector<32x64xbf16>
    %2 = arith.truncf %0 : vector<8x32xf32> to vector<8x32xbf16>
    %cst = arith.constant dense<0.000000e+00> : vector<8x64xf32>
    %3 = tpu.matmul %2, %1, %cst {dimension_numbers = #tpu.dot_dimension_numbers<[1], [0], [0], [1], [0, 0, 1, 1], [], []>} : vector<8x32xbf16>, vector<32x64xbf16>, vector<8x64xf32> -> vector<8x64xf32>
    %c0_3 = arith.constant 0 : index
    %c0_4 = arith.constant 0 : index
    %4 = vector.load %arg3[%c0_3, %c0_4] : memref<1x64xf32, #tpu.memory_space<vmem>>, vector<1x64xf32>
    %5 = vector.broadcast %4 : vector<1x64xf32> to vector<8x64xf32>
    %6 = arith.addf %3, %5 : vector<8x64xf32>
    %cst_5 = arith.constant 0.000000e+00 : f32
    %7 = vector.broadcast %cst_5 : f32 to vector<8x64xf32>
    %8 = arith.maximumf %6, %7 : vector<8x64xf32>
    %c0_6 = arith.constant 0 : index
    %c0_7 = arith.constant 0 : index
    %9 = vector.load %arg4[%c0_6, %c0_7] : memref<64x32xbf16, #tpu.memory_space<vmem>>, vector<64x32xbf16>
    %10 = arith.truncf %8 : vector<8x64xf32> to vector<8x64xbf16>
    %cst_8 = arith.constant dense<0.000000e+00> : vector<8x32xf32>
    %11 = tpu.matmul %10, %9, %cst_8 {dimension_numbers = #tpu.dot_dimension_numbers<[1], [0], [0], [1], [0, 0, 1, 1], [], []>} : vector<8x64xbf16>, vector<64x32xbf16>, vector<8x32xf32> -> vector<8x32xf32>
    %12 = arith.addf %0, %11 : vector<8x32xf32>
    %c0_9 = arith.constant 0 : index
    %c0_10 = arith.constant 0 : index
    %13 = vector.load %arg5[%c0_9, %c0_10] : memref<1x32xf32, #tpu.memory_space<vmem>>, vector<1x32xf32>
    %14 = vector.broadcast %13 : vector<1x32xf32> to vector<8x32xf32>
    %15 = arith.addf %12, %14 : vector<8x32xf32>
    %c0_11 = arith.constant 0 : index
    %c0_12 = arith.constant 0 : index
    %16 = vector.load %arg6[%c0_11, %c0_12] : memref<1x32xf32, #tpu.memory_space<vmem>>, vector<1x32xf32>
    %c0_13 = arith.constant 0 : index
    %c0_14 = arith.constant 0 : index
    %17 = vector.load %arg7[%c0_13, %c0_14] : memref<1x32xf32, #tpu.memory_space<vmem>>, vector<1x32xf32>
    %cst_15 = arith.constant dense<0.000000e+00> : vector<8xf32>
    %18 = vector.multi_reduction <add>, %15, %cst_15 [1] : vector<8x32xf32> to vector<8xf32>
    %19 = vector.shape_cast %18 : vector<8xf32> to vector<8x1xf32>
    %cst_16 = arith.constant 3.200000e+01 : f32
    %20 = vector.broadcast %cst_16 : f32 to vector<8x1xf32>
    %21 = arith.divf %19, %20 : vector<8x1xf32>
    %22 = vector.broadcast %21 : vector<8x1xf32> to vector<8x32xf32>
    %23 = arith.subf %15, %22 : vector<8x32xf32>
    %24 = arith.mulf %23, %23 : vector<8x32xf32>
    %cst_17 = arith.constant dense<0.000000e+00> : vector<8xf32>
    %25 = vector.multi_reduction <add>, %24, %cst_17 [1] : vector<8x32xf32> to vector<8xf32>
    %26 = vector.shape_cast %25 : vector<8xf32> to vector<8x1xf32>
    %cst_18 = arith.constant 3.200000e+01 : f32
    %27 = vector.broadcast %cst_18 : f32 to vector<8x1xf32>
    %28 = arith.divf %26, %27 : vector<8x1xf32>
    %29 = vector.broadcast %21 : vector<8x1xf32> to vector<8x32xf32>
    %30 = arith.subf %15, %29 : vector<8x32xf32>
    %cst_19 = arith.constant 9.99999974E-6 : f32
    %31 = vector.broadcast %cst_19 : f32 to vector<8x1xf32>
    %32 = arith.addf %28, %31 : vector<8x1xf32>
    %33 = math.rsqrt %32 : vector<8x1xf32>
    %34 = vector.broadcast %33 : vector<8x1xf32> to vector<8x32xf32>
    %35 = arith.mulf %30, %34 : vector<8x32xf32>
    %36 = vector.broadcast %16 : vector<1x32xf32> to vector<8x32xf32>
    %37 = arith.mulf %35, %36 : vector<8x32xf32>
    %38 = vector.broadcast %17 : vector<1x32xf32> to vector<8x32xf32>
    %39 = arith.addf %37, %38 : vector<8x32xf32>
    %c0_20 = arith.constant 0 : index
    %c0_21 = arith.constant 0 : index
    %40 = vector.load %arg8[%c0_20, %c0_21] : memref<8x32xf32, #tpu.memory_space<vmem>>, vector<8x32xf32>
    tpu.vector_store %arg8[%c0_20, %c0_21], %39 {strides = array<i32>} : memref<8x32xf32, #tpu.memory_space<vmem>>, vector<8x32xf32>,
    return
  }
  func.func @transform_0(%arg0: i32) -> (i32, i32) {
    %c0_i32 = arith.constant 0 : i32
    %c0_i32_0 = arith.constant 0 : i32
    return %arg0, %c0_i32 : i32, i32
  }
  func.func @transform_1(%arg0: i32) -> (i32, i32) {
    %c0_i32 = arith.constant 0 : i32
    %c0_i32_0 = arith.constant 0 : i32
    %c0_i32_1 = arith.constant 0 : i32
    return %c0_i32, %c0_i32_0 : i32, i32
  }
  func.func @transform_2(%arg0: i32) -> (i32, i32) {
    %c0_i32 = arith.constant 0 : i32
    %c0_i32_0 = arith.constant 0 : i32
    %c0_i32_1 = arith.constant 0 : i32
    return %c0_i32, %c0_i32_0 : i32, i32
  }
  func.func @transform_3(%arg0: i32) -> (i32, i32) {
    %c0_i32 = arith.constant 0 : i32
    %c0_i32_0 = arith.constant 0 : i32
    %c0_i32_1 = arith.constant 0 : i32
    return %c0_i32, %c0_i32_0 : i32, i32
  }
  func.func @transform_4(%arg0: i32) -> (i32, i32) {
    %c0_i32 = arith.constant 0 : i32
    %c0_i32_0 = arith.constant 0 : i32
    %c0_i32_1 = arith.constant 0 : i32
    return %c0_i32, %c0_i32_0 : i32, i32
  }
  func.func @transform_5(%arg0: i32) -> (i32, i32) {
    %c0_i32 = arith.constant 0 : i32
    %c0_i32_0 = arith.constant 0 : i32
    %c0_i32_1 = arith.constant 0 : i32
    return %c0_i32, %c0_i32_0 : i32, i32
  }
  func.func @transform_6(%arg0: i32) -> (i32, i32) {
    %c0_i32 = arith.constant 0 : i32
    %c0_i32_0 = arith.constant 0 : i32
    %c0_i32_1 = arith.constant 0 : i32
    return %c0_i32, %c0_i32_0 : i32, i32
  }
  func.func @transform_7(%arg0: i32) -> (i32, i32) {
    %c0_i32 = arith.constant 0 : i32
    %c0_i32_0 = arith.constant 0 : i32
    return %arg0, %c0_i32 : i32, i32
  }
}

module attributes {stable_mosaic.version = 11 : i64} {
  func.func @_ln_kernel(%arg0: i32, %arg1: memref<8x32xf32, #tpu.memory_space<vmem>>, %arg2: memref<1x32xf32, #tpu.memory_space<vmem>>, %arg3: memref<1x32xf32, #tpu.memory_space<vmem>>, %arg4: memref<8x32xf32, #tpu.memory_space<vmem>>) attributes {dimension_semantics = [#tpu.dimension_semantics<parallel>], iteration_bounds = array<i64: 1>, scalar_prefetch = 0 : i64, scratch_operands = 0 : i64, tpu.core_type = #tpu.core_type<tc>, window_params = [{transform_indices = @transform_0, window_bounds = array<i64: 8, 32>}, {pipeline_mode = #tpu.pipeline_mode<synchronous>, transform_indices = @transform_1, window_bounds = array<i64: 1, 32>}, {pipeline_mode = #tpu.pipeline_mode<synchronous>, transform_indices = @transform_2, window_bounds = array<i64: 1, 32>}, {transform_indices = @transform_3, window_bounds = array<i64: 8, 32>}]} {
    %c0 = arith.constant 0 : index
    %c0_0 = arith.constant 0 : index
    %0 = vector.load %arg1[%c0, %c0_0] : memref<8x32xf32, #tpu.memory_space<vmem>>, vector<8x32xf32>
    %c0_1 = arith.constant 0 : index
    %c0_2 = arith.constant 0 : index
    %1 = vector.load %arg2[%c0_1, %c0_2] : memref<1x32xf32, #tpu.memory_space<vmem>>, vector<1x32xf32>
    %c0_3 = arith.constant 0 : index
    %c0_4 = arith.constant 0 : index
    %2 = vector.load %arg3[%c0_3, %c0_4] : memref<1x32xf32, #tpu.memory_space<vmem>>, vector<1x32xf32>
    %cst = arith.constant dense<0.000000e+00> : vector<8xf32>
    %3 = vector.multi_reduction <add>, %0, %cst [1] : vector<8x32xf32> to vector<8xf32>
    %4 = vector.shape_cast %3 : vector<8xf32> to vector<8x1xf32>
    %cst_5 = arith.constant 3.200000e+01 : f32
    %5 = vector.broadcast %cst_5 : f32 to vector<8x1xf32>
    %6 = arith.divf %4, %5 : vector<8x1xf32>
    %7 = vector.broadcast %6 : vector<8x1xf32> to vector<8x32xf32>
    %8 = arith.subf %0, %7 : vector<8x32xf32>
    %9 = arith.mulf %8, %8 : vector<8x32xf32>
    %cst_6 = arith.constant dense<0.000000e+00> : vector<8xf32>
    %10 = vector.multi_reduction <add>, %9, %cst_6 [1] : vector<8x32xf32> to vector<8xf32>
    %11 = vector.shape_cast %10 : vector<8xf32> to vector<8x1xf32>
    %cst_7 = arith.constant 3.200000e+01 : f32
    %12 = vector.broadcast %cst_7 : f32 to vector<8x1xf32>
    %13 = arith.divf %11, %12 : vector<8x1xf32>
    %14 = vector.broadcast %6 : vector<8x1xf32> to vector<8x32xf32>
    %15 = arith.subf %0, %14 : vector<8x32xf32>
    %cst_8 = arith.constant 9.99999974E-6 : f32
    %16 = vector.broadcast %cst_8 : f32 to vector<8x1xf32>
    %17 = arith.addf %13, %16 : vector<8x1xf32>
    %18 = math.rsqrt %17 : vector<8x1xf32>
    %19 = vector.broadcast %18 : vector<8x1xf32> to vector<8x32xf32>
    %20 = arith.mulf %15, %19 : vector<8x32xf32>
    %21 = vector.broadcast %1 : vector<1x32xf32> to vector<8x32xf32>
    %22 = arith.mulf %20, %21 : vector<8x32xf32>
    %23 = vector.broadcast %2 : vector<1x32xf32> to vector<8x32xf32>
    %24 = arith.addf %22, %23 : vector<8x32xf32>
    %c0_9 = arith.constant 0 : index
    %c0_10 = arith.constant 0 : index
    %25 = vector.load %arg4[%c0_9, %c0_10] : memref<8x32xf32, #tpu.memory_space<vmem>>, vector<8x32xf32>
    tpu.vector_store %arg4[%c0_9, %c0_10], %24 {strides = array<i32>} : memref<8x32xf32, #tpu.memory_space<vmem>>, vector<8x32xf32>,
    return
  }
  func.func @transform_0(%arg0: i32) -> (i32, i32) {
    %c0_i32 = arith.constant 0 : i32
    %c0_i32_0 = arith.constant 0 : i32
    return %arg0, %c0_i32 : i32, i32
  }
  func.func @transform_1(%arg0: i32) -> (i32, i32) {
    %c0_i32 = arith.constant 0 : i32
    %c0_i32_0 = arith.constant 0 : i32
    %c0_i32_1 = arith.constant 0 : i32
    return %c0_i32, %c0_i32_0 : i32, i32
  }
  func.func @transform_2(%arg0: i32) -> (i32, i32) {
    %c0_i32 = arith.constant 0 : i32
    %c0_i32_0 = arith.constant 0 : i32
    %c0_i32_1 = arith.constant 0 : i32
    return %c0_i32, %c0_i32_0 : i32, i32
  }
  func.func @transform_3(%arg0: i32) -> (i32, i32) {
    %c0_i32 = arith.constant 0 : i32
    %c0_i32_0 = arith.constant 0 : i32
    return %arg0, %c0_i32 : i32, i32
  }
}

</mosaic_0001>

<bundles_post_ra>
// kernel: sep_transformer_forward.36
= control target key start
LH: loop header
LB: loop body
LE: loop exit
PB: predicated region body
PF: predicated region fallthrough
CT: control target
= control target key end

     0   :  { %vm53_vm0 = vcmask 261120   ;;  %vm117_vm1 = vcmask 523264   ;;  %v329_v44 = vmov 32.0   ;;  %s453_s1 = inlined_call_operand.vmem [shape: bf16[32,64], index: 1, kind: input, shape index: {}]   ;;  %s454_s0 = inlined_call_operand.vmem [shape: f32[32,32], index: 0, kind: input, shape index: {}]   ;;  %s455_s2 = inlined_call_operand.vmem [shape: f32[1,64], index: 2, kind: input, shape index: {}]   ;;  %s456_s3 = inlined_call_operand.vmem [shape: bf16[64,32], index: 3, kind: input, shape index: {}]   ;;  %s457_s4 = inlined_call_operand.vmem [shape: f32[1,32], index: 4, kind: input, shape index: {}]   ;;  %s458_s5 = inlined_call_operand.vmem [shape: f32[1,32], index: 5, kind: input, shape index: {}]   ;;  %s459_s6 = inlined_call_operand.vmem [shape: f32[1,32], index: 6, kind: input, shape index: {}]   ;;  %s460_s7 = inlined_call_operand.vmem [shape: f32[32,32], index: 7, kind: output, shape index: {}]  }
   0x1   :  { %v303_v0 = vld [vmem:[%s453_s1 + $0x8] sm:$0xff]  ;;  %v302_v1 = vld [vmem:[%s453_s1] sm:$0xff]  ;;  %v29_v4 = vld [vmem:[%s454_s0 + $0x10] sm:$0xff]  ;;  %319 = vrcp.f32 %v329_v44 }
   0x2   :  { %v27_v2 = vld [vmem:[%s454_s0] sm:$0xff]  ;;  %v28_v3 = vld [vmem:[%s454_s0 + $0x8] sm:$0xff]  ;;  %66 = vmatpush.bf16.msra.mxu0 %v303_v0  ;;  %308 = vmatpush.bf16.msra.mxu3 %v303_v0  ;;  %v30_v5 = vld [vmem:[%s454_s0 + $0x18] sm:$0xff] }
   0x3   :  { %v35_v6 = vpack.c.bf16 %v28_v3, %v27_v2  ;;  %v36_v7 = vpack.c.bf16 %v30_v5, %v29_v4  ;;  %v307_v8 = vld [vmem:[%s456_s3 + $0x18] sm:$0xff]  ;;  %v306_v9 = vld [vmem:[%s456_s3 + $0x10] sm:$0xff]  ;;  %v305_v10 = vld [vmem:[%s456_s3 + $0x8] sm:$0xff] }
   0x4   :  { %128 = vmatpush.bf16.msra.mxu1 %v307_v8  ;;  %310 = vmatpush.bf16.msra.mxu2 %v307_v8  ;;  %v304_v11 = vld [vmem:[%s456_s3] sm:$0xff] }
   0x5   :  { %v315_v13 = vld [vmem:[%s455_s2] ss:$0 sm:$0xff] }
   0x6   :  { %67 = vmatpush.bf16.msra.mxu0 %v302_v1  ;;  %309 = vmatpush.bf16.msra.mxu3 %v302_v1  ;;  %v316_v27 = vld [vmem:[%s457_s4] ss:$0 sm:$0xff] }
   0x7   :  { %v320_v45 = vpop.eup %319 }
   0x8   :  { %129 = vmatpush.bf16.msra.mxu1 %v306_v9  ;;  %311 = vmatpush.bf16.msra.mxu2 %v306_v9  ;;  %v170_v46 = vmul.f32 32.0, %v320_v45  ;;  %vm174_vm2 = vweird.f32 %v320_v45 }
   0x9   :  { %282 = vmatmul.msk.bf16.vlgmr.msra.gmra.mxu0 %vm53_vm0, %v35_v6  ;;  %283 = vmatmul.msk.bf16.vlgmr.msra.gmra.mxu3 %vm53_vm0, %v36_v7 }
   0xa   :  { %v171_v47 = vsub.f32 1.0, %v170_v46 }
   0xc   :  { %130 = vmatpush.bf16.msra.mxu1 %v305_v10  ;;  %312 = vmatpush.bf16.msra.mxu2 %v305_v10  ;;  %v172_v48 = vmul.f32 %v320_v45, %v171_v47 }
   0xe   :  { %v173_v49 = vadd.f32 %v320_v45, %v172_v48 }
  0x10   :  { %131 = vmatpush.bf16.msra.mxu1 %v304_v11  ;;  %313 = vmatpush.bf16.msra.mxu2 %v304_v11  ;;  %v175_v50 = vsel %vm174_vm2, %v320_v45, %v173_v49 }
  0x86   :  { %v69_v12 = vpop.f32.mrf.mxu0 }
  0x87   :  { %v70_v14 = vadd.f32 %v315_v13, %v69_v12 }
  0x89   :  { %v79_v17 = vmax.f32 %v70_v14, 0.0 }
  0x8c   :  { %v74_v15 = vpop.f32.mrf.mxu3 }
  0x8d   :  { %v75_v20 = vadd.f32 %v315_v13, %v74_v15 }
  0x8e   :  { %v71_v16 = vpop.f32.mrf.mxu0 }
  0x8f   :  { %v72_v18 = vadd.f32 %v315_v13, %v71_v16  ;;  %v81_v24 = vmax.f32 %v75_v20, 0.0 }
  0x91   :  { %v80_v19 = vmax.f32 %v72_v18, 0.0 }
  0x93   :  { %v91_v21 = vpack.c.bf16 %v80_v19, %v79_v17 }
  0x94   :  { %v76_v22 = vpop.f32.mrf.mxu3 }
  0x95   :  { %v77_v23 = vadd.f32 %v315_v13, %v76_v22  ;;  %300 = vmatmul.msk.bf16.vlgmr.msra.gmra.mxu1 %vm117_vm1, %v91_v21 }
  0x97   :  { %v82_v25 = vmax.f32 %v77_v23, 0.0 }
  0x99   :  { %v92_v26 = vpack.c.bf16 %v82_v25, %v81_v24  ;;  %v317_v25 = vld [vmem:[%s458_s5] ss:$0 sm:$0xff] }
  0x9b   :  { %301 = vmatmul.msk.bf16.vlgmr.msra.gmra.mxu2 %vm117_vm1, %v92_v26 }
 0x112   :  { %v133_v28 = vpop.f32.mrf.mxu1 }
 0x113   :  { %v143_v29 = vadd.f32 %v133_v28, %v27_v2 }
 0x115   :  { %v151_v30 = vadd.f32 %v316_v27, %v143_v29 }
 0x117   :  { %v157_v31 = vsel %vm53_vm0, %v151_v30, 0.0 }
 0x118   :  { %158 = vadd.xlane.f32.xlu0 %v157_v31 }
 0x11a   :  { %v135_v32 = vpop.f32.mrf.mxu1 }
 0x11b   :  { %v144_v33 = vadd.f32 %v135_v32, %v28_v3 }
 0x11d   :  { %v152_v34 = vadd.f32 %v316_v27, %v144_v33 }
 0x11e   :  { %v138_v35 = vpop.f32.mrf.mxu2 }
 0x11f   :  { %v145_v36 = vadd.f32 %v138_v35, %v29_v4  ;;  %v160_v37 = vsel %vm53_vm0, %v152_v34, 0.0 }
 0x120   :  { %161 = vadd.xlane.f32.xlu0 %v160_v37 }
 0x121   :  { %v153_v38 = vadd.f32 %v316_v27, %v145_v36 }
 0x123   :  { %v163_v39 = vsel %vm53_vm0, %v153_v38, 0.0 }
 0x124   :  { %164 = vadd.xlane.f32.xlu1 %v163_v39 }
 0x126   :  { %v140_v40 = vpop.f32.mrf.mxu2 }
 0x127   :  { %v146_v41 = vadd.f32 %v140_v40, %v30_v5 }
 0x129   :  { %v154_v42 = vadd.f32 %v316_v27, %v146_v41 }
 0x12b   :  { %v166_v43 = vsel %vm53_vm0, %v154_v42, 0.0 }
 0x12c   :  { %167 = vadd.xlane.f32.xlu1 %v166_v43 }
 0x18b   :  { %v159_v51 = vpop.xlane.xlu0 %158 }
 0x18c   :  { %v176_v52 = vmul.f32 %v175_v50, %v159_v51 }
 0x18e   :  { %v180_v53 = vsub.f32 %v151_v30, %v176_v52  ;;  %v318_v30 = vld [vmem:[%s459_s6] ss:$0 sm:$0xff] }
 0x190   :  { %v184_v54 = vmul.f32 %v180_v53, %v180_v53 }
 0x192   :  { %v188_v55 = vsel %vm53_vm0, %v184_v54, 0.0 }
 0x193   :  { %189 = vadd.xlane.f32.xlu2 %v188_v55  ;;  %v162_v56 = vpop.xlane.xlu0 %161 }
 0x194   :  { %v177_v57 = vmul.f32 %v175_v50, %v162_v56 }
 0x196   :  { %v413_v58 = vsub.f32 %v152_v34, %v177_v57 }
 0x197   :  { %v165_v59 = vpop.xlane.xlu1 %164 }
 0x198   :  { %v178_v60 = vmul.f32 %v175_v50, %v165_v59  ;;  %v185_v61 = vmul.f32 %v413_v58, %v413_v58 }
 0x19a   :  { %v417_v62 = vsub.f32 %v153_v38, %v178_v60  ;;  %v191_v63 = vsel %vm53_vm0, %v185_v61, 0.0 }
 0x19b   :  { %192 = vadd.xlane.f32.xlu2 %v191_v63 }
 0x19c   :  { %v186_v0 = vmul.f32 %v417_v62, %v417_v62 }
 0x19e   :  { %v194_v1 = vsel %vm53_vm0, %v186_v0, 0.0 }
 0x19f   :  { %v168_v2 = vpop.xlane.xlu1 %167  ;;  %195 = vadd.xlane.f32.xlu0 %v194_v1 }
 0x1a0   :  { %v179_v3 = vmul.f32 %v175_v50, %v168_v2 }
 0x1a2   :  { %v423_v4 = vsub.f32 %v154_v42, %v179_v3 }
 0x1a4   :  { %v187_v5 = vmul.f32 %v423_v4, %v423_v4 }
 0x1a6   :  { %v197_v6 = vsel %vm53_vm0, %v187_v5, 0.0 }
 0x1a7   :  { %198 = vadd.xlane.f32.xlu1 %v197_v6 }
 0x206   :  { %v190_v7 = vpop.xlane.xlu2 %189 }
 0x207   :  { %v200_v8 = vmul.f32 %v190_v7, %v175_v50 }
 0x209   :  { %v204_v9 = vadd.f32 1e-05, %v200_v8 }
 0x20b   :  { %321 = vrsqrt.f32 %v204_v9  ;;  %vm214_vm4 = vweird.f32 %v204_v9 }
 0x20e   :  { %v193_v10 = vpop.xlane.xlu2 %192 }
 0x20f   :  { %v201_v11 = vmul.f32 %v193_v10, %v175_v50 }
 0x211   :  { %v322_v12 = vpop.eup %321  ;;  %v205_v13 = vadd.f32 1e-05, %v201_v11 }
 0x212   :  { %v209_v14 = vmul.f32 %v322_v12, %v204_v9  ;;  %v196_v15 = vpop.xlane.xlu0 %195  ;;  %vm215_vm3 = vweird.f32 %v322_v12 }
 0x213   :  { %323 = vrsqrt.f32 %v205_v13  ;;  %v202_v16 = vmul.f32 %v196_v15, %v175_v50  ;;  %vm216_vm5 = vmor %vm214_vm4, %vm215_vm3  ;;  %vm224_vm7 = vweird.f32 %v205_v13 }
 0x214   :  { %v210_v17 = vmul.f32 %v322_v12, %v209_v14 }
 0x215   :  { %v206_v18 = vadd.f32 1e-05, %v202_v16 }
 0x216   :  { %v211_v19 = vmul.f32 0.5, %v210_v17 }
 0x217   :  { %325 = vrsqrt.f32 %v206_v18  ;;  %vm234_vm10 = vweird.f32 %v206_v18 }
 0x218   :  { %v212_v20 = vsub.f32 1.5, %v211_v19 }
 0x219   :  { %v324_v21 = vpop.eup %323 }
 0x21a   :  { %v213_v22 = vmul.f32 %v322_v12, %v212_v20  ;;  %v219_v23 = vmul.f32 %v324_v21, %v205_v13  ;;  %v199_v24 = vpop.xlane.xlu1 %198  ;;  %vm225_vm6 = vweird.f32 %v324_v21 }
 0x21b   :  { %v203_v26 = vmul.f32 %v199_v24, %v175_v50  ;;  %vm226_vm8 = vmor %vm224_vm7, %vm225_vm6 }
 0x21c   :  { %v217_v27 = vsel %vm216_vm5, %v322_v12, %v213_v22  ;;  %v220_v28 = vmul.f32 %v324_v21, %v219_v23 }
 0x21d   :  { %v326_v29 = vpop.eup %325  ;;  %v248_v31 = vmul.f32 %v217_v27, %v180_v53  ;;  %v207_v32 = vadd.f32 1e-05, %v203_v26 }
 0x21e   :  { %v221_v33 = vmul.f32 0.5, %v220_v28  ;;  %v229_v34 = vmul.f32 %v326_v29, %v206_v18  ;;  %vm235_vm9 = vweird.f32 %v326_v29 }
 0x21f   :  { %v255_v35 = vmul.f32 %v317_v25, %v248_v31  ;;  %327 = vrsqrt.f32 %v207_v32  ;;  %vm236_vm11 = vmor %vm234_vm10, %vm235_vm9  ;;  %vm244_vm13 = vweird.f32 %v207_v32 }
 0x220   :  { %v222_v36 = vsub.f32 1.5, %v221_v33  ;;  %v230_v37 = vmul.f32 %v326_v29, %v229_v34 }
 0x221   :  { %v262_v38 = vadd.f32 %v318_v30, %v255_v35 }
 0x222   :  { %v223_v39 = vmul.f32 %v324_v21, %v222_v36  ;;  %v231_v40 = vmul.f32 0.5, %v230_v37 }
 0x223   :  { %266 = vst.msk [vmem:[%s460_s7] sm:$0xff] %vm53_vm0, %v262_v38 }
 0x224   :  { %v227_v41 = vsel %vm226_vm8, %v324_v21, %v223_v39  ;;  %v232_v42 = vsub.f32 1.5, %v231_v40 }
 0x225   :  { %v328_v43 = vpop.eup %327  ;;  %v249_v44 = vmul.f32 %v227_v41, %v413_v58 }
 0x226   :  { %v233_v45 = vmul.f32 %v326_v29, %v232_v42  ;;  %v239_v46 = vmul.f32 %v328_v43, %v207_v32  ;;  %vm245_vm12 = vweird.f32 %v328_v43 }
 0x227   :  { %v256_v47 = vmul.f32 %v317_v25, %v249_v44  ;;  %vm246_vm14 = vmor %vm244_vm13, %vm245_vm12 }
 0x228   :  { %v237_v48 = vsel %vm236_vm11, %v326_v29, %v233_v45  ;;  %v240_v49 = vmul.f32 %v328_v43, %v239_v46 }
 0x229   :  { %v263_v50 = vadd.f32 %v318_v30, %v256_v47  ;;  %v250_v51 = vmul.f32 %v237_v48, %v417_v62 }
 0x22a   :  { %v241_v52 = vmul.f32 0.5, %v240_v49 }
 0x22b   :  { %267 = vst.msk [vmem:[%s460_s7 + $0x8] sm:$0xff] %vm53_vm0, %v263_v50  ;;  %v257_v53 = vmul.f32 %v317_v25, %v250_v51 }
 0x22c   :  { %v242_v54 = vsub.f32 1.5, %v241_v52 }
 0x22d   :  { %v264_v55 = vadd.f32 %v318_v30, %v257_v53 }
 0x22e   :  { %v243_v56 = vmul.f32 %v328_v43, %v242_v54 }
 0x22f   :  { %268 = vst.msk [vmem:[%s460_s7 + $0x10] sm:$0xff] %vm53_vm0, %v264_v55 }
 0x230   :  { %v247_v57 = vsel %vm246_vm14, %v328_v43, %v243_v56 }
 0x231   :  { %v251_v58 = vmul.f32 %v247_v57, %v423_v4 }
 0x233   :  { %v258_v59 = vmul.f32 %v317_v25, %v251_v58 }
 0x235   :  { %v265_v60 = vadd.f32 %v318_v30, %v258_v59 }
 0x237   :  { %269 = vst.msk [vmem:[%s460_s7 + $0x18] sm:$0xff] %vm53_vm0, %v265_v60 }

// kernel: sep_transformer_forward.35
= control target key start
LH: loop header
LB: loop body
LE: loop exit
PB: predicated region body
PF: predicated region fallthrough
CT: control target
= control target key end

     0   :  { %s1368_s30 = smov 0   ;;  %s1370_s10 = smov 0   ;;  %s1518_s0 = inlined_call_operand.vmem [shape: bf16[2,16,32], index: 0, kind: input, shape index: {}]   ;;  %s1519_s1 = inlined_call_operand.vmem [shape: bf16[2,16,32], index: 1, kind: input, shape index: {}]   ;;  %s1520_s2 = inlined_call_operand.vmem [shape: bf16[2,16,32], index: 2, kind: input, shape index: {}]   ;;  %s1521_s3 = inlined_call_operand.vmem [shape: f32[2,1,16], index: 3, kind: input, shape index: {}]   ;;  %s1522_s4 = inlined_call_operand.vmem [shape: f32[2,16,32], index: 4, kind: input, shape index: {}]   ;;  %s1523_s5 = inlined_call_operand.vmem [shape: bf16[32,32], index: 5, kind: input, shape index: {}]   ;;  %s1524_s6 = inlined_call_operand.vmem [shape: f32[1,32], index: 6, kind: input, shape index: {}]   ;;  %s1525_s7 = inlined_call_operand.vmem [shape: f32[1,32], index: 7, kind: input, shape index: {}]   ;;  %s1526_s8 = inlined_call_operand.vmem [shape: f32[1,32], index: 8, kind: input, shape index: {}]   ;;  %s1527_s9 = inlined_call_operand.vmem [shape: f32[2,16,32], index: 9, kind: output, shape index: {}]  }
   0x1   :  { %s1372_s11 = smov 0  }
   0x2 LB: > { %s31_s12 = sadd.s32 1, %s1305_s10  ;;  %p1147_p0 = scmp.ge.s32.totalorder %s1309_s11, 1  ;;  %s1309_s11 = sphi %s1372_s11, %s19_s11   ;;  %s1305_s10 = sphi %s1370_s10, %s1531_s10   ;;  %s1301_s30 = sphi %s1368_s30, %s1530_s30  }
   0x3   : > { %p33_p1 = scmp.ge.s32.totalorder %s31_s12, 2  ;;  %p353_p2 = scmp.lt.s32.totalorder %s1309_s11, 3 }
   0x5   : > { %s1533_s12 = smov (%p33_p1, %s31_s12), 0  ;;  %p354_p3 = pnand %p1147_p0, %p353_p2 }
   0x6   : > { %p420_p4 = scmp.lt.s32.totalorder (!%p354_p3), %s1301_s30, 1  ;;  %s1311_s20 = smov (!%p354_p3), 120  }
   0x7   : > { %357 = sbr.rel (%p354_p3) target bundleno = 1220 (0x4c4), region = 56  ;;  %s1312_s21 = smov (!%p354_p3), 112  }
   0x8   : > { %s1313_s25 = smov (!%p354_p3), 104   ;;  %s1314_s29 = smov (!%p354_p3), 8  }
   0xc   : > { %s1535_s30 = smov (!%p420_p4, %s1301_s30), 1  ;;  %vm483_vm0 = vcmask 64512   ;;  %vm504_vm1 = vcmask 130048  }
   0xd   : > { %s1389_s13 = sshll.u32 %s1535_s30, 3  ;;  %s441_s16 = scalar_lea.vmem %s1521_s3, %s1535_s30 }
   0xe   : > { %s433_s19 = scalar_lea.vmem %s1519_s1, %s1389_s13  ;;  %s427_s24 = scalar_lea.vmem %s1518_s0, %s1389_s13  ;;  %v1413_v9 = vld [vmem:[%s441_s16] ss:$0 sm:$0xff] }
   0xf   : > { %v1195_v0 = vld [vmem:[%s433_s19] sm:$0xff]  ;;  %s438_s28 = scalar_lea.vmem %s1520_s2, %s1389_s13  ;;  %s1315_s13 = smov 24  }
  0x10   : > { %581 = vrot.lane.b32.xlu1 %v1195_v0, %s1311_s20  ;;  %v488_v1 = vsel %vm483_vm0, %v1195_v0, 0  ;;  %676 = vrot.lane.b32.xlu2 %v1195_v0, %s1312_s21  ;;  %v1194_v2 = vld [vmem:[%s427_s24] sm:$0xff]  ;;  %s1316_s16 = smov 16   ;;  %s1192_s19 = sshll.u32 %s1535_s30, 4 }
  0x11   : > { %497 = vmatpush.bf16.xpose.msra.mxu0 %v488_v1  ;;  %v1420_v12 = vld [vmem:[%s438_s28] sm:$0xff]  ;;  %s450_s22 = scalar_lea.vmem %s1522_s4, %s1192_s19  ;;  %s460_s14 = scalar_lea.vmem %s1527_s9, %s1192_s19 }
  0x12   : > { %540 = vmatpush.bf16.msra.mxu1 %v1420_v12 }
  0x18   : > { %579 = vrot.lane.b32.xlu1 %v1194_v2, %s1311_s20  ;;  %1166 = vmatmul.msk.bf16.vlgmr.msra.gmra.mxu0 %vm483_vm0, %v1194_v2 }
  0x19   : > { %771 = vrot.lane.b32.xlu2 %v1195_v0, %s1313_s25 }
  0x20   : > { %769 = vrot.lane.b32.xlu1 %v1194_v2, %s1313_s25 }
  0x6a   : > { %v677_v3 = vpop.permute.xlu2 %676 }
  0x6b   : > { %v682_v13 = vsel %vm483_vm0, %v677_v3, 0 }
  0x6c   : > { %691 = vmatpush.bf16.xpose.msrb.mxu1 %v682_v13 }
  0x73   : > { %v772_v4 = vpop.permute.xlu2 %771 }
  0x74   : > { %v777_v5 = vsel %vm483_vm0, %v772_v4, 0 }
  0x75   : > { %786 = vmatpush.bf16.xpose.msrb.mxu0 %v777_v5 }
  0x82   : > { %v582_v6 = vpop.permute.xlu1 %581 }
  0x83   : > { %v587_v7 = vsel %vm483_vm0, %v582_v6, 0 }
  0x84   : > { %596 = vmatpush.bf16.xpose.msra.mxu2 %v587_v7 }
  0x8a   : > { %v580_v8 = vpop.permute.xlu1 %579 }
  0x8b   : > { %1172 = vmatmul.msk.bf16.vlgmr.msra.gmra.mxu2 %vm483_vm0, %v580_v8 }
  0x92   : > { %v770_v10 = vpop.permute.xlu1 %769 }
  0x93   : > { %1176 = vmatmul.msk.bf16.vlgmr.msrb.gmra.mxu0 %vm483_vm0, %v770_v10 }
  0x95   : > { %v499_v11 = vpop.f32.mrf.mxu0 }
  0x96   : > { %v500_v14 = vadd.f32 %v1413_v9, %v499_v11 }
  0x98   : > { %v505_v15 = vsel %vm504_vm1, %v500_v14, -inf }
  0x99   : > { %506 = vmax.xlane.f32.xlu0 %v505_v15 }
  0x9d   : > { %v501_v16 = vpop.f32.mrf.mxu0 }
  0x9e   : > { %v502_v17 = vadd.f32 %v1413_v9, %v501_v16 }
  0xa0   : > { %v508_v18 = vsel %vm504_vm1, %v502_v17, -inf }
  0xa1   : > { %509 = vmax.xlane.f32.xlu0 %v508_v18 }
  0xb5   : > { %674 = vrot.lane.b32.xlu0 %v1194_v2, %s1312_s21 }
  0xbd   : > { %622 = vrot.lane.b32.xlu0 %v1420_v12, %s1311_s20 }
 0x10c   : > { %v507_v19 = vpop.xlane.xlu0 %506 }
 0x10d   : > { %v511_v22 = vsub.f32 %v500_v14, %v507_v19 }
 0x10e   : > { %v598_v20 = vpop.f32.mrf.mxu2 }
 0x10f   : > { %v599_v21 = vadd.f32 %v1413_v9, %v598_v20  ;;  %v513_v26 = vmul.f32 1.442695, %v511_v22 }
 0x110   : > { %v788_v23 = vpop.f32.mrf.mxu0 }
 0x111   : > { %v603_v24 = vsel %vm504_vm1, %v599_v21, -inf  ;;  %v789_v25 = vadd.f32 %v1413_v9, %v788_v23  ;;  %1249 = vpow2.f32 %v513_v26 }
 0x112   : > { %604 = vmax.xlane.f32.xlu2 %v603_v24 }
 0x113   : > { %v793_v32 = vsel %vm504_vm1, %v789_v25, -inf }
 0x114   : > { %v510_v27 = vpop.xlane.xlu0 %509 }
 0x115   : > { %v512_v28 = vsub.f32 %v502_v17, %v510_v27 }
 0x116   : > { %v600_v29 = vpop.f32.mrf.mxu2 }
 0x117   : > { %v515_v30 = vmul.f32 1.442695, %v512_v28  ;;  %v601_v31 = vadd.f32 %v1413_v9, %v600_v29  ;;  %v1250_v36 = vpop.eup %1249 }
 0x118   : > { %v790_v33 = vpop.f32.mrf.mxu0 }
 0x119   : > { %1251 = vpow2.f32 %v515_v30  ;;  %v606_v34 = vsel %vm504_vm1, %v601_v31, -inf  ;;  %v791_v35 = vadd.f32 %v1413_v9, %v790_v33 }
 0x11a   : > { %607 = vmax.xlane.f32.xlu1 %v606_v34  ;;  %794 = vmax.xlane.f32.xlu2 %v793_v32 }
 0x11b   : > { %v796_v38 = vsel %vm504_vm1, %v791_v35, -inf }
 0x11f   : > { %v1252_v37 = vpop.eup %1251 }
 0x120   : > { %v523_v39 = vpack.c.bf16 %v1252_v37, %v1250_v36  ;;  %v520_v10 = vsel %vm504_vm1, %v1252_v37, 0.0 }
 0x122   : > { %797 = vmax.xlane.f32.xlu1 %v796_v38  ;;  %1171 = vmatmul.msk.bf16.vlgmr.msra.gmra.mxu1 %vm504_vm1, %v523_v39 }
 0x127   : > { %v675_v40 = vpop.permute.xlu0 %674 }
 0x12f   : > { %v623_v41 = vpop.permute.xlu0 %622 }
 0x130   : > { %635 = vmatpush.bf16.msra.mxu3 %v623_v41 }
 0x132   : > { %1174 = vmatmul.msk.bf16.vlgmr.msrb.gmra.mxu1 %vm483_vm0, %v675_v40 }
 0x13b   : > { %812 = vrot.lane.b32.xlu1 %v1420_v12, %s1313_s25 }
 0x185   : > { %v605_v42 = vpop.xlane.xlu2 %604 }
 0x186   : > { %v609_v43 = vsub.f32 %v599_v21, %v605_v42 }
 0x188   : > { %v611_v44 = vmul.f32 1.442695, %v609_v43 }
 0x18a   : > { %1253 = vpow2.f32 %v611_v44 }
 0x18d   : > { %v608_v45 = vpop.xlane.xlu1 %607  ;;  %v795_v52 = vpop.xlane.xlu2 %794 }
 0x18e   : > { %v610_v46 = vsub.f32 %v601_v31, %v608_v45  ;;  %v799_v55 = vsub.f32 %v789_v25, %v795_v52 }
 0x190   : > { %v613_v47 = vmul.f32 1.442695, %v610_v46  ;;  %v1254_v48 = vpop.eup %1253  ;;  %v801_v57 = vmul.f32 1.442695, %v799_v55 }
 0x191   : > { %v615_v5 = vsel %vm504_vm1, %v1254_v48, 0.0 }
 0x192   : > { %1255 = vpow2.f32 %v613_v47 }
 0x195   : > { %v798_v51 = vpop.xlane.xlu1 %797 }
 0x196   : > { %v800_v53 = vsub.f32 %v791_v35, %v798_v51 }
 0x198   : > { %v1256_v49 = vpop.eup %1255  ;;  %v803_v56 = vmul.f32 1.442695, %v800_v53 }
 0x199   : > { %v621_v50 = vpack.c.bf16 %v1256_v49, %v1254_v48  ;;  %v618_v6 = vsel %vm504_vm1, %v1256_v49, 0.0 }
 0x19a   : > { %1257 = vpow2.f32 %v803_v56 }
 0x19b   : > { %1173 = vmatmul.msk.bf16.vlgmr.msra.gmra.mxu3 %vm504_vm1, %v621_v50  ;;  %1259 = vpow2.f32 %v801_v57 }
 0x19f   : > { %v1444_v54 = vpop.f32.mrf.mxu1 }
 0x1a0   : > { %v1258_v59 = vpop.eup %1257 }
 0x1a1   : > { %v1260_v61 = vpop.eup %1259  ;;  %v808_v8 = vsel %vm504_vm1, %v1258_v59, 0.0 }
 0x1a2   : > { %v811_v63 = vpack.c.bf16 %v1258_v59, %v1260_v61  ;;  %v805_v7 = vsel %vm504_vm1, %v1260_v61, 0.0 }
 0x1a7   : > { %v1446_v58 = vpop.f32.mrf.mxu1 }
 0x1ad   : > { %v813_v60 = vpop.permute.xlu1 %812 }
 0x1ae   : > { %825 = vmatpush.bf16.msrb.mxu2 %v813_v60 }
 0x1af   : > { %v693_v62 = vpop.f32.mrf.mxu1 }
 0x1b0   : > { %v694_v0 = vadd.f32 %v1413_v9, %v693_v62 }
 0x1b1   : > { %1177 = vmatmul.msk.bf16.vlgmr.msrb.gmra.mxu2 %vm504_vm1, %v811_v63 }
 0x1b2   : > { %v698_v1 = vsel %vm504_vm1, %v694_v0, -inf }
 0x1b3   : > { %699 = vmax.xlane.f32.xlu0 %v698_v1 }
 0x1b7   : > { %v695_v2 = vpop.f32.mrf.mxu1 }
 0x1b8   : > { %v696_v3 = vadd.f32 %v1413_v9, %v695_v2  ;;  %v517_v9 = vsel %vm504_vm1, %v1250_v36, 0.0 }
 0x1ba   : > { %v701_v4 = vsel %vm504_vm1, %v696_v3, -inf }
 0x1bb   : > { %702 = vmax.xlane.f32.xlu2 %v701_v4  ;;  %616 = vadd.xlane.f32.xlu0 %v615_v5 }
 0x1c3   : > { %619 = vadd.xlane.f32.xlu0 %v618_v6 }
 0x1cb   : > { %806 = vadd.xlane.f32.xlu0 %v805_v7 }
 0x1d3   : > { %809 = vadd.xlane.f32.xlu0 %v808_v8  ;;  %717 = vrot.lane.b32.xlu2 %v1420_v12, %s1312_s21 }
 0x1db   : > { %518 = vadd.xlane.f32.xlu0 %v517_v9 }
 0x1e3   : > { %521 = vadd.xlane.f32.xlu0 %v520_v10 }
 0x21e   : > { %v637_v30 = vpop.f32.mrf.mxu3 }
 0x226   : > { %v700_v11 = vpop.xlane.xlu0 %699  ;;  %v639_v50 = vpop.f32.mrf.mxu3 }
 0x227   : > { %v704_v13 = vsub.f32 %v694_v0, %v700_v11 }
 0x229   : > { %v706_v14 = vmul.f32 1.442695, %v704_v13 }
 0x22b   : > { %1261 = vpow2.f32 %v706_v14 }
 0x22e   : > { %v703_v15 = vpop.xlane.xlu2 %702  ;;  %v617_v16 = vpop.xlane.xlu0 %616 }
 0x22f   : > { %v705_v17 = vsub.f32 %v696_v3, %v703_v15  ;;  %1263 = vrcp.f32 %v617_v16  ;;  %v653_v34 = vand.u32 2147483648, %v617_v16  ;;  %vm647_vm3 = vweird.f32 %v617_v16 }
 0x230   : > { %v651_v36 = vand.u32 2147483647, %v617_v16 }
 0x231   : > { %v1262_v18 = vpop.eup %1261  ;;  %v708_v19 = vmul.f32 1.442695, %v705_v17  ;;  %v654_v42 = vor.u32 1.1754944e-38, %v653_v34 }
 0x232   : > { %v710_v20 = vsel %vm504_vm1, %v1262_v18, 0.0  ;;  %vm652_vm7 = vcmp.eq.f32.partialorder %v651_v36, 8.507059e+37 }
 0x233   : > { %1265 = vpow2.f32 %v708_v19  ;;  %711 = vadd.xlane.f32.xlu2 %v710_v20  ;;  %v1198_v19 = vld [vmem:[%s1523_s5 + $0x8] sm:$0xff] }
 0x234   : > { %v827_v60 = vpop.f32.mrf.mxu2  ;;  %924 = vmatpush.bf16.msra.mxu1 %v1198_v19 }
 0x235   : > { %v1264_v12 = vpop.eup %1263 }
 0x236   : > { %v643_v21 = vmul.f32 %v1264_v12, %v617_v16  ;;  %v718_v22 = vpop.permute.xlu2 %717  ;;  %v620_v23 = vpop.xlane.xlu0 %619  ;;  %vm648_vm2 = vweird.f32 %v1264_v12 }
 0x237   : > { %1267 = vrcp.f32 %v620_v23  ;;  %730 = vmatpush.bf16.msrb.mxu3 %v718_v22  ;;  %vm1464_vm4 = vmor %vm647_vm3, %vm648_vm2  ;;  %v668_v39 = vand.u32 2147483648, %v620_v23  ;;  %v666_v40 = vand.u32 2147483647, %v620_v23  ;;  %vm662_vm6 = vweird.f32 %v620_v23 }
 0x238   : > { %v644_v24 = vsub.f32 1.0, %v643_v21 }
 0x239   : > { %v1266_v25 = vpop.eup %1265  ;;  %v669_v45 = vor.u32 1.1754944e-38, %v668_v39  ;;  %vm667_vm9 = vcmp.eq.f32.partialorder %v666_v40, 8.507059e+37 }
 0x23a   : > { %v713_v26 = vsel %vm504_vm1, %v1266_v25, 0.0  ;;  %v716_v27 = vpack.c.bf16 %v1266_v25, %v1262_v18  ;;  %v645_v28 = vmul.f32 %v1264_v12, %v644_v24 }
 0x23b   : > { %714 = vadd.xlane.f32.xlu1 %v713_v26 }
 0x23c   : > { %1175 = vmatmul.msk.bf16.vlgmr.msrb.gmra.mxu3 %vm504_vm1, %v716_v27  ;;  %v646_v33 = vadd.f32 %v1264_v12, %v645_v28  ;;  %v829_v11 = vpop.f32.mrf.mxu2 }
 0x23d   : > { %v1268_v29 = vpop.eup %1267 }
 0x23e   : > { %v658_v31 = vmul.f32 %v1268_v29, %v620_v23  ;;  %v807_v32 = vpop.xlane.xlu0 %806  ;;  %vm663_vm5 = vweird.f32 %v1268_v29  ;;  %v650_v41 = vsel %vm1464_vm4, %v1264_v12, %v646_v33 }
 0x23f   : > { %1269 = vrcp.f32 %v807_v32  ;;  %vm664_vm8 = vmor %vm662_vm6, %vm663_vm5  ;;  %v655_v48 = vsel %vm652_vm7, %v654_v42, %v650_v41  ;;  %v843_v63 = vand.u32 2147483648, %v807_v32  ;;  %vm837_vm11 = vweird.f32 %v807_v32 }
 0x240   : > { %v659_v35 = vsub.f32 1.0, %v658_v31  ;;  %v672_v53 = vmul.f32 %v655_v48, %v637_v30  ;;  %v841_v1 = vand.u32 2147483647, %v807_v32 }
 0x241   : > { %v844_v6 = vor.u32 1.1754944e-38, %v843_v63 }
 0x242   : > { %v660_v38 = vmul.f32 %v1268_v29, %v659_v35  ;;  %vm842_vm15 = vcmp.eq.f32.partialorder %v841_v1, 8.507059e+37 }
 0x244   : > { %v661_v43 = vadd.f32 %v1268_v29, %v660_v38 }
 0x245   : > { %v1270_v44 = vpop.eup %1269 }
 0x246   : > { %v833_v46 = vmul.f32 %v1270_v44, %v807_v32  ;;  %v810_v47 = vpop.xlane.xlu0 %809  ;;  %v665_v49 = vsel %vm664_vm8, %v1268_v29, %v661_v43  ;;  %vm838_vm10 = vweird.f32 %v1270_v44 }
 0x247   : > { %1271 = vrcp.f32 %v810_v47  ;;  %v670_v52 = vsel %vm667_vm9, %v669_v45, %v665_v49  ;;  %vm839_vm12 = vmor %vm837_vm11, %vm838_vm10  ;;  %v858_v3 = vand.u32 2147483648, %v810_v47  ;;  %v856_v4 = vand.u32 2147483647, %v810_v47 }
 0x248   : > { %v834_v51 = vsub.f32 1.0, %v833_v46  ;;  %v673_v55 = vmul.f32 %v670_v52, %v639_v50  ;;  %vm852_vm14 = vweird.f32 %v810_v47  ;;  %v1197_v46 = vld [vmem:[%s1523_s5] sm:$0xff] }
 0x249   : > { %v859_v8 = vor.u32 1.1754944e-38, %v858_v3  ;;  %vm857_vm3 = vcmp.eq.f32.partialorder %v856_v4, 8.507059e+37  ;;  %925 = vmatpush.bf16.msra.mxu1 %v1197_v46 }
 0x24a   : > { %v835_v56 = vmul.f32 %v1270_v44, %v834_v51  ;;  %v1230_v57 = vpack.i.bf16 %v673_v55, %v672_v53 }
 0x24c   : > { %1231 = vrot.lane.b32.xlu0 %v1230_v57, %s1314_s29  ;;  %v836_v62 = vadd.f32 %v1270_v44, %v835_v56 }
 0x24d   : > { %v1272_v59 = vpop.eup %1271 }
 0x24e   : > { %v848_v61 = vmul.f32 %v1272_v59, %v810_v47  ;;  %vm853_vm13 = vweird.f32 %v1272_v59  ;;  %v840_v5 = vsel %vm839_vm12, %v1270_v44, %v836_v62  ;;  %v519_v44 = vpop.xlane.xlu0 %518 }
 0x24f   : > { %vm854_vm2 = vmor %vm852_vm14, %vm853_vm13  ;;  %v845_v9 = vsel %vm842_vm15, %v844_v6, %v840_v5  ;;  %vm552_vm14 = vweird.f32 %v519_v44 }
 0x250   : > { %v849_v0 = vsub.f32 1.0, %v848_v61  ;;  %v862_v14 = vmul.f32 %v845_v9, %v827_v60  ;;  %v556_v61 = vand.u32 2147483647, %v519_v44 }
 0x252   : > { %v850_v2 = vmul.f32 %v1272_v59, %v849_v0 }
 0x254   : > { %v851_v7 = vadd.f32 %v1272_v59, %v850_v2 }
 0x256   : > { %v855_v10 = vsel %vm854_vm2, %v1272_v59, %v851_v7  ;;  %v522_v45 = vpop.xlane.xlu0 %521  ;;  %v558_v59 = vand.u32 2147483648, %v519_v44 }
 0x257   : > { %v860_v13 = vsel %vm857_vm3, %v859_v8, %v855_v10  ;;  %v573_v60 = vand.u32 2147483648, %v522_v45  ;;  %vm567_vm2 = vweird.f32 %v522_v45  ;;  %v571_v62 = vand.u32 2147483647, %v522_v45 }
 0x258   : > { %v863_v15 = vmul.f32 %v860_v13, %v829_v11  ;;  %v559_v1 = vor.u32 1.1754944e-38, %v558_v59 }
 0x259   : > { %v574_v2 = vor.u32 1.1754944e-38, %v573_v60 }
 0x25a   : > { %v1240_v16 = vpack.i.bf16 %v863_v15, %v862_v14 }
 0x25c   : > { %1241 = vrot.lane.b32.xlu1 %v1240_v16, %s1315_s13 }
 0x2a6   : > { %v712_v17 = vpop.xlane.xlu2 %711 }
 0x2a7   : > { %1273 = vrcp.f32 %v712_v17  ;;  %vm742_vm6 = vweird.f32 %v712_v17  ;;  %v748_v30 = vand.u32 2147483648, %v712_v17  ;;  %v746_v32 = vand.u32 2147483647, %v712_v17 }
 0x2a9   : > { %v749_v36 = vor.u32 1.1754944e-38, %v748_v30  ;;  %vm747_vm10 = vcmp.eq.f32.partialorder %v746_v32, 8.507059e+37  ;;  %v1317_v32 = vmov 32.0  }
 0x2ad   : > { %v1274_v20 = vpop.eup %1273 }
 0x2ae   : > { %v715_v18 = vpop.xlane.xlu1 %714  ;;  %v738_v12 = vmul.f32 %v1274_v20, %v712_v17  ;;  %vm743_vm4 = vweird.f32 %v1274_v20 }
 0x2af   : > { %1275 = vrcp.f32 %v715_v18  ;;  %v763_v31 = vand.u32 2147483648, %v715_v18  ;;  %vm744_vm7 = vmor %vm742_vm6, %vm743_vm4  ;;  %vm757_vm8 = vweird.f32 %v715_v18  ;;  %v761_v33 = vand.u32 2147483647, %v715_v18 }
 0x2b0   : > { %v739_v23 = vsub.f32 1.0, %v738_v12  ;;  %1277 = vrcp.f32 %v519_v44  ;;  %vm557_vm4 = vcmp.eq.f32.partialorder %v556_v61, 8.507059e+37  ;;  %vm892_vm6 = vcmask 195584  }
 0x2b1   : > { %v764_v37 = vor.u32 1.1754944e-38, %v763_v31  ;;  %vm762_vm11 = vcmp.eq.f32.partialorder %v761_v33, 8.507059e+37  ;;  %1279 = vrcp.f32 %v522_v45 }
 0x2b2   : > { %v740_v25 = vmul.f32 %v1274_v20, %v739_v23  ;;  %1281 = vrcp.f32 %v1317_v32 }
 0x2b4   : > { %v741_v28 = vadd.f32 %v1274_v20, %v740_v25 }
 0x2b5   : > { %v1276_v21 = vpop.eup %1275 }
 0x2b6   : > { %v753_v22 = vmul.f32 %v1276_v21, %v715_v18  ;;  %vm758_vm5 = vweird.f32 %v1276_v21  ;;  %v745_v34 = vsel %vm744_vm7, %v1274_v20, %v741_v28  ;;  %v1278_v47 = vpop.eup %1277  ;;  %vm914_vm7 = vcmask 261120  }
 0x2b7   : > { %vm759_vm9 = vmor %vm757_vm8, %vm758_vm5  ;;  %v750_v38 = vsel %vm747_vm10, %v749_v36, %v745_v34  ;;  %v1280_v48 = vpop.eup %1279  ;;  %v548_v49 = vmul.f32 %v1278_v47, %v519_v44  ;;  %vm553_vm12 = vweird.f32 %v1278_v47  ;;  %vm572_vm5 = vcmp.eq.f32.partialorder %v571_v62, 8.507059e+37 }
 0x2b8   : > { %v754_v24 = vsub.f32 1.0, %v753_v22  ;;  %v563_v50 = vmul.f32 %v1280_v48, %v522_v45  ;;  %vm568_vm13 = vweird.f32 %v1280_v48  ;;  %vm554_vm15 = vmor %vm552_vm14, %vm553_vm12  ;;  %v1246_v22 = vld [vmem:[%s1524_s6] ss:$0 sm:$0xff]  ;;  %v1282_v33 = vpop.eup %1281 }
 0x2b9   : > { %v549_v51 = vsub.f32 1.0, %v548_v49  ;;  %vm569_vm3 = vmor %vm567_vm2, %vm568_vm13  ;;  %v949_v34 = vmul.f32 32.0, %v1282_v33 }
 0x2ba   : > { %v755_v26 = vmul.f32 %v1276_v21, %v754_v24  ;;  %v564_v52 = vsub.f32 1.0, %v563_v50 }
 0x2bb   : > { %v550_v53 = vmul.f32 %v1278_v47, %v549_v51 }
 0x2bc   : > { %v756_v29 = vadd.f32 %v1276_v21, %v755_v26  ;;  %v565_v55 = vmul.f32 %v1280_v48, %v564_v52 }
 0x2bd   : > { %v551_v56 = vadd.f32 %v1278_v47, %v550_v53 }
 0x2be   : > { %v760_v35 = vsel %vm759_vm9, %v1276_v21, %v756_v29  ;;  %v566_v57 = vadd.f32 %v1280_v48, %v565_v55  ;;  %v1232_v3 = vpop.permute.xlu0 %1231  ;;  %v895_v21 = vld [vmem:[%s450_s22] sm:$0xff] }
 0x2bf   : > { %v732_v27 = vpop.f32.mrf.mxu3  ;;  %v765_v40 = vsel %vm762_vm11, %v764_v37, %v760_v35  ;;  %v555_v63 = vsel %vm554_vm15, %v1278_v47, %v551_v56  ;;  %v1234_v6 = vunpack.i.h.bf16 %v1232_v3  ;;  %v1233_v7 = vunpack.i.l.bf16 %v1232_v3 }
 0x2c0   : > { %v767_v41 = vmul.f32 %v750_v38, %v732_v27  ;;  %v570_v0 = vsel %vm569_vm3, %v1280_v48, %v566_v57  ;;  %v560_v4 = vsel %vm557_vm4, %v559_v1, %v555_v63  ;;  %v896_v27 = vld [vmem:[%s450_s22 + $0x8] sm:$0xff]  ;;  %v950_v35 = vsub.f32 1.0, %v949_v34  ;;  %v1247_v1 = vld [vmem:[%s1525_s7] ss:$0 sm:$0xff] }
 0x2c1   : > { %v575_v5 = vsel %vm572_vm5, %v574_v2, %v570_v0  ;;  %v577_v9 = vmul.f32 %v560_v4, %v1444_v54  ;;  %v1248_v4 = vld [vmem:[%s1526_s8] ss:$0 sm:$0xff] }
 0x2c2   : > { %v578_v10 = vmul.f32 %v575_v5, %v1446_v58  ;;  %v951_v36 = vmul.f32 %v1282_v33, %v950_v35 }
 0x2c3   : > { %v888_v16 = vsel %vm483_vm0, %v577_v9, %v1233_v7 }
 0x2c4   : > { %v889_v15 = vsel %vm483_vm0, %v578_v10, %v1234_v6  ;;  %v952_v37 = vadd.f32 %v1282_v33, %v951_v36  ;;  %vm953_vm0 = vweird.f32 %v1282_v33 }
 0x2c6   : > { %v954_v38 = vsel %vm953_vm0, %v1282_v33, %v952_v37 }
 0x2c7   : > { %v734_v39 = vpop.f32.mrf.mxu3 }
 0x2c8   : > { %v768_v42 = vmul.f32 %v765_v40, %v734_v39 }
 0x2ca   : > { %v1235_v43 = vpack.i.bf16 %v768_v42, %v767_v41 }
 0x2cc   : > { %1236 = vrot.lane.b32.xlu2 %v1235_v43, %s1316_s16 }
 0x2ce   : > { %v1242_v8 = vpop.permute.xlu1 %1241 }
 0x2cf   : > { %v1244_v17 = vunpack.i.h.bf16 %v1242_v8  ;;  %v1243_v18 = vunpack.i.l.bf16 %v1242_v8 }
 0x326   : > { %v1237_v11 = vpop.permute.xlu2 %1236 }
 0x327   : > { %v1239_v13 = vunpack.i.h.bf16 %v1237_v11  ;;  %v1238_v14 = vunpack.i.l.bf16 %v1237_v11 }
 0x329   : > { %v890_v19 = vsel %vm504_vm1, %v888_v16, %v1238_v14  ;;  %v891_v20 = vsel %vm504_vm1, %v889_v15, %v1239_v13 }
 0x32a   : > { %v893_v12 = vsel %vm892_vm6, %v890_v19, %v1243_v18  ;;  %v894_v54 = vsel %vm892_vm6, %v891_v20, %v1244_v17 }
 0x32b   : > { %v901_v58 = vpack.c.bf16 %v894_v54, %v893_v12 }
 0x32d   : > { %1186 = vmatmul.msk.bf16.vlgmr.msra.gmra.mxu1 %vm914_vm7, %v901_v58 }
 0x3aa   : > { %v927_v23 = vpop.f32.mrf.mxu1 }
 0x3ab   : > { %v932_v24 = vadd.f32 %v927_v23, %v895_v21 }
 0x3ad   : > { %v938_v25 = vadd.f32 %v1246_v22, %v932_v24 }
 0x3af   : > { %v942_v26 = vsel %vm914_vm7, %v938_v25, 0.0 }
 0x3b0   : > { %943 = vadd.xlane.f32.xlu0 %v942_v26 }
 0x3b2   : > { %v929_v28 = vpop.f32.mrf.mxu1 }
 0x3b3   : > { %v933_v29 = vadd.f32 %v929_v28, %v896_v27 }
 0x3b5   : > { %v939_v30 = vadd.f32 %v1246_v22, %v933_v29 }
 0x3b7   : > { %v945_v31 = vsel %vm914_vm7, %v939_v30, 0.0 }
 0x3b8   : > { %946 = vadd.xlane.f32.xlu2 %v945_v31 }
 0x423   : > { %v944_v39 = vpop.xlane.xlu0 %943 }
 0x424   : > { %v955_v40 = vmul.f32 %v954_v38, %v944_v39 }
 0x426   : > { %v957_v41 = vsub.f32 %v938_v25, %v955_v40 }
 0x428   : > { %v959_v42 = vmul.f32 %v957_v41, %v957_v41 }
 0x42a   : > { %v961_v43 = vsel %vm914_vm7, %v959_v42, 0.0 }
 0x42b   : > { %962 = vadd.xlane.f32.xlu1 %v961_v43  ;;  %v947_v44 = vpop.xlane.xlu2 %946 }
 0x42c   : > { %v956_v45 = vmul.f32 %v954_v38, %v947_v44 }
 0x42e   : > { %v958_v46 = vsub.f32 %v939_v30, %v956_v45 }
 0x430   : > { %v960_v47 = vmul.f32 %v958_v46, %v958_v46 }
 0x432   : > { %v964_v48 = vsel %vm914_vm7, %v960_v47, 0.0 }
 0x433   : > { %965 = vadd.xlane.f32.xlu0 %v964_v48 }
 0x49e   : > { %v963_v49 = vpop.xlane.xlu1 %962 }
 0x49f   : > { %v967_v50 = vmul.f32 %v963_v49, %v954_v38 }
 0x4a1   : > { %v969_v51 = vadd.f32 1e-05, %v967_v50 }
 0x4a3   : > { %1283 = vrsqrt.f32 %v969_v51  ;;  %vm977_vm8 = vweird.f32 %v969_v51 }
 0x4a6   : > { %v966_v52 = vpop.xlane.xlu0 %965 }
 0x4a7   : > { %v968_v53 = vmul.f32 %v966_v52, %v954_v38 }
 0x4a9   : > { %v1284_v55 = vpop.eup %1283  ;;  %v970_v56 = vadd.f32 1e-05, %v968_v53 }
 0x4aa   : > { %v972_v57 = vmul.f32 %v1284_v55, %v969_v51  ;;  %vm978_vm1 = vweird.f32 %v1284_v55 }
 0x4ab   : > { %1285 = vrsqrt.f32 %v970_v56  ;;  %vm979_vm9 = vmor %vm977_vm8, %vm978_vm1  ;;  %vm987_vm11 = vweird.f32 %v970_v56 }
 0x4ac   : > { %v973_v59 = vmul.f32 %v1284_v55, %v972_v57 }
 0x4ae   : > { %v974_v60 = vmul.f32 0.5, %v973_v59 }
 0x4b0   : > { %v975_v61 = vsub.f32 1.5, %v974_v60 }
 0x4b1   : > { %v1286_v62 = vpop.eup %1285 }
 0x4b2   : > { %v976_v63 = vmul.f32 %v1284_v55, %v975_v61  ;;  %v982_v0 = vmul.f32 %v1286_v62, %v970_v56  ;;  %vm988_vm10 = vweird.f32 %v1286_v62 }
 0x4b3   : > { %vm989_vm12 = vmor %vm987_vm11, %vm988_vm10 }
 0x4b4   : > { %v980_v2 = vsel %vm979_vm9, %v1284_v55, %v976_v63  ;;  %v983_v3 = vmul.f32 %v1286_v62, %v982_v0 }
 0x4b5   : > { %v991_v5 = vmul.f32 %v980_v2, %v957_v41 }
 0x4b6   : > { %v984_v6 = vmul.f32 0.5, %v983_v3 }
 0x4b7   : > { %v996_v7 = vmul.f32 %v1247_v1, %v991_v5 }
 0x4b8   : > { %v985_v8 = vsub.f32 1.5, %v984_v6 }
 0x4b9   : > { %v1001_v9 = vadd.f32 %v1248_v4, %v996_v7 }
 0x4ba   : > { %v986_v10 = vmul.f32 %v1286_v62, %v985_v8 }
 0x4bb   : > { %1003 = vst.msk [vmem:[%s460_s14] sm:$0xff] %vm914_vm7, %v1001_v9 }
 0x4bc   : > { %v990_v11 = vsel %vm989_vm12, %v1286_v62, %v986_v10 }
 0x4bd   : > { %v992_v13 = vmul.f32 %v990_v11, %v958_v46 }
 0x4bf   : > { %v997_v14 = vmul.f32 %v1247_v1, %v992_v13 }
 0x4c1   : > { %v1002_v15 = vadd.f32 %v1248_v4, %v997_v14 }
 0x4c3   : > { %1004 = vst.msk [vmem:[%s460_s14 + $0x8] sm:$0xff] %vm914_vm7, %v1002_v15 }
 0x4c4 PF: > { %s19_s11 = sadd.s32 1, %s1309_s11   ;;  %s1530_s30 = smov %s1305_s10 }
 0x4c5   : > { %p16_p5 = scmp.ge.s32.totalorder %s19_s11, 4   ;;  %s1531_s10 = smov %s1533_s12 }
 0x4c7   :  { %18 = sbr.rel (!%p16_p5) target bundleno = 2 (0x2), region = 98 }

// kernel: sep_transformer_forward.34
= control target key start
LH: loop header
LB: loop body
LE: loop exit
PB: predicated region body
PF: predicated region fallthrough
CT: control target
= control target key end

     0   :  { %vm61_vm0 = vcmask 261120   ;;  %vm91_vm1 = vcmask 257024   ;;  %s214_s9 = smov 96   ;;  %s350_s2 = inlined_call_operand.vmem [shape: bf16[32,64], index: 2, kind: input, shape index: {}]   ;;  %s351_s0 = inlined_call_operand.vmem [shape: f32[32,32], index: 0, kind: input, shape index: {}]   ;;  %s352_s1 = inlined_call_operand.vmem [shape: f32[32,32], index: 1, kind: input, shape index: {}]   ;;  %s353_s4 = inlined_call_operand.vmem [shape: bf16[32,32], index: 4, kind: input, shape index: {}]   ;;  %s354_s3 = inlined_call_operand.vmem [shape: f32[1,64], index: 3, kind: input, shape index: {}]   ;;  %s355_s5 = inlined_call_operand.vmem [shape: f32[1,32], index: 5, kind: input, shape index: {}]   ;;  %s356_s6 = inlined_call_operand.vmem [shape: bf16[32,32], index: 6, kind: output, shape index: {0}]   ;;  %s357_s8 = inlined_call_operand.vmem [shape: bf16[32,32], index: 8, kind: output, shape index: {2}]   ;;  %s358_s7 = inlined_call_operand.vmem [shape: bf16[32,32], index: 7, kind: output, shape index: {1}]  }
   0x1   :  { %v204_v0 = vld [vmem:[%s350_s2 + $0x8] sm:$0xff]  ;;  %v203_v1 = vld [vmem:[%s350_s2] sm:$0xff]  ;;  %v29_v8 = vld [vmem:[%s351_s0 + $0x10] sm:$0xff] }
   0x2   :  { %v27_v2 = vld [vmem:[%s351_s0] sm:$0xff]  ;;  %v28_v3 = vld [vmem:[%s351_s0 + $0x8] sm:$0xff]  ;;  %74 = vmatpush.bf16.msra.mxu0 %v204_v0  ;;  %207 = vmatpush.bf16.msra.mxu2 %v204_v0  ;;  %v30_v9 = vld [vmem:[%s351_s0 + $0x18] sm:$0xff] }
   0x3   :  { %v31_v4 = vld [vmem:[%s352_s1] sm:$0xff]  ;;  %v32_v5 = vld [vmem:[%s352_s1 + $0x8] sm:$0xff]  ;;  %v33_v10 = vld [vmem:[%s352_s1 + $0x10] sm:$0xff]  ;;  %v121_v18 = vpack.c.bf16 %v30_v9, %v29_v8  ;;  %v120_v19 = vpack.c.bf16 %v28_v3, %v27_v2 }
   0x4   :  { %v35_v6 = vadd.f32 %v31_v4, %v27_v2  ;;  %v36_v7 = vadd.f32 %v32_v5, %v28_v3  ;;  %v34_v11 = vld [vmem:[%s352_s1 + $0x18] sm:$0xff]  ;;  %v37_v12 = vadd.f32 %v33_v10, %v29_v8  ;;  %v206_v13 = vld [vmem:[%s353_s4 + $0x8] sm:$0xff]  ;;  %v205_v17 = vld [vmem:[%s353_s4] sm:$0xff] }
   0x5   :  { %v38_v14 = vadd.f32 %v34_v11, %v30_v9  ;;  %209 = vmatpush.bf16.msra.mxu3 %v206_v13  ;;  %150 = vmatpush.bf16.msra.mxu1 %v206_v13  ;;  %v212_v20 = vld [vmem:[%s354_s3] ss:$0 sm:$0xff] }
   0x6   :  { %v43_v15 = vpack.c.bf16 %v36_v7, %v35_v6  ;;  %75 = vmatpush.bf16.msra.mxu0 %v203_v1  ;;  %208 = vmatpush.bf16.msra.mxu2 %v203_v1  ;;  %v213_v23 = vld [vmem:[%s355_s5] ss:$0 sm:$0xff] }
   0x7   :  { %v44_v16 = vpack.c.bf16 %v38_v14, %v37_v12 }
   0x9   :  { %191 = vmatmul.msk.bf16.vlgmr.msra.gmra.mxu0 %vm61_vm0, %v43_v15  ;;  %192 = vmatmul.msk.bf16.vlgmr.msra.gmra.mxu2 %vm61_vm0, %v44_v16 }
   0xa   :  { %210 = vmatpush.bf16.msra.mxu3 %v205_v17  ;;  %151 = vmatpush.bf16.msra.mxu1 %v205_v17 }
   0xd   :  { %202 = vmatmul.msk.bf16.vlgmr.msra.gmra.mxu3 %vm61_vm0, %v121_v18  ;;  %201 = vmatmul.msk.bf16.vlgmr.msra.gmra.mxu1 %vm61_vm0, %v120_v19 }
  0x86   :  { %v77_v21 = vpop.f32.mrf.mxu0 }
  0x87   :  { %v78_v22 = vadd.f32 %v212_v20, %v77_v21 }
  0x89   :  { %v87_v24 = vpack.c.bf16 %v78_v22, %v78_v22 }
  0x8a   :  { %v153_v25 = vpop.f32.mrf.mxu1 }
  0x8b   :  { %92 = vst.msk [vmem:[%s356_s6] sm:$0xf] %vm91_vm1, %v87_v24  ;;  %100 = vrot.lane.b32.xlu0 %v87_v24, %s214_s9  ;;  %v154_v26 = vadd.f32 %v213_v23, %v153_v25 }
  0x8c   :  { %v82_v27 = vpop.f32.mrf.mxu2 }
  0x8d   :  { %v83_v28 = vadd.f32 %v212_v20, %v82_v27  ;;  %v163_v29 = vpack.c.bf16 %v154_v26, %v154_v26 }
  0x8e   :  { %v79_v30 = vpop.f32.mrf.mxu0 }
  0x8f   :  { %v89_v31 = vpack.c.bf16 %v83_v28, %v83_v28  ;;  %v80_v32 = vadd.f32 %v212_v20, %v79_v30  ;;  %167 = vst.msk [vmem:[%s357_s8] sm:$0xf] %vm91_vm1, %v163_v29 }
  0x90   :  { %v158_v33 = vpop.f32.mrf.mxu3 }
  0x91   :  { %94 = vst.msk [vmem:[%s356_s6 + $0x8] sm:$0xf] %vm91_vm1, %v89_v31  ;;  %v88_v34 = vpack.c.bf16 %v80_v32, %v80_v32  ;;  %104 = vrot.lane.b32.xlu1 %v89_v31, %s214_s9  ;;  %v159_v35 = vadd.f32 %v213_v23, %v158_v33 }
  0x92   :  { %v155_v40 = vpop.f32.mrf.mxu1 }
  0x93   :  { %93 = vst.msk [vmem:[%s356_s6 + $0x4] sm:$0xf] %vm91_vm1, %v88_v34  ;;  %102 = vrot.lane.b32.xlu0 %v88_v34, %s214_s9  ;;  %v165_v36 = vpack.c.bf16 %v159_v35, %v159_v35  ;;  %v156_v42 = vadd.f32 %v213_v23, %v155_v40 }
  0x94   :  { %v84_v37 = vpop.f32.mrf.mxu2 }
  0x95   :  { %v85_v38 = vadd.f32 %v212_v20, %v84_v37  ;;  %169 = vst.msk [vmem:[%s357_s8 + $0x8] sm:$0xf] %vm91_vm1, %v165_v36  ;;  %v164_v44 = vpack.c.bf16 %v156_v42, %v156_v42 }
  0x97   :  { %v90_v39 = vpack.c.bf16 %v85_v38, %v85_v38  ;;  %168 = vst.msk [vmem:[%s357_s8 + $0x4] sm:$0xf] %vm91_vm1, %v164_v44 }
  0x98   :  { %v160_v41 = vpop.f32.mrf.mxu3 }
  0x99   :  { %95 = vst.msk [vmem:[%s356_s6 + $0xc] sm:$0xf] %vm91_vm1, %v90_v39  ;;  %106 = vrot.lane.b32.xlu1 %v90_v39, %s214_s9  ;;  %v161_v43 = vadd.f32 %v213_v23, %v160_v41 }
  0x9b   :  { %v166_v45 = vpack.c.bf16 %v161_v43, %v161_v43 }
  0x9d   :  { %170 = vst.msk [vmem:[%s357_s8 + $0xc] sm:$0xf] %vm91_vm1, %v166_v45 }
  0xfd   :  { %v101_v46 = vpop.permute.xlu0 %100 }
  0xfe   :  { %112 = vst.msk [vmem:[%s358_s7] sm:$0xf] %vm91_vm1, %v101_v46 }
 0x103   :  { %v105_v47 = vpop.permute.xlu1 %104 }
 0x104   :  { %114 = vst.msk [vmem:[%s358_s7 + $0x8] sm:$0xf] %vm91_vm1, %v105_v47 }
 0x105   :  { %v103_v48 = vpop.permute.xlu0 %102 }
 0x106   :  { %113 = vst.msk [vmem:[%s358_s7 + $0x4] sm:$0xf] %vm91_vm1, %v103_v48 }
 0x10b   :  { %v107_v49 = vpop.permute.xlu1 %106 }
 0x10c   :  { %115 = vst.msk [vmem:[%s358_s7 + $0xc] sm:$0xf] %vm91_vm1, %v107_v49 }

// kernel: sep_transformer_forward.37
= control target key start
LH: loop header
LB: loop body
LE: loop exit
PB: predicated region body
PF: predicated region fallthrough
CT: control target
= control target key end

     0   :  { %14 = vsyncpa [#allocation3], 0  ;;  %s260_s30 = smov [#allocation2]   ;;  %s261_s10 = smov 64   ;;  %s396_s0 = inlined_call_operand.vmem [shape: f32[32,32], index: 0, kind: input, shape index: {}]   ;;  %s397_s1 = inlined_call_operand.vmem [shape: f32[32,32], index: 1, kind: input, shape index: {}]   ;;  %s398_s2 = inlined_call_operand.vmem [shape: bf16[32,64], index: 2, kind: input, shape index: {}]   ;;  %s399_s3 = inlined_call_operand.vmem [shape: f32[1,64], index: 3, kind: input, shape index: {}]   ;;  %s400_s4 = inlined_call_operand.hbm [shape: bf16[32,32], index: 4, kind: input, shape index: {}]   ;;  %s401_s5 = inlined_call_operand.vmem [shape: f32[1,32], index: 5, kind: input, shape index: {}]   ;;  %s402_s6 = inlined_call_operand.vmem [shape: bf16[32,32], index: 6, kind: output, shape index: {0}]   ;;  %s403_s7 = inlined_call_operand.vmem [shape: bf16[32,32], index: 7, kind: output, shape index: {1}]   ;;  %s404_s8 = inlined_call_operand.vmem [shape: bf16[32,32], index: 8, kind: output, shape index: {2}]  }
   0x1   :  { %s27_s29 = sshll.u32 %s400_s4, 4  ;;  %s29_s9 = sshll.u32 %s260_s30, 4  ;;  %s28_s29 = int_to_ptr.hbm [resolvable:$true] %s27_s29  ;;  %s30_s9 = int_to_ptr.vmem [resolvable:$true] %s29_s9 }
   0x2   :  { %s262_s11 = smov 4  }
   0x3   :  { %35 = dma.hbm_to_vmem [thread:$0]  %s28_s29, 256, %s30_s9, [#allocation3], %s261_s10, %s261_s10, %s262_s11  }
   0x4   :  { %258 = dma.done.wait [#allocation3], 256  }
   0x5   :  { %259 = vsyncadd [#allocation3], 4294967040  ;;  %v221_v0 = vld [vmem:[%s398_s2 + $0x8] sm:$0xff]  ;;  %v220_v1 = vld [vmem:[%s398_s2] sm:$0xff]  ;;  %vm77_vm0 = vcmask 261120   ;;  %vm107_vm1 = vcmask 257024  }
   0x6   :  { %v43_v2 = vld [vmem:[%s396_s0] sm:$0xff]  ;;  %v44_v3 = vld [vmem:[%s396_s0 + $0x8] sm:$0xff]  ;;  %90 = vmatpush.bf16.msra.mxu0 %v221_v0  ;;  %224 = vmatpush.bf16.msra.mxu2 %v221_v0  ;;  %v45_v8 = vld [vmem:[%s396_s0 + $0x10] sm:$0xff]  ;;  %s263_s12 = smov 96  }
   0x7   :  { %v47_v4 = vld [vmem:[%s397_s1] sm:$0xff]  ;;  %v48_v5 = vld [vmem:[%s397_s1 + $0x8] sm:$0xff]  ;;  %v46_v9 = vld [vmem:[%s396_s0 + $0x18] sm:$0xff]  ;;  %v136_v19 = vpack.c.bf16 %v44_v3, %v43_v2 }
   0x8   :  { %v51_v6 = vadd.f32 %v47_v4, %v43_v2  ;;  %v52_v7 = vadd.f32 %v48_v5, %v44_v3  ;;  %v49_v10 = vld [vmem:[%s397_s1 + $0x10] sm:$0xff]  ;;  %v50_v11 = vld [vmem:[%s397_s1 + $0x18] sm:$0xff]  ;;  %v223_v13 = vld [vmem:[#allocation2 + $0x8] sm:$0xff]  ;;  %v137_v18 = vpack.c.bf16 %v46_v9, %v45_v8 }
   0x9   :  { %v53_v12 = vadd.f32 %v49_v10, %v45_v8  ;;  %v54_v14 = vadd.f32 %v50_v11, %v46_v9  ;;  %226 = vmatpush.bf16.msra.mxu3 %v223_v13  ;;  %166 = vmatpush.bf16.msra.mxu1 %v223_v13  ;;  %v222_v17 = vld [vmem:[#allocation2] sm:$0xff] }
   0xa   :  { %v59_v15 = vpack.c.bf16 %v52_v7, %v51_v6  ;;  %91 = vmatpush.bf16.msra.mxu0 %v220_v1  ;;  %225 = vmatpush.bf16.msra.mxu2 %v220_v1  ;;  %v232_v20 = vld [vmem:[%s399_s3] ss:$0 sm:$0xff] }
   0xb   :  { %v60_v16 = vpack.c.bf16 %v54_v14, %v53_v12  ;;  %v233_v23 = vld [vmem:[%s401_s5] ss:$0 sm:$0xff] }
   0xd   :  { %208 = vmatmul.msk.bf16.vlgmr.msra.gmra.mxu0 %vm77_vm0, %v59_v15  ;;  %209 = vmatmul.msk.bf16.vlgmr.msra.gmra.mxu2 %vm77_vm0, %v60_v16 }
   0xe   :  { %227 = vmatpush.bf16.msra.mxu3 %v222_v17  ;;  %167 = vmatpush.bf16.msra.mxu1 %v222_v17 }
  0x11   :  { %219 = vmatmul.msk.bf16.vlgmr.msra.gmra.mxu3 %vm77_vm0, %v137_v18  ;;  %218 = vmatmul.msk.bf16.vlgmr.msra.gmra.mxu1 %vm77_vm0, %v136_v19 }
  0x8a   :  { %v93_v21 = vpop.f32.mrf.mxu0 }
  0x8b   :  { %v94_v22 = vadd.f32 %v232_v20, %v93_v21 }
  0x8d   :  { %v103_v24 = vpack.c.bf16 %v94_v22, %v94_v22 }
  0x8e   :  { %v169_v25 = vpop.f32.mrf.mxu1 }
  0x8f   :  { %108 = vst.msk [vmem:[%s402_s6] sm:$0xf] %vm107_vm1, %v103_v24  ;;  %116 = vrot.lane.b32.xlu0 %v103_v24, %s263_s12  ;;  %v170_v26 = vadd.f32 %v233_v23, %v169_v25 }
  0x90   :  { %v98_v27 = vpop.f32.mrf.mxu2 }
  0x91   :  { %v99_v28 = vadd.f32 %v232_v20, %v98_v27  ;;  %v179_v29 = vpack.c.bf16 %v170_v26, %v170_v26 }
  0x92   :  { %v95_v30 = vpop.f32.mrf.mxu0 }
  0x93   :  { %v105_v31 = vpack.c.bf16 %v99_v28, %v99_v28  ;;  %v96_v32 = vadd.f32 %v232_v20, %v95_v30  ;;  %183 = vst.msk [vmem:[%s404_s8] sm:$0xf] %vm107_vm1, %v179_v29 }
  0x94   :  { %v174_v33 = vpop.f32.mrf.mxu3 }
  0x95   :  { %110 = vst.msk [vmem:[%s402_s6 + $0x8] sm:$0xf] %vm107_vm1, %v105_v31  ;;  %v104_v34 = vpack.c.bf16 %v96_v32, %v96_v32  ;;  %120 = vrot.lane.b32.xlu1 %v105_v31, %s263_s12  ;;  %v175_v35 = vadd.f32 %v233_v23, %v174_v33 }
  0x96   :  { %v171_v40 = vpop.f32.mrf.mxu1 }
  0x97   :  { %109 = vst.msk [vmem:[%s402_s6 + $0x4] sm:$0xf] %vm107_vm1, %v104_v34  ;;  %118 = vrot.lane.b32.xlu0 %v104_v34, %s263_s12  ;;  %v181_v36 = vpack.c.bf16 %v175_v35, %v175_v35  ;;  %v172_v42 = vadd.f32 %v233_v23, %v171_v40 }
  0x98   :  { %v100_v37 = vpop.f32.mrf.mxu2 }
  0x99   :  { %v101_v38 = vadd.f32 %v232_v20, %v100_v37  ;;  %185 = vst.msk [vmem:[%s404_s8 + $0x8] sm:$0xf] %vm107_vm1, %v181_v36  ;;  %v180_v44 = vpack.c.bf16 %v172_v42, %v172_v42 }
  0x9b   :  { %v106_v39 = vpack.c.bf16 %v101_v38, %v101_v38  ;;  %184 = vst.msk [vmem:[%s404_s8 + $0x4] sm:$0xf] %vm107_vm1, %v180_v44 }
  0x9c   :  { %v176_v41 = vpop.f32.mrf.mxu3 }
  0x9d   :  { %111 = vst.msk [vmem:[%s402_s6 + $0xc] sm:$0xf] %vm107_vm1, %v106_v39  ;;  %122 = vrot.lane.b32.xlu1 %v106_v39, %s263_s12  ;;  %v177_v43 = vadd.f32 %v233_v23, %v176_v41 }
  0x9f   :  { %v182_v45 = vpack.c.bf16 %v177_v43, %v177_v43 }
  0xa1   :  { %186 = vst.msk [vmem:[%s404_s8 + $0xc] sm:$0xf] %vm107_vm1, %v182_v45 }
 0x101   :  { %v117_v46 = vpop.permute.xlu0 %116 }
 0x102   :  { %128 = vst.msk [vmem:[%s403_s7] sm:$0xf] %vm107_vm1, %v117_v46 }
 0x107   :  { %v121_v47 = vpop.permute.xlu1 %120 }
 0x108   :  { %130 = vst.msk [vmem:[%s403_s7 + $0x8] sm:$0xf] %vm107_vm1, %v121_v47 }
 0x109   :  { %v119_v48 = vpop.permute.xlu0 %118 }
 0x10a   :  { %129 = vst.msk [vmem:[%s403_s7 + $0x4] sm:$0xf] %vm107_vm1, %v119_v48 }
 0x10f   :  { %v123_v49 = vpop.permute.xlu1 %122 }
 0x110   :  { %131 = vst.msk [vmem:[%s403_s7 + $0xc] sm:$0xf] %vm107_vm1, %v123_v49 }
 0x111   :  { %199 = vsyncpa [#allocation3], 1 }

// kernel: sep_transformer_forward.43
= control target key start
LH: loop header
LB: loop body
LE: loop exit
PB: predicated region body
PF: predicated region fallthrough
CT: control target
= control target key end

     0   :  { %vm60_vm0 = vcmask 261120   ;;  %vm90_vm1 = vcmask 257024   ;;  %s302_s2 = inlined_call_operand.vmem [shape: bf16[32,32], index: 2, kind: input, shape index: {}]   ;;  %s303_s4 = inlined_call_operand.vmem [shape: bf16[32,32], index: 4, kind: input, shape index: {}]   ;;  %s304_s0 = inlined_call_operand.vmem [shape: f32[32,32], index: 0, kind: input, shape index: {}]   ;;  %s305_s1 = inlined_call_operand.vmem [shape: f32[32,32], index: 1, kind: input, shape index: {}]   ;;  %s306_s3 = inlined_call_operand.vmem [shape: f32[1,32], index: 3, kind: input, shape index: {}]   ;;  %s307_s5 = inlined_call_operand.vmem [shape: f32[1,32], index: 5, kind: input, shape index: {}]   ;;  %s308_s6 = inlined_call_operand.vmem [shape: bf16[32,32], index: 6, kind: output, shape index: {0}]   ;;  %s309_s7 = inlined_call_operand.vmem [shape: bf16[32,32], index: 7, kind: output, shape index: {1}]  }
   0x1   :  { %v179_v0 = vld [vmem:[%s302_s2 + $0x8] sm:$0xff]  ;;  %v178_v2 = vld [vmem:[%s302_s2] sm:$0xff]  ;;  %v28_v8 = vld [vmem:[%s304_s0 + $0x10] sm:$0xff] }
   0x2   :  { %v181_v1 = vld [vmem:[%s303_s4 + $0x8] sm:$0xff]  ;;  %v180_v3 = vld [vmem:[%s303_s4] sm:$0xff]  ;;  %73 = vmatpush.bf16.msra.mxu0 %v179_v0  ;;  %182 = vmatpush.bf16.msra.mxu2 %v179_v0  ;;  %v29_v11 = vld [vmem:[%s304_s0 + $0x18] sm:$0xff] }
   0x3   :  { %v26_v4 = vld [vmem:[%s304_s0] sm:$0xff]  ;;  %v27_v5 = vld [vmem:[%s304_s0 + $0x8] sm:$0xff]  ;;  %129 = vmatpush.bf16.msra.mxu1 %v181_v1  ;;  %184 = vmatpush.bf16.msra.mxu3 %v181_v1  ;;  %v32_v12 = vld [vmem:[%s305_s1 + $0x10] sm:$0xff]  ;;  %v100_v19 = vpack.c.bf16 %v29_v11, %v28_v8 }
   0x4   :  { %v30_v6 = vld [vmem:[%s305_s1] sm:$0xff]  ;;  %v31_v7 = vld [vmem:[%s305_s1 + $0x8] sm:$0xff]  ;;  %v33_v13 = vld [vmem:[%s305_s1 + $0x18] sm:$0xff]  ;;  %v36_v14 = vadd.f32 %v32_v12, %v28_v8  ;;  %v99_v18 = vpack.c.bf16 %v27_v5, %v26_v4 }
   0x5   :  { %v34_v9 = vadd.f32 %v30_v6, %v26_v4  ;;  %v35_v10 = vadd.f32 %v31_v7, %v27_v5  ;;  %v37_v15 = vadd.f32 %v33_v13, %v29_v11  ;;  %v186_v20 = vld [vmem:[%s306_s3] ss:$0 sm:$0xff] }
   0x6   :  { %74 = vmatpush.bf16.msra.mxu0 %v178_v2  ;;  %183 = vmatpush.bf16.msra.mxu2 %v178_v2  ;;  %v187_v21 = vld [vmem:[%s307_s5] ss:$0 sm:$0xff] }
   0x7   :  { %v42_v16 = vpack.c.bf16 %v35_v10, %v34_v9  ;;  %v43_v17 = vpack.c.bf16 %v37_v15, %v36_v14  ;;  %130 = vmatpush.bf16.msra.mxu1 %v180_v3  ;;  %185 = vmatpush.bf16.msra.mxu3 %v180_v3 }
   0x9   :  { %166 = vmatmul.msk.bf16.vlgmr.msra.gmra.mxu0 %vm60_vm0, %v42_v16  ;;  %167 = vmatmul.msk.bf16.vlgmr.msra.gmra.mxu2 %vm60_vm0, %v43_v17 }
   0xa   :  { %176 = vmatmul.msk.bf16.vlgmr.msra.gmra.mxu1 %vm60_vm0, %v99_v18  ;;  %177 = vmatmul.msk.bf16.vlgmr.msra.gmra.mxu3 %vm60_vm0, %v100_v19 }
  0x86   :  { %v76_v22 = vpop.f32.mrf.mxu0 }
  0x87   :  { %v77_v23 = vadd.f32 %v186_v20, %v76_v22  ;;  %v132_v24 = vpop.f32.mrf.mxu1 }
  0x88   :  { %v133_v25 = vadd.f32 %v187_v21, %v132_v24 }
  0x89   :  { %v86_v26 = vpack.c.bf16 %v77_v23, %v77_v23 }
  0x8a   :  { %v142_v27 = vpack.c.bf16 %v133_v25, %v133_v25 }
  0x8b   :  { %91 = vst.msk [vmem:[%s308_s6] sm:$0xf] %vm90_vm1, %v86_v26 }
  0x8c   :  { %146 = vst.msk [vmem:[%s309_s7] sm:$0xf] %vm90_vm1, %v142_v27  ;;  %v81_v28 = vpop.f32.mrf.mxu2 }
  0x8d   :  { %v82_v29 = vadd.f32 %v186_v20, %v81_v28  ;;  %v137_v30 = vpop.f32.mrf.mxu3 }
  0x8e   :  { %v138_v31 = vadd.f32 %v187_v21, %v137_v30  ;;  %v78_v32 = vpop.f32.mrf.mxu0 }
  0x8f   :  { %v88_v33 = vpack.c.bf16 %v82_v29, %v82_v29  ;;  %v79_v34 = vadd.f32 %v186_v20, %v78_v32  ;;  %v134_v35 = vpop.f32.mrf.mxu1 }
  0x90   :  { %v144_v36 = vpack.c.bf16 %v138_v31, %v138_v31  ;;  %v135_v37 = vadd.f32 %v187_v21, %v134_v35 }
  0x91   :  { %93 = vst.msk [vmem:[%s308_s6 + $0x8] sm:$0xf] %vm90_vm1, %v88_v33  ;;  %v87_v38 = vpack.c.bf16 %v79_v34, %v79_v34 }
  0x92   :  { %148 = vst.msk [vmem:[%s309_s7 + $0x8] sm:$0xf] %vm90_vm1, %v144_v36  ;;  %v143_v39 = vpack.c.bf16 %v135_v37, %v135_v37 }
  0x93   :  { %92 = vst.msk [vmem:[%s308_s6 + $0x4] sm:$0xf] %vm90_vm1, %v87_v38 }
  0x94   :  { %147 = vst.msk [vmem:[%s309_s7 + $0x4] sm:$0xf] %vm90_vm1, %v143_v39  ;;  %v83_v40 = vpop.f32.mrf.mxu2 }
  0x95   :  { %v84_v41 = vadd.f32 %v186_v20, %v83_v40  ;;  %v139_v42 = vpop.f32.mrf.mxu3 }
  0x96   :  { %v140_v43 = vadd.f32 %v187_v21, %v139_v42 }
  0x97   :  { %v89_v44 = vpack.c.bf16 %v84_v41, %v84_v41 }
  0x98   :  { %v145_v45 = vpack.c.bf16 %v140_v43, %v140_v43 }
  0x99   :  { %94 = vst.msk [vmem:[%s308_s6 + $0xc] sm:$0xf] %vm90_vm1, %v89_v44 }
  0x9a   :  { %149 = vst.msk [vmem:[%s309_s7 + $0xc] sm:$0xf] %vm90_vm1, %v145_v45 }

// kernel: sep_transformer_forward.40
= control target key start
LH: loop header
LB: loop body
LE: loop exit
PB: predicated region body
PF: predicated region fallthrough
CT: control target
= control target key end

     0   :  { %vm54_vm0 = vcmask 261120   ;;  %vm74_vm1 = vcmask 257024   ;;  %s166_s23 = smov 96   ;;  %s266_s2 = inlined_call_operand.vmem [shape: bf16[32,64], index: 2, kind: input, shape index: {}]   ;;  %s267_s0 = inlined_call_operand.vmem [shape: f32[16,32], index: 0, kind: input, shape index: {}]   ;;  %s268_s1 = inlined_call_operand.vmem [shape: f32[16,32], index: 1, kind: input, shape index: {}]   ;;  %s269_s4 = inlined_call_operand.vmem [shape: bf16[32,32], index: 4, kind: input, shape index: {}]   ;;  %s270_s3 = inlined_call_operand.vmem [shape: f32[1,64], index: 3, kind: input, shape index: {}]   ;;  %s271_s5 = inlined_call_operand.vmem [shape: f32[1,32], index: 5, kind: input, shape index: {}]   ;;  %s272_s6 = inlined_call_operand.vmem [shape: bf16[16,32], index: 6, kind: output, shape index: {0}]   ;;  %s273_s8 = inlined_call_operand.vmem [shape: bf16[16,32], index: 8, kind: output, shape index: {2}]   ;;  %s274_s7 = inlined_call_operand.vmem [shape: bf16[16,32], index: 7, kind: output, shape index: {1}]  }
   0x1   :  { %v160_v0 = vld [vmem:[%s266_s2 + $0x8] sm:$0xff]  ;;  %v27_v1 = vld [vmem:[%s267_s0] sm:$0xff] }
   0x2   :  { %v28_v2 = vld [vmem:[%s267_s0 + $0x8] sm:$0xff]  ;;  %v29_v3 = vld [vmem:[%s268_s1] sm:$0xff]  ;;  %64 = vmatpush.bf16.msra.mxu0 %v160_v0 }
   0x3   :  { %v30_v4 = vld [vmem:[%s268_s1 + $0x8] sm:$0xff]  ;;  %v159_v5 = vld [vmem:[%s266_s2] sm:$0xff]  ;;  %v31_v6 = vadd.f32 %v29_v3, %v27_v1  ;;  %v91_v11 = vpack.c.bf16 %v28_v2, %v27_v1 }
   0x4   :  { %v32_v7 = vadd.f32 %v30_v4, %v28_v2  ;;  %v162_v8 = vld [vmem:[%s269_s4 + $0x8] sm:$0xff]  ;;  %v161_v9 = vld [vmem:[%s269_s4] sm:$0xff] }
   0x5   :  { %117 = vmatpush.bf16.msra.mxu1 %v162_v8  ;;  %v164_v12 = vld [vmem:[%s270_s3] ss:$0 sm:$0xff] }
   0x6   :  { %v37_v10 = vpack.c.bf16 %v32_v7, %v31_v6  ;;  %65 = vmatpush.bf16.msra.mxu0 %v159_v5  ;;  %v165_v13 = vld [vmem:[%s271_s5] ss:$0 sm:$0xff] }
   0x9   :  { %118 = vmatpush.bf16.msra.mxu1 %v161_v9  ;;  %149 = vmatmul.msk.bf16.vlgmr.msra.gmra.mxu0 %vm54_vm0, %v37_v10 }
   0xc   :  { %158 = vmatmul.msk.bf16.vlgmr.msra.gmra.mxu1 %vm54_vm0, %v91_v11 }
  0x86   :  { %v67_v14 = vpop.f32.mrf.mxu0 }
  0x87   :  { %v68_v15 = vadd.f32 %v164_v12, %v67_v14 }
  0x89   :  { %v120_v16 = vpop.f32.mrf.mxu1  ;;  %v72_v17 = vpack.c.bf16 %v68_v15, %v68_v15 }
  0x8a   :  { %v121_v18 = vadd.f32 %v165_v13, %v120_v16 }
  0x8b   :  { %75 = vst.msk [vmem:[%s272_s6] sm:$0xf] %vm74_vm1, %v72_v17  ;;  %79 = vrot.lane.b32.xlu0 %v72_v17, %s166_s23 }
  0x8c   :  { %v125_v19 = vpack.c.bf16 %v121_v18, %v121_v18 }
  0x8e   :  { %127 = vst.msk [vmem:[%s273_s8] sm:$0xf] %vm74_vm1, %v125_v19  ;;  %v69_v20 = vpop.f32.mrf.mxu0 }
  0x8f   :  { %v70_v21 = vadd.f32 %v164_v12, %v69_v20 }
  0x91   :  { %v122_v22 = vpop.f32.mrf.mxu1  ;;  %v73_v23 = vpack.c.bf16 %v70_v21, %v70_v21 }
  0x92   :  { %v123_v24 = vadd.f32 %v165_v13, %v122_v22 }
  0x93   :  { %76 = vst.msk [vmem:[%s272_s6 + $0x4] sm:$0xf] %vm74_vm1, %v73_v23  ;;  %81 = vrot.lane.b32.xlu0 %v73_v23, %s166_s23 }
  0x94   :  { %v126_v25 = vpack.c.bf16 %v123_v24, %v123_v24 }
  0x96   :  { %128 = vst.msk [vmem:[%s273_s8 + $0x4] sm:$0xf] %vm74_vm1, %v126_v25 }
  0xfd   :  { %v80_v26 = vpop.permute.xlu0 %79 }
  0xfe   :  { %85 = vst.msk [vmem:[%s274_s7] sm:$0xf] %vm74_vm1, %v80_v26 }
 0x105   :  { %v82_v27 = vpop.permute.xlu0 %81 }
 0x106   :  { %86 = vst.msk [vmem:[%s274_s7 + $0x4] sm:$0xf] %vm74_vm1, %v82_v27 }

// kernel: sep_transformer_forward.38
= control target key start
LH: loop header
LB: loop body
LE: loop exit
PB: predicated region body
PF: predicated region fallthrough
CT: control target
= control target key end

     0   :  { %14 = vsyncpa [#allocation3], 0  ;;  %s1449_s30 = smov 0   ;;  %s1451_s10 = smov 0   ;;  %s1597_s0 = inlined_call_operand.vmem [shape: bf16[2,16,32], index: 0, kind: input, shape index: {}]   ;;  %s1598_s1 = inlined_call_operand.vmem [shape: bf16[2,16,32], index: 1, kind: input, shape index: {}]   ;;  %s1599_s2 = inlined_call_operand.vmem [shape: bf16[2,16,32], index: 2, kind: input, shape index: {}]   ;;  %s1600_s3 = inlined_call_operand.vmem [shape: f32[2,1,16], index: 3, kind: input, shape index: {}]   ;;  %s1601_s4 = inlined_call_operand.vmem [shape: f32[2,16,32], index: 4, kind: input, shape index: {}]   ;;  %s1602_s5 = inlined_call_operand.hbm [shape: bf16[32,32], index: 5, kind: input, shape index: {}]   ;;  %s1603_s6 = inlined_call_operand.vmem [shape: f32[1,32], index: 6, kind: input, shape index: {}]   ;;  %s1604_s7 = inlined_call_operand.vmem [shape: f32[1,32], index: 7, kind: input, shape index: {}]   ;;  %s1605_s8 = inlined_call_operand.vmem [shape: f32[1,32], index: 8, kind: input, shape index: {}]   ;;  %s1606_s9 = inlined_call_operand.vmem [shape: f32[2,16,32], index: 9, kind: output, shape index: {}]  }
   0x1   :  { %s1453_s11 = smov 0  }
   0x2 LB: > { %s1172_s12 = sadd.s32 4294967295, %s1387_s11   ;;  %s32_s13 = sadd.s32 1, %s1383_s10  ;;  %s1387_s11 = sphi %s1453_s11, %s20_s11   ;;  %s1383_s10 = sphi %s1451_s10, %s1610_s10   ;;  %s1379_s30 = sphi %s1449_s30, %s1609_s30  }
   0x3   : > { %p34_p0 = scmp.ge.s32.totalorder %s32_s13, 2  ;;  %p1174_p1 = scmp.ge.s32.totalorder %s1387_s11, 1 }
   0x4   : > { %p283_p2 = scmp.lt.s32.totalorder %s1387_s11, 3  ;;  %p1238_p4 = scmp.eq.s32.totalorder %s1172_s12, 0 }
   0x5   : > { %s1612_s13 = smov (%p34_p0, %s32_s13), 0  ;;  %s294_s16 = sshll.u32 %s1602_s5, 4  ;;  %s295_s16 = int_to_ptr.hbm [resolvable:$true] %s294_s16 }
   0x6   : > { %p284_p3 = pnand %p1174_p1, %p283_p2  ;;  %s1389_s17 = smov [#allocation2]  }
   0x7   : > { %s296_s18 = sshll.u32 %s1389_s17, 4  ;;  %s1390_s19 = smov 64   ;;  %s297_s18 = int_to_ptr.vmem [resolvable:$true] %s296_s18 }
   0x8   : > { %p1234_p5 = pneg %p284_p3  ;;  %s1391_s20 = smov 4  }
   0x9   : > { %369 = sbr.rel (%p284_p3) target bundleno = 1225 (0x4c9), region = 56 }
   0xa   : > { %p1235_p6 = pnand %p1238_p4, %p1234_p5 }
   0xc   : > { %1237 = dma.hbm_to_vmem [thread:$0]  (!%p1235_p6), %s295_s16, 256, %s297_s18, [#allocation3], %s1390_s19, %s1390_s19, %s1391_s20  }
   0xe   : > { %1374 = dma.done.wait (%p1238_p4), [#allocation3], 256  }
   0xf   : > { %1376 = vsyncadd (%p1238_p4), [#allocation3], 4294967040  ;;  %p437_p7 = scmp.lt.s32.totalorder %s1379_s30, 1  ;;  %vm500_vm0 = vcmask 64512   ;;  %s1392_s28 = smov 120   ;;  %vm521_vm1 = vcmask 130048  }
  0x10   : > { %s1393_s29 = smov 112   ;;  %s1394_s16 = smov 104  }
  0x11   : > { %s1614_s30 = smov (!%p437_p7, %s1379_s30), 1  ;;  %s1395_s20 = smov 8  }
  0x12   : > { %s1474_s21 = sshll.u32 %s1614_s30, 3  ;;  %s458_s27 = scalar_lea.vmem %s1600_s3, %s1614_s30 }
  0x13   : > { %s450_s24 = scalar_lea.vmem %s1598_s1, %s1474_s21  ;;  %s444_s15 = scalar_lea.vmem %s1597_s0, %s1474_s21  ;;  %v1498_v9 = vld [vmem:[%s458_s27] ss:$0 sm:$0xff] }
  0x14   : > { %v1226_v0 = vld [vmem:[%s450_s24] sm:$0xff]  ;;  %s455_s19 = scalar_lea.vmem %s1599_s2, %s1474_s21  ;;  %s1396_s21 = smov 24  }
  0x15   : > { %598 = vrot.lane.b32.xlu1 %v1226_v0, %s1392_s28  ;;  %v505_v1 = vsel %vm500_vm0, %v1226_v0, 0  ;;  %693 = vrot.lane.b32.xlu2 %v1226_v0, %s1393_s29  ;;  %v1225_v2 = vld [vmem:[%s444_s15] sm:$0xff]  ;;  %s1397_s22 = smov 16   ;;  %s1223_s23 = sshll.u32 %s1614_s30, 4 }
  0x16   : > { %514 = vmatpush.bf16.xpose.msra.mxu0 %v505_v1  ;;  %v1505_v12 = vld [vmem:[%s455_s19] sm:$0xff]  ;;  %s467_s26 = scalar_lea.vmem %s1601_s4, %s1223_s23  ;;  %s477_s18 = scalar_lea.vmem %s1606_s9, %s1223_s23 }
  0x17   : > { %557 = vmatpush.bf16.msra.mxu1 %v1505_v12 }
  0x1d   : > { %596 = vrot.lane.b32.xlu1 %v1225_v2, %s1392_s28  ;;  %1197 = vmatmul.msk.bf16.vlgmr.msra.gmra.mxu0 %vm500_vm0, %v1225_v2 }
  0x1e   : > { %788 = vrot.lane.b32.xlu2 %v1226_v0, %s1394_s16 }
  0x25   : > { %786 = vrot.lane.b32.xlu1 %v1225_v2, %s1394_s16 }
  0x6f   : > { %v694_v3 = vpop.permute.xlu2 %693 }
  0x70   : > { %v699_v13 = vsel %vm500_vm0, %v694_v3, 0 }
  0x71   : > { %708 = vmatpush.bf16.xpose.msrb.mxu1 %v699_v13 }
  0x78   : > { %v789_v4 = vpop.permute.xlu2 %788 }
  0x79   : > { %v794_v5 = vsel %vm500_vm0, %v789_v4, 0 }
  0x7a   : > { %803 = vmatpush.bf16.xpose.msrb.mxu0 %v794_v5 }
  0x87   : > { %v599_v6 = vpop.permute.xlu1 %598 }
  0x88   : > { %v604_v7 = vsel %vm500_vm0, %v599_v6, 0 }
  0x89   : > { %613 = vmatpush.bf16.xpose.msra.mxu2 %v604_v7 }
  0x8f   : > { %v597_v8 = vpop.permute.xlu1 %596 }
  0x90   : > { %1203 = vmatmul.msk.bf16.vlgmr.msra.gmra.mxu2 %vm500_vm0, %v597_v8 }
  0x97   : > { %v787_v10 = vpop.permute.xlu1 %786 }
  0x98   : > { %1207 = vmatmul.msk.bf16.vlgmr.msrb.gmra.mxu0 %vm500_vm0, %v787_v10 }
  0x9a   : > { %v516_v11 = vpop.f32.mrf.mxu0 }
  0x9b   : > { %v517_v14 = vadd.f32 %v1498_v9, %v516_v11 }
  0x9d   : > { %v522_v15 = vsel %vm521_vm1, %v517_v14, -inf }
  0x9e   : > { %523 = vmax.xlane.f32.xlu0 %v522_v15 }
  0xa2   : > { %v518_v16 = vpop.f32.mrf.mxu0 }
  0xa3   : > { %v519_v17 = vadd.f32 %v1498_v9, %v518_v16 }
  0xa5   : > { %v525_v18 = vsel %vm521_vm1, %v519_v17, -inf }
  0xa6   : > { %526 = vmax.xlane.f32.xlu0 %v525_v18 }
  0xba   : > { %691 = vrot.lane.b32.xlu0 %v1225_v2, %s1393_s29 }
  0xc2   : > { %639 = vrot.lane.b32.xlu0 %v1505_v12, %s1392_s28 }
 0x111   : > { %v524_v19 = vpop.xlane.xlu0 %523 }
 0x112   : > { %v528_v22 = vsub.f32 %v517_v14, %v524_v19 }
 0x113   : > { %v615_v20 = vpop.f32.mrf.mxu2 }
 0x114   : > { %v616_v21 = vadd.f32 %v1498_v9, %v615_v20  ;;  %v530_v26 = vmul.f32 1.442695, %v528_v22 }
 0x115   : > { %v805_v23 = vpop.f32.mrf.mxu0 }
 0x116   : > { %v620_v24 = vsel %vm521_vm1, %v616_v21, -inf  ;;  %v806_v25 = vadd.f32 %v1498_v9, %v805_v23  ;;  %1293 = vpow2.f32 %v530_v26 }
 0x117   : > { %621 = vmax.xlane.f32.xlu2 %v620_v24 }
 0x118   : > { %v810_v32 = vsel %vm521_vm1, %v806_v25, -inf }
 0x119   : > { %v527_v27 = vpop.xlane.xlu0 %526 }
 0x11a   : > { %v529_v28 = vsub.f32 %v519_v17, %v527_v27 }
 0x11b   : > { %v617_v29 = vpop.f32.mrf.mxu2 }
 0x11c   : > { %v532_v30 = vmul.f32 1.442695, %v529_v28  ;;  %v618_v31 = vadd.f32 %v1498_v9, %v617_v29  ;;  %v1294_v36 = vpop.eup %1293 }
 0x11d   : > { %v807_v33 = vpop.f32.mrf.mxu0 }
 0x11e   : > { %1295 = vpow2.f32 %v532_v30  ;;  %v623_v34 = vsel %vm521_vm1, %v618_v31, -inf  ;;  %v808_v35 = vadd.f32 %v1498_v9, %v807_v33 }
 0x11f   : > { %624 = vmax.xlane.f32.xlu1 %v623_v34  ;;  %811 = vmax.xlane.f32.xlu2 %v810_v32 }
 0x120   : > { %v813_v38 = vsel %vm521_vm1, %v808_v35, -inf }
 0x124   : > { %v1296_v37 = vpop.eup %1295 }
 0x125   : > { %v540_v39 = vpack.c.bf16 %v1296_v37, %v1294_v36  ;;  %v537_v10 = vsel %vm521_vm1, %v1296_v37, 0.0 }
 0x127   : > { %814 = vmax.xlane.f32.xlu1 %v813_v38  ;;  %1202 = vmatmul.msk.bf16.vlgmr.msra.gmra.mxu1 %vm521_vm1, %v540_v39 }
 0x12c   : > { %v692_v40 = vpop.permute.xlu0 %691 }
 0x134   : > { %v640_v41 = vpop.permute.xlu0 %639 }
 0x135   : > { %652 = vmatpush.bf16.msra.mxu3 %v640_v41 }
 0x137   : > { %1205 = vmatmul.msk.bf16.vlgmr.msrb.gmra.mxu1 %vm500_vm0, %v692_v40 }
 0x140   : > { %829 = vrot.lane.b32.xlu1 %v1505_v12, %s1394_s16 }
 0x18a   : > { %v622_v42 = vpop.xlane.xlu2 %621 }
 0x18b   : > { %v626_v43 = vsub.f32 %v616_v21, %v622_v42 }
 0x18d   : > { %v628_v44 = vmul.f32 1.442695, %v626_v43 }
 0x18f   : > { %1297 = vpow2.f32 %v628_v44 }
 0x192   : > { %v625_v45 = vpop.xlane.xlu1 %624  ;;  %v812_v52 = vpop.xlane.xlu2 %811 }
 0x193   : > { %v627_v46 = vsub.f32 %v618_v31, %v625_v45  ;;  %v816_v55 = vsub.f32 %v806_v25, %v812_v52 }
 0x195   : > { %v630_v47 = vmul.f32 1.442695, %v627_v46  ;;  %v1298_v48 = vpop.eup %1297  ;;  %v818_v57 = vmul.f32 1.442695, %v816_v55 }
 0x196   : > { %v632_v5 = vsel %vm521_vm1, %v1298_v48, 0.0 }
 0x197   : > { %1299 = vpow2.f32 %v630_v47 }
 0x19a   : > { %v815_v51 = vpop.xlane.xlu1 %814 }
 0x19b   : > { %v817_v53 = vsub.f32 %v808_v35, %v815_v51 }
 0x19d   : > { %v1300_v49 = vpop.eup %1299  ;;  %v820_v56 = vmul.f32 1.442695, %v817_v53 }
 0x19e   : > { %v638_v50 = vpack.c.bf16 %v1300_v49, %v1298_v48  ;;  %v635_v6 = vsel %vm521_vm1, %v1300_v49, 0.0 }
 0x19f   : > { %1301 = vpow2.f32 %v820_v56 }
 0x1a0   : > { %1204 = vmatmul.msk.bf16.vlgmr.msra.gmra.mxu3 %vm521_vm1, %v638_v50  ;;  %1303 = vpow2.f32 %v818_v57 }
 0x1a4   : > { %v1529_v54 = vpop.f32.mrf.mxu1 }
 0x1a5   : > { %v1302_v59 = vpop.eup %1301 }
 0x1a6   : > { %v1304_v61 = vpop.eup %1303  ;;  %v825_v8 = vsel %vm521_vm1, %v1302_v59, 0.0 }
 0x1a7   : > { %v828_v63 = vpack.c.bf16 %v1302_v59, %v1304_v61  ;;  %v822_v7 = vsel %vm521_vm1, %v1304_v61, 0.0 }
 0x1ac   : > { %v1531_v58 = vpop.f32.mrf.mxu1 }
 0x1b2   : > { %v830_v60 = vpop.permute.xlu1 %829 }
 0x1b3   : > { %842 = vmatpush.bf16.msrb.mxu2 %v830_v60 }
 0x1b4   : > { %v710_v62 = vpop.f32.mrf.mxu1 }
 0x1b5   : > { %v711_v0 = vadd.f32 %v1498_v9, %v710_v62 }
 0x1b6   : > { %1208 = vmatmul.msk.bf16.vlgmr.msrb.gmra.mxu2 %vm521_vm1, %v828_v63 }
 0x1b7   : > { %v715_v1 = vsel %vm521_vm1, %v711_v0, -inf }
 0x1b8   : > { %716 = vmax.xlane.f32.xlu0 %v715_v1 }
 0x1bc   : > { %v712_v2 = vpop.f32.mrf.mxu1 }
 0x1bd   : > { %v713_v3 = vadd.f32 %v1498_v9, %v712_v2  ;;  %v534_v9 = vsel %vm521_vm1, %v1294_v36, 0.0 }
 0x1bf   : > { %v718_v4 = vsel %vm521_vm1, %v713_v3, -inf }
 0x1c0   : > { %719 = vmax.xlane.f32.xlu2 %v718_v4  ;;  %633 = vadd.xlane.f32.xlu0 %v632_v5 }
 0x1c8   : > { %636 = vadd.xlane.f32.xlu0 %v635_v6 }
 0x1d0   : > { %823 = vadd.xlane.f32.xlu0 %v822_v7 }
 0x1d8   : > { %826 = vadd.xlane.f32.xlu0 %v825_v8  ;;  %734 = vrot.lane.b32.xlu2 %v1505_v12, %s1393_s29 }
 0x1e0   : > { %535 = vadd.xlane.f32.xlu0 %v534_v9 }
 0x1e8   : > { %538 = vadd.xlane.f32.xlu0 %v537_v10 }
 0x223   : > { %v654_v30 = vpop.f32.mrf.mxu3 }
 0x22b   : > { %v717_v11 = vpop.xlane.xlu0 %716  ;;  %v656_v50 = vpop.f32.mrf.mxu3 }
 0x22c   : > { %v721_v13 = vsub.f32 %v711_v0, %v717_v11 }
 0x22e   : > { %v723_v14 = vmul.f32 1.442695, %v721_v13 }
 0x230   : > { %1305 = vpow2.f32 %v723_v14 }
 0x233   : > { %v720_v15 = vpop.xlane.xlu2 %719  ;;  %v634_v16 = vpop.xlane.xlu0 %633 }
 0x234   : > { %v722_v17 = vsub.f32 %v713_v3, %v720_v15  ;;  %1307 = vrcp.f32 %v634_v16  ;;  %v670_v34 = vand.u32 2147483648, %v634_v16  ;;  %vm664_vm3 = vweird.f32 %v634_v16 }
 0x235   : > { %v668_v36 = vand.u32 2147483647, %v634_v16 }
 0x236   : > { %v1306_v18 = vpop.eup %1305  ;;  %v725_v19 = vmul.f32 1.442695, %v722_v17  ;;  %v671_v42 = vor.u32 1.1754944e-38, %v670_v34 }
 0x237   : > { %v727_v20 = vsel %vm521_vm1, %v1306_v18, 0.0  ;;  %vm669_vm7 = vcmp.eq.f32.partialorder %v668_v36, 8.507059e+37 }
 0x238   : > { %1309 = vpow2.f32 %v725_v19  ;;  %728 = vadd.xlane.f32.xlu2 %v727_v20  ;;  %v1229_v19 = vld [vmem:[#allocation2 + $0x8] sm:$0xff] }
 0x239   : > { %v844_v60 = vpop.f32.mrf.mxu2  ;;  %941 = vmatpush.bf16.msra.mxu1 %v1229_v19 }
 0x23a   : > { %v1308_v12 = vpop.eup %1307 }
 0x23b   : > { %v660_v21 = vmul.f32 %v1308_v12, %v634_v16  ;;  %v735_v22 = vpop.permute.xlu2 %734  ;;  %v637_v23 = vpop.xlane.xlu0 %636  ;;  %vm665_vm2 = vweird.f32 %v1308_v12 }
 0x23c   : > { %1311 = vrcp.f32 %v637_v23  ;;  %747 = vmatpush.bf16.msrb.mxu3 %v735_v22  ;;  %vm1549_vm4 = vmor %vm664_vm3, %vm665_vm2  ;;  %v685_v39 = vand.u32 2147483648, %v637_v23  ;;  %v683_v40 = vand.u32 2147483647, %v637_v23  ;;  %vm679_vm6 = vweird.f32 %v637_v23 }
 0x23d   : > { %v661_v24 = vsub.f32 1.0, %v660_v21 }
 0x23e   : > { %v1310_v25 = vpop.eup %1309  ;;  %v686_v45 = vor.u32 1.1754944e-38, %v685_v39  ;;  %vm684_vm9 = vcmp.eq.f32.partialorder %v683_v40, 8.507059e+37 }
 0x23f   : > { %v730_v26 = vsel %vm521_vm1, %v1310_v25, 0.0  ;;  %v733_v27 = vpack.c.bf16 %v1310_v25, %v1306_v18  ;;  %v662_v28 = vmul.f32 %v1308_v12, %v661_v24 }
 0x240   : > { %731 = vadd.xlane.f32.xlu1 %v730_v26 }
 0x241   : > { %1206 = vmatmul.msk.bf16.vlgmr.msrb.gmra.mxu3 %vm521_vm1, %v733_v27  ;;  %v663_v33 = vadd.f32 %v1308_v12, %v662_v28  ;;  %v846_v11 = vpop.f32.mrf.mxu2 }
 0x242   : > { %v1312_v29 = vpop.eup %1311 }
 0x243   : > { %v675_v31 = vmul.f32 %v1312_v29, %v637_v23  ;;  %v824_v32 = vpop.xlane.xlu0 %823  ;;  %vm680_vm5 = vweird.f32 %v1312_v29  ;;  %v667_v41 = vsel %vm1549_vm4, %v1308_v12, %v663_v33 }
 0x244   : > { %1313 = vrcp.f32 %v824_v32  ;;  %vm681_vm8 = vmor %vm679_vm6, %vm680_vm5  ;;  %v672_v48 = vsel %vm669_vm7, %v671_v42, %v667_v41  ;;  %v860_v63 = vand.u32 2147483648, %v824_v32  ;;  %vm854_vm11 = vweird.f32 %v824_v32 }
 0x245   : > { %v676_v35 = vsub.f32 1.0, %v675_v31  ;;  %v689_v53 = vmul.f32 %v672_v48, %v654_v30  ;;  %v858_v1 = vand.u32 2147483647, %v824_v32 }
 0x246   : > { %v861_v6 = vor.u32 1.1754944e-38, %v860_v63 }
 0x247   : > { %v677_v38 = vmul.f32 %v1312_v29, %v676_v35  ;;  %vm859_vm15 = vcmp.eq.f32.partialorder %v858_v1, 8.507059e+37 }
 0x249   : > { %v678_v43 = vadd.f32 %v1312_v29, %v677_v38 }
 0x24a   : > { %v1314_v44 = vpop.eup %1313 }
 0x24b   : > { %v850_v46 = vmul.f32 %v1314_v44, %v824_v32  ;;  %v827_v47 = vpop.xlane.xlu0 %826  ;;  %v682_v49 = vsel %vm681_vm8, %v1312_v29, %v678_v43  ;;  %vm855_vm10 = vweird.f32 %v1314_v44 }
 0x24c   : > { %1315 = vrcp.f32 %v827_v47  ;;  %v687_v52 = vsel %vm684_vm9, %v686_v45, %v682_v49  ;;  %vm856_vm12 = vmor %vm854_vm11, %vm855_vm10  ;;  %v875_v3 = vand.u32 2147483648, %v827_v47  ;;  %v873_v4 = vand.u32 2147483647, %v827_v47 }
 0x24d   : > { %v851_v51 = vsub.f32 1.0, %v850_v46  ;;  %v690_v55 = vmul.f32 %v687_v52, %v656_v50  ;;  %vm869_vm14 = vweird.f32 %v827_v47  ;;  %v1228_v46 = vld [vmem:[#allocation2] sm:$0xff] }
 0x24e   : > { %v876_v8 = vor.u32 1.1754944e-38, %v875_v3  ;;  %vm874_vm3 = vcmp.eq.f32.partialorder %v873_v4, 8.507059e+37  ;;  %942 = vmatpush.bf16.msra.mxu1 %v1228_v46 }
 0x24f   : > { %v852_v56 = vmul.f32 %v1314_v44, %v851_v51  ;;  %v1274_v57 = vpack.i.bf16 %v690_v55, %v689_v53 }
 0x251   : > { %1275 = vrot.lane.b32.xlu0 %v1274_v57, %s1395_s20  ;;  %v853_v62 = vadd.f32 %v1314_v44, %v852_v56 }
 0x252   : > { %v1316_v59 = vpop.eup %1315 }
 0x253   : > { %v865_v61 = vmul.f32 %v1316_v59, %v827_v47  ;;  %vm870_vm13 = vweird.f32 %v1316_v59  ;;  %v857_v5 = vsel %vm856_vm12, %v1314_v44, %v853_v62  ;;  %v536_v44 = vpop.xlane.xlu0 %535 }
 0x254   : > { %vm871_vm2 = vmor %vm869_vm14, %vm870_vm13  ;;  %v862_v9 = vsel %vm859_vm15, %v861_v6, %v857_v5  ;;  %vm569_vm14 = vweird.f32 %v536_v44 }
 0x255   : > { %v866_v0 = vsub.f32 1.0, %v865_v61  ;;  %v879_v14 = vmul.f32 %v862_v9, %v844_v60  ;;  %v573_v61 = vand.u32 2147483647, %v536_v44 }
 0x257   : > { %v867_v2 = vmul.f32 %v1316_v59, %v866_v0 }
 0x259   : > { %v868_v7 = vadd.f32 %v1316_v59, %v867_v2 }
 0x25b   : > { %v872_v10 = vsel %vm871_vm2, %v1316_v59, %v868_v7  ;;  %v539_v45 = vpop.xlane.xlu0 %538  ;;  %v575_v59 = vand.u32 2147483648, %v536_v44 }
 0x25c   : > { %v877_v13 = vsel %vm874_vm3, %v876_v8, %v872_v10  ;;  %v590_v60 = vand.u32 2147483648, %v539_v45  ;;  %vm584_vm2 = vweird.f32 %v539_v45  ;;  %v588_v62 = vand.u32 2147483647, %v539_v45 }
 0x25d   : > { %v880_v15 = vmul.f32 %v877_v13, %v846_v11  ;;  %v576_v1 = vor.u32 1.1754944e-38, %v575_v59 }
 0x25e   : > { %v591_v2 = vor.u32 1.1754944e-38, %v590_v60 }
 0x25f   : > { %v1284_v16 = vpack.i.bf16 %v880_v15, %v879_v14 }
 0x261   : > { %1285 = vrot.lane.b32.xlu1 %v1284_v16, %s1396_s21 }
 0x2ab   : > { %v729_v17 = vpop.xlane.xlu2 %728 }
 0x2ac   : > { %1317 = vrcp.f32 %v729_v17  ;;  %vm759_vm6 = vweird.f32 %v729_v17  ;;  %v765_v30 = vand.u32 2147483648, %v729_v17  ;;  %v763_v32 = vand.u32 2147483647, %v729_v17 }
 0x2ae   : > { %v766_v36 = vor.u32 1.1754944e-38, %v765_v30  ;;  %vm764_vm10 = vcmp.eq.f32.partialorder %v763_v32, 8.507059e+37  ;;  %v1398_v32 = vmov 32.0  }
 0x2b2   : > { %v1318_v20 = vpop.eup %1317 }
 0x2b3   : > { %v732_v18 = vpop.xlane.xlu1 %731  ;;  %v755_v12 = vmul.f32 %v1318_v20, %v729_v17  ;;  %vm760_vm4 = vweird.f32 %v1318_v20 }
 0x2b4   : > { %1319 = vrcp.f32 %v732_v18  ;;  %v780_v31 = vand.u32 2147483648, %v732_v18  ;;  %vm761_vm7 = vmor %vm759_vm6, %vm760_vm4  ;;  %vm774_vm8 = vweird.f32 %v732_v18  ;;  %v778_v33 = vand.u32 2147483647, %v732_v18 }
 0x2b5   : > { %v756_v23 = vsub.f32 1.0, %v755_v12  ;;  %1321 = vrcp.f32 %v536_v44  ;;  %vm574_vm4 = vcmp.eq.f32.partialorder %v573_v61, 8.507059e+37  ;;  %vm909_vm6 = vcmask 195584  }
 0x2b6   : > { %v781_v37 = vor.u32 1.1754944e-38, %v780_v31  ;;  %vm779_vm11 = vcmp.eq.f32.partialorder %v778_v33, 8.507059e+37  ;;  %1323 = vrcp.f32 %v539_v45 }
 0x2b7   : > { %v757_v25 = vmul.f32 %v1318_v20, %v756_v23  ;;  %1325 = vrcp.f32 %v1398_v32 }
 0x2b9   : > { %v758_v28 = vadd.f32 %v1318_v20, %v757_v25 }
 0x2ba   : > { %v1320_v21 = vpop.eup %1319 }
 0x2bb   : > { %v770_v22 = vmul.f32 %v1320_v21, %v732_v18  ;;  %vm775_vm5 = vweird.f32 %v1320_v21  ;;  %v762_v34 = vsel %vm761_vm7, %v1318_v20, %v758_v28  ;;  %v1322_v47 = vpop.eup %1321  ;;  %vm931_vm7 = vcmask 261120  }
 0x2bc   : > { %vm776_vm9 = vmor %vm774_vm8, %vm775_vm5  ;;  %v767_v38 = vsel %vm764_vm10, %v766_v36, %v762_v34  ;;  %v1324_v48 = vpop.eup %1323  ;;  %v565_v49 = vmul.f32 %v1322_v47, %v536_v44  ;;  %vm570_vm12 = vweird.f32 %v1322_v47  ;;  %vm589_vm5 = vcmp.eq.f32.partialorder %v588_v62, 8.507059e+37 }
 0x2bd   : > { %v771_v24 = vsub.f32 1.0, %v770_v22  ;;  %v580_v50 = vmul.f32 %v1324_v48, %v539_v45  ;;  %vm585_vm13 = vweird.f32 %v1324_v48  ;;  %vm571_vm15 = vmor %vm569_vm14, %vm570_vm12  ;;  %v1290_v22 = vld [vmem:[%s1603_s6] ss:$0 sm:$0xff]  ;;  %v1326_v33 = vpop.eup %1325 }
 0x2be   : > { %v566_v51 = vsub.f32 1.0, %v565_v49  ;;  %vm586_vm3 = vmor %vm584_vm2, %vm585_vm13  ;;  %v966_v34 = vmul.f32 32.0, %v1326_v33 }
 0x2bf   : > { %v772_v26 = vmul.f32 %v1320_v21, %v771_v24  ;;  %v581_v52 = vsub.f32 1.0, %v580_v50 }
 0x2c0   : > { %v567_v53 = vmul.f32 %v1322_v47, %v566_v51 }
 0x2c1   : > { %v773_v29 = vadd.f32 %v1320_v21, %v772_v26  ;;  %v582_v55 = vmul.f32 %v1324_v48, %v581_v52 }
 0x2c2   : > { %v568_v56 = vadd.f32 %v1322_v47, %v567_v53 }
 0x2c3   : > { %v777_v35 = vsel %vm776_vm9, %v1320_v21, %v773_v29  ;;  %v583_v57 = vadd.f32 %v1324_v48, %v582_v55  ;;  %v1276_v3 = vpop.permute.xlu0 %1275  ;;  %v912_v21 = vld [vmem:[%s467_s26] sm:$0xff] }
 0x2c4   : > { %v749_v27 = vpop.f32.mrf.mxu3  ;;  %v782_v40 = vsel %vm779_vm11, %v781_v37, %v777_v35  ;;  %v572_v63 = vsel %vm571_vm15, %v1322_v47, %v568_v56  ;;  %v1278_v6 = vunpack.i.h.bf16 %v1276_v3  ;;  %v1277_v7 = vunpack.i.l.bf16 %v1276_v3 }
 0x2c5   : > { %v784_v41 = vmul.f32 %v767_v38, %v749_v27  ;;  %v587_v0 = vsel %vm586_vm3, %v1324_v48, %v583_v57  ;;  %v577_v4 = vsel %vm574_vm4, %v576_v1, %v572_v63  ;;  %v913_v27 = vld [vmem:[%s467_s26 + $0x8] sm:$0xff]  ;;  %v967_v35 = vsub.f32 1.0, %v966_v34  ;;  %v1291_v1 = vld [vmem:[%s1604_s7] ss:$0 sm:$0xff] }
 0x2c6   : > { %v592_v5 = vsel %vm589_vm5, %v591_v2, %v587_v0  ;;  %v594_v9 = vmul.f32 %v577_v4, %v1529_v54  ;;  %v1292_v4 = vld [vmem:[%s1605_s8] ss:$0 sm:$0xff] }
 0x2c7   : > { %v595_v10 = vmul.f32 %v592_v5, %v1531_v58  ;;  %v968_v36 = vmul.f32 %v1326_v33, %v967_v35 }
 0x2c8   : > { %v905_v16 = vsel %vm500_vm0, %v594_v9, %v1277_v7 }
 0x2c9   : > { %v906_v15 = vsel %vm500_vm0, %v595_v10, %v1278_v6  ;;  %v969_v37 = vadd.f32 %v1326_v33, %v968_v36  ;;  %vm970_vm0 = vweird.f32 %v1326_v33 }
 0x2cb   : > { %v971_v38 = vsel %vm970_vm0, %v1326_v33, %v969_v37 }
 0x2cc   : > { %v751_v39 = vpop.f32.mrf.mxu3 }
 0x2cd   : > { %v785_v42 = vmul.f32 %v782_v40, %v751_v39 }
 0x2cf   : > { %v1279_v43 = vpack.i.bf16 %v785_v42, %v784_v41 }
 0x2d1   : > { %1280 = vrot.lane.b32.xlu2 %v1279_v43, %s1397_s22 }
 0x2d3   : > { %v1286_v8 = vpop.permute.xlu1 %1285 }
 0x2d4   : > { %v1288_v17 = vunpack.i.h.bf16 %v1286_v8  ;;  %v1287_v18 = vunpack.i.l.bf16 %v1286_v8 }
 0x32b   : > { %v1281_v11 = vpop.permute.xlu2 %1280 }
 0x32c   : > { %v1283_v13 = vunpack.i.h.bf16 %v1281_v11  ;;  %v1282_v14 = vunpack.i.l.bf16 %v1281_v11 }
 0x32e   : > { %v907_v19 = vsel %vm521_vm1, %v905_v16, %v1282_v14  ;;  %v908_v20 = vsel %vm521_vm1, %v906_v15, %v1283_v13 }
 0x32f   : > { %v910_v12 = vsel %vm909_vm6, %v907_v19, %v1287_v18  ;;  %v911_v54 = vsel %vm909_vm6, %v908_v20, %v1288_v17 }
 0x330   : > { %v918_v58 = vpack.c.bf16 %v911_v54, %v910_v12 }
 0x332   : > { %1217 = vmatmul.msk.bf16.vlgmr.msra.gmra.mxu1 %vm931_vm7, %v918_v58 }
 0x3af   : > { %v944_v23 = vpop.f32.mrf.mxu1 }
 0x3b0   : > { %v949_v24 = vadd.f32 %v944_v23, %v912_v21 }
 0x3b2   : > { %v955_v25 = vadd.f32 %v1290_v22, %v949_v24 }
 0x3b4   : > { %v959_v26 = vsel %vm931_vm7, %v955_v25, 0.0 }
 0x3b5   : > { %960 = vadd.xlane.f32.xlu0 %v959_v26 }
 0x3b7   : > { %v946_v28 = vpop.f32.mrf.mxu1 }
 0x3b8   : > { %v950_v29 = vadd.f32 %v946_v28, %v913_v27 }
 0x3ba   : > { %v956_v30 = vadd.f32 %v1290_v22, %v950_v29 }
 0x3bc   : > { %v962_v31 = vsel %vm931_vm7, %v956_v30, 0.0 }
 0x3bd   : > { %963 = vadd.xlane.f32.xlu2 %v962_v31 }
 0x428   : > { %v961_v39 = vpop.xlane.xlu0 %960 }
 0x429   : > { %v972_v40 = vmul.f32 %v971_v38, %v961_v39 }
 0x42b   : > { %v974_v41 = vsub.f32 %v955_v25, %v972_v40 }
 0x42d   : > { %v976_v42 = vmul.f32 %v974_v41, %v974_v41 }
 0x42f   : > { %v978_v43 = vsel %vm931_vm7, %v976_v42, 0.0 }
 0x430   : > { %979 = vadd.xlane.f32.xlu1 %v978_v43  ;;  %v964_v44 = vpop.xlane.xlu2 %963 }
 0x431   : > { %v973_v45 = vmul.f32 %v971_v38, %v964_v44 }
 0x433   : > { %v975_v46 = vsub.f32 %v956_v30, %v973_v45 }
 0x435   : > { %v977_v47 = vmul.f32 %v975_v46, %v975_v46 }
 0x437   : > { %v981_v48 = vsel %vm931_vm7, %v977_v47, 0.0 }
 0x438   : > { %982 = vadd.xlane.f32.xlu0 %v981_v48 }
 0x4a3   : > { %v980_v49 = vpop.xlane.xlu1 %979 }
 0x4a4   : > { %v984_v50 = vmul.f32 %v980_v49, %v971_v38 }
 0x4a6   : > { %v986_v51 = vadd.f32 1e-05, %v984_v50 }
 0x4a8   : > { %1327 = vrsqrt.f32 %v986_v51  ;;  %vm994_vm8 = vweird.f32 %v986_v51 }
 0x4ab   : > { %v983_v52 = vpop.xlane.xlu0 %982 }
 0x4ac   : > { %v985_v53 = vmul.f32 %v983_v52, %v971_v38 }
 0x4ae   : > { %v1328_v55 = vpop.eup %1327  ;;  %v987_v56 = vadd.f32 1e-05, %v985_v53 }
 0x4af   : > { %v989_v57 = vmul.f32 %v1328_v55, %v986_v51  ;;  %vm995_vm1 = vweird.f32 %v1328_v55 }
 0x4b0   : > { %1329 = vrsqrt.f32 %v987_v56  ;;  %vm996_vm9 = vmor %vm994_vm8, %vm995_vm1  ;;  %vm1004_vm11 = vweird.f32 %v987_v56 }
 0x4b1   : > { %v990_v59 = vmul.f32 %v1328_v55, %v989_v57 }
 0x4b3   : > { %v991_v60 = vmul.f32 0.5, %v990_v59 }
 0x4b5   : > { %v992_v61 = vsub.f32 1.5, %v991_v60 }
 0x4b6   : > { %v1330_v62 = vpop.eup %1329 }
 0x4b7   : > { %v993_v63 = vmul.f32 %v1328_v55, %v992_v61  ;;  %v999_v0 = vmul.f32 %v1330_v62, %v987_v56  ;;  %vm1005_vm10 = vweird.f32 %v1330_v62 }
 0x4b8   : > { %vm1006_vm12 = vmor %vm1004_vm11, %vm1005_vm10 }
 0x4b9   : > { %v997_v2 = vsel %vm996_vm9, %v1328_v55, %v993_v63  ;;  %v1000_v3 = vmul.f32 %v1330_v62, %v999_v0 }
 0x4ba   : > { %v1008_v5 = vmul.f32 %v997_v2, %v974_v41 }
 0x4bb   : > { %v1001_v6 = vmul.f32 0.5, %v1000_v3 }
 0x4bc   : > { %v1013_v7 = vmul.f32 %v1291_v1, %v1008_v5 }
 0x4bd   : > { %v1002_v8 = vsub.f32 1.5, %v1001_v6 }
 0x4be   : > { %v1018_v9 = vadd.f32 %v1292_v4, %v1013_v7 }
 0x4bf   : > { %v1003_v10 = vmul.f32 %v1330_v62, %v1002_v8 }
 0x4c0   : > { %1020 = vst.msk [vmem:[%s477_s18] sm:$0xff] %vm931_vm7, %v1018_v9 }
 0x4c1   : > { %v1007_v11 = vsel %vm1006_vm12, %v1330_v62, %v1003_v10 }
 0x4c2   : > { %v1009_v13 = vmul.f32 %v1007_v11, %v975_v46 }
 0x4c4   : > { %v1014_v14 = vmul.f32 %v1291_v1, %v1009_v13 }
 0x4c6   : > { %v1019_v15 = vadd.f32 %v1292_v4, %v1014_v14 }
 0x4c8   : > { %1021 = vst.msk [vmem:[%s477_s18 + $0x8] sm:$0xff] %vm931_vm7, %v1019_v15 }
 0x4c9 PF: > { %s20_s11 = sadd.s32 1, %s1387_s11   ;;  %s1609_s30 = smov %s1383_s10 }
 0x4ca   : > { %p17_p8 = scmp.ge.s32.totalorder %s20_s11, 4   ;;  %s1610_s10 = smov %s1612_s13 }
 0x4cc   :  { %19 = sbr.rel (!%p17_p8) target bundleno = 2 (0x2), region = 103 }
 0x4d1   :  { %1052 = vsyncpa [#allocation3], 1 }
 0x4d2   :  { %1054 = vsyncpa [#allocation3 + $0x1], 1 }

// kernel: sep_transformer_forward.41
= control target key start
LH: loop header
LB: loop body
LE: loop exit
PB: predicated region body
PF: predicated region fallthrough
CT: control target
= control target key end

     0   :  { %s1115_s30 = smov 0   ;;  %s1117_s10 = smov 0   ;;  %s1227_s0 = inlined_call_operand.vmem [shape: bf16[2,8,32], index: 0, kind: input, shape index: {}]   ;;  %s1228_s1 = inlined_call_operand.vmem [shape: bf16[2,8,32], index: 1, kind: input, shape index: {}]   ;;  %s1229_s2 = inlined_call_operand.vmem [shape: bf16[2,8,32], index: 2, kind: input, shape index: {}]   ;;  %s1230_s3 = inlined_call_operand.vmem [shape: f32[2,1,8], index: 3, kind: input, shape index: {}]   ;;  %s1231_s4 = inlined_call_operand.vmem [shape: f32[2,8,32], index: 4, kind: input, shape index: {}]   ;;  %s1232_s5 = inlined_call_operand.vmem [shape: bf16[32,32], index: 5, kind: input, shape index: {}]   ;;  %s1233_s6 = inlined_call_operand.vmem [shape: f32[1,32], index: 6, kind: input, shape index: {}]   ;;  %s1234_s7 = inlined_call_operand.vmem [shape: f32[1,32], index: 7, kind: input, shape index: {}]   ;;  %s1235_s8 = inlined_call_operand.vmem [shape: f32[1,32], index: 8, kind: input, shape index: {}]   ;;  %s1236_s9 = inlined_call_operand.vmem [shape: f32[2,8,32], index: 9, kind: output, shape index: {}]  }
   0x1   :  { %s1119_s11 = smov 0  }
   0x2 LB: > { %s31_s12 = sadd.s32 1, %s1052_s10  ;;  %p952_p0 = scmp.ge.s32.totalorder %s1056_s11, 1  ;;  %s1056_s11 = sphi %s1119_s11, %s19_s11   ;;  %s1052_s10 = sphi %s1117_s10, %s1238_s10   ;;  %s1048_s30 = sphi %s1115_s30, %s1237_s30  }
   0x3   : > { %p33_p1 = scmp.ge.s32.totalorder %s31_s12, 2  ;;  %p345_p2 = scmp.lt.s32.totalorder %s1056_s11, 3 }
   0x5   : > { %s1240_s12 = smov (%p33_p1, %s31_s12), 0  ;;  %p346_p3 = pnand %p952_p0, %p345_p2 }
   0x6   : > { %p403_p4 = scmp.lt.s32.totalorder (!%p346_p3), %s1048_s30, 1  ;;  %s1058_s23 = smov (!%p346_p3), 120  }
   0x7   : > { %349 = sbr.rel (%p346_p3) target bundleno = 1228 (0x4cc), region = 56  ;;  %s1059_s24 = smov (!%p346_p3), 104  }
   0x8   : > { %s1060_s25 = smov (!%p346_p3), 112   ;;  %s1061_s29 = smov (!%p346_p3), 8  }
   0x9   : > { %s1063_s14 = smov (!%p346_p3), 16  }
   0xc   : > { %s1242_s30 = smov (!%p403_p4, %s1048_s30), 1  ;;  %vm443_vm0 = vcmask 64512   ;;  %vm476_vm1 = vcmask 1043456  }
   0xd   : > { %s1136_s13 = sshll.u32 %s1242_s30, 2  ;;  %s420_s16 = scalar_lea.vmem %s1230_s3, %s1242_s30 }
   0xe   : > { %s413_s19 = scalar_lea.vmem %s1228_s1, %s1136_s13  ;;  %s409_s22 = scalar_lea.vmem %s1227_s0, %s1136_s13  ;;  %v1010_v10 = vld [vmem:[%s420_s16] ss:$0 sm:$0xff] }
   0xf   : > { %v437_v0 = vld [vmem:[%s413_s19] sm:$0xf]  ;;  %s417_s28 = scalar_lea.vmem %s1229_s2, %s1136_s13  ;;  %s1062_s13 = smov 24  }
  0x10   : > { %v436_v1 = vld [vmem:[%s409_s22] sm:$0xf]  ;;  %v448_v2 = vsel %vm443_vm0, %v437_v0, 0  ;;  %v515_v3 = vunpack.c.l.b16 %v437_v0  ;;  %s956_s19 = sshll.u32 %s1242_s30, 3 }
  0x11   : > { %v510_v4 = vunpack.c.l.b16 %v436_v1  ;;  %457 = vmatpush.bf16.xpose.msra.mxu0 %v448_v2  ;;  %v438_v17 = vld [vmem:[%s417_s28] sm:$0xf]  ;;  %s427_s22 = scalar_lea.vmem %s1231_s4, %s956_s19 }
  0x12   : > { %v516_v5 = vpack.c.b16 %v515_v3, %v515_v3  ;;  %v478_v18 = vsel %vm476_vm1, %v438_v17, 0  ;;  %v549_v19 = vunpack.c.l.b16 %v438_v17 }
  0x13   : > { %v511_v6 = vpack.c.b16 %v510_v4, %v510_v4  ;;  %487 = vmatpush.bf16.msra.mxu1 %v478_v18 }
  0x14   : > { %660 = vrot.lane.b32.xlu2 %v516_v5, %s1059_s24  ;;  %v550_v20 = vpack.c.b16 %v549_v19, %v549_v19 }
  0x15   : > { %512 = vrot.lane.b32.xlu1 %v511_v6, %s1058_s23 }
  0x18   : > { %958 = vmatmul.msk.bf16.vlgmr.msra.gmra.mxu0 %vm443_vm0, %v436_v1 }
  0x1c   : > { %588 = vrot.lane.b32.xlu2 %v511_v6, %s1060_s25 }
  0x1d   : > { %590 = vrot.lane.b32.xlu1 %v516_v5, %s1060_s25 }
  0x25   : > { %658 = vrot.lane.b32.xlu1 %v511_v6, %s1059_s24 }
  0x2d   : > { %551 = vrot.lane.b32.xlu1 %v550_v20, %s1058_s23 }
  0x6e   : > { %v661_v8 = vpop.permute.xlu2 %660 }
  0x6f   : > { %v666_v9 = vsel %vm443_vm0, %v661_v8, 0 }
  0x70   : > { %675 = vmatpush.bf16.xpose.msrb.mxu0 %v666_v9 }
  0x76   : > { %v589_v33 = vpop.permute.xlu2 %588 }
  0x87   : > { %v513_v7 = vpop.permute.xlu1 %512 }
  0x8f   : > { %v591_v12 = vpop.permute.xlu1 %590 }
  0x90   : > { %v596_v21 = vsel %vm443_vm0, %v591_v12, 0 }
  0x91   : > { %605 = vmatpush.bf16.xpose.msrb.mxu1 %v596_v21 }
  0x95   : > { %v459_v11 = vpop.f32.mrf.mxu0 }
  0x96   : > { %v460_v13 = vadd.f32 %v1010_v10, %v459_v11 }
  0x97   : > { %v659_v16 = vpop.permute.xlu1 %658 }
  0x98   : > { %v463_v14 = vsel %vm443_vm0, %v460_v13, -inf  ;;  %964 = vmatmul.msk.bf16.vlgmr.msrb.gmra.mxu0 %vm443_vm0, %v659_v16 }
  0x99   : > { %464 = vmax.xlane.f32.xlu0 %v463_v14 }
  0x9d   : > { %v461_v15 = vpop.f32.mrf.mxu0 }
  0x9f   : > { %v552_v45 = vpop.permute.xlu1 %551 }
  0xa0   : > { %v557_v46 = vsel %vm476_vm1, %v552_v45, 0 }
  0xa1   : > { %566 = vmatpush.bf16.msra.mxu3 %v557_v46 }
  0xad   : > { %517 = vrot.lane.b32.xlu0 %v516_v5, %s1058_s23 }
 0x10c   : > { %v465_v22 = vpop.xlane.xlu0 %464 }
 0x10d   : > { %v466_v23 = vsub.f32 %v460_v13, %v465_v22 }
 0x10f   : > { %v467_v24 = vmul.f32 1.442695, %v466_v23 }
 0x111   : > { %1014 = vpow2.f32 %v467_v24 }
 0x115   : > { %v677_v27 = vpop.f32.mrf.mxu0 }
 0x116   : > { %v678_v28 = vadd.f32 %v1010_v10, %v677_v27 }
 0x117   : > { %v1015_v25 = vpop.eup %1014 }
 0x118   : > { %v472_v26 = vpack.c.bf16 %v1015_v25, %v1015_v25  ;;  %v681_v29 = vsel %vm443_vm0, %v678_v28, -inf  ;;  %v469_v44 = vsel %vm443_vm0, %v1015_v25, 0.0 }
 0x119   : > { %682 = vmax.xlane.f32.xlu1 %v681_v29 }
 0x11a   : > { %959 = vmatmul.msk.bf16.vlgmr.msra.gmra.mxu1 %vm443_vm0, %v472_v26 }
 0x11d   : > { %v679_v32 = vpop.f32.mrf.mxu0 }
 0x11f   : > { %v518_v30 = vpop.permute.xlu0 %517 }
 0x120   : > { %v523_v31 = vsel %vm443_vm0, %v518_v30, 0 }
 0x121   : > { %532 = vmatpush.bf16.xpose.msra.mxu2 %v523_v31 }
 0x128   : > { %960 = vmatmul.msk.bf16.vlgmr.msra.gmra.mxu2 %vm443_vm0, %v513_v7 }
 0x12a   : > { %962 = vmatmul.msk.bf16.vlgmr.msrb.gmra.mxu1 %vm443_vm0, %v589_v33 }
 0x18c   : > { %v683_v49 = vpop.xlane.xlu1 %682 }
 0x18d   : > { %v684_v52 = vsub.f32 %v678_v28, %v683_v49  ;;  %v977_v49 = vld [vmem:[%s1232_s5] sm:$0xff] }
 0x18f   : > { %v685_v55 = vmul.f32 1.442695, %v684_v52 }
 0x197   : > { %v1170_v34 = vpop.f32.mrf.mxu1 }
 0x19f   : > { %v491_v35 = vpop.f32.mrf.mxu1 }
 0x1a7   : > { %v607_v36 = vpop.f32.mrf.mxu1 }
 0x1a8   : > { %v608_v37 = vadd.f32 %v1010_v10, %v607_v36 }
 0x1aa   : > { %v611_v38 = vsel %vm443_vm0, %v608_v37, -inf }
 0x1ab   : > { %612 = vmax.xlane.f32.xlu0 %v611_v38  ;;  %v534_v39 = vpop.f32.mrf.mxu2 }
 0x1ac   : > { %v535_v40 = vadd.f32 %v1010_v10, %v534_v39 }
 0x1ae   : > { %v538_v41 = vsel %vm443_vm0, %v535_v40, -inf }
 0x1af   : > { %539 = vmax.xlane.f32.xlu2 %v538_v41  ;;  %v609_v42 = vpop.f32.mrf.mxu1 }
 0x1b3   : > { %v536_v43 = vpop.f32.mrf.mxu2 }
 0x1bf   : > { %691 = vrot.lane.b32.xlu0 %v550_v20, %s1059_s24 }
 0x1c7   : > { %621 = vrot.lane.b32.xlu2 %v550_v20, %s1060_s25 }
 0x1e9   : > { %470 = vadd.xlane.f32.xlu0 %v469_v44 }
 0x21e   : > { %v613_v47 = vpop.xlane.xlu0 %612 }
 0x21f   : > { %v614_v48 = vsub.f32 %v608_v37, %v613_v47 }
 0x221   : > { %v615_v50 = vmul.f32 1.442695, %v614_v48  ;;  %v978_v48 = vld [vmem:[%s1232_s5 + $0x8] sm:$0xff] }
 0x222   : > { %v540_v51 = vpop.xlane.xlu2 %539  ;;  %773 = vmatpush.bf16.msra.mxu1 %v978_v48 }
 0x223   : > { %1016 = vpow2.f32 %v615_v50  ;;  %v541_v53 = vsub.f32 %v535_v40, %v540_v51 }
 0x225   : > { %v542_v54 = vmul.f32 1.442695, %v541_v53 }
 0x226   : > { %774 = vmatpush.bf16.msra.mxu1 %v977_v49 }
 0x227   : > { %1018 = vpow2.f32 %v542_v54 }
 0x228   : > { %1020 = vpow2.f32 %v685_v55 }
 0x229   : > { %v1017_v56 = vpop.eup %1016 }
 0x22a   : > { %v617_v57 = vsel %vm443_vm0, %v1017_v56, 0.0  ;;  %v622_v58 = vpop.permute.xlu2 %621  ;;  %v620_v4 = vpack.c.bf16 %v1017_v56, %v1017_v56 }
 0x22b   : > { %618 = vadd.xlane.f32.xlu2 %v617_v57  ;;  %v627_v59 = vsel %vm476_vm1, %v622_v58, 0 }
 0x22c   : > { %636 = vmatpush.bf16.msrb.mxu3 %v627_v59 }
 0x22d   : > { %v1019_v60 = vpop.eup %1018 }
 0x22e   : > { %v544_v61 = vsel %vm443_vm0, %v1019_v60, 0.0  ;;  %v547_v62 = vpack.c.bf16 %v1019_v60, %v1019_v60  ;;  %v1021_v63 = vpop.eup %1020 }
 0x22f   : > { %545 = vadd.xlane.f32.xlu1 %v544_v61  ;;  %v690_v2 = vpack.c.bf16 %v1021_v63, %v1021_v63  ;;  %v687_v3 = vsel %vm443_vm0, %v1021_v63, 0.0 }
 0x230   : > { %961 = vmatmul.msk.bf16.vlgmr.msra.gmra.mxu3 %vm443_vm0, %v547_v62 }
 0x231   : > { %v692_v0 = vpop.permute.xlu0 %691 }
 0x232   : > { %v697_v1 = vsel %vm476_vm1, %v692_v0, 0 }
 0x233   : > { %706 = vmatpush.bf16.msrb.mxu2 %v697_v1 }
 0x236   : > { %965 = vmatmul.msk.bf16.vlgmr.msrb.gmra.mxu2 %vm443_vm0, %v690_v2 }
 0x237   : > { %688 = vadd.xlane.f32.xlu1 %v687_v3 }
 0x240   : > { %963 = vmatmul.msk.bf16.vlgmr.msrb.gmra.mxu3 %vm443_vm0, %v620_v4 }
 0x25c   : > { %v471_v50 = vpop.xlane.xlu0 %470 }
 0x25d   : > { %v504_v56 = vand.u32 2147483648, %v471_v50  ;;  %vm498_vm15 = vweird.f32 %v471_v50  ;;  %v502_v57 = vand.u32 2147483647, %v471_v50 }
 0x25f   : > { %v505_v60 = vor.u32 1.1754944e-38, %v504_v56 }
 0x29e   : > { %v619_v6 = vpop.xlane.xlu2 %618 }
 0x29f   : > { %v653_v39 = vand.u32 2147483648, %v619_v6  ;;  %vm647_vm11 = vweird.f32 %v619_v6  ;;  %v651_v40 = vand.u32 2147483647, %v619_v6 }
 0x2a1   : > { %v654_v43 = vor.u32 1.1754944e-38, %v653_v39  ;;  %vm652_vm13 = vcmp.eq.f32.partialorder %v651_v40, 8.507059e+37 }
 0x2a2   : > { %v546_v5 = vpop.xlane.xlu1 %545 }
 0x2a3   : > { %1022 = vrcp.f32 %v546_v5  ;;  %v583_v12 = vand.u32 2147483648, %v546_v5  ;;  %v581_v14 = vand.u32 2147483647, %v546_v5  ;;  %vm577_vm3 = vweird.f32 %v546_v5 }
 0x2a4   : > { %1024 = vrcp.f32 %v619_v6 }
 0x2a5   : > { %v584_v18 = vor.u32 1.1754944e-38, %v583_v12  ;;  %vm582_vm5 = vcmp.eq.f32.partialorder %v581_v14, 8.507059e+37 }
 0x2a9   : > { %v1023_v7 = vpop.eup %1022 }
 0x2aa   : > { %v573_v8 = vmul.f32 %v1023_v7, %v546_v5  ;;  %v689_v9 = vpop.xlane.xlu1 %688  ;;  %v1025_v11 = vpop.eup %1024  ;;  %vm578_vm2 = vweird.f32 %v1023_v7  ;;  %v745_v5 = vld [vmem:[%s427_s22] sm:$0xff] }
 0x2ab   : > { %1026 = vrcp.f32 %v689_v9  ;;  %v643_v15 = vmul.f32 %v1025_v11, %v619_v6  ;;  %vm579_vm4 = vmor %vm577_vm3, %vm578_vm2  ;;  %v723_v26 = vand.u32 2147483648, %v689_v9  ;;  %v721_v28 = vand.u32 2147483647, %v689_v9 }
 0x2ac   : > { %v574_v10 = vsub.f32 1.0, %v573_v8  ;;  %vm717_vm7 = vweird.f32 %v689_v9  ;;  %vm648_vm10 = vweird.f32 %v1025_v11  ;;  %1028 = vrcp.f32 %v471_v50 }
 0x2ad   : > { %v644_v23 = vsub.f32 1.0, %v643_v15  ;;  %v724_v32 = vor.u32 1.1754944e-38, %v723_v26  ;;  %vm722_vm9 = vcmp.eq.f32.partialorder %v721_v28, 8.507059e+37  ;;  %vm649_vm12 = vmor %vm647_vm11, %vm648_vm10  ;;  %vm503_vm2 = vcmp.eq.f32.partialorder %v502_v57, 8.507059e+37 }
 0x2ae   : > { %v575_v13 = vmul.f32 %v1023_v7, %v574_v10  ;;  %vm741_vm3 = vcmask 130048  }
 0x2af   : > { %v645_v30 = vmul.f32 %v1025_v11, %v644_v23 }
 0x2b0   : > { %v576_v16 = vadd.f32 %v1023_v7, %v575_v13 }
 0x2b1   : > { %v1027_v17 = vpop.eup %1026  ;;  %v646_v38 = vadd.f32 %v1025_v11, %v645_v30 }
 0x2b2   : > { %v713_v19 = vmul.f32 %v1027_v17, %v689_v9  ;;  %v580_v20 = vsel %vm579_vm4, %v1023_v7, %v576_v16  ;;  %vm718_vm6 = vweird.f32 %v1027_v17  ;;  %v1029_v51 = vpop.eup %1028  ;;  %vm743_vm4 = vcmask 195584  }
 0x2b3   : > { %v568_v21 = vpop.f32.mrf.mxu3  ;;  %v585_v22 = vsel %vm582_vm5, %v584_v18, %v580_v20  ;;  %vm719_vm8 = vmor %vm717_vm7, %vm718_vm6  ;;  %v650_v41 = vsel %vm649_vm12, %v1025_v11, %v646_v38  ;;  %v494_v52 = vmul.f32 %v1029_v51, %v471_v50  ;;  %vm499_vm14 = vweird.f32 %v1029_v51 }
 0x2b4   : > { %v714_v24 = vsub.f32 1.0, %v713_v19  ;;  %v587_v25 = vmul.f32 %v585_v22, %v568_v21  ;;  %v655_v45 = vsel %vm652_vm13, %v654_v43, %v650_v41  ;;  %vm500_vm1 = vmor %vm498_vm15, %vm499_vm14  ;;  %vm763_vm5 = vcmask 261120  }
 0x2b5   : > { %v495_v53 = vsub.f32 1.0, %v494_v52  ;;  %v1064_v11 = vmov 32.0  }
 0x2b6   : > { %729 = vrot.lane.b32.xlu1 %v587_v25, %s1061_s29  ;;  %v715_v27 = vmul.f32 %v1027_v17, %v714_v24  ;;  %1030 = vrcp.f32 %v1064_v11 }
 0x2b7   : > { %v496_v54 = vmul.f32 %v1029_v51, %v495_v53 }
 0x2b8   : > { %v716_v29 = vadd.f32 %v1027_v17, %v715_v27 }
 0x2b9   : > { %v708_v31 = vpop.f32.mrf.mxu2  ;;  %v497_v55 = vadd.f32 %v1029_v51, %v496_v54 }
 0x2ba   : > { %v720_v33 = vsel %vm719_vm8, %v1027_v17, %v716_v29 }
 0x2bb   : > { %v725_v35 = vsel %vm722_vm9, %v724_v32, %v720_v33  ;;  %v570_v36 = vpop.f32.mrf.mxu3  ;;  %v501_v59 = vsel %vm500_vm1, %v1029_v51, %v497_v55  ;;  %v1012_v32 = vld [vmem:[%s1234_s7] ss:$0 sm:$0xff] }
 0x2bc   : > { %v727_v37 = vmul.f32 %v725_v35, %v708_v31  ;;  %v506_v61 = vsel %vm503_vm2, %v505_v60, %v501_v59  ;;  %v1031_v12 = vpop.eup %1030  ;;  %v1013_v35 = vld [vmem:[%s1235_s8] ss:$0 sm:$0xff] }
 0x2bd   : > { %v508_v62 = vmul.f32 %v506_v61, %v1170_v34  ;;  %v1011_v34 = vld [vmem:[%s1233_s6] ss:$0 sm:$0xff]  ;;  %v792_v13 = vmul.f32 32.0, %v1031_v12 }
 0x2be   : > { %737 = vrot.lane.b32.xlu2 %v727_v37, %s1062_s13 }
 0x2bf   : > { %v793_v14 = vsub.f32 1.0, %v792_v13 }
 0x2c1   : > { %v710_v42 = vpop.f32.mrf.mxu2  ;;  %v794_v15 = vmul.f32 %v1031_v12, %v793_v14 }
 0x2c3   : > { %v638_v44 = vpop.f32.mrf.mxu3  ;;  %v795_v16 = vadd.f32 %v1031_v12, %v794_v15 }
 0x2c4   : > { %v657_v46 = vmul.f32 %v655_v45, %v638_v44 }
 0x2c6   : > { %733 = vrot.lane.b32.xlu1 %v657_v46, %s1063_s14  ;;  %s434_s14 = scalar_lea.vmem %s1236_s9, %s956_s19 }
 0x2cb   : > { %v640_v47 = vpop.f32.mrf.mxu3 }
 0x318   : > { %v738_v1 = vpop.permute.xlu2 %737 }
 0x328   : > { %v730_v58 = vpop.permute.xlu1 %729 }
 0x329   : > { %v740_v63 = vsel %vm443_vm0, %v508_v62, %v730_v58  ;;  %vm796_vm0 = vweird.f32 %v1031_v12 }
 0x32a   : > { %v797_v17 = vsel %vm796_vm0, %v1031_v12, %v795_v16 }
 0x338   : > { %v734_v0 = vpop.permute.xlu1 %733 }
 0x339   : > { %v742_v2 = vsel %vm741_vm3, %v740_v63, %v734_v0 }
 0x33a   : > { %v744_v3 = vsel %vm743_vm4, %v742_v2, %v738_v1 }
 0x33b   : > { %v750_v4 = vpack.c.bf16 %v744_v3, %v744_v3 }
 0x33d   : > { %974 = vmatmul.msk.bf16.vlgmr.msra.gmra.mxu1 %vm763_vm5, %v750_v4 }
 0x3ba   : > { %v776_v6 = vpop.f32.mrf.mxu1 }
 0x3bb   : > { %v780_v7 = vadd.f32 %v776_v6, %v745_v5 }
 0x3bd   : > { %v785_v8 = vadd.f32 %v1011_v34, %v780_v7 }
 0x3bf   : > { %v788_v9 = vsel %vm763_vm5, %v785_v8, 0.0 }
 0x3c0   : > { %789 = vadd.xlane.f32.xlu1 %v788_v9 }
 0x3c2   : > { %v778_v10 = vpop.f32.mrf.mxu1 }
 0x433   : > { %v790_v18 = vpop.xlane.xlu1 %789 }
 0x434   : > { %v798_v19 = vmul.f32 %v797_v17, %v790_v18 }
 0x436   : > { %v799_v20 = vsub.f32 %v785_v8, %v798_v19 }
 0x438   : > { %v800_v21 = vmul.f32 %v799_v20, %v799_v20 }
 0x43a   : > { %v801_v22 = vsel %vm763_vm5, %v800_v21, 0.0 }
 0x43b   : > { %802 = vadd.xlane.f32.xlu0 %v801_v22 }
 0x4ae   : > { %v803_v23 = vpop.xlane.xlu0 %802 }
 0x4af   : > { %v804_v24 = vmul.f32 %v803_v23, %v797_v17 }
 0x4b1   : > { %v805_v25 = vadd.f32 1e-05, %v804_v24 }
 0x4b3   : > { %1032 = vrsqrt.f32 %v805_v25  ;;  %vm812_vm7 = vweird.f32 %v805_v25 }
 0x4b9   : > { %v1033_v26 = vpop.eup %1032 }
 0x4ba   : > { %v807_v27 = vmul.f32 %v1033_v26, %v805_v25  ;;  %vm813_vm6 = vweird.f32 %v1033_v26 }
 0x4bb   : > { %vm814_vm8 = vmor %vm812_vm7, %vm813_vm6 }
 0x4bc   : > { %v808_v28 = vmul.f32 %v1033_v26, %v807_v27 }
 0x4be   : > { %v809_v29 = vmul.f32 0.5, %v808_v28 }
 0x4c0   : > { %v810_v30 = vsub.f32 1.5, %v809_v29 }
 0x4c2   : > { %v811_v31 = vmul.f32 %v1033_v26, %v810_v30 }
 0x4c4   : > { %v815_v33 = vsel %vm814_vm8, %v1033_v26, %v811_v31 }
 0x4c5   : > { %v816_v36 = vmul.f32 %v815_v33, %v799_v20 }
 0x4c7   : > { %v820_v37 = vmul.f32 %v1012_v32, %v816_v36 }
 0x4c9   : > { %v824_v38 = vadd.f32 %v1013_v35, %v820_v37 }
 0x4cb   : > { %825 = vst.msk [vmem:[%s434_s14] sm:$0xff] %vm763_vm5, %v824_v38 }
 0x4cc PF: > { %s19_s11 = sadd.s32 1, %s1056_s11   ;;  %s1237_s30 = smov %s1052_s10 }
 0x4cd   : > { %p16_p5 = scmp.ge.s32.totalorder %s19_s11, 4   ;;  %s1238_s10 = smov %s1240_s12 }
 0x4cf   :  { %18 = sbr.rel (!%p16_p5) target bundleno = 2 (0x2), region = 98 }

// kernel: sep_transformer_forward.42
= control target key start
LH: loop header
LB: loop body
LE: loop exit
PB: predicated region body
PF: predicated region fallthrough
CT: control target
= control target key end

     0   :  { %9 = vsyncpa [#allocation3], 0  ;;  %s130_s18 = smov [#allocation2]   ;;  %s131_s20 = smov 64   ;;  %s182_s0 = inlined_call_operand.vmem [shape: f32[16,32], index: 0, kind: input, shape index: {}]   ;;  %s183_s1 = inlined_call_operand.vmem [shape: f32[16,32], index: 1, kind: input, shape index: {}]   ;;  %s184_s2 = inlined_call_operand.hbm [shape: bf16[32,32], index: 2, kind: input, shape index: {}]   ;;  %s185_s3 = inlined_call_operand.vmem [shape: f32[1,32], index: 3, kind: input, shape index: {}]   ;;  %s186_s4 = inlined_call_operand.vmem [shape: bf16[16,32], index: 4, kind: output, shape index: {}]  }
   0x1   :  { %s18_s17 = sshll.u32 %s184_s2, 4  ;;  %s20_s19 = sshll.u32 %s130_s18, 4  ;;  %s19_s17 = int_to_ptr.hbm [resolvable:$true] %s18_s17  ;;  %s21_s19 = int_to_ptr.vmem [resolvable:$true] %s20_s19 }
   0x2   :  { %s132_s21 = smov 4  }
   0x3   :  { %26 = dma.hbm_to_vmem [thread:$0]  %s19_s17, 256, %s21_s19, [#allocation3], %s131_s20, %s131_s20, %s132_s21  }
   0x4   :  { %128 = dma.done.wait [#allocation3], 256  }
   0x5   :  { %129 = vsyncadd [#allocation3], 4294967040  ;;  %v99_v0 = vld [vmem:[#allocation2 + $0x8] sm:$0xff]  ;;  %v34_v1 = vld [vmem:[%s182_s0] sm:$0xff]  ;;  %vm61_vm0 = vcmask 261120   ;;  %vm81_vm1 = vcmask 257024  }
   0x6   :  { %v35_v2 = vld [vmem:[%s182_s0 + $0x8] sm:$0xff]  ;;  %v36_v3 = vld [vmem:[%s183_s1] sm:$0xff]  ;;  %71 = vmatpush.bf16.msra.mxu0 %v99_v0 }
   0x7   :  { %v37_v4 = vld [vmem:[%s183_s1 + $0x8] sm:$0xff]  ;;  %v98_v5 = vld [vmem:[#allocation2] sm:$0xff]  ;;  %v38_v6 = vadd.f32 %v36_v3, %v34_v1 }
   0x8   :  { %v39_v7 = vadd.f32 %v37_v4, %v35_v2  ;;  %v103_v9 = vld [vmem:[%s185_s3] ss:$0 sm:$0xff] }
   0xa   :  { %v44_v8 = vpack.c.bf16 %v39_v7, %v38_v6  ;;  %72 = vmatpush.bf16.msra.mxu0 %v98_v5 }
   0xd   :  { %97 = vmatmul.msk.bf16.vlgmr.msra.gmra.mxu0 %vm61_vm0, %v44_v8 }
  0x8a   :  { %v74_v10 = vpop.f32.mrf.mxu0 }
  0x8b   :  { %v75_v11 = vadd.f32 %v103_v9, %v74_v10 }
  0x8d   :  { %v79_v12 = vpack.c.bf16 %v75_v11, %v75_v11 }
  0x8f   :  { %82 = vst.msk [vmem:[%s186_s4] sm:$0xf] %vm81_vm1, %v79_v12 }
  0x92   :  { %v76_v13 = vpop.f32.mrf.mxu0 }
  0x93   :  { %v77_v14 = vadd.f32 %v103_v9, %v76_v13 }
  0x95   :  { %v80_v15 = vpack.c.bf16 %v77_v14, %v77_v14 }
  0x97   :  { %83 = vst.msk [vmem:[%s186_s4 + $0x4] sm:$0xf] %vm81_vm1, %v80_v15 }
  0x98   :  { %88 = vsyncpa [#allocation3], 1 }

// kernel: sep_transformer_forward.49
= control target key start
LH: loop header
LB: loop body
LE: loop exit
PB: predicated region body
PF: predicated region fallthrough
CT: control target
= control target key end

     0   :  { %9 = vsyncpa [#allocation3], 0  ;;  %s225_s0 = inlined_call_operand.vmem [shape: f32[16,32], index: 0, kind: input, shape index: {}]   ;;  %s226_s1 = inlined_call_operand.vmem [shape: f32[16,32], index: 1, kind: input, shape index: {}]   ;;  %s227_s2 = inlined_call_operand.hbm [shape: bf16[32,32], index: 2, kind: input, shape index: {}]   ;;  %s228_s3 = inlined_call_operand.hbm [shape: f32[1,32], index: 3, kind: input, shape index: {}]   ;;  %s229_s4 = inlined_call_operand.vmem [shape: bf16[16,32], index: 4, kind: output, shape index: {}]  }
   0x1   :  { %s19_s17 = sshll.u32 %s227_s2, 4  ;;  %s20_s17 = int_to_ptr.hbm [resolvable:$true] %s19_s17 }
   0x2   :  { %10 = vsyncpa [#allocation5], 0  ;;  %s172_s18 = smov [#allocation2]   ;;  %s33_s22 = sshll.u32 %s228_s3, 4  ;;  %s34_s22 = int_to_ptr.hbm [resolvable:$true] %s33_s22 }
   0x3   :  { %s21_s19 = sshll.u32 %s172_s18, 4  ;;  %s173_s23 = smov 64   ;;  %s22_s19 = int_to_ptr.vmem [resolvable:$true] %s21_s19 }
   0x4   :  { %s174_s24 = smov 4   ;;  %s175_s25 = smov [#allocation4]  }
   0x5   :  { %27 = dma.hbm_to_vmem [thread:$0]  %s20_s17, 256, %s22_s19, [#allocation3], %s173_s23, %s173_s23, %s174_s24  }
   0x6   :  { %s35_s26 = sshll.u32 %s175_s25, 4  ;;  %s36_s26 = int_to_ptr.vmem [resolvable:$true] %s35_s26 }
   0x7   :  { %38 = dma.hbm_to_vmem [thread:$0]  %s34_s22, 16, %s36_s26, [#allocation5]  }
   0x8   :  { %168 = dma.done.wait [#allocation3], 256  }
   0x9   :  { %169 = vsyncadd [#allocation3], 4294967040 }
   0xa   :  { %170 = dma.done.wait [#allocation5], 16  }
   0xb   :  { %171 = vsyncadd [#allocation5], 4294967280  ;;  %v114_v0 = vld [vmem:[#allocation2 + $0x8] sm:$0xff]  ;;  %v48_v1 = vld [vmem:[%s225_s0] sm:$0xff]  ;;  %vm75_vm0 = vcmask 261120   ;;  %vm95_vm1 = vcmask 257024  }
   0xc   :  { %v49_v2 = vld [vmem:[%s225_s0 + $0x8] sm:$0xff]  ;;  %v50_v3 = vld [vmem:[%s226_s1] sm:$0xff]  ;;  %85 = vmatpush.bf16.msra.mxu0 %v114_v0  ;;  %v119_v9 = vld [vmem:[#allocation4] ss:$0 sm:$0xff] }
   0xd   :  { %v51_v4 = vld [vmem:[%s226_s1 + $0x8] sm:$0xff]  ;;  %v113_v5 = vld [vmem:[#allocation2] sm:$0xff]  ;;  %v52_v6 = vadd.f32 %v50_v3, %v48_v1 }
   0xe   :  { %v53_v7 = vadd.f32 %v51_v4, %v49_v2 }
  0x10   :  { %v58_v8 = vpack.c.bf16 %v53_v7, %v52_v6  ;;  %86 = vmatpush.bf16.msra.mxu0 %v113_v5 }
  0x13   :  { %112 = vmatmul.msk.bf16.vlgmr.msra.gmra.mxu0 %vm75_vm0, %v58_v8 }
  0x90   :  { %v88_v10 = vpop.f32.mrf.mxu0 }
  0x91   :  { %v89_v11 = vadd.f32 %v119_v9, %v88_v10 }
  0x93   :  { %v93_v12 = vpack.c.bf16 %v89_v11, %v89_v11 }
  0x95   :  { %96 = vst.msk [vmem:[%s229_s4] sm:$0xf] %vm95_vm1, %v93_v12 }
  0x98   :  { %v90_v13 = vpop.f32.mrf.mxu0 }
  0x99   :  { %v91_v14 = vadd.f32 %v119_v9, %v90_v13 }
  0x9b   :  { %v94_v15 = vpack.c.bf16 %v91_v14, %v91_v14 }
  0x9d   :  { %97 = vst.msk [vmem:[%s229_s4 + $0x4] sm:$0xf] %vm95_vm1, %v94_v15 }
  0x9e   :  { %102 = vsyncpa [#allocation3], 1 }
  0x9f   :  { %103 = vsyncpa [#allocation5], 1 }

// kernel: sep_transformer_forward.44
= control target key start
LH: loop header
LB: loop body
LE: loop exit
PB: predicated region body
PF: predicated region fallthrough
CT: control target
= control target key end

     0   :  { %14 = vsyncpa [#allocation3], 0  ;;  %s1214_s30 = smov 0   ;;  %s1216_s10 = smov 0   ;;  %s1313_s0 = inlined_call_operand.vmem [shape: bf16[2,8,32], index: 0, kind: input, shape index: {}]   ;;  %s1314_s1 = inlined_call_operand.vmem [shape: bf16[2,16,32], index: 1, kind: input, shape index: {}]   ;;  %s1315_s2 = inlined_call_operand.vmem [shape: bf16[2,16,32], index: 2, kind: input, shape index: {}]   ;;  %s1316_s3 = inlined_call_operand.vmem [shape: f32[2,1,16], index: 3, kind: input, shape index: {}]   ;;  %s1317_s4 = inlined_call_operand.vmem [shape: f32[2,8,32], index: 4, kind: input, shape index: {}]   ;;  %s1318_s5 = inlined_call_operand.hbm [shape: bf16[32,32], index: 5, kind: input, shape index: {}]   ;;  %s1319_s6 = inlined_call_operand.vmem [shape: f32[1,32], index: 6, kind: input, shape index: {}]   ;;  %s1320_s7 = inlined_call_operand.vmem [shape: f32[1,32], index: 7, kind: input, shape index: {}]   ;;  %s1321_s8 = inlined_call_operand.vmem [shape: f32[1,32], index: 8, kind: input, shape index: {}]   ;;  %s1322_s9 = inlined_call_operand.vmem [shape: f32[2,8,32], index: 9, kind: output, shape index: {}]  }
   0x1   :  { %s1218_s11 = smov 0  }
   0x2 LB: > { %s981_s12 = sadd.s32 4294967295, %s1152_s11   ;;  %s32_s13 = sadd.s32 1, %s1148_s10  ;;  %s1152_s11 = sphi %s1218_s11, %s20_s11   ;;  %s1148_s10 = sphi %s1216_s10, %s1324_s10   ;;  %s1144_s30 = sphi %s1214_s30, %s1323_s30  }
   0x3   : > { %p34_p0 = scmp.ge.s32.totalorder %s32_s13, 2  ;;  %p983_p1 = scmp.ge.s32.totalorder %s1152_s11, 1 }
   0x4   : > { %p283_p2 = scmp.lt.s32.totalorder %s1152_s11, 3  ;;  %p1036_p4 = scmp.eq.s32.totalorder %s981_s12, 0 }
   0x5   : > { %s1326_s13 = smov (%p34_p0, %s32_s13), 0  ;;  %s294_s16 = sshll.u32 %s1318_s5, 4  ;;  %s295_s16 = int_to_ptr.hbm [resolvable:$true] %s294_s16 }
   0x6   : > { %p284_p3 = pnand %p983_p1, %p283_p2  ;;  %s1154_s17 = smov [#allocation2]  }
   0x7   : > { %s296_s18 = sshll.u32 %s1154_s17, 4  ;;  %s1155_s19 = smov 64   ;;  %s297_s18 = int_to_ptr.vmem [resolvable:$true] %s296_s18 }
   0x8   : > { %p1032_p5 = pneg %p284_p3  ;;  %s1156_s20 = smov 4  }
   0x9   : > { %363 = sbr.rel (%p284_p3) target bundleno = 1233 (0x4d1), region = 56 }
   0xa   : > { %p1033_p6 = pnand %p1036_p4, %p1032_p5 }
   0xc   : > { %1035 = dma.hbm_to_vmem [thread:$0]  (!%p1033_p6), %s295_s16, 256, %s297_s18, [#allocation3], %s1155_s19, %s1155_s19, %s1156_s20  }
   0xe   : > { %1139 = dma.done.wait (%p1036_p4), [#allocation3], 256  }
   0xf   : > { %1141 = vsyncadd (%p1036_p4), [#allocation3], 4294967040  ;;  %p424_p7 = scmp.lt.s32.totalorder %s1144_s30, 1  ;;  %vm473_vm0 = vcmask 64512   ;;  %s1157_s15 = smov 104   ;;  %vm493_vm1 = vcmask 130048  }
  0x10   : > { %s1158_s16 = smov 120   ;;  %s1159_s17 = smov 112  }
  0x11   : > { %s1328_s30 = smov (!%p424_p7, %s1144_s30), 1  ;;  %s1160_s20 = smov 8  }
  0x12   : > { %s1236_s21 = sshll.u32 %s1328_s30, 3  ;;  %s988_s22 = sshll.u32 %s1328_s30, 2 }
  0x13   : > { %s435_s25 = scalar_lea.vmem %s1314_s1, %s1236_s21  ;;  %s430_s28 = scalar_lea.vmem %s1313_s0, %s988_s22 }
  0x14   : > { %s443_s14 = scalar_lea.vmem %s1316_s3, %s1328_s30  ;;  %v1024_v0 = vld [vmem:[%s435_s25] sm:$0xff]  ;;  %s440_s19 = scalar_lea.vmem %s1315_s2, %s1236_s21 }
  0x15   : > { %v459_v1 = vld [vmem:[%s430_s28] sm:$0xf]  ;;  %v478_v3 = vsel %vm473_vm0, %v1024_v0, 0  ;;  %683 = vrot.lane.b32.xlu2 %v1024_v0, %s1157_s15  ;;  %s1161_s22 = smov 24   ;;  %s1162_s23 = smov 16  }
  0x16   : > { %v543_v2 = vunpack.c.l.b16 %v459_v1  ;;  %487 = vmatpush.bf16.xpose.msra.mxu0 %v478_v3  ;;  %v1072_v8 = vld [vmem:[%s443_s14] ss:$0 sm:$0xff]  ;;  %s450_s26 = scalar_lea.vmem %s1317_s4, %s1236_s21  ;;  %s457_s30 = scalar_lea.vmem %s1322_s9, %s1236_s21 }
  0x17   : > { %v1025_v15 = vld [vmem:[%s440_s19] sm:$0xff] }
  0x18   : > { %v544_v4 = vpack.c.b16 %v543_v2, %v543_v2  ;;  %520 = vmatpush.bf16.msra.mxu1 %v1025_v15 }
  0x1a   : > { %545 = vrot.lane.b32.xlu1 %v544_v4, %s1158_s16 }
  0x1d   : > { %999 = vmatmul.msk.bf16.vlgmr.msra.gmra.mxu0 %vm473_vm0, %v459_v1  ;;  %613 = vrot.lane.b32.xlu2 %v544_v4, %s1159_s17 }
  0x22   : > { %615 = vrot.lane.b32.xlu1 %v1024_v0, %s1159_s17 }
  0x2a   : > { %681 = vrot.lane.b32.xlu1 %v544_v4, %s1157_s15 }
  0x32   : > { %578 = vrot.lane.b32.xlu1 %v1025_v15, %s1158_s16 }
  0x6f   : > { %v684_v6 = vpop.permute.xlu2 %683 }
  0x70   : > { %v689_v7 = vsel %vm473_vm0, %v684_v6, 0 }
  0x71   : > { %698 = vmatpush.bf16.xpose.msrb.mxu0 %v689_v7 }
  0x77   : > { %v614_v28 = vpop.permute.xlu2 %613 }
  0x8c   : > { %v546_v5 = vpop.permute.xlu1 %545 }
  0x94   : > { %v616_v10 = vpop.permute.xlu1 %615 }
  0x95   : > { %v621_v16 = vsel %vm473_vm0, %v616_v10, 0 }
  0x96   : > { %630 = vmatpush.bf16.xpose.msrb.mxu1 %v621_v16 }
  0x9a   : > { %v489_v9 = vpop.f32.mrf.mxu0 }
  0x9b   : > { %v490_v11 = vadd.f32 %v1072_v8, %v489_v9 }
  0x9c   : > { %v682_v14 = vpop.permute.xlu1 %681 }
  0x9d   : > { %v494_v12 = vsel %vm493_vm1, %v490_v11, -inf  ;;  %1009 = vmatmul.msk.bf16.vlgmr.msrb.gmra.mxu0 %vm473_vm0, %v682_v14 }
  0x9e   : > { %495 = vmax.xlane.f32.xlu0 %v494_v12 }
  0xa2   : > { %v491_v13 = vpop.f32.mrf.mxu0 }
  0xa4   : > { %v579_v31 = vpop.permute.xlu1 %578 }
  0xa5   : > { %591 = vmatpush.bf16.msra.mxu3 %v579_v31 }
  0xb2   : > { %547 = vrot.lane.b32.xlu0 %v1024_v0, %s1158_s16 }
 0x111   : > { %v496_v17 = vpop.xlane.xlu0 %495 }
 0x112   : > { %v497_v18 = vsub.f32 %v490_v11, %v496_v17 }
 0x114   : > { %v498_v19 = vmul.f32 1.442695, %v497_v18 }
 0x116   : > { %1076 = vpow2.f32 %v498_v19 }
 0x11a   : > { %v700_v22 = vpop.f32.mrf.mxu0 }
 0x11b   : > { %v701_v23 = vadd.f32 %v1072_v8, %v700_v22 }
 0x11c   : > { %v1077_v20 = vpop.eup %1076 }
 0x11d   : > { %v503_v21 = vpack.c.bf16 %v1077_v20, %v1077_v20  ;;  %v704_v24 = vsel %vm493_vm1, %v701_v23, -inf  ;;  %v500_v40 = vsel %vm493_vm1, %v1077_v20, 0.0 }
 0x11e   : > { %705 = vmax.xlane.f32.xlu1 %v704_v24 }
 0x11f   : > { %1004 = vmatmul.msk.bf16.vlgmr.msra.gmra.mxu1 %vm493_vm1, %v503_v21 }
 0x122   : > { %v702_v27 = vpop.f32.mrf.mxu0 }
 0x124   : > { %v548_v25 = vpop.permute.xlu0 %547 }
 0x125   : > { %v553_v26 = vsel %vm473_vm0, %v548_v25, 0 }
 0x126   : > { %562 = vmatpush.bf16.xpose.msra.mxu2 %v553_v26 }
 0x12d   : > { %1005 = vmatmul.msk.bf16.vlgmr.msra.gmra.mxu2 %vm473_vm0, %v546_v5 }
 0x12f   : > { %1007 = vmatmul.msk.bf16.vlgmr.msrb.gmra.mxu1 %vm473_vm0, %v614_v28 }
 0x191   : > { %v706_v42 = vpop.xlane.xlu1 %705 }
 0x192   : > { %v707_v45 = vsub.f32 %v701_v23, %v706_v42 }
 0x194   : > { %v708_v49 = vmul.f32 1.442695, %v707_v45 }
 0x19c   : > { %v1267_v29 = vpop.f32.mrf.mxu1 }
 0x1a4   : > { %v524_v30 = vpop.f32.mrf.mxu1 }
 0x1ac   : > { %v632_v32 = vpop.f32.mrf.mxu1 }
 0x1ad   : > { %v633_v33 = vadd.f32 %v1072_v8, %v632_v32 }
 0x1af   : > { %v636_v34 = vsel %vm493_vm1, %v633_v33, -inf }
 0x1b0   : > { %637 = vmax.xlane.f32.xlu0 %v636_v34  ;;  %v564_v35 = vpop.f32.mrf.mxu2 }
 0x1b1   : > { %v565_v36 = vadd.f32 %v1072_v8, %v564_v35 }
 0x1b3   : > { %v568_v37 = vsel %vm493_vm1, %v565_v36, -inf }
 0x1b4   : > { %569 = vmax.xlane.f32.xlu2 %v568_v37  ;;  %v634_v38 = vpop.f32.mrf.mxu1 }
 0x1b8   : > { %v566_v39 = vpop.f32.mrf.mxu2 }
 0x1c4   : > { %714 = vrot.lane.b32.xlu0 %v1025_v15, %s1157_s15 }
 0x1cc   : > { %646 = vrot.lane.b32.xlu2 %v1025_v15, %s1159_s17 }
 0x1ee   : > { %501 = vadd.xlane.f32.xlu0 %v500_v40  ;;  %v1027_v40 = vld [vmem:[#allocation2 + $0x8] sm:$0xff] }
 0x1ef   : > { %793 = vmatpush.bf16.msra.mxu1 %v1027_v40 }
 0x223   : > { %v638_v41 = vpop.xlane.xlu0 %637 }
 0x224   : > { %v639_v43 = vsub.f32 %v633_v33, %v638_v41  ;;  %v1026_v41 = vld [vmem:[#allocation2] sm:$0xff] }
 0x225   : > { %794 = vmatpush.bf16.msra.mxu1 %v1026_v41 }
 0x226   : > { %v640_v44 = vmul.f32 1.442695, %v639_v43 }
 0x227   : > { %v570_v46 = vpop.xlane.xlu2 %569 }
 0x228   : > { %1078 = vpow2.f32 %v640_v44  ;;  %v571_v47 = vsub.f32 %v565_v36, %v570_v46 }
 0x22a   : > { %v572_v48 = vmul.f32 1.442695, %v571_v47 }
 0x22c   : > { %1080 = vpow2.f32 %v572_v48 }
 0x22d   : > { %1082 = vpow2.f32 %v708_v49 }
 0x22e   : > { %v1079_v50 = vpop.eup %1078 }
 0x22f   : > { %v642_v51 = vsel %vm493_vm1, %v1079_v50, 0.0  ;;  %v647_v52 = vpop.permute.xlu2 %646  ;;  %v645_v60 = vpack.c.bf16 %v1079_v50, %v1079_v50 }
 0x230   : > { %643 = vadd.xlane.f32.xlu2 %v642_v51  ;;  %659 = vmatpush.bf16.msrb.mxu3 %v647_v52 }
 0x232   : > { %v1081_v53 = vpop.eup %1080 }
 0x233   : > { %v574_v54 = vsel %vm493_vm1, %v1081_v53, 0.0  ;;  %v577_v55 = vpack.c.bf16 %v1081_v53, %v1081_v53  ;;  %v1083_v56 = vpop.eup %1082 }
 0x234   : > { %575 = vadd.xlane.f32.xlu1 %v574_v54  ;;  %v713_v58 = vpack.c.bf16 %v1083_v56, %v1083_v56  ;;  %v710_v59 = vsel %vm493_vm1, %v1083_v56, 0.0 }
 0x235   : > { %1006 = vmatmul.msk.bf16.vlgmr.msra.gmra.mxu3 %vm493_vm1, %v577_v55 }
 0x236   : > { %v715_v57 = vpop.permute.xlu0 %714 }
 0x237   : > { %727 = vmatpush.bf16.msrb.mxu2 %v715_v57 }
 0x23a   : > { %1010 = vmatmul.msk.bf16.vlgmr.msrb.gmra.mxu2 %vm493_vm1, %v713_v58 }
 0x23c   : > { %711 = vadd.xlane.f32.xlu1 %v710_v59 }
 0x245   : > { %1008 = vmatmul.msk.bf16.vlgmr.msrb.gmra.mxu3 %vm493_vm1, %v645_v60 }
 0x261   : > { %v502_v42 = vpop.xlane.xlu0 %501 }
 0x262   : > { %v537_v48 = vand.u32 2147483648, %v502_v42  ;;  %vm531_vm15 = vweird.f32 %v502_v42  ;;  %v535_v49 = vand.u32 2147483647, %v502_v42 }
 0x264   : > { %v538_v52 = vor.u32 1.1754944e-38, %v537_v48 }
 0x2a3   : > { %v644_v62 = vpop.xlane.xlu2 %643 }
 0x2a4   : > { %v676_v31 = vand.u32 2147483648, %v644_v62  ;;  %vm670_vm11 = vweird.f32 %v644_v62  ;;  %v674_v32 = vand.u32 2147483647, %v644_v62 }
 0x2a6   : > { %v677_v35 = vor.u32 1.1754944e-38, %v676_v31  ;;  %vm675_vm13 = vcmp.eq.f32.partialorder %v674_v32, 8.507059e+37 }
 0x2a7   : > { %v576_v61 = vpop.xlane.xlu1 %575 }
 0x2a8   : > { %1084 = vrcp.f32 %v576_v61  ;;  %v608_v4 = vand.u32 2147483648, %v576_v61  ;;  %v606_v6 = vand.u32 2147483647, %v576_v61  ;;  %vm602_vm3 = vweird.f32 %v576_v61 }
 0x2a9   : > { %1086 = vrcp.f32 %v644_v62 }
 0x2aa   : > { %v609_v10 = vor.u32 1.1754944e-38, %v608_v4  ;;  %vm607_vm5 = vcmp.eq.f32.partialorder %v606_v6, 8.507059e+37 }
 0x2ae   : > { %v1085_v63 = vpop.eup %1084 }
 0x2af   : > { %v598_v0 = vmul.f32 %v1085_v63, %v576_v61  ;;  %v712_v1 = vpop.xlane.xlu1 %711  ;;  %v1087_v3 = vpop.eup %1086  ;;  %vm603_vm2 = vweird.f32 %v1085_v63  ;;  %v765_v61 = vld [vmem:[%s450_s26] sm:$0xff] }
 0x2b0   : > { %1088 = vrcp.f32 %v712_v1  ;;  %v666_v7 = vmul.f32 %v1087_v3, %v644_v62  ;;  %vm604_vm4 = vmor %vm602_vm3, %vm603_vm2  ;;  %v744_v18 = vand.u32 2147483648, %v712_v1  ;;  %v742_v20 = vand.u32 2147483647, %v712_v1 }
 0x2b1   : > { %v599_v2 = vsub.f32 1.0, %v598_v0  ;;  %vm738_vm7 = vweird.f32 %v712_v1  ;;  %vm671_vm10 = vweird.f32 %v1087_v3  ;;  %1090 = vrcp.f32 %v502_v42 }
 0x2b2   : > { %v667_v15 = vsub.f32 1.0, %v666_v7  ;;  %v745_v24 = vor.u32 1.1754944e-38, %v744_v18  ;;  %vm743_vm9 = vcmp.eq.f32.partialorder %v742_v20, 8.507059e+37  ;;  %vm672_vm12 = vmor %vm670_vm11, %vm671_vm10  ;;  %vm536_vm3 = vcmp.eq.f32.partialorder %v535_v49, 8.507059e+37 }
 0x2b3   : > { %v600_v5 = vmul.f32 %v1085_v63, %v599_v2 }
 0x2b4   : > { %v668_v23 = vmul.f32 %v1087_v3, %v667_v15 }
 0x2b5   : > { %v601_v8 = vadd.f32 %v1085_v63, %v600_v5 }
 0x2b6   : > { %v1089_v9 = vpop.eup %1088  ;;  %v669_v30 = vadd.f32 %v1087_v3, %v668_v23 }
 0x2b7   : > { %v734_v11 = vmul.f32 %v1089_v9, %v712_v1  ;;  %v605_v12 = vsel %vm604_vm4, %v1085_v63, %v601_v8  ;;  %vm739_vm6 = vweird.f32 %v1089_v9  ;;  %v1091_v43 = vpop.eup %1090  ;;  %vm763_vm4 = vcmask 195584  }
 0x2b8   : > { %v593_v13 = vpop.f32.mrf.mxu3  ;;  %v610_v14 = vsel %vm607_vm5, %v609_v10, %v605_v12  ;;  %vm740_vm8 = vmor %vm738_vm7, %vm739_vm6  ;;  %v673_v34 = vsel %vm672_vm12, %v1087_v3, %v669_v30  ;;  %v527_v44 = vmul.f32 %v1091_v43, %v502_v42  ;;  %vm532_vm14 = vweird.f32 %v1091_v43 }
 0x2b9   : > { %v735_v16 = vsub.f32 1.0, %v734_v11  ;;  %v612_v17 = vmul.f32 %v610_v14, %v593_v13  ;;  %v678_v37 = vsel %vm675_vm13, %v677_v35, %v673_v34  ;;  %vm533_vm2 = vmor %vm531_vm15, %vm532_vm14  ;;  %vm783_vm5 = vcmask 261120  }
 0x2ba   : > { %v528_v45 = vsub.f32 1.0, %v527_v44  ;;  %v1163_v3 = vmov 32.0  }
 0x2bb   : > { %750 = vrot.lane.b32.xlu1 %v612_v17, %s1160_s20  ;;  %v736_v19 = vmul.f32 %v1089_v9, %v735_v16  ;;  %1092 = vrcp.f32 %v1163_v3 }
 0x2bc   : > { %v529_v46 = vmul.f32 %v1091_v43, %v528_v45 }
 0x2bd   : > { %v729_v21 = vpop.f32.mrf.mxu2  ;;  %v737_v22 = vadd.f32 %v1089_v9, %v736_v19 }
 0x2be   : > { %v530_v47 = vadd.f32 %v1091_v43, %v529_v46 }
 0x2bf   : > { %v741_v25 = vsel %vm740_vm8, %v1089_v9, %v737_v22 }
 0x2c0   : > { %v746_v26 = vsel %vm743_vm9, %v745_v24, %v741_v25  ;;  %v595_v27 = vpop.f32.mrf.mxu3  ;;  %v534_v51 = vsel %vm533_vm2, %v1091_v43, %v530_v47  ;;  %v1074_v24 = vld [vmem:[%s1320_s7] ss:$0 sm:$0xff] }
 0x2c1   : > { %v748_v28 = vmul.f32 %v746_v26, %v729_v21  ;;  %v539_v53 = vsel %vm536_vm3, %v538_v52, %v534_v51  ;;  %v1093_v4 = vpop.eup %1092  ;;  %v1075_v26 = vld [vmem:[%s1321_s8] ss:$0 sm:$0xff] }
 0x2c2   : > { %v541_v54 = vmul.f32 %v539_v53, %v1267_v29  ;;  %v1073_v29 = vld [vmem:[%s1319_s6] ss:$0 sm:$0xff]  ;;  %v812_v5 = vmul.f32 32.0, %v1093_v4 }
 0x2c3   : > { %758 = vrot.lane.b32.xlu2 %v748_v28, %s1161_s22 }
 0x2c4   : > { %v813_v6 = vsub.f32 1.0, %v812_v5 }
 0x2c5   : > { %v731_v33 = vpop.f32.mrf.mxu2 }
 0x2c6   : > { %v814_v7 = vmul.f32 %v1093_v4, %v813_v6 }
 0x2c8   : > { %v661_v36 = vpop.f32.mrf.mxu3  ;;  %v815_v8 = vadd.f32 %v1093_v4, %v814_v7 }
 0x2c9   : > { %v680_v38 = vmul.f32 %v678_v37, %v661_v36 }
 0x2cb   : > { %754 = vrot.lane.b32.xlu1 %v680_v38, %s1162_s23 }
 0x2d0   : > { %v663_v39 = vpop.f32.mrf.mxu3 }
 0x31d   : > { %v759_v57 = vpop.permute.xlu2 %758 }
 0x32d   : > { %v751_v50 = vpop.permute.xlu1 %750 }
 0x32e   : > { %v761_v55 = vsel %vm473_vm0, %v541_v54, %v751_v50  ;;  %vm816_vm0 = vweird.f32 %v1093_v4 }
 0x32f   : > { %v817_v9 = vsel %vm816_vm0, %v1093_v4, %v815_v8 }
 0x33d   : > { %v755_v56 = vpop.permute.xlu1 %754 }
 0x33e   : > { %v762_v58 = vsel %vm493_vm1, %v761_v55, %v755_v56 }
 0x33f   : > { %v764_v59 = vsel %vm763_vm4, %v762_v58, %v759_v57 }
 0x340   : > { %v770_v60 = vpack.c.bf16 %v764_v59, %v764_v59 }
 0x342   : > { %1019 = vmatmul.msk.bf16.vlgmr.msra.gmra.mxu1 %vm783_vm5, %v770_v60 }
 0x3bf   : > { %v796_v62 = vpop.f32.mrf.mxu1 }
 0x3c0   : > { %v800_v63 = vadd.f32 %v796_v62, %v765_v61 }
 0x3c2   : > { %v805_v0 = vadd.f32 %v1073_v29, %v800_v63 }
 0x3c4   : > { %v808_v1 = vsel %vm783_vm5, %v805_v0, 0.0 }
 0x3c5   : > { %809 = vadd.xlane.f32.xlu1 %v808_v1 }
 0x3c7   : > { %v798_v2 = vpop.f32.mrf.mxu1 }
 0x438   : > { %v810_v10 = vpop.xlane.xlu1 %809 }
 0x439   : > { %v818_v11 = vmul.f32 %v817_v9, %v810_v10 }
 0x43b   : > { %v819_v12 = vsub.f32 %v805_v0, %v818_v11 }
 0x43d   : > { %v820_v13 = vmul.f32 %v819_v12, %v819_v12 }
 0x43f   : > { %v821_v14 = vsel %vm783_vm5, %v820_v13, 0.0 }
 0x440   : > { %822 = vadd.xlane.f32.xlu0 %v821_v14 }
 0x4b3   : > { %v823_v15 = vpop.xlane.xlu0 %822 }
 0x4b4   : > { %v824_v16 = vmul.f32 %v823_v15, %v817_v9 }
 0x4b6   : > { %v825_v17 = vadd.f32 1e-05, %v824_v16 }
 0x4b8   : > { %1094 = vrsqrt.f32 %v825_v17  ;;  %vm832_vm6 = vweird.f32 %v825_v17 }
 0x4be   : > { %v1095_v18 = vpop.eup %1094 }
 0x4bf   : > { %v827_v19 = vmul.f32 %v1095_v18, %v825_v17  ;;  %vm833_vm1 = vweird.f32 %v1095_v18 }
 0x4c0   : > { %vm834_vm7 = vmor %vm832_vm6, %vm833_vm1 }
 0x4c1   : > { %v828_v20 = vmul.f32 %v1095_v18, %v827_v19 }
 0x4c3   : > { %v829_v21 = vmul.f32 0.5, %v828_v20 }
 0x4c5   : > { %v830_v22 = vsub.f32 1.5, %v829_v21 }
 0x4c7   : > { %v831_v23 = vmul.f32 %v1095_v18, %v830_v22 }
 0x4c9   : > { %v835_v25 = vsel %vm834_vm7, %v1095_v18, %v831_v23 }
 0x4ca   : > { %v836_v27 = vmul.f32 %v835_v25, %v819_v12 }
 0x4cc   : > { %v840_v28 = vmul.f32 %v1074_v24, %v836_v27 }
 0x4ce   : > { %v844_v30 = vadd.f32 %v1075_v26, %v840_v28 }
 0x4d0   : > { %845 = vst.msk [vmem:[%s457_s30] sm:$0xff] %vm783_vm5, %v844_v30 }
 0x4d1 PF: > { %s20_s11 = sadd.s32 1, %s1152_s11   ;;  %s1323_s30 = smov %s1148_s10 }
 0x4d2   : > { %p17_p8 = scmp.ge.s32.totalorder %s20_s11, 4   ;;  %s1324_s10 = smov %s1326_s13 }
 0x4d4   :  { %19 = sbr.rel (!%p17_p8) target bundleno = 2 (0x2), region = 103 }
 0x4d9   :  { %871 = vsyncpa [#allocation3], 1 }
 0x4da   :  { %873 = vsyncpa [#allocation3 + $0x1], 1 }

// kernel: sep_transformer_forward.48
= control target key start
LH: loop header
LB: loop body
LE: loop exit
PB: predicated region body
PF: predicated region fallthrough
CT: control target
= control target key end

     0   :  { %14 = vsyncpa [#allocation3], 0  ;;  %s1405_s0 = inlined_call_operand.vmem [shape: bf16[2,8,32], index: 0, kind: input, shape index: {}]   ;;  %s1406_s1 = inlined_call_operand.vmem [shape: bf16[2,8,32], index: 1, kind: input, shape index: {}]   ;;  %s1407_s2 = inlined_call_operand.vmem [shape: bf16[2,8,32], index: 2, kind: input, shape index: {}]   ;;  %s1408_s3 = inlined_call_operand.vmem [shape: f32[2,1,8], index: 3, kind: input, shape index: {}]   ;;  %s1409_s4 = inlined_call_operand.vmem [shape: f32[2,8,32], index: 4, kind: input, shape index: {}]   ;;  %s1410_s5 = inlined_call_operand.hbm [shape: bf16[32,32], index: 5, kind: input, shape index: {}]   ;;  %s1411_s6 = inlined_call_operand.vmem [shape: f32[1,32], index: 6, kind: input, shape index: {}]   ;;  %s1412_s7 = inlined_call_operand.vmem [shape: f32[1,32], index: 7, kind: input, shape index: {}]   ;;  %s1413_s8 = inlined_call_operand.hbm [shape: f32[1,32], index: 8, kind: input, shape index: {}]   ;;  %s1414_s9 = inlined_call_operand.vmem [shape: f32[2,8,32], index: 9, kind: output, shape index: {}]  }
   0x1   :  { %15 = vsyncpa [#allocation5], 0  ;;  %s1269_s30 = smov 0   ;;  %s1271_s10 = smov 0  }
   0x2   :  { %s1273_s11 = smov 0  }
   0x3 LB: > { %s1003_s12 = sadd.s32 4294967295, %s1206_s11   ;;  %s33_s13 = sadd.s32 1, %s1202_s10  ;;  %s1206_s11 = sphi %s1273_s11, %s21_s11   ;;  %s1202_s10 = sphi %s1271_s10, %s1418_s10   ;;  %s1198_s30 = sphi %s1269_s30, %s1417_s30  }
   0x4   : > { %p35_p0 = scmp.ge.s32.totalorder %s33_s13, 2  ;;  %p1005_p1 = scmp.ge.s32.totalorder %s1206_s11, 1 }
   0x5   : > { %p284_p2 = scmp.lt.s32.totalorder %s1206_s11, 3  ;;  %p1294_p4 = scmp.eq.s32.totalorder %s1003_s12, 0 }
   0x6   : > { %s1420_s13 = smov (%p35_p0, %s33_s13), 0  ;;  %s295_s18 = sshll.u32 %s1410_s5, 4  ;;  %s296_s18 = int_to_ptr.hbm [resolvable:$true] %s295_s18 }
   0x7   : > { %p1290_p3 = pnand %p1005_p1, %p284_p2  ;;  %s1208_s19 = smov [#allocation2]  }
   0x8   : > { %s297_s20 = sshll.u32 %s1208_s19, 4  ;;  %s316_s23 = sshll.u32 %s1413_s8, 4  ;;  %s298_s20 = int_to_ptr.vmem [resolvable:$true] %s297_s20  ;;  %s317_s23 = int_to_ptr.hbm [resolvable:$true] %s316_s23 }
   0x9   : > { %p1046_p5 = pneg %p1290_p3  ;;  %s1209_s24 = smov 64  }
   0xa   : > { %s1210_s25 = smov 4   ;;  %s1211_s26 = smov [#allocation4]  }
   0xb   : > { %p1047_p6 = pnand %p1294_p4, %p1046_p5  ;;  %s318_s27 = sshll.u32 %s1211_s26, 4  ;;  %s319_s27 = int_to_ptr.vmem [resolvable:$true] %s318_s27 }
   0xc   : > { %371 = sbr.rel (%p1290_p3) target bundleno = 1238 (0x4d6), region = 56 }
   0xd   : > { %1049 = dma.hbm_to_vmem [thread:$0]  (!%p1047_p6), %s296_s18, 256, %s298_s20, [#allocation3], %s1209_s24, %s1209_s24, %s1210_s25  }
   0xe   : > { %1052 = dma.hbm_to_vmem [thread:$0]  (!%p1047_p6), %s317_s23, 16, %s319_s27, [#allocation5]  }
  0x11   : > { %1189 = dma.done.wait (%p1294_p4), [#allocation3], 256  }
  0x12   : > { %1191 = vsyncadd (%p1294_p4), [#allocation3], 4294967040 }
  0x13   : > { %1193 = dma.done.wait (%p1294_p4), [#allocation5], 16  }
  0x14   : > { %1195 = vsyncadd (%p1294_p4), [#allocation5], 4294967280  ;;  %p435_p7 = scmp.lt.s32.totalorder %s1198_s30, 1  ;;  %vm475_vm0 = vcmask 64512   ;;  %s1212_s21 = smov 120   ;;  %vm508_vm1 = vcmask 1043456  }
  0x15   : > { %s1213_s22 = smov 104   ;;  %s1214_s23 = smov 112  }
  0x16   : > { %s1422_s30 = smov (!%p435_p7, %s1198_s30), 1  ;;  %s1215_s27 = smov 8  }
  0x17   : > { %s1323_s28 = sshll.u32 %s1422_s30, 2  ;;  %s452_s20 = scalar_lea.vmem %s1408_s3, %s1422_s30 }
  0x18   : > { %s445_s14 = scalar_lea.vmem %s1406_s1, %s1323_s28  ;;  %s441_s15 = scalar_lea.vmem %s1405_s0, %s1323_s28  ;;  %v1092_v10 = vld [vmem:[%s452_s20] ss:$0 sm:$0xff] }
  0x19   : > { %v469_v0 = vld [vmem:[%s445_s14] sm:$0xf]  ;;  %s449_s26 = scalar_lea.vmem %s1407_s2, %s1323_s28  ;;  %s1216_s28 = smov 24  }
  0x1a   : > { %v468_v1 = vld [vmem:[%s441_s15] sm:$0xf]  ;;  %v480_v2 = vsel %vm475_vm0, %v469_v0, 0  ;;  %v547_v3 = vunpack.c.l.b16 %v469_v0  ;;  %s1217_s29 = smov 16   ;;  %s1015_s12 = sshll.u32 %s1422_s30, 3 }
  0x1b   : > { %v542_v4 = vunpack.c.l.b16 %v468_v1  ;;  %489 = vmatpush.bf16.xpose.msra.mxu0 %v480_v2  ;;  %v470_v17 = vld [vmem:[%s449_s26] sm:$0xf]  ;;  %s459_s17 = scalar_lea.vmem %s1409_s4, %s1015_s12 }
  0x1c   : > { %v548_v5 = vpack.c.b16 %v547_v3, %v547_v3  ;;  %v510_v18 = vsel %vm508_vm1, %v470_v17, 0  ;;  %v581_v19 = vunpack.c.l.b16 %v470_v17 }
  0x1d   : > { %v543_v6 = vpack.c.b16 %v542_v4, %v542_v4  ;;  %519 = vmatpush.bf16.msra.mxu1 %v510_v18 }
  0x1e   : > { %692 = vrot.lane.b32.xlu2 %v548_v5, %s1213_s22  ;;  %v582_v20 = vpack.c.b16 %v581_v19, %v581_v19 }
  0x1f   : > { %544 = vrot.lane.b32.xlu1 %v543_v6, %s1212_s21 }
  0x22   : > { %1017 = vmatmul.msk.bf16.vlgmr.msra.gmra.mxu0 %vm475_vm0, %v468_v1 }
  0x26   : > { %620 = vrot.lane.b32.xlu2 %v543_v6, %s1214_s23 }
  0x27   : > { %622 = vrot.lane.b32.xlu1 %v548_v5, %s1214_s23 }
  0x2f   : > { %690 = vrot.lane.b32.xlu1 %v543_v6, %s1213_s22 }
  0x37   : > { %583 = vrot.lane.b32.xlu1 %v582_v20, %s1212_s21 }
  0x78   : > { %v693_v8 = vpop.permute.xlu2 %692 }
  0x79   : > { %v698_v9 = vsel %vm475_vm0, %v693_v8, 0 }
  0x7a   : > { %707 = vmatpush.bf16.xpose.msrb.mxu0 %v698_v9 }
  0x80   : > { %v621_v33 = vpop.permute.xlu2 %620 }
  0x91   : > { %v545_v7 = vpop.permute.xlu1 %544 }
  0x99   : > { %v623_v12 = vpop.permute.xlu1 %622 }
  0x9a   : > { %v628_v21 = vsel %vm475_vm0, %v623_v12, 0 }
  0x9b   : > { %637 = vmatpush.bf16.xpose.msrb.mxu1 %v628_v21 }
  0x9f   : > { %v491_v11 = vpop.f32.mrf.mxu0 }
  0xa0   : > { %v492_v13 = vadd.f32 %v1092_v10, %v491_v11 }
  0xa1   : > { %v691_v16 = vpop.permute.xlu1 %690 }
  0xa2   : > { %v495_v14 = vsel %vm475_vm0, %v492_v13, -inf  ;;  %1023 = vmatmul.msk.bf16.vlgmr.msrb.gmra.mxu0 %vm475_vm0, %v691_v16 }
  0xa3   : > { %496 = vmax.xlane.f32.xlu0 %v495_v14 }
  0xa7   : > { %v493_v15 = vpop.f32.mrf.mxu0 }
  0xa9   : > { %v584_v45 = vpop.permute.xlu1 %583 }
  0xaa   : > { %v589_v46 = vsel %vm508_vm1, %v584_v45, 0 }
  0xab   : > { %598 = vmatpush.bf16.msra.mxu3 %v589_v46 }
  0xb7   : > { %549 = vrot.lane.b32.xlu0 %v548_v5, %s1212_s21 }
 0x116   : > { %v497_v22 = vpop.xlane.xlu0 %496 }
 0x117   : > { %v498_v23 = vsub.f32 %v492_v13, %v497_v22 }
 0x119   : > { %v499_v24 = vmul.f32 1.442695, %v498_v23 }
 0x11b   : > { %1096 = vpow2.f32 %v499_v24 }
 0x11f   : > { %v709_v27 = vpop.f32.mrf.mxu0 }
 0x120   : > { %v710_v28 = vadd.f32 %v1092_v10, %v709_v27 }
 0x121   : > { %v1097_v25 = vpop.eup %1096 }
 0x122   : > { %v504_v26 = vpack.c.bf16 %v1097_v25, %v1097_v25  ;;  %v713_v29 = vsel %vm475_vm0, %v710_v28, -inf  ;;  %v501_v44 = vsel %vm475_vm0, %v1097_v25, 0.0 }
 0x123   : > { %714 = vmax.xlane.f32.xlu1 %v713_v29 }
 0x124   : > { %1018 = vmatmul.msk.bf16.vlgmr.msra.gmra.mxu1 %vm475_vm0, %v504_v26 }
 0x127   : > { %v711_v32 = vpop.f32.mrf.mxu0 }
 0x129   : > { %v550_v30 = vpop.permute.xlu0 %549 }
 0x12a   : > { %v555_v31 = vsel %vm475_vm0, %v550_v30, 0 }
 0x12b   : > { %564 = vmatpush.bf16.xpose.msra.mxu2 %v555_v31 }
 0x132   : > { %1019 = vmatmul.msk.bf16.vlgmr.msra.gmra.mxu2 %vm475_vm0, %v545_v7 }
 0x134   : > { %1021 = vmatmul.msk.bf16.vlgmr.msrb.gmra.mxu1 %vm475_vm0, %v621_v33 }
 0x196   : > { %v715_v49 = vpop.xlane.xlu1 %714 }
 0x197   : > { %v716_v52 = vsub.f32 %v710_v28, %v715_v49  ;;  %v1036_v49 = vld [vmem:[#allocation2] sm:$0xff] }
 0x199   : > { %v717_v55 = vmul.f32 1.442695, %v716_v52 }
 0x1a1   : > { %v1357_v34 = vpop.f32.mrf.mxu1 }
 0x1a9   : > { %v523_v35 = vpop.f32.mrf.mxu1 }
 0x1b1   : > { %v639_v36 = vpop.f32.mrf.mxu1 }
 0x1b2   : > { %v640_v37 = vadd.f32 %v1092_v10, %v639_v36 }
 0x1b4   : > { %v643_v38 = vsel %vm475_vm0, %v640_v37, -inf }
 0x1b5   : > { %644 = vmax.xlane.f32.xlu0 %v643_v38  ;;  %v566_v39 = vpop.f32.mrf.mxu2 }
 0x1b6   : > { %v567_v40 = vadd.f32 %v1092_v10, %v566_v39 }
 0x1b8   : > { %v570_v41 = vsel %vm475_vm0, %v567_v40, -inf }
 0x1b9   : > { %571 = vmax.xlane.f32.xlu2 %v570_v41  ;;  %v641_v42 = vpop.f32.mrf.mxu1 }
 0x1bd   : > { %v568_v43 = vpop.f32.mrf.mxu2 }
 0x1c9   : > { %723 = vrot.lane.b32.xlu0 %v582_v20, %s1213_s22 }
 0x1d1   : > { %653 = vrot.lane.b32.xlu2 %v582_v20, %s1214_s23  ;;  %s466_s23 = scalar_lea.vmem %s1414_s9, %s1015_s12 }
 0x1f3   : > { %502 = vadd.xlane.f32.xlu0 %v501_v44 }
 0x228   : > { %v645_v47 = vpop.xlane.xlu0 %644 }
 0x229   : > { %v646_v48 = vsub.f32 %v640_v37, %v645_v47 }
 0x22b   : > { %v647_v50 = vmul.f32 1.442695, %v646_v48  ;;  %v1037_v48 = vld [vmem:[#allocation2 + $0x8] sm:$0xff] }
 0x22c   : > { %v572_v51 = vpop.xlane.xlu2 %571  ;;  %805 = vmatpush.bf16.msra.mxu1 %v1037_v48 }
 0x22d   : > { %1098 = vpow2.f32 %v647_v50  ;;  %v573_v53 = vsub.f32 %v567_v40, %v572_v51 }
 0x22f   : > { %v574_v54 = vmul.f32 1.442695, %v573_v53 }
 0x230   : > { %806 = vmatpush.bf16.msra.mxu1 %v1036_v49 }
 0x231   : > { %1100 = vpow2.f32 %v574_v54 }
 0x232   : > { %1102 = vpow2.f32 %v717_v55 }
 0x233   : > { %v1099_v56 = vpop.eup %1098 }
 0x234   : > { %v649_v57 = vsel %vm475_vm0, %v1099_v56, 0.0  ;;  %v654_v58 = vpop.permute.xlu2 %653  ;;  %v652_v4 = vpack.c.bf16 %v1099_v56, %v1099_v56 }
 0x235   : > { %650 = vadd.xlane.f32.xlu2 %v649_v57  ;;  %v659_v59 = vsel %vm508_vm1, %v654_v58, 0 }
 0x236   : > { %668 = vmatpush.bf16.msrb.mxu3 %v659_v59 }
 0x237   : > { %v1101_v60 = vpop.eup %1100 }
 0x238   : > { %v576_v61 = vsel %vm475_vm0, %v1101_v60, 0.0  ;;  %v579_v62 = vpack.c.bf16 %v1101_v60, %v1101_v60  ;;  %v1103_v63 = vpop.eup %1102 }
 0x239   : > { %577 = vadd.xlane.f32.xlu1 %v576_v61  ;;  %v722_v2 = vpack.c.bf16 %v1103_v63, %v1103_v63  ;;  %v719_v3 = vsel %vm475_vm0, %v1103_v63, 0.0 }
 0x23a   : > { %1020 = vmatmul.msk.bf16.vlgmr.msra.gmra.mxu3 %vm475_vm0, %v579_v62 }
 0x23b   : > { %v724_v0 = vpop.permute.xlu0 %723 }
 0x23c   : > { %v729_v1 = vsel %vm508_vm1, %v724_v0, 0 }
 0x23d   : > { %738 = vmatpush.bf16.msrb.mxu2 %v729_v1 }
 0x240   : > { %1024 = vmatmul.msk.bf16.vlgmr.msrb.gmra.mxu2 %vm475_vm0, %v722_v2 }
 0x241   : > { %720 = vadd.xlane.f32.xlu1 %v719_v3 }
 0x24a   : > { %1022 = vmatmul.msk.bf16.vlgmr.msrb.gmra.mxu3 %vm475_vm0, %v652_v4 }
 0x266   : > { %v503_v50 = vpop.xlane.xlu0 %502 }
 0x267   : > { %v536_v56 = vand.u32 2147483648, %v503_v50  ;;  %vm530_vm15 = vweird.f32 %v503_v50  ;;  %v534_v57 = vand.u32 2147483647, %v503_v50 }
 0x269   : > { %v537_v60 = vor.u32 1.1754944e-38, %v536_v56 }
 0x2a8   : > { %v651_v6 = vpop.xlane.xlu2 %650 }
 0x2a9   : > { %v685_v39 = vand.u32 2147483648, %v651_v6  ;;  %vm679_vm11 = vweird.f32 %v651_v6  ;;  %v683_v40 = vand.u32 2147483647, %v651_v6 }
 0x2ab   : > { %v686_v43 = vor.u32 1.1754944e-38, %v685_v39  ;;  %vm684_vm13 = vcmp.eq.f32.partialorder %v683_v40, 8.507059e+37 }
 0x2ac   : > { %v578_v5 = vpop.xlane.xlu1 %577 }
 0x2ad   : > { %1104 = vrcp.f32 %v578_v5  ;;  %v615_v12 = vand.u32 2147483648, %v578_v5  ;;  %v613_v14 = vand.u32 2147483647, %v578_v5  ;;  %vm609_vm3 = vweird.f32 %v578_v5 }
 0x2ae   : > { %1106 = vrcp.f32 %v651_v6 }
 0x2af   : > { %v616_v18 = vor.u32 1.1754944e-38, %v615_v12  ;;  %vm614_vm5 = vcmp.eq.f32.partialorder %v613_v14, 8.507059e+37 }
 0x2b3   : > { %v1105_v7 = vpop.eup %1104 }
 0x2b4   : > { %v605_v8 = vmul.f32 %v1105_v7, %v578_v5  ;;  %v721_v9 = vpop.xlane.xlu1 %720  ;;  %v1107_v11 = vpop.eup %1106  ;;  %vm610_vm2 = vweird.f32 %v1105_v7  ;;  %v777_v5 = vld [vmem:[%s459_s17] sm:$0xff] }
 0x2b5   : > { %1108 = vrcp.f32 %v721_v9  ;;  %v675_v15 = vmul.f32 %v1107_v11, %v651_v6  ;;  %vm611_vm4 = vmor %vm609_vm3, %vm610_vm2  ;;  %v755_v26 = vand.u32 2147483648, %v721_v9  ;;  %v753_v28 = vand.u32 2147483647, %v721_v9 }
 0x2b6   : > { %v606_v10 = vsub.f32 1.0, %v605_v8  ;;  %vm749_vm7 = vweird.f32 %v721_v9  ;;  %vm680_vm10 = vweird.f32 %v1107_v11  ;;  %1110 = vrcp.f32 %v503_v50 }
 0x2b7   : > { %v676_v23 = vsub.f32 1.0, %v675_v15  ;;  %v756_v32 = vor.u32 1.1754944e-38, %v755_v26  ;;  %vm754_vm9 = vcmp.eq.f32.partialorder %v753_v28, 8.507059e+37  ;;  %vm681_vm12 = vmor %vm679_vm11, %vm680_vm10  ;;  %vm535_vm2 = vcmp.eq.f32.partialorder %v534_v57, 8.507059e+37 }
 0x2b8   : > { %v607_v13 = vmul.f32 %v1105_v7, %v606_v10  ;;  %vm773_vm3 = vcmask 130048  }
 0x2b9   : > { %v677_v30 = vmul.f32 %v1107_v11, %v676_v23 }
 0x2ba   : > { %v608_v16 = vadd.f32 %v1105_v7, %v607_v13 }
 0x2bb   : > { %v1109_v17 = vpop.eup %1108  ;;  %v678_v38 = vadd.f32 %v1107_v11, %v677_v30 }
 0x2bc   : > { %v745_v19 = vmul.f32 %v1109_v17, %v721_v9  ;;  %v612_v20 = vsel %vm611_vm4, %v1105_v7, %v608_v16  ;;  %vm750_vm6 = vweird.f32 %v1109_v17  ;;  %v1111_v51 = vpop.eup %1110  ;;  %vm775_vm4 = vcmask 195584  }
 0x2bd   : > { %v600_v21 = vpop.f32.mrf.mxu3  ;;  %v617_v22 = vsel %vm614_vm5, %v616_v18, %v612_v20  ;;  %vm751_vm8 = vmor %vm749_vm7, %vm750_vm6  ;;  %v682_v41 = vsel %vm681_vm12, %v1107_v11, %v678_v38  ;;  %v526_v52 = vmul.f32 %v1111_v51, %v503_v50  ;;  %vm531_vm14 = vweird.f32 %v1111_v51 }
 0x2be   : > { %v746_v24 = vsub.f32 1.0, %v745_v19  ;;  %v619_v25 = vmul.f32 %v617_v22, %v600_v21  ;;  %v687_v45 = vsel %vm684_vm13, %v686_v43, %v682_v41  ;;  %vm532_vm1 = vmor %vm530_vm15, %vm531_vm14  ;;  %vm795_vm5 = vcmask 261120  }
 0x2bf   : > { %v527_v53 = vsub.f32 1.0, %v526_v52  ;;  %v1218_v11 = vmov 32.0  }
 0x2c0   : > { %761 = vrot.lane.b32.xlu1 %v619_v25, %s1215_s27  ;;  %v747_v27 = vmul.f32 %v1109_v17, %v746_v24  ;;  %1112 = vrcp.f32 %v1218_v11 }
 0x2c1   : > { %v528_v54 = vmul.f32 %v1111_v51, %v527_v53 }
 0x2c2   : > { %v748_v29 = vadd.f32 %v1109_v17, %v747_v27 }
 0x2c3   : > { %v740_v31 = vpop.f32.mrf.mxu2  ;;  %v529_v55 = vadd.f32 %v1111_v51, %v528_v54 }
 0x2c4   : > { %v752_v33 = vsel %vm751_vm8, %v1109_v17, %v748_v29 }
 0x2c5   : > { %v757_v35 = vsel %vm754_vm9, %v756_v32, %v752_v33  ;;  %v602_v36 = vpop.f32.mrf.mxu3  ;;  %v533_v59 = vsel %vm532_vm1, %v1111_v51, %v529_v55  ;;  %v1094_v32 = vld [vmem:[%s1412_s7] ss:$0 sm:$0xff] }
 0x2c6   : > { %v759_v37 = vmul.f32 %v757_v35, %v740_v31  ;;  %v538_v61 = vsel %vm535_vm2, %v537_v60, %v533_v59  ;;  %v1113_v12 = vpop.eup %1112  ;;  %v1095_v35 = vld [vmem:[#allocation4] ss:$0 sm:$0xff] }
 0x2c7   : > { %v540_v62 = vmul.f32 %v538_v61, %v1357_v34  ;;  %v1093_v34 = vld [vmem:[%s1411_s6] ss:$0 sm:$0xff]  ;;  %v824_v13 = vmul.f32 32.0, %v1113_v12 }
 0x2c8   : > { %769 = vrot.lane.b32.xlu2 %v759_v37, %s1216_s28 }
 0x2c9   : > { %v825_v14 = vsub.f32 1.0, %v824_v13 }
 0x2cb   : > { %v742_v42 = vpop.f32.mrf.mxu2  ;;  %v826_v15 = vmul.f32 %v1113_v12, %v825_v14 }
 0x2cd   : > { %v670_v44 = vpop.f32.mrf.mxu3  ;;  %v827_v16 = vadd.f32 %v1113_v12, %v826_v15 }
 0x2ce   : > { %v689_v46 = vmul.f32 %v687_v45, %v670_v44 }
 0x2d0   : > { %765 = vrot.lane.b32.xlu1 %v689_v46, %s1217_s29 }
 0x2d5   : > { %v672_v47 = vpop.f32.mrf.mxu3 }
 0x322   : > { %v770_v1 = vpop.permute.xlu2 %769 }
 0x332   : > { %v762_v58 = vpop.permute.xlu1 %761 }
 0x333   : > { %v772_v63 = vsel %vm475_vm0, %v540_v62, %v762_v58  ;;  %vm828_vm0 = vweird.f32 %v1113_v12 }
 0x334   : > { %v829_v17 = vsel %vm828_vm0, %v1113_v12, %v827_v16 }
 0x342   : > { %v766_v0 = vpop.permute.xlu1 %765 }
 0x343   : > { %v774_v2 = vsel %vm773_vm3, %v772_v63, %v766_v0 }
 0x344   : > { %v776_v3 = vsel %vm775_vm4, %v774_v2, %v770_v1 }
 0x345   : > { %v782_v4 = vpack.c.bf16 %v776_v3, %v776_v3 }
 0x347   : > { %1033 = vmatmul.msk.bf16.vlgmr.msra.gmra.mxu1 %vm795_vm5, %v782_v4 }
 0x3c4   : > { %v808_v6 = vpop.f32.mrf.mxu1 }
 0x3c5   : > { %v812_v7 = vadd.f32 %v808_v6, %v777_v5 }
 0x3c7   : > { %v817_v8 = vadd.f32 %v1093_v34, %v812_v7 }
 0x3c9   : > { %v820_v9 = vsel %vm795_vm5, %v817_v8, 0.0 }
 0x3ca   : > { %821 = vadd.xlane.f32.xlu1 %v820_v9 }
 0x3cc   : > { %v810_v10 = vpop.f32.mrf.mxu1 }
 0x43d   : > { %v822_v18 = vpop.xlane.xlu1 %821 }
 0x43e   : > { %v830_v19 = vmul.f32 %v829_v17, %v822_v18 }
 0x440   : > { %v831_v20 = vsub.f32 %v817_v8, %v830_v19 }
 0x442   : > { %v832_v21 = vmul.f32 %v831_v20, %v831_v20 }
 0x444   : > { %v833_v22 = vsel %vm795_vm5, %v832_v21, 0.0 }
 0x445   : > { %834 = vadd.xlane.f32.xlu0 %v833_v22 }
 0x4b8   : > { %v835_v23 = vpop.xlane.xlu0 %834 }
 0x4b9   : > { %v836_v24 = vmul.f32 %v835_v23, %v829_v17 }
 0x4bb   : > { %v837_v25 = vadd.f32 1e-05, %v836_v24 }
 0x4bd   : > { %1114 = vrsqrt.f32 %v837_v25  ;;  %vm844_vm7 = vweird.f32 %v837_v25 }
 0x4c3   : > { %v1115_v26 = vpop.eup %1114 }
 0x4c4   : > { %v839_v27 = vmul.f32 %v1115_v26, %v837_v25  ;;  %vm845_vm6 = vweird.f32 %v1115_v26 }
 0x4c5   : > { %vm846_vm8 = vmor %vm844_vm7, %vm845_vm6 }
 0x4c6   : > { %v840_v28 = vmul.f32 %v1115_v26, %v839_v27 }
 0x4c8   : > { %v841_v29 = vmul.f32 0.5, %v840_v28 }
 0x4ca   : > { %v842_v30 = vsub.f32 1.5, %v841_v29 }
 0x4cc   : > { %v843_v31 = vmul.f32 %v1115_v26, %v842_v30 }
 0x4ce   : > { %v847_v33 = vsel %vm846_vm8, %v1115_v26, %v843_v31 }
 0x4cf   : > { %v848_v36 = vmul.f32 %v847_v33, %v831_v20 }
 0x4d1   : > { %v852_v37 = vmul.f32 %v1094_v32, %v848_v36 }
 0x4d3   : > { %v856_v38 = vadd.f32 %v1095_v35, %v852_v37 }
 0x4d5   : > { %857 = vst.msk [vmem:[%s466_s23] sm:$0xff] %vm795_vm5, %v856_v38 }
 0x4d6 PF: > { %s21_s11 = sadd.s32 1, %s1206_s11   ;;  %s1417_s30 = smov %s1202_s10 }
 0x4d7   : > { %p18_p8 = scmp.ge.s32.totalorder %s21_s11, 4   ;;  %s1418_s10 = smov %s1420_s13 }
 0x4d9   :  { %20 = sbr.rel (!%p18_p8) target bundleno = 3 (0x3), region = 107 }
 0x4de   :  { %883 = vsyncpa [#allocation3], 1 }
 0x4df   :  { %885 = vsyncpa [#allocation3 + $0x1], 1 }
 0x4e0   :  { %886 = vsyncpa [#allocation5], 1 }

// kernel: sep_transformer_forward.45
= control target key start
LH: loop header
LB: loop body
LE: loop exit
PB: predicated region body
PF: predicated region fallthrough
CT: control target
= control target key end

     0   :  { %vm50_vm0 = vcmask 261120   ;;  %vm103_vm1 = vcmask 523264   ;;  %v241_v26 = vmov 32.0   ;;  %s331_s1 = inlined_call_operand.vmem [shape: bf16[32,64], index: 1, kind: input, shape index: {}]   ;;  %s332_s0 = inlined_call_operand.vmem [shape: f32[16,32], index: 0, kind: input, shape index: {}]   ;;  %s333_s2 = inlined_call_operand.vmem [shape: f32[1,64], index: 2, kind: input, shape index: {}]   ;;  %s334_s3 = inlined_call_operand.vmem [shape: bf16[64,32], index: 3, kind: input, shape index: {}]   ;;  %s335_s4 = inlined_call_operand.vmem [shape: f32[1,32], index: 4, kind: input, shape index: {}]   ;;  %s336_s5 = inlined_call_operand.vmem [shape: f32[1,32], index: 5, kind: input, shape index: {}]   ;;  %s337_s6 = inlined_call_operand.vmem [shape: f32[1,32], index: 6, kind: input, shape index: {}]   ;;  %s338_s7 = inlined_call_operand.vmem [shape: f32[16,32], index: 7, kind: output, shape index: {}]  }
   0x1   :  { %v225_v0 = vld [vmem:[%s331_s1 + $0x8] sm:$0xff]  ;;  %v224_v1 = vld [vmem:[%s331_s1] sm:$0xff]  ;;  %v229_v5 = vld [vmem:[%s334_s3 + $0x18] sm:$0xff]  ;;  %235 = vrcp.f32 %v241_v26 }
   0x2   :  { %60 = vmatpush.bf16.msra.mxu0 %v225_v0  ;;  %v27_v2 = vld [vmem:[%s332_s0] sm:$0xff]  ;;  %v28_v3 = vld [vmem:[%s332_s0 + $0x8] sm:$0xff]  ;;  %111 = vmatpush.bf16.msra.mxu1 %v229_v5  ;;  %v228_v6 = vld [vmem:[%s334_s3 + $0x10] sm:$0xff] }
   0x3   :  { %v33_v4 = vpack.c.bf16 %v28_v3, %v27_v2  ;;  %v227_v7 = vld [vmem:[%s334_s3 + $0x8] sm:$0xff]  ;;  %v226_v8 = vld [vmem:[%s334_s3] sm:$0xff] }
   0x4   :  { %v231_v10 = vld [vmem:[%s333_s2] ss:$0 sm:$0xff] }
   0x5   :  { %v232_v17 = vld [vmem:[%s335_s4] ss:$0 sm:$0xff] }
   0x6   :  { %61 = vmatpush.bf16.msra.mxu0 %v224_v1  ;;  %112 = vmatpush.bf16.msra.mxu1 %v228_v6  ;;  %v233_v57 = vld [vmem:[%s336_s5] ss:$0 sm:$0xff] }
   0x7   :  { %v236_v27 = vpop.eup %235  ;;  %v234_v60 = vld [vmem:[%s337_s6] ss:$0 sm:$0xff] }
   0x8   :  { %v138_v28 = vmul.f32 32.0, %v236_v27  ;;  %vm142_vm2 = vweird.f32 %v236_v27 }
   0x9   :  { %206 = vmatmul.msk.bf16.vlgmr.msra.gmra.mxu0 %vm50_vm0, %v33_v4 }
   0xa   :  { %113 = vmatpush.bf16.msra.mxu1 %v227_v7  ;;  %v139_v29 = vsub.f32 1.0, %v138_v28 }
   0xc   :  { %v140_v30 = vmul.f32 %v236_v27, %v139_v29 }
   0xe   :  { %114 = vmatpush.bf16.msra.mxu1 %v226_v8  ;;  %v141_v31 = vadd.f32 %v236_v27, %v140_v30 }
  0x10   :  { %v143_v32 = vsel %vm142_vm2, %v236_v27, %v141_v31 }
  0x86   :  { %v63_v9 = vpop.f32.mrf.mxu0 }
  0x87   :  { %v64_v11 = vadd.f32 %v231_v10, %v63_v9 }
  0x89   :  { %v68_v14 = vmax.f32 %v64_v11, 0.0 }
  0x8e   :  { %v65_v12 = vpop.f32.mrf.mxu0 }
  0x8f   :  { %v66_v13 = vadd.f32 %v231_v10, %v65_v12 }
  0x91   :  { %v69_v15 = vmax.f32 %v66_v13, 0.0 }
  0x93   :  { %v78_v16 = vpack.c.bf16 %v69_v15, %v68_v14 }
  0x95   :  { %223 = vmatmul.msk.bf16.vlgmr.msra.gmra.mxu1 %vm103_vm1, %v78_v16 }
 0x112   :  { %v116_v18 = vpop.f32.mrf.mxu1 }
 0x113   :  { %v121_v19 = vadd.f32 %v116_v18, %v27_v2 }
 0x115   :  { %v127_v20 = vadd.f32 %v232_v17, %v121_v19 }
 0x117   :  { %v131_v21 = vsel %vm50_vm0, %v127_v20, 0.0 }
 0x118   :  { %132 = vadd.xlane.f32.xlu0 %v131_v21 }
 0x11a   :  { %v118_v22 = vpop.f32.mrf.mxu1 }
 0x11b   :  { %v122_v23 = vadd.f32 %v118_v22, %v28_v3 }
 0x11d   :  { %v128_v24 = vadd.f32 %v232_v17, %v122_v23 }
 0x11f   :  { %v134_v25 = vsel %vm50_vm0, %v128_v24, 0.0 }
 0x120   :  { %135 = vadd.xlane.f32.xlu0 %v134_v25 }
 0x18b   :  { %v133_v33 = vpop.xlane.xlu0 %132 }
 0x18c   :  { %v144_v34 = vmul.f32 %v143_v32, %v133_v33 }
 0x18e   :  { %v146_v35 = vsub.f32 %v127_v20, %v144_v34 }
 0x190   :  { %v148_v36 = vmul.f32 %v146_v35, %v146_v35 }
 0x192   :  { %v150_v37 = vsel %vm50_vm0, %v148_v36, 0.0 }
 0x193   :  { %151 = vadd.xlane.f32.xlu1 %v150_v37  ;;  %v136_v38 = vpop.xlane.xlu0 %135 }
 0x194   :  { %v145_v39 = vmul.f32 %v143_v32, %v136_v38 }
 0x196   :  { %v147_v40 = vsub.f32 %v128_v24, %v145_v39 }
 0x198   :  { %v149_v41 = vmul.f32 %v147_v40, %v147_v40 }
 0x19a   :  { %v153_v42 = vsel %vm50_vm0, %v149_v41, 0.0 }
 0x19b   :  { %154 = vadd.xlane.f32.xlu1 %v153_v42 }
 0x206   :  { %v152_v43 = vpop.xlane.xlu1 %151 }
 0x207   :  { %v156_v44 = vmul.f32 %v152_v43, %v143_v32 }
 0x209   :  { %v158_v45 = vadd.f32 1e-05, %v156_v44 }
 0x20b   :  { %237 = vrsqrt.f32 %v158_v45  ;;  %vm166_vm4 = vweird.f32 %v158_v45 }
 0x20e   :  { %v155_v46 = vpop.xlane.xlu1 %154 }
 0x20f   :  { %v157_v47 = vmul.f32 %v155_v46, %v143_v32 }
 0x211   :  { %v238_v48 = vpop.eup %237  ;;  %v159_v49 = vadd.f32 1e-05, %v157_v47 }
 0x212   :  { %v161_v50 = vmul.f32 %v238_v48, %v158_v45  ;;  %vm167_vm3 = vweird.f32 %v238_v48 }
 0x213   :  { %239 = vrsqrt.f32 %v159_v49  ;;  %vm168_vm5 = vmor %vm166_vm4, %vm167_vm3  ;;  %vm176_vm7 = vweird.f32 %v159_v49 }
 0x214   :  { %v162_v51 = vmul.f32 %v238_v48, %v161_v50 }
 0x216   :  { %v163_v52 = vmul.f32 0.5, %v162_v51 }
 0x218   :  { %v164_v53 = vsub.f32 1.5, %v163_v52 }
 0x219   :  { %v240_v54 = vpop.eup %239 }
 0x21a   :  { %v165_v55 = vmul.f32 %v238_v48, %v164_v53  ;;  %v171_v56 = vmul.f32 %v240_v54, %v159_v49  ;;  %vm177_vm6 = vweird.f32 %v240_v54 }
 0x21b   :  { %vm178_vm8 = vmor %vm176_vm7, %vm177_vm6 }
 0x21c   :  { %v169_v58 = vsel %vm168_vm5, %v238_v48, %v165_v55  ;;  %v172_v59 = vmul.f32 %v240_v54, %v171_v56 }
 0x21d   :  { %v180_v61 = vmul.f32 %v169_v58, %v146_v35 }
 0x21e   :  { %v173_v62 = vmul.f32 0.5, %v172_v59 }
 0x21f   :  { %v185_v63 = vmul.f32 %v233_v57, %v180_v61 }
 0x220   :  { %v174_v0 = vsub.f32 1.5, %v173_v62 }
 0x221   :  { %v190_v1 = vadd.f32 %v234_v60, %v185_v63 }
 0x222   :  { %v175_v2 = vmul.f32 %v240_v54, %v174_v0 }
 0x223   :  { %192 = vst.msk [vmem:[%s338_s7] sm:$0xff] %vm50_vm0, %v190_v1 }
 0x224   :  { %v179_v3 = vsel %vm178_vm8, %v240_v54, %v175_v2 }
 0x225   :  { %v181_v4 = vmul.f32 %v179_v3, %v147_v40 }
 0x227   :  { %v186_v5 = vmul.f32 %v233_v57, %v181_v4 }
 0x229   :  { %v191_v6 = vadd.f32 %v234_v60, %v186_v5 }
 0x22b   :  { %193 = vst.msk [vmem:[%s338_s7 + $0x8] sm:$0xff] %vm50_vm0, %v191_v6 }

// kernel: sep_transformer_forward.50
= control target key start
LH: loop header
LB: loop body
LE: loop exit
PB: predicated region body
PF: predicated region fallthrough
CT: control target
= control target key end

     0   :  { %13 = vsyncpa [#allocation3], 0  ;;  %s472_s0 = inlined_call_operand.vmem [shape: f32[32,32], index: 0, kind: input, shape index: {}]   ;;  %s473_s1 = inlined_call_operand.vmem [shape: f32[32,32], index: 1, kind: input, shape index: {}]   ;;  %s474_s2 = inlined_call_operand.hbm [shape: bf16[32,32], index: 2, kind: input, shape index: {}]   ;;  %s475_s3 = inlined_call_operand.hbm [shape: f32[1,32], index: 3, kind: input, shape index: {}]   ;;  %s476_s4 = inlined_call_operand.hbm [shape: bf16[32,32], index: 4, kind: input, shape index: {}]   ;;  %s477_s5 = inlined_call_operand.hbm [shape: f32[1,32], index: 5, kind: input, shape index: {}]   ;;  %s478_s6 = inlined_call_operand.vmem [shape: bf16[32,32], index: 6, kind: output, shape index: {0}]   ;;  %s479_s7 = inlined_call_operand.vmem [shape: bf16[32,32], index: 7, kind: output, shape index: {1}]  }
   0x1   :  { %14 = vsyncpa [#allocation5], 0  ;;  %s38_s26 = sshll.u32 %s475_s3, 4  ;;  %s39_s26 = int_to_ptr.hbm [resolvable:$true] %s38_s26 }
   0x2   :  { %15 = vsyncpa [#allocation8], 0  ;;  %s358_s27 = smov [#allocation4]   ;;  %s24_s8 = sshll.u32 %s474_s2, 4  ;;  %s25_s8 = int_to_ptr.hbm [resolvable:$true] %s24_s8 }
   0x3   :  { %s40_s28 = sshll.u32 %s358_s27, 4  ;;  %s359_s9 = smov [#allocation2]   ;;  %s41_s28 = int_to_ptr.vmem [resolvable:$true] %s40_s28 }
   0x4   :  { %43 = dma.hbm_to_vmem [thread:$0]  %s39_s26, 16, %s41_s28, [#allocation5]  }
   0x5   :  { %s26_s10 = sshll.u32 %s359_s9, 4  ;;  %s360_s11 = smov 64   ;;  %s27_s10 = int_to_ptr.vmem [resolvable:$true] %s26_s10 }
   0x6   :  { %s361_s12 = smov 4   ;;  %s48_s3 = sshll.u32 %s476_s4, 4  ;;  %s49_s3 = int_to_ptr.hbm [resolvable:$true] %s48_s3 }
   0x7   :  { %32 = dma.hbm_to_vmem [thread:$0]  %s25_s8, 256, %s27_s10, [#allocation3], %s360_s11, %s360_s11, %s361_s12  }
   0x8   :  { %s362_s15 = smov [#allocation6]   ;;  %s62_s2 = sshll.u32 %s477_s5, 4  ;;  %s63_s2 = int_to_ptr.hbm [resolvable:$true] %s62_s2 }
   0x9   :  { %s50_s16 = sshll.u32 %s362_s15, 4  ;;  %s363_s19 = smov [#allocation7]   ;;  %s51_s16 = int_to_ptr.vmem [resolvable:$true] %s50_s16 }
   0xa   :  { %56 = dma.hbm_to_vmem [thread:$0]  %s49_s3, 256, %s51_s16, [#allocation5], %s360_s11, %s360_s11, %s361_s12  }
   0xb   :  { %s64_s20 = sshll.u32 %s363_s19, 4  ;;  %s65_s20 = int_to_ptr.vmem [resolvable:$true] %s64_s20 }
   0xc   :  { %67 = dma.hbm_to_vmem [thread:$0]  %s63_s2, 16, %s65_s20, [#allocation8]  }
   0xd   :  { %352 = dma.done.wait [#allocation3], 256  }
   0xe   :  { %353 = vsyncadd [#allocation3], 4294967040 }
   0xf   :  { %354 = dma.done.wait [#allocation5], 272  }
  0x10   :  { %355 = vsyncadd [#allocation5], 4294967024 }
  0x11   :  { %356 = dma.done.wait [#allocation8], 16  }
  0x12   :  { %357 = vsyncadd [#allocation8], 4294967280  ;;  %v241_v0 = vld [vmem:[#allocation2 + $0x8] sm:$0xff]  ;;  %v243_v1 = vld [vmem:[#allocation6 + $0x8] sm:$0xff]  ;;  %vm119_vm0 = vcmask 261120   ;;  %vm149_vm1 = vcmask 257024  }
  0x13   :  { %v240_v2 = vld [vmem:[#allocation2] sm:$0xff]  ;;  %v242_v3 = vld [vmem:[#allocation6] sm:$0xff]  ;;  %v86_v5 = vld [vmem:[%s472_s0 + $0x8] sm:$0xff]  ;;  %132 = vmatpush.bf16.msra.mxu0 %v241_v0  ;;  %244 = vmatpush.bf16.msra.mxu2 %v241_v0 }
  0x14   :  { %v85_v4 = vld [vmem:[%s472_s0] sm:$0xff]  ;;  %v90_v7 = vld [vmem:[%s473_s1 + $0x8] sm:$0xff]  ;;  %v87_v8 = vld [vmem:[%s472_s0 + $0x10] sm:$0xff]  ;;  %188 = vmatpush.bf16.msra.mxu1 %v243_v1  ;;  %246 = vmatpush.bf16.msra.mxu3 %v243_v1 }
  0x15   :  { %v89_v6 = vld [vmem:[%s473_s1] sm:$0xff]  ;;  %v94_v10 = vadd.f32 %v90_v7, %v86_v5  ;;  %v88_v11 = vld [vmem:[%s472_s0 + $0x18] sm:$0xff]  ;;  %v91_v12 = vld [vmem:[%s473_s1 + $0x10] sm:$0xff]  ;;  %v158_v18 = vpack.c.bf16 %v86_v5, %v85_v4 }
  0x16   :  { %v93_v9 = vadd.f32 %v89_v6, %v85_v4  ;;  %v92_v13 = vld [vmem:[%s473_s1 + $0x18] sm:$0xff]  ;;  %v95_v14 = vadd.f32 %v91_v12, %v87_v8  ;;  %v159_v19 = vpack.c.bf16 %v88_v11, %v87_v8  ;;  %v254_v20 = vld [vmem:[#allocation4] ss:$0 sm:$0xff]  ;;  %v255_v21 = vld [vmem:[#allocation7] ss:$0 sm:$0xff] }
  0x17   :  { %v96_v15 = vadd.f32 %v92_v13, %v88_v11  ;;  %133 = vmatpush.bf16.msra.mxu0 %v240_v2  ;;  %245 = vmatpush.bf16.msra.mxu2 %v240_v2 }
  0x18   :  { %v101_v16 = vpack.c.bf16 %v94_v10, %v93_v9  ;;  %189 = vmatpush.bf16.msra.mxu1 %v242_v3  ;;  %247 = vmatpush.bf16.msra.mxu3 %v242_v3 }
  0x19   :  { %v102_v17 = vpack.c.bf16 %v96_v15, %v95_v14 }
  0x1a   :  { %228 = vmatmul.msk.bf16.vlgmr.msra.gmra.mxu0 %vm119_vm0, %v101_v16 }
  0x1b   :  { %229 = vmatmul.msk.bf16.vlgmr.msra.gmra.mxu2 %vm119_vm0, %v102_v17  ;;  %238 = vmatmul.msk.bf16.vlgmr.msra.gmra.mxu1 %vm119_vm0, %v158_v18 }
  0x1c   :  { %239 = vmatmul.msk.bf16.vlgmr.msra.gmra.mxu3 %vm119_vm0, %v159_v19 }
  0x97   :  { %v135_v22 = vpop.f32.mrf.mxu0 }
  0x98   :  { %v136_v23 = vadd.f32 %v254_v20, %v135_v22  ;;  %v191_v24 = vpop.f32.mrf.mxu1 }
  0x99   :  { %v192_v25 = vadd.f32 %v255_v21, %v191_v24 }
  0x9a   :  { %v145_v26 = vpack.c.bf16 %v136_v23, %v136_v23 }
  0x9b   :  { %v201_v27 = vpack.c.bf16 %v192_v25, %v192_v25 }
  0x9c   :  { %150 = vst.msk [vmem:[%s478_s6] sm:$0xf] %vm149_vm1, %v145_v26 }
  0x9d   :  { %205 = vst.msk [vmem:[%s479_s7] sm:$0xf] %vm149_vm1, %v201_v27 }
  0x9e   :  { %v140_v28 = vpop.f32.mrf.mxu2 }
  0x9f   :  { %v141_v29 = vadd.f32 %v254_v20, %v140_v28  ;;  %v196_v30 = vpop.f32.mrf.mxu3  ;;  %v137_v32 = vpop.f32.mrf.mxu0 }
  0xa0   :  { %v197_v31 = vadd.f32 %v255_v21, %v196_v30  ;;  %v138_v34 = vadd.f32 %v254_v20, %v137_v32  ;;  %v193_v35 = vpop.f32.mrf.mxu1 }
  0xa1   :  { %v147_v33 = vpack.c.bf16 %v141_v29, %v141_v29  ;;  %v194_v37 = vadd.f32 %v255_v21, %v193_v35 }
  0xa2   :  { %v203_v36 = vpack.c.bf16 %v197_v31, %v197_v31  ;;  %v146_v38 = vpack.c.bf16 %v138_v34, %v138_v34 }
  0xa3   :  { %152 = vst.msk [vmem:[%s478_s6 + $0x8] sm:$0xf] %vm149_vm1, %v147_v33  ;;  %v202_v39 = vpack.c.bf16 %v194_v37, %v194_v37 }
  0xa4   :  { %207 = vst.msk [vmem:[%s479_s7 + $0x8] sm:$0xf] %vm149_vm1, %v203_v36 }
  0xa5   :  { %151 = vst.msk [vmem:[%s478_s6 + $0x4] sm:$0xf] %vm149_vm1, %v146_v38 }
  0xa6   :  { %206 = vst.msk [vmem:[%s479_s7 + $0x4] sm:$0xf] %vm149_vm1, %v202_v39  ;;  %v142_v40 = vpop.f32.mrf.mxu2 }
  0xa7   :  { %v143_v41 = vadd.f32 %v254_v20, %v142_v40  ;;  %v198_v42 = vpop.f32.mrf.mxu3 }
  0xa8   :  { %v199_v43 = vadd.f32 %v255_v21, %v198_v42 }
  0xa9   :  { %v148_v44 = vpack.c.bf16 %v143_v41, %v143_v41 }
  0xaa   :  { %v204_v45 = vpack.c.bf16 %v199_v43, %v199_v43 }
  0xab   :  { %153 = vst.msk [vmem:[%s478_s6 + $0xc] sm:$0xf] %vm149_vm1, %v148_v44 }
  0xac   :  { %208 = vst.msk [vmem:[%s479_s7 + $0xc] sm:$0xf] %vm149_vm1, %v204_v45 }
  0xad   :  { %217 = vsyncpa [#allocation3], 1 }
  0xae   :  { %218 = vsyncpa [#allocation5], 1 }
  0xaf   :  { %219 = vsyncpa [#allocation8], 1 }

// kernel: sep_transformer_forward.53
= control target key start
LH: loop header
LB: loop body
LE: loop exit
PB: predicated region body
PF: predicated region fallthrough
CT: control target
= control target key end

     0   :  { %vm18_vm0 = vcmask 261120   ;;  %v95_v4 = vmov 32.0   ;;  %s140_s0 = inlined_call_operand.vmem [shape: f32[16,32], index: 0, kind: input, shape index: {}]   ;;  %s141_s1 = inlined_call_operand.vmem [shape: f32[1,32], index: 1, kind: input, shape index: {}]   ;;  %s142_s2 = inlined_call_operand.vmem [shape: f32[1,32], index: 2, kind: input, shape index: {}]   ;;  %s143_s3 = inlined_call_operand.vmem [shape: f32[16,32], index: 3, kind: output, shape index: {}]  }
   0x1   :  { %v14_v0 = vld [vmem:[%s140_s0] sm:$0xff]  ;;  %v15_v2 = vld [vmem:[%s140_s0 + $0x8] sm:$0xff]  ;;  %89 = vrcp.f32 %v95_v4 }
   0x2   :  { %v19_v1 = vsel %vm18_vm0, %v14_v0, 0.0  ;;  %v22_v3 = vsel %vm18_vm0, %v15_v2, 0.0  ;;  %v87_v35 = vld [vmem:[%s141_s1] ss:$0 sm:$0xff] }
   0x3   :  { %20 = vadd.xlane.f32.xlu0 %v19_v1  ;;  %v88_v38 = vld [vmem:[%s142_s2] ss:$0 sm:$0xff] }
   0x7   :  { %v90_v5 = vpop.eup %89 }
   0x8   :  { %v26_v6 = vmul.f32 32.0, %v90_v5  ;;  %vm30_vm1 = vweird.f32 %v90_v5 }
   0xa   :  { %v27_v7 = vsub.f32 1.0, %v26_v6 }
   0xb   :  { %23 = vadd.xlane.f32.xlu0 %v22_v3 }
   0xc   :  { %v28_v8 = vmul.f32 %v90_v5, %v27_v7 }
   0xe   :  { %v29_v9 = vadd.f32 %v90_v5, %v28_v8 }
  0x10   :  { %v31_v10 = vsel %vm30_vm1, %v90_v5, %v29_v9 }
  0x76   :  { %v21_v11 = vpop.xlane.xlu0 %20 }
  0x77   :  { %v32_v12 = vmul.f32 %v31_v10, %v21_v11 }
  0x79   :  { %v34_v13 = vsub.f32 %v14_v0, %v32_v12 }
  0x7b   :  { %v36_v14 = vmul.f32 %v34_v13, %v34_v13 }
  0x7d   :  { %v38_v15 = vsel %vm18_vm0, %v36_v14, 0.0 }
  0x7e   :  { %39 = vadd.xlane.f32.xlu1 %v38_v15  ;;  %v24_v16 = vpop.xlane.xlu0 %23 }
  0x7f   :  { %v33_v17 = vmul.f32 %v31_v10, %v24_v16 }
  0x81   :  { %v35_v18 = vsub.f32 %v15_v2, %v33_v17 }
  0x83   :  { %v37_v19 = vmul.f32 %v35_v18, %v35_v18 }
  0x85   :  { %v41_v20 = vsel %vm18_vm0, %v37_v19, 0.0 }
  0x86   :  { %42 = vadd.xlane.f32.xlu1 %v41_v20 }
  0xf1   :  { %v40_v21 = vpop.xlane.xlu1 %39 }
  0xf2   :  { %v44_v22 = vmul.f32 %v40_v21, %v31_v10 }
  0xf4   :  { %v46_v23 = vadd.f32 1e-05, %v44_v22 }
  0xf6   :  { %91 = vrsqrt.f32 %v46_v23  ;;  %vm54_vm3 = vweird.f32 %v46_v23 }
  0xf9   :  { %v43_v24 = vpop.xlane.xlu1 %42 }
  0xfa   :  { %v45_v25 = vmul.f32 %v43_v24, %v31_v10 }
  0xfc   :  { %v92_v26 = vpop.eup %91  ;;  %v47_v27 = vadd.f32 1e-05, %v45_v25 }
  0xfd   :  { %v49_v28 = vmul.f32 %v92_v26, %v46_v23  ;;  %vm55_vm2 = vweird.f32 %v92_v26 }
  0xfe   :  { %93 = vrsqrt.f32 %v47_v27  ;;  %vm56_vm4 = vmor %vm54_vm3, %vm55_vm2  ;;  %vm64_vm6 = vweird.f32 %v47_v27 }
  0xff   :  { %v50_v29 = vmul.f32 %v92_v26, %v49_v28 }
 0x101   :  { %v51_v30 = vmul.f32 0.5, %v50_v29 }
 0x103   :  { %v52_v31 = vsub.f32 1.5, %v51_v30 }
 0x104   :  { %v94_v32 = vpop.eup %93 }
 0x105   :  { %v53_v33 = vmul.f32 %v92_v26, %v52_v31  ;;  %v59_v34 = vmul.f32 %v94_v32, %v47_v27  ;;  %vm65_vm5 = vweird.f32 %v94_v32 }
 0x106   :  { %vm66_vm7 = vmor %vm64_vm6, %vm65_vm5 }
 0x107   :  { %v57_v36 = vsel %vm56_vm4, %v92_v26, %v53_v33  ;;  %v60_v37 = vmul.f32 %v94_v32, %v59_v34 }
 0x108   :  { %v68_v39 = vmul.f32 %v57_v36, %v34_v13 }
 0x109   :  { %v61_v40 = vmul.f32 0.5, %v60_v37 }
 0x10a   :  { %v73_v41 = vmul.f32 %v87_v35, %v68_v39 }
 0x10b   :  { %v62_v42 = vsub.f32 1.5, %v61_v40 }
 0x10c   :  { %v78_v43 = vadd.f32 %v88_v38, %v73_v41 }
 0x10d   :  { %v63_v44 = vmul.f32 %v94_v32, %v62_v42 }
 0x10e   :  { %80 = vst.msk [vmem:[%s143_s3] sm:$0xff] %vm18_vm0, %v78_v43 }
 0x10f   :  { %v67_v45 = vsel %vm66_vm7, %v94_v32, %v63_v44 }
 0x110   :  { %v69_v46 = vmul.f32 %v67_v45, %v35_v18 }
 0x112   :  { %v74_v47 = vmul.f32 %v87_v35, %v69_v46 }
 0x114   :  { %v79_v48 = vadd.f32 %v88_v38, %v74_v47 }
 0x116   :  { %81 = vst.msk [vmem:[%s143_s3 + $0x8] sm:$0xff] %vm18_vm0, %v79_v48 }

// kernel: sep_transformer_forward.51
= control target key start
LH: loop header
LB: loop body
LE: loop exit
PB: predicated region body
PF: predicated region fallthrough
CT: control target
= control target key end

     0   :  { %14 = vsyncpa [#allocation3], 0  ;;  %s1565_s0 = inlined_call_operand.vmem [shape: bf16[2,8,32], index: 0, kind: input, shape index: {}]   ;;  %s1566_s1 = inlined_call_operand.vmem [shape: bf16[2,16,32], index: 1, kind: input, shape index: {}]   ;;  %s1567_s2 = inlined_call_operand.vmem [shape: bf16[2,16,32], index: 2, kind: input, shape index: {}]   ;;  %s1568_s3 = inlined_call_operand.vmem [shape: f32[2,1,16], index: 3, kind: input, shape index: {}]   ;;  %s1569_s4 = inlined_call_operand.vmem [shape: f32[2,8,32], index: 4, kind: input, shape index: {}]   ;;  %s1570_s5 = inlined_call_operand.hbm [shape: bf16[32,32], index: 5, kind: input, shape index: {}]   ;;  %s1571_s6 = inlined_call_operand.hbm [shape: f32[1,32], index: 6, kind: input, shape index: {}]   ;;  %s1572_s7 = inlined_call_operand.hbm [shape: f32[1,32], index: 7, kind: input, shape index: {}]   ;;  %s1573_s8 = inlined_call_operand.hbm [shape: f32[1,32], index: 8, kind: input, shape index: {}]   ;;  %s1574_s9 = inlined_call_operand.vmem [shape: f32[2,8,32], index: 9, kind: output, shape index: {}]  }
   0x1   :  { %15 = vsyncpa [#allocation5], 0 }
   0x2   :  { %16 = vsyncpa [#allocation8], 0  ;;  %s1424_s30 = smov 0   ;;  %s1426_s10 = smov 0  }
   0x3   :  { %s1428_s11 = smov 0  }
   0x4 LB: > { %s311_s14 = sshll.u32 %s1571_s6, 4  ;;  %s1054_s15 = sadd.s32 4294967295, %s1359_s11   ;;  %s1359_s11 = sphi %s1428_s11, %s22_s11   ;;  %s1355_s10 = sphi %s1426_s10, %s1579_s10   ;;  %s1351_s30 = sphi %s1424_s30, %s1578_s30   ;;  %s312_s14 = int_to_ptr.hbm [resolvable:$true] %s311_s14 }
   0x5   : > { %p1056_p0 = scmp.ge.s32.totalorder %s1359_s11, 1  ;;  %p285_p1 = scmp.lt.s32.totalorder %s1359_s11, 3 }
   0x6   : > { %p1445_p2 = scmp.eq.s32.totalorder %s1054_s15, 0  ;;  %s1361_s18 = smov [#allocation4]  }
   0x7   : > { %p1449_p3 = pnand %p1056_p0, %p285_p1  ;;  %s313_s19 = sshll.u32 %s1361_s18, 4  ;;  %s314_s19 = int_to_ptr.vmem [resolvable:$true] %s313_s19 }
   0x8   : > { %s34_s21 = sadd.s32 1, %s1355_s10  ;;  %s296_s24 = sshll.u32 %s1570_s5, 4  ;;  %s297_s24 = int_to_ptr.hbm [resolvable:$true] %s296_s24 }
   0x9   : > { %p1123_p4 = pneg %p1449_p3  ;;  %p36_p6 = scmp.ge.s32.totalorder %s34_s21, 2 }
   0xa   : > { %s1362_s25 = smov [#allocation2]   ;;  %s323_s29 = sshll.u32 %s1572_s7, 4  ;;  %s324_s29 = int_to_ptr.hbm [resolvable:$true] %s323_s29 }
   0xb   : > { %p1457_p5 = pnand %p1445_p2, %p1123_p4  ;;  %s1581_s21 = smov (%p36_p6, %s34_s21), 0 }
   0xc   : > { %s298_s26 = sshll.u32 %s1362_s25, 4  ;;  %s1363_s12 = smov 64   ;;  %s299_s26 = int_to_ptr.vmem [resolvable:$true] %s298_s26 }
   0xd   : > { %1129 = dma.hbm_to_vmem [thread:$0]  (!%p1457_p5), %s312_s14, 16, %s314_s19, [#allocation5]  }
   0xe   : > { %s1364_s13 = smov 4   ;;  %s1365_s15 = smov [#allocation6]  }
   0xf   : > { %1126 = dma.hbm_to_vmem [thread:$0]  (!%p1457_p5), %s297_s24, 256, %s299_s26, [#allocation3], %s1363_s12, %s1363_s12, %s1364_s13  }
  0x10   : > { %s325_s18 = sshll.u32 %s1365_s15, 4  ;;  %s335_s14 = sshll.u32 %s1573_s8, 4  ;;  %s326_s18 = int_to_ptr.vmem [resolvable:$true] %s325_s18  ;;  %s336_s14 = int_to_ptr.hbm [resolvable:$true] %s335_s14 }
  0x11   : > { %1132 = dma.hbm_to_vmem [thread:$0]  (!%p1457_p5), %s324_s29, 16, %s326_s18, [#allocation5]  }
  0x12   : > { %s1366_s19 = smov [#allocation7]   ;;  %392 = sbr.rel (%p1449_p3) target bundleno = 1246 (0x4de), region = 56 }
  0x13   : > { %s337_s25 = sshll.u32 %s1366_s19, 4  ;;  %s338_s25 = int_to_ptr.vmem [resolvable:$true] %s337_s25 }
  0x14   : > { %1135 = dma.hbm_to_vmem [thread:$0]  (!%p1457_p5), %s336_s14, 16, %s338_s25, [#allocation8]  }
  0x17   : > { %1338 = dma.done.wait (%p1445_p2), [#allocation3], 256  }
  0x18   : > { %1340 = vsyncadd (%p1445_p2), [#allocation3], 4294967040 }
  0x19   : > { %1342 = dma.done.wait (%p1445_p2), [#allocation5], 32  }
  0x1a   : > { %1344 = vsyncadd (%p1445_p2), [#allocation5], 4294967264 }
  0x1b   : > { %1346 = dma.done.wait (%p1445_p2), [#allocation8], 16  }
  0x1c   : > { %1348 = vsyncadd (%p1445_p2), [#allocation8], 4294967280  ;;  %p468_p7 = scmp.lt.s32.totalorder %s1351_s30, 1  ;;  %vm517_vm0 = vcmask 64512   ;;  %s1367_s18 = smov 104   ;;  %vm537_vm1 = vcmask 130048  }
  0x1d   : > { %s1368_s22 = smov 120   ;;  %s1369_s23 = smov 112  }
  0x1e   : > { %s1583_s30 = smov (!%p468_p7, %s1351_s30), 1  ;;  %s1370_s25 = smov 8  }
  0x1f   : > { %s1497_s17 = sshll.u32 %s1583_s30, 3  ;;  %s1067_s20 = sshll.u32 %s1583_s30, 2 }
  0x20   : > { %s479_s27 = scalar_lea.vmem %s1566_s1, %s1497_s17  ;;  %s474_s12 = scalar_lea.vmem %s1565_s0, %s1067_s20 }
  0x21   : > { %s487_s15 = scalar_lea.vmem %s1568_s3, %s1583_s30  ;;  %v1103_v0 = vld [vmem:[%s479_s27] sm:$0xff]  ;;  %s484_s19 = scalar_lea.vmem %s1567_s2, %s1497_s17 }
  0x22   : > { %v503_v1 = vld [vmem:[%s474_s12] sm:$0xf]  ;;  %v522_v3 = vsel %vm517_vm0, %v1103_v0, 0  ;;  %727 = vrot.lane.b32.xlu2 %v1103_v0, %s1367_s18  ;;  %s1371_s20 = smov 24   ;;  %s1372_s24 = smov 16  }
  0x23   : > { %v587_v2 = vunpack.c.l.b16 %v503_v1  ;;  %531 = vmatpush.bf16.xpose.msra.mxu0 %v522_v3  ;;  %v1181_v8 = vld [vmem:[%s487_s15] ss:$0 sm:$0xff]  ;;  %s494_s28 = scalar_lea.vmem %s1569_s4, %s1497_s17  ;;  %s501_s13 = scalar_lea.vmem %s1574_s9, %s1497_s17 }
  0x24   : > { %v1104_v15 = vld [vmem:[%s484_s19] sm:$0xff] }
  0x25   : > { %v588_v4 = vpack.c.b16 %v587_v2, %v587_v2  ;;  %564 = vmatpush.bf16.msra.mxu1 %v1104_v15 }
  0x27   : > { %589 = vrot.lane.b32.xlu1 %v588_v4, %s1368_s22 }
  0x2a   : > { %1078 = vmatmul.msk.bf16.vlgmr.msra.gmra.mxu0 %vm517_vm0, %v503_v1  ;;  %657 = vrot.lane.b32.xlu2 %v588_v4, %s1369_s23 }
  0x2f   : > { %659 = vrot.lane.b32.xlu1 %v1103_v0, %s1369_s23 }
  0x37   : > { %725 = vrot.lane.b32.xlu1 %v588_v4, %s1367_s18 }
  0x3f   : > { %622 = vrot.lane.b32.xlu1 %v1104_v15, %s1368_s22 }
  0x7c   : > { %v728_v6 = vpop.permute.xlu2 %727 }
  0x7d   : > { %v733_v7 = vsel %vm517_vm0, %v728_v6, 0 }
  0x7e   : > { %742 = vmatpush.bf16.xpose.msrb.mxu0 %v733_v7 }
  0x84   : > { %v658_v28 = vpop.permute.xlu2 %657 }
  0x99   : > { %v590_v5 = vpop.permute.xlu1 %589 }
  0xa1   : > { %v660_v10 = vpop.permute.xlu1 %659 }
  0xa2   : > { %v665_v16 = vsel %vm517_vm0, %v660_v10, 0 }
  0xa3   : > { %674 = vmatpush.bf16.xpose.msrb.mxu1 %v665_v16 }
  0xa7   : > { %v533_v9 = vpop.f32.mrf.mxu0 }
  0xa8   : > { %v534_v11 = vadd.f32 %v1181_v8, %v533_v9 }
  0xa9   : > { %v726_v14 = vpop.permute.xlu1 %725 }
  0xaa   : > { %v538_v12 = vsel %vm537_vm1, %v534_v11, -inf  ;;  %1088 = vmatmul.msk.bf16.vlgmr.msrb.gmra.mxu0 %vm517_vm0, %v726_v14 }
  0xab   : > { %539 = vmax.xlane.f32.xlu0 %v538_v12 }
  0xaf   : > { %v535_v13 = vpop.f32.mrf.mxu0 }
  0xb1   : > { %v623_v31 = vpop.permute.xlu1 %622 }
  0xb2   : > { %635 = vmatpush.bf16.msra.mxu3 %v623_v31 }
  0xbf   : > { %591 = vrot.lane.b32.xlu0 %v1103_v0, %s1368_s22 }
 0x11e   : > { %v540_v17 = vpop.xlane.xlu0 %539 }
 0x11f   : > { %v541_v18 = vsub.f32 %v534_v11, %v540_v17 }
 0x121   : > { %v542_v19 = vmul.f32 1.442695, %v541_v18 }
 0x123   : > { %1185 = vpow2.f32 %v542_v19 }
 0x127   : > { %v744_v22 = vpop.f32.mrf.mxu0 }
 0x128   : > { %v745_v23 = vadd.f32 %v1181_v8, %v744_v22 }
 0x129   : > { %v1186_v20 = vpop.eup %1185 }
 0x12a   : > { %v547_v21 = vpack.c.bf16 %v1186_v20, %v1186_v20  ;;  %v748_v24 = vsel %vm537_vm1, %v745_v23, -inf  ;;  %v544_v40 = vsel %vm537_vm1, %v1186_v20, 0.0 }
 0x12b   : > { %749 = vmax.xlane.f32.xlu1 %v748_v24 }
 0x12c   : > { %1083 = vmatmul.msk.bf16.vlgmr.msra.gmra.mxu1 %vm537_vm1, %v547_v21 }
 0x12f   : > { %v746_v27 = vpop.f32.mrf.mxu0 }
 0x131   : > { %v592_v25 = vpop.permute.xlu0 %591 }
 0x132   : > { %v597_v26 = vsel %vm517_vm0, %v592_v25, 0 }
 0x133   : > { %606 = vmatpush.bf16.xpose.msra.mxu2 %v597_v26 }
 0x13a   : > { %1084 = vmatmul.msk.bf16.vlgmr.msra.gmra.mxu2 %vm517_vm0, %v590_v5 }
 0x13c   : > { %1086 = vmatmul.msk.bf16.vlgmr.msrb.gmra.mxu1 %vm517_vm0, %v658_v28 }
 0x19e   : > { %v750_v42 = vpop.xlane.xlu1 %749 }
 0x19f   : > { %v751_v45 = vsub.f32 %v745_v23, %v750_v42 }
 0x1a1   : > { %v752_v49 = vmul.f32 1.442695, %v751_v45 }
 0x1a9   : > { %v1528_v29 = vpop.f32.mrf.mxu1 }
 0x1b1   : > { %v568_v30 = vpop.f32.mrf.mxu1 }
 0x1b9   : > { %v676_v32 = vpop.f32.mrf.mxu1 }
 0x1ba   : > { %v677_v33 = vadd.f32 %v1181_v8, %v676_v32 }
 0x1bc   : > { %v680_v34 = vsel %vm537_vm1, %v677_v33, -inf }
 0x1bd   : > { %681 = vmax.xlane.f32.xlu0 %v680_v34  ;;  %v608_v35 = vpop.f32.mrf.mxu2 }
 0x1be   : > { %v609_v36 = vadd.f32 %v1181_v8, %v608_v35 }
 0x1c0   : > { %v612_v37 = vsel %vm537_vm1, %v609_v36, -inf }
 0x1c1   : > { %613 = vmax.xlane.f32.xlu2 %v612_v37  ;;  %v678_v38 = vpop.f32.mrf.mxu1 }
 0x1c5   : > { %v610_v39 = vpop.f32.mrf.mxu2 }
 0x1d1   : > { %758 = vrot.lane.b32.xlu0 %v1104_v15, %s1367_s18 }
 0x1d9   : > { %690 = vrot.lane.b32.xlu2 %v1104_v15, %s1369_s23 }
 0x1fb   : > { %545 = vadd.xlane.f32.xlu0 %v544_v40  ;;  %v1106_v40 = vld [vmem:[#allocation2 + $0x8] sm:$0xff] }
 0x1fc   : > { %837 = vmatpush.bf16.msra.mxu1 %v1106_v40 }
 0x230   : > { %v682_v41 = vpop.xlane.xlu0 %681 }
 0x231   : > { %v683_v43 = vsub.f32 %v677_v33, %v682_v41  ;;  %v1105_v41 = vld [vmem:[#allocation2] sm:$0xff] }
 0x232   : > { %838 = vmatpush.bf16.msra.mxu1 %v1105_v41 }
 0x233   : > { %v684_v44 = vmul.f32 1.442695, %v683_v43 }
 0x234   : > { %v614_v46 = vpop.xlane.xlu2 %613 }
 0x235   : > { %1187 = vpow2.f32 %v684_v44  ;;  %v615_v47 = vsub.f32 %v609_v36, %v614_v46 }
 0x237   : > { %v616_v48 = vmul.f32 1.442695, %v615_v47 }
 0x239   : > { %1189 = vpow2.f32 %v616_v48 }
 0x23a   : > { %1191 = vpow2.f32 %v752_v49 }
 0x23b   : > { %v1188_v50 = vpop.eup %1187 }
 0x23c   : > { %v686_v51 = vsel %vm537_vm1, %v1188_v50, 0.0  ;;  %v691_v52 = vpop.permute.xlu2 %690  ;;  %v689_v60 = vpack.c.bf16 %v1188_v50, %v1188_v50 }
 0x23d   : > { %687 = vadd.xlane.f32.xlu2 %v686_v51  ;;  %703 = vmatpush.bf16.msrb.mxu3 %v691_v52 }
 0x23f   : > { %v1190_v53 = vpop.eup %1189 }
 0x240   : > { %v618_v54 = vsel %vm537_vm1, %v1190_v53, 0.0  ;;  %v621_v55 = vpack.c.bf16 %v1190_v53, %v1190_v53  ;;  %v1192_v56 = vpop.eup %1191 }
 0x241   : > { %619 = vadd.xlane.f32.xlu1 %v618_v54  ;;  %v757_v58 = vpack.c.bf16 %v1192_v56, %v1192_v56  ;;  %v754_v59 = vsel %vm537_vm1, %v1192_v56, 0.0 }
 0x242   : > { %1085 = vmatmul.msk.bf16.vlgmr.msra.gmra.mxu3 %vm537_vm1, %v621_v55 }
 0x243   : > { %v759_v57 = vpop.permute.xlu0 %758 }
 0x244   : > { %771 = vmatpush.bf16.msrb.mxu2 %v759_v57 }
 0x247   : > { %1089 = vmatmul.msk.bf16.vlgmr.msrb.gmra.mxu2 %vm537_vm1, %v757_v58 }
 0x249   : > { %755 = vadd.xlane.f32.xlu1 %v754_v59 }
 0x252   : > { %1087 = vmatmul.msk.bf16.vlgmr.msrb.gmra.mxu3 %vm537_vm1, %v689_v60 }
 0x26e   : > { %v546_v42 = vpop.xlane.xlu0 %545 }
 0x26f   : > { %v581_v48 = vand.u32 2147483648, %v546_v42  ;;  %vm575_vm15 = vweird.f32 %v546_v42  ;;  %v579_v49 = vand.u32 2147483647, %v546_v42 }
 0x271   : > { %v582_v52 = vor.u32 1.1754944e-38, %v581_v48 }
 0x2b0   : > { %v688_v62 = vpop.xlane.xlu2 %687 }
 0x2b1   : > { %v720_v31 = vand.u32 2147483648, %v688_v62  ;;  %vm714_vm11 = vweird.f32 %v688_v62  ;;  %v718_v32 = vand.u32 2147483647, %v688_v62 }
 0x2b3   : > { %v721_v35 = vor.u32 1.1754944e-38, %v720_v31  ;;  %vm719_vm13 = vcmp.eq.f32.partialorder %v718_v32, 8.507059e+37 }
 0x2b4   : > { %v620_v61 = vpop.xlane.xlu1 %619 }
 0x2b5   : > { %1193 = vrcp.f32 %v620_v61  ;;  %v652_v4 = vand.u32 2147483648, %v620_v61  ;;  %v650_v6 = vand.u32 2147483647, %v620_v61  ;;  %vm646_vm3 = vweird.f32 %v620_v61 }
 0x2b6   : > { %1195 = vrcp.f32 %v688_v62 }
 0x2b7   : > { %v653_v10 = vor.u32 1.1754944e-38, %v652_v4  ;;  %vm651_vm5 = vcmp.eq.f32.partialorder %v650_v6, 8.507059e+37 }
 0x2bb   : > { %v1194_v63 = vpop.eup %1193 }
 0x2bc   : > { %v642_v0 = vmul.f32 %v1194_v63, %v620_v61  ;;  %v756_v1 = vpop.xlane.xlu1 %755  ;;  %v1196_v3 = vpop.eup %1195  ;;  %vm647_vm2 = vweird.f32 %v1194_v63  ;;  %v809_v61 = vld [vmem:[%s494_s28] sm:$0xff] }
 0x2bd   : > { %1197 = vrcp.f32 %v756_v1  ;;  %v710_v7 = vmul.f32 %v1196_v3, %v688_v62  ;;  %vm648_vm4 = vmor %vm646_vm3, %vm647_vm2  ;;  %v788_v18 = vand.u32 2147483648, %v756_v1  ;;  %v786_v20 = vand.u32 2147483647, %v756_v1  ;;  %v1182_v62 = vld [vmem:[#allocation4] ss:$0 sm:$0xff] }
 0x2be   : > { %v643_v2 = vsub.f32 1.0, %v642_v0  ;;  %vm782_vm7 = vweird.f32 %v756_v1  ;;  %vm715_vm10 = vweird.f32 %v1196_v3  ;;  %1199 = vrcp.f32 %v546_v42 }
 0x2bf   : > { %v711_v15 = vsub.f32 1.0, %v710_v7  ;;  %v789_v24 = vor.u32 1.1754944e-38, %v788_v18  ;;  %vm787_vm9 = vcmp.eq.f32.partialorder %v786_v20, 8.507059e+37  ;;  %vm716_vm12 = vmor %vm714_vm11, %vm715_vm10  ;;  %vm580_vm3 = vcmp.eq.f32.partialorder %v579_v49, 8.507059e+37 }
 0x2c0   : > { %v644_v5 = vmul.f32 %v1194_v63, %v643_v2 }
 0x2c1   : > { %v712_v23 = vmul.f32 %v1196_v3, %v711_v15 }
 0x2c2   : > { %v645_v8 = vadd.f32 %v1194_v63, %v644_v5 }
 0x2c3   : > { %v1198_v9 = vpop.eup %1197  ;;  %v713_v30 = vadd.f32 %v1196_v3, %v712_v23 }
 0x2c4   : > { %v778_v11 = vmul.f32 %v1198_v9, %v756_v1  ;;  %v649_v12 = vsel %vm648_vm4, %v1194_v63, %v645_v8  ;;  %vm783_vm6 = vweird.f32 %v1198_v9  ;;  %v1200_v43 = vpop.eup %1199  ;;  %vm807_vm4 = vcmask 195584  }
 0x2c5   : > { %v637_v13 = vpop.f32.mrf.mxu3  ;;  %v654_v14 = vsel %vm651_vm5, %v653_v10, %v649_v12  ;;  %vm784_vm8 = vmor %vm782_vm7, %vm783_vm6  ;;  %v717_v34 = vsel %vm716_vm12, %v1196_v3, %v713_v30  ;;  %v571_v44 = vmul.f32 %v1200_v43, %v546_v42  ;;  %vm576_vm14 = vweird.f32 %v1200_v43 }
 0x2c6   : > { %v779_v16 = vsub.f32 1.0, %v778_v11  ;;  %v656_v17 = vmul.f32 %v654_v14, %v637_v13  ;;  %v722_v37 = vsel %vm719_vm13, %v721_v35, %v717_v34  ;;  %vm577_vm2 = vmor %vm575_vm15, %vm576_vm14  ;;  %vm827_vm5 = vcmask 261120  }
 0x2c7   : > { %v572_v45 = vsub.f32 1.0, %v571_v44  ;;  %v1373_v3 = vmov 32.0  }
 0x2c8   : > { %794 = vrot.lane.b32.xlu1 %v656_v17, %s1370_s25  ;;  %v780_v19 = vmul.f32 %v1198_v9, %v779_v16  ;;  %1201 = vrcp.f32 %v1373_v3 }
 0x2c9   : > { %v573_v46 = vmul.f32 %v1200_v43, %v572_v45 }
 0x2ca   : > { %v773_v21 = vpop.f32.mrf.mxu2  ;;  %v781_v22 = vadd.f32 %v1198_v9, %v780_v19 }
 0x2cb   : > { %v574_v47 = vadd.f32 %v1200_v43, %v573_v46 }
 0x2cc   : > { %v785_v25 = vsel %vm784_vm8, %v1198_v9, %v781_v22 }
 0x2cd   : > { %v790_v26 = vsel %vm787_vm9, %v789_v24, %v785_v25  ;;  %v639_v27 = vpop.f32.mrf.mxu3  ;;  %v578_v51 = vsel %vm577_vm2, %v1200_v43, %v574_v47  ;;  %v1183_v24 = vld [vmem:[#allocation6] ss:$0 sm:$0xff] }
 0x2ce   : > { %v792_v28 = vmul.f32 %v790_v26, %v773_v21  ;;  %v583_v53 = vsel %vm580_vm3, %v582_v52, %v578_v51  ;;  %v1202_v4 = vpop.eup %1201  ;;  %v1184_v26 = vld [vmem:[#allocation7] ss:$0 sm:$0xff] }
 0x2cf   : > { %v585_v54 = vmul.f32 %v583_v53, %v1528_v29  ;;  %v856_v5 = vmul.f32 32.0, %v1202_v4 }
 0x2d0   : > { %802 = vrot.lane.b32.xlu2 %v792_v28, %s1371_s20 }
 0x2d1   : > { %v857_v6 = vsub.f32 1.0, %v856_v5 }
 0x2d2   : > { %v775_v33 = vpop.f32.mrf.mxu2 }
 0x2d3   : > { %v858_v7 = vmul.f32 %v1202_v4, %v857_v6 }
 0x2d5   : > { %v705_v36 = vpop.f32.mrf.mxu3  ;;  %v859_v8 = vadd.f32 %v1202_v4, %v858_v7 }
 0x2d6   : > { %v724_v38 = vmul.f32 %v722_v37, %v705_v36 }
 0x2d8   : > { %798 = vrot.lane.b32.xlu1 %v724_v38, %s1372_s24 }
 0x2dd   : > { %v707_v39 = vpop.f32.mrf.mxu3 }
 0x32a   : > { %v803_v57 = vpop.permute.xlu2 %802 }
 0x33a   : > { %v795_v50 = vpop.permute.xlu1 %794 }
 0x33b   : > { %v805_v55 = vsel %vm517_vm0, %v585_v54, %v795_v50  ;;  %vm860_vm0 = vweird.f32 %v1202_v4 }
 0x33c   : > { %v861_v9 = vsel %vm860_vm0, %v1202_v4, %v859_v8 }
 0x34a   : > { %v799_v56 = vpop.permute.xlu1 %798 }
 0x34b   : > { %v806_v58 = vsel %vm537_vm1, %v805_v55, %v799_v56 }
 0x34c   : > { %v808_v59 = vsel %vm807_vm4, %v806_v58, %v803_v57 }
 0x34d   : > { %v814_v60 = vpack.c.bf16 %v808_v59, %v808_v59 }
 0x34f   : > { %1098 = vmatmul.msk.bf16.vlgmr.msra.gmra.mxu1 %vm827_vm5, %v814_v60 }
 0x3cc   : > { %v840_v63 = vpop.f32.mrf.mxu1 }
 0x3cd   : > { %v844_v29 = vadd.f32 %v840_v63, %v809_v61 }
 0x3cf   : > { %v849_v0 = vadd.f32 %v1182_v62, %v844_v29 }
 0x3d1   : > { %v852_v1 = vsel %vm827_vm5, %v849_v0, 0.0 }
 0x3d2   : > { %853 = vadd.xlane.f32.xlu1 %v852_v1 }
 0x3d4   : > { %v842_v2 = vpop.f32.mrf.mxu1 }
 0x445   : > { %v854_v10 = vpop.xlane.xlu1 %853 }
 0x446   : > { %v862_v11 = vmul.f32 %v861_v9, %v854_v10 }
 0x448   : > { %v863_v12 = vsub.f32 %v849_v0, %v862_v11 }
 0x44a   : > { %v864_v13 = vmul.f32 %v863_v12, %v863_v12 }
 0x44c   : > { %v865_v14 = vsel %vm827_vm5, %v864_v13, 0.0 }
 0x44d   : > { %866 = vadd.xlane.f32.xlu0 %v865_v14 }
 0x4c0   : > { %v867_v15 = vpop.xlane.xlu0 %866 }
 0x4c1   : > { %v868_v16 = vmul.f32 %v867_v15, %v861_v9 }
 0x4c3   : > { %v869_v17 = vadd.f32 1e-05, %v868_v16 }
 0x4c5   : > { %1203 = vrsqrt.f32 %v869_v17  ;;  %vm876_vm6 = vweird.f32 %v869_v17 }
 0x4cb   : > { %v1204_v18 = vpop.eup %1203 }
 0x4cc   : > { %v871_v19 = vmul.f32 %v1204_v18, %v869_v17  ;;  %vm877_vm1 = vweird.f32 %v1204_v18 }
 0x4cd   : > { %vm878_vm7 = vmor %vm876_vm6, %vm877_vm1 }
 0x4ce   : > { %v872_v20 = vmul.f32 %v1204_v18, %v871_v19 }
 0x4d0   : > { %v873_v21 = vmul.f32 0.5, %v872_v20 }
 0x4d2   : > { %v874_v22 = vsub.f32 1.5, %v873_v21 }
 0x4d4   : > { %v875_v23 = vmul.f32 %v1204_v18, %v874_v22 }
 0x4d6   : > { %v879_v25 = vsel %vm878_vm7, %v1204_v18, %v875_v23 }
 0x4d7   : > { %v880_v27 = vmul.f32 %v879_v25, %v863_v12 }
 0x4d9   : > { %v884_v28 = vmul.f32 %v1183_v24, %v880_v27 }
 0x4db   : > { %v888_v30 = vadd.f32 %v1184_v26, %v884_v28 }
 0x4dd   : > { %889 = vst.msk [vmem:[%s501_s13] sm:$0xff] %vm827_vm5, %v888_v30 }
 0x4de PF: > { %s22_s11 = sadd.s32 1, %s1359_s11   ;;  %s1578_s30 = smov %s1355_s10 }
 0x4df   : > { %p19_p8 = scmp.ge.s32.totalorder %s22_s11, 4   ;;  %s1579_s10 = smov %s1581_s21 }
 0x4e1   :  { %21 = sbr.rel (!%p19_p8) target bundleno = 4 (0x4), region = 115 }
 0x4e6   :  { %915 = vsyncpa [#allocation3], 1 }
 0x4e7   :  { %917 = vsyncpa [#allocation3 + $0x1], 1 }
 0x4e8   :  { %918 = vsyncpa [#allocation5], 1 }
 0x4e9   :  { %919 = vsyncpa [#allocation8], 1 }

// kernel: sep_transformer_forward.54
= control target key start
LH: loop header
LB: loop body
LE: loop exit
PB: predicated region body
PF: predicated region fallthrough
CT: control target
= control target key end

     0   :  { %vm51_vm0 = vcmask 261120   ;;  %vm69_vm1 = vcmask 257024   ;;  %s231_s2 = inlined_call_operand.vmem [shape: bf16[32,64], index: 2, kind: input, shape index: {}]   ;;  %s232_s0 = inlined_call_operand.vmem [shape: f32[8,32], index: 0, kind: input, shape index: {}]   ;;  %s233_s1 = inlined_call_operand.vmem [shape: f32[8,32], index: 1, kind: input, shape index: {}]   ;;  %s234_s4 = inlined_call_operand.vmem [shape: bf16[32,32], index: 4, kind: input, shape index: {}]   ;;  %s235_s3 = inlined_call_operand.vmem [shape: f32[1,64], index: 3, kind: input, shape index: {}]   ;;  %s236_s5 = inlined_call_operand.vmem [shape: f32[1,32], index: 5, kind: input, shape index: {}]   ;;  %s237_s6 = inlined_call_operand.vmem [shape: bf16[8,32], index: 6, kind: output, shape index: {0}]   ;;  %s238_s8 = inlined_call_operand.vmem [shape: bf16[8,32], index: 8, kind: output, shape index: {2}]   ;;  %s239_s7 = inlined_call_operand.vmem [shape: bf16[8,32], index: 7, kind: output, shape index: {1}]  }
   0x1   :  { %v146_v0 = vld [vmem:[%s231_s2 + $0x8] sm:$0xff]  ;;  %v27_v1 = vld [vmem:[%s232_s0] sm:$0xff] }
   0x2   :  { %v28_v2 = vld [vmem:[%s233_s1] sm:$0xff]  ;;  %v148_v3 = vld [vmem:[%s234_s4 + $0x8] sm:$0xff]  ;;  %61 = vmatpush.bf16.msra.mxu0 %v146_v0  ;;  %v80_v8 = vpack.c.bf16 %v27_v1, %v27_v1 }
   0x3   :  { %v145_v4 = vld [vmem:[%s231_s2] sm:$0xff]  ;;  %v29_v5 = vadd.f32 %v28_v2, %v27_v1  ;;  %106 = vmatpush.bf16.msra.mxu1 %v148_v3  ;;  %s152_s2 = smov 96  }
   0x4   :  { %v147_v6 = vld [vmem:[%s234_s4] sm:$0xff] }
   0x5   :  { %v34_v7 = vpack.c.bf16 %v29_v5, %v29_v5  ;;  %v150_v9 = vld [vmem:[%s235_s3] ss:$0 sm:$0xff] }
   0x6   :  { %62 = vmatpush.bf16.msra.mxu0 %v145_v4  ;;  %v151_v10 = vld [vmem:[%s236_s5] ss:$0 sm:$0xff] }
   0x7   :  { %107 = vmatpush.bf16.msra.mxu1 %v147_v6 }
   0x9   :  { %135 = vmatmul.msk.bf16.vlgmr.msra.gmra.mxu0 %vm51_vm0, %v34_v7 }
   0xa   :  { %144 = vmatmul.msk.bf16.vlgmr.msra.gmra.mxu1 %vm51_vm0, %v80_v8 }
  0x86   :  { %v64_v11 = vpop.f32.mrf.mxu0 }
  0x87   :  { %v65_v12 = vadd.f32 %v150_v9, %v64_v11  ;;  %v109_v13 = vpop.f32.mrf.mxu1 }
  0x88   :  { %v110_v14 = vadd.f32 %v151_v10, %v109_v13 }
  0x89   :  { %v68_v15 = vpack.c.bf16 %v65_v12, %v65_v12 }
  0x8a   :  { %v113_v16 = vpack.c.bf16 %v110_v14, %v110_v14 }
  0x8b   :  { %72 = vrot.lane.b32.xlu0 %v68_v15, %s152_s2  ;;  %70 = vst.msk [vmem:[%s237_s6] sm:$0xf] %vm69_vm1, %v68_v15 }
  0x8c   :  { %114 = vst.msk [vmem:[%s238_s8] sm:$0xf] %vm69_vm1, %v113_v16 }
  0x8e   :  { %v66_v17 = vpop.f32.mrf.mxu0 }
  0x8f   :  { %v111_v18 = vpop.f32.mrf.mxu1 }
  0xfd   :  { %v73_v19 = vpop.permute.xlu0 %72 }
  0xfe   :  { %75 = vst.msk [vmem:[%s239_s7] sm:$0xf] %vm69_vm1, %v73_v19 }

// kernel: sep_transformer_forward.56
= control target key start
LH: loop header
LB: loop body
LE: loop exit
PB: predicated region body
PF: predicated region fallthrough
CT: control target
= control target key end

     0   :  { %vm42_vm0 = vcmask 261120   ;;  %vm60_vm1 = vcmask 257024   ;;  %s121_s2 = inlined_call_operand.vmem [shape: bf16[32,32], index: 2, kind: input, shape index: {}]   ;;  %s122_s0 = inlined_call_operand.vmem [shape: f32[8,32], index: 0, kind: input, shape index: {}]   ;;  %s123_s1 = inlined_call_operand.vmem [shape: f32[8,32], index: 1, kind: input, shape index: {}]   ;;  %s124_s3 = inlined_call_operand.vmem [shape: f32[1,32], index: 3, kind: input, shape index: {}]   ;;  %s125_s4 = inlined_call_operand.vmem [shape: bf16[8,32], index: 4, kind: output, shape index: {}]  }
   0x1   :  { %v76_v0 = vld [vmem:[%s121_s2 + $0x8] sm:$0xff]  ;;  %v18_v1 = vld [vmem:[%s122_s0] sm:$0xff] }
   0x2   :  { %v19_v2 = vld [vmem:[%s123_s1] sm:$0xff]  ;;  %52 = vmatpush.bf16.msra.mxu0 %v76_v0 }
   0x3   :  { %v75_v3 = vld [vmem:[%s121_s2] sm:$0xff]  ;;  %v20_v4 = vadd.f32 %v19_v2, %v18_v1 }
   0x4   :  { %v77_v6 = vld [vmem:[%s124_s3] ss:$0 sm:$0xff] }
   0x5   :  { %v25_v5 = vpack.c.bf16 %v20_v4, %v20_v4 }
   0x6   :  { %53 = vmatpush.bf16.msra.mxu0 %v75_v3 }
   0x9   :  { %74 = vmatmul.msk.bf16.vlgmr.msra.gmra.mxu0 %vm42_vm0, %v25_v5 }
  0x86   :  { %v55_v7 = vpop.f32.mrf.mxu0 }
  0x87   :  { %v56_v8 = vadd.f32 %v77_v6, %v55_v7 }
  0x89   :  { %v59_v9 = vpack.c.bf16 %v56_v8, %v56_v8 }
  0x8b   :  { %61 = vst.msk [vmem:[%s125_s4] sm:$0xf] %vm60_vm1, %v59_v9 }
  0x8e   :  { %v57_v10 = vpop.f32.mrf.mxu0 }

// kernel: sep_transformer_forward.67
= control target key start
LH: loop header
LB: loop body
LE: loop exit
PB: predicated region body
PF: predicated region fallthrough
CT: control target
= control target key end

     0   :  { %vm17_vm0 = vcmask 261120   ;;  %v67_v2 = vmov 32.0   ;;  %s103_s0 = inlined_call_operand.vmem [shape: f32[8,32], index: 0, kind: input, shape index: {}]   ;;  %s104_s1 = inlined_call_operand.vmem [shape: f32[1,32], index: 1, kind: input, shape index: {}]   ;;  %s105_s2 = inlined_call_operand.vmem [shape: f32[1,32], index: 2, kind: input, shape index: {}]   ;;  %s106_s3 = inlined_call_operand.vmem [shape: f32[8,32], index: 3, kind: output, shape index: {}]  }
   0x1   :  { %v14_v0 = vld [vmem:[%s103_s0] sm:$0xff]  ;;  %63 = vrcp.f32 %v67_v2 }
   0x2   :  { %v18_v1 = vsel %vm17_vm0, %v14_v0, 0.0  ;;  %v61_v23 = vld [vmem:[%s104_s1] ss:$0 sm:$0xff] }
   0x3   :  { %19 = vadd.xlane.f32.xlu0 %v18_v1  ;;  %v62_v25 = vld [vmem:[%s105_s2] ss:$0 sm:$0xff] }
   0x7   :  { %v64_v3 = vpop.eup %63 }
   0x8   :  { %v22_v4 = vmul.f32 32.0, %v64_v3  ;;  %vm26_vm1 = vweird.f32 %v64_v3 }
   0xa   :  { %v23_v5 = vsub.f32 1.0, %v22_v4 }
   0xc   :  { %v24_v6 = vmul.f32 %v64_v3, %v23_v5 }
   0xe   :  { %v25_v7 = vadd.f32 %v64_v3, %v24_v6 }
  0x10   :  { %v27_v8 = vsel %vm26_vm1, %v64_v3, %v25_v7 }
  0x76   :  { %v20_v9 = vpop.xlane.xlu0 %19 }
  0x77   :  { %v28_v10 = vmul.f32 %v27_v8, %v20_v9 }
  0x79   :  { %v29_v11 = vsub.f32 %v14_v0, %v28_v10 }
  0x7b   :  { %v30_v12 = vmul.f32 %v29_v11, %v29_v11 }
  0x7d   :  { %v31_v13 = vsel %vm17_vm0, %v30_v12, 0.0 }
  0x7e   :  { %32 = vadd.xlane.f32.xlu0 %v31_v13 }
  0xf1   :  { %v33_v14 = vpop.xlane.xlu0 %32 }
  0xf2   :  { %v34_v15 = vmul.f32 %v33_v14, %v27_v8 }
  0xf4   :  { %v35_v16 = vadd.f32 1e-05, %v34_v15 }
  0xf6   :  { %65 = vrsqrt.f32 %v35_v16  ;;  %vm42_vm3 = vweird.f32 %v35_v16 }
  0xfc   :  { %v66_v17 = vpop.eup %65 }
  0xfd   :  { %v37_v18 = vmul.f32 %v66_v17, %v35_v16  ;;  %vm43_vm2 = vweird.f32 %v66_v17 }
  0xfe   :  { %vm44_vm4 = vmor %vm42_vm3, %vm43_vm2 }
  0xff   :  { %v38_v19 = vmul.f32 %v66_v17, %v37_v18 }
 0x101   :  { %v39_v20 = vmul.f32 0.5, %v38_v19 }
 0x103   :  { %v40_v21 = vsub.f32 1.5, %v39_v20 }
 0x105   :  { %v41_v22 = vmul.f32 %v66_v17, %v40_v21 }
 0x107   :  { %v45_v24 = vsel %vm44_vm4, %v66_v17, %v41_v22 }
 0x108   :  { %v46_v26 = vmul.f32 %v45_v24, %v29_v11 }
 0x10a   :  { %v50_v27 = vmul.f32 %v61_v23, %v46_v26 }
 0x10c   :  { %v54_v28 = vadd.f32 %v62_v25, %v50_v27 }
 0x10e   :  { %55 = vst.msk [vmem:[%s106_s3] sm:$0xff] %vm17_vm0, %v54_v28 }

// kernel: sep_transformer_forward.58
= control target key start
LH: loop header
LB: loop body
LE: loop exit
PB: predicated region body
PF: predicated region fallthrough
CT: control target
= control target key end

     0   :  { %s1132_s30 = smov 0   ;;  %s1134_s10 = smov 0   ;;  %s1233_s0 = inlined_call_operand.vmem [shape: bf16[2,8,32], index: 0, kind: input, shape index: {}]   ;;  %s1234_s1 = inlined_call_operand.vmem [shape: bf16[2,16,32], index: 1, kind: input, shape index: {}]   ;;  %s1235_s2 = inlined_call_operand.vmem [shape: bf16[2,16,32], index: 2, kind: input, shape index: {}]   ;;  %s1236_s3 = inlined_call_operand.vmem [shape: f32[2,1,16], index: 3, kind: input, shape index: {}]   ;;  %s1237_s4 = inlined_call_operand.vmem [shape: f32[2,8,32], index: 4, kind: input, shape index: {}]   ;;  %s1238_s5 = inlined_call_operand.vmem [shape: bf16[32,32], index: 5, kind: input, shape index: {}]   ;;  %s1239_s6 = inlined_call_operand.vmem [shape: f32[1,32], index: 6, kind: input, shape index: {}]   ;;  %s1240_s7 = inlined_call_operand.vmem [shape: f32[1,32], index: 7, kind: input, shape index: {}]   ;;  %s1241_s8 = inlined_call_operand.vmem [shape: f32[1,32], index: 8, kind: input, shape index: {}]   ;;  %s1242_s9 = inlined_call_operand.vmem [shape: f32[2,8,32], index: 9, kind: output, shape index: {}]  }
   0x1   :  { %s1136_s11 = smov 0  }
   0x2 LB: > { %s31_s12 = sadd.s32 1, %s1069_s10  ;;  %p955_p0 = scmp.ge.s32.totalorder %s1073_s11, 1  ;;  %s1073_s11 = sphi %s1136_s11, %s19_s11   ;;  %s1069_s10 = sphi %s1134_s10, %s1244_s10   ;;  %s1065_s30 = sphi %s1132_s30, %s1243_s30  }
   0x3   : > { %p33_p1 = scmp.ge.s32.totalorder %s31_s12, 2  ;;  %p347_p2 = scmp.lt.s32.totalorder %s1073_s11, 3 }
   0x5   : > { %s1246_s12 = smov (%p33_p1, %s31_s12), 0  ;;  %p348_p3 = pnand %p955_p0, %p347_p2 }
   0x6   : > { %p407_p4 = scmp.lt.s32.totalorder (!%p348_p3), %s1065_s30, 1  ;;  %s1075_s24 = smov (!%p348_p3), 104  }
   0x7   : > { %351 = sbr.rel (%p348_p3) target bundleno = 1228 (0x4cc), region = 56  ;;  %s1076_s25 = smov (!%p348_p3), 120  }
   0x8   : > { %s1077_s26 = smov (!%p348_p3), 112   ;;  %s1080_s15 = smov (!%p348_p3), 16  }
   0xc   : > { %s1248_s30 = smov (!%p407_p4, %s1065_s30), 1  ;;  %vm456_vm0 = vcmask 64512   ;;  %vm476_vm1 = vcmask 130048  }
   0xd   : > { %s1150_s13 = sshll.u32 %s1248_s30, 3  ;;  %s956_s14 = sshll.u32 %s1248_s30, 2 }
   0xe   : > { %s418_s17 = scalar_lea.vmem %s1234_s1, %s1150_s13  ;;  %s413_s20 = scalar_lea.vmem %s1233_s0, %s956_s14 }
   0xf   : > { %v992_v0 = vld [vmem:[%s418_s17] sm:$0xff]  ;;  %s426_s23 = scalar_lea.vmem %s1236_s3, %s1248_s30  ;;  %s423_s29 = scalar_lea.vmem %s1235_s2, %s1150_s13 }
  0x10   : > { %v442_v1 = vld [vmem:[%s413_s20] sm:$0xf]  ;;  %v461_v2 = vsel %vm456_vm0, %v992_v0, 0  ;;  %666 = vrot.lane.b32.xlu2 %v992_v0, %s1075_s24  ;;  %s1078_s30 = smov 8   ;;  %s1079_s14 = smov 24  }
  0x11   : > { %v526_v3 = vunpack.c.l.b16 %v442_v1  ;;  %470 = vmatpush.bf16.xpose.msra.mxu0 %v461_v2  ;;  %v1027_v8 = vld [vmem:[%s426_s23] ss:$0 sm:$0xff]  ;;  %s433_s22 = scalar_lea.vmem %s1237_s4, %s1150_s13 }
  0x12   : > { %v993_v15 = vld [vmem:[%s423_s29] sm:$0xff] }
  0x13   : > { %v527_v4 = vpack.c.b16 %v526_v3, %v526_v3  ;;  %503 = vmatpush.bf16.msra.mxu1 %v993_v15 }
  0x15   : > { %528 = vrot.lane.b32.xlu1 %v527_v4, %s1076_s25 }
  0x18   : > { %967 = vmatmul.msk.bf16.vlgmr.msra.gmra.mxu0 %vm456_vm0, %v442_v1  ;;  %596 = vrot.lane.b32.xlu2 %v527_v4, %s1077_s26 }
  0x1d   : > { %598 = vrot.lane.b32.xlu1 %v992_v0, %s1077_s26 }
  0x25   : > { %664 = vrot.lane.b32.xlu1 %v527_v4, %s1075_s24 }
  0x2d   : > { %561 = vrot.lane.b32.xlu1 %v993_v15, %s1076_s25 }
  0x6a   : > { %v667_v6 = vpop.permute.xlu2 %666 }
  0x6b   : > { %v672_v7 = vsel %vm456_vm0, %v667_v6, 0 }
  0x6c   : > { %681 = vmatpush.bf16.xpose.msrb.mxu0 %v672_v7 }
  0x72   : > { %v597_v28 = vpop.permute.xlu2 %596 }
  0x87   : > { %v529_v5 = vpop.permute.xlu1 %528 }
  0x8f   : > { %v599_v10 = vpop.permute.xlu1 %598 }
  0x90   : > { %v604_v16 = vsel %vm456_vm0, %v599_v10, 0 }
  0x91   : > { %613 = vmatpush.bf16.xpose.msrb.mxu1 %v604_v16 }
  0x95   : > { %v472_v9 = vpop.f32.mrf.mxu0 }
  0x96   : > { %v473_v11 = vadd.f32 %v1027_v8, %v472_v9 }
  0x97   : > { %v665_v14 = vpop.permute.xlu1 %664 }
  0x98   : > { %v477_v12 = vsel %vm476_vm1, %v473_v11, -inf  ;;  %977 = vmatmul.msk.bf16.vlgmr.msrb.gmra.mxu0 %vm456_vm0, %v665_v14 }
  0x99   : > { %478 = vmax.xlane.f32.xlu0 %v477_v12 }
  0x9d   : > { %v474_v13 = vpop.f32.mrf.mxu0 }
  0x9f   : > { %v562_v31 = vpop.permute.xlu1 %561 }
  0xa0   : > { %574 = vmatpush.bf16.msra.mxu3 %v562_v31 }
  0xad   : > { %530 = vrot.lane.b32.xlu0 %v992_v0, %s1076_s25 }
 0x10c   : > { %v479_v17 = vpop.xlane.xlu0 %478 }
 0x10d   : > { %v480_v18 = vsub.f32 %v473_v11, %v479_v17 }
 0x10f   : > { %v481_v19 = vmul.f32 1.442695, %v480_v18 }
 0x111   : > { %1031 = vpow2.f32 %v481_v19 }
 0x115   : > { %v683_v22 = vpop.f32.mrf.mxu0 }
 0x116   : > { %v684_v23 = vadd.f32 %v1027_v8, %v683_v22 }
 0x117   : > { %v1032_v20 = vpop.eup %1031 }
 0x118   : > { %v486_v21 = vpack.c.bf16 %v1032_v20, %v1032_v20  ;;  %v687_v24 = vsel %vm476_vm1, %v684_v23, -inf  ;;  %v483_v40 = vsel %vm476_vm1, %v1032_v20, 0.0 }
 0x119   : > { %688 = vmax.xlane.f32.xlu1 %v687_v24 }
 0x11a   : > { %972 = vmatmul.msk.bf16.vlgmr.msra.gmra.mxu1 %vm476_vm1, %v486_v21 }
 0x11d   : > { %v685_v27 = vpop.f32.mrf.mxu0 }
 0x11f   : > { %v531_v25 = vpop.permute.xlu0 %530 }
 0x120   : > { %v536_v26 = vsel %vm456_vm0, %v531_v25, 0 }
 0x121   : > { %545 = vmatpush.bf16.xpose.msra.mxu2 %v536_v26 }
 0x128   : > { %973 = vmatmul.msk.bf16.vlgmr.msra.gmra.mxu2 %vm456_vm0, %v529_v5 }
 0x12a   : > { %975 = vmatmul.msk.bf16.vlgmr.msrb.gmra.mxu1 %vm456_vm0, %v597_v28 }
 0x18c   : > { %v689_v42 = vpop.xlane.xlu1 %688 }
 0x18d   : > { %v690_v45 = vsub.f32 %v684_v23, %v689_v42 }
 0x18f   : > { %v691_v49 = vmul.f32 1.442695, %v690_v45 }
 0x197   : > { %v1181_v29 = vpop.f32.mrf.mxu1 }
 0x19f   : > { %v507_v30 = vpop.f32.mrf.mxu1 }
 0x1a7   : > { %v615_v32 = vpop.f32.mrf.mxu1 }
 0x1a8   : > { %v616_v33 = vadd.f32 %v1027_v8, %v615_v32 }
 0x1aa   : > { %v619_v34 = vsel %vm476_vm1, %v616_v33, -inf }
 0x1ab   : > { %620 = vmax.xlane.f32.xlu0 %v619_v34  ;;  %v547_v35 = vpop.f32.mrf.mxu2 }
 0x1ac   : > { %v548_v36 = vadd.f32 %v1027_v8, %v547_v35 }
 0x1ae   : > { %v551_v37 = vsel %vm476_vm1, %v548_v36, -inf }
 0x1af   : > { %552 = vmax.xlane.f32.xlu2 %v551_v37  ;;  %v617_v38 = vpop.f32.mrf.mxu1 }
 0x1b3   : > { %v549_v39 = vpop.f32.mrf.mxu2 }
 0x1bf   : > { %697 = vrot.lane.b32.xlu0 %v993_v15, %s1075_s24 }
 0x1c7   : > { %629 = vrot.lane.b32.xlu2 %v993_v15, %s1077_s26 }
 0x1e9   : > { %484 = vadd.xlane.f32.xlu0 %v483_v40  ;;  %v995_v40 = vld [vmem:[%s1238_s5 + $0x8] sm:$0xff] }
 0x1ea   : > { %776 = vmatpush.bf16.msra.mxu1 %v995_v40 }
 0x21e   : > { %v621_v41 = vpop.xlane.xlu0 %620 }
 0x21f   : > { %v622_v43 = vsub.f32 %v616_v33, %v621_v41  ;;  %v994_v41 = vld [vmem:[%s1238_s5] sm:$0xff] }
 0x220   : > { %777 = vmatpush.bf16.msra.mxu1 %v994_v41 }
 0x221   : > { %v623_v44 = vmul.f32 1.442695, %v622_v43 }
 0x222   : > { %v553_v46 = vpop.xlane.xlu2 %552 }
 0x223   : > { %1033 = vpow2.f32 %v623_v44  ;;  %v554_v47 = vsub.f32 %v548_v36, %v553_v46 }
 0x225   : > { %v555_v48 = vmul.f32 1.442695, %v554_v47 }
 0x227   : > { %1035 = vpow2.f32 %v555_v48 }
 0x228   : > { %1037 = vpow2.f32 %v691_v49 }
 0x229   : > { %v1034_v50 = vpop.eup %1033 }
 0x22a   : > { %v625_v51 = vsel %vm476_vm1, %v1034_v50, 0.0  ;;  %v630_v52 = vpop.permute.xlu2 %629  ;;  %v628_v60 = vpack.c.bf16 %v1034_v50, %v1034_v50 }
 0x22b   : > { %626 = vadd.xlane.f32.xlu2 %v625_v51  ;;  %642 = vmatpush.bf16.msrb.mxu3 %v630_v52 }
 0x22d   : > { %v1036_v53 = vpop.eup %1035 }
 0x22e   : > { %v557_v54 = vsel %vm476_vm1, %v1036_v53, 0.0  ;;  %v560_v55 = vpack.c.bf16 %v1036_v53, %v1036_v53  ;;  %v1038_v56 = vpop.eup %1037 }
 0x22f   : > { %558 = vadd.xlane.f32.xlu1 %v557_v54  ;;  %v696_v58 = vpack.c.bf16 %v1038_v56, %v1038_v56  ;;  %v693_v59 = vsel %vm476_vm1, %v1038_v56, 0.0 }
 0x230   : > { %974 = vmatmul.msk.bf16.vlgmr.msra.gmra.mxu3 %vm476_vm1, %v560_v55 }
 0x231   : > { %v698_v57 = vpop.permute.xlu0 %697 }
 0x232   : > { %710 = vmatpush.bf16.msrb.mxu2 %v698_v57 }
 0x235   : > { %978 = vmatmul.msk.bf16.vlgmr.msrb.gmra.mxu2 %vm476_vm1, %v696_v58 }
 0x237   : > { %694 = vadd.xlane.f32.xlu1 %v693_v59 }
 0x240   : > { %976 = vmatmul.msk.bf16.vlgmr.msrb.gmra.mxu3 %vm476_vm1, %v628_v60 }
 0x25c   : > { %v485_v42 = vpop.xlane.xlu0 %484 }
 0x25d   : > { %v520_v48 = vand.u32 2147483648, %v485_v42  ;;  %vm514_vm15 = vweird.f32 %v485_v42  ;;  %v518_v49 = vand.u32 2147483647, %v485_v42 }
 0x25f   : > { %v521_v52 = vor.u32 1.1754944e-38, %v520_v48 }
 0x29e   : > { %v627_v62 = vpop.xlane.xlu2 %626 }
 0x29f   : > { %v659_v31 = vand.u32 2147483648, %v627_v62  ;;  %vm653_vm11 = vweird.f32 %v627_v62  ;;  %v657_v32 = vand.u32 2147483647, %v627_v62 }
 0x2a1   : > { %v660_v35 = vor.u32 1.1754944e-38, %v659_v31  ;;  %vm658_vm13 = vcmp.eq.f32.partialorder %v657_v32, 8.507059e+37 }
 0x2a2   : > { %v559_v61 = vpop.xlane.xlu1 %558 }
 0x2a3   : > { %1039 = vrcp.f32 %v559_v61  ;;  %v591_v4 = vand.u32 2147483648, %v559_v61  ;;  %v589_v6 = vand.u32 2147483647, %v559_v61  ;;  %vm585_vm3 = vweird.f32 %v559_v61 }
 0x2a4   : > { %1041 = vrcp.f32 %v627_v62 }
 0x2a5   : > { %v592_v10 = vor.u32 1.1754944e-38, %v591_v4  ;;  %vm590_vm5 = vcmp.eq.f32.partialorder %v589_v6, 8.507059e+37 }
 0x2a9   : > { %v1040_v63 = vpop.eup %1039 }
 0x2aa   : > { %v581_v0 = vmul.f32 %v1040_v63, %v559_v61  ;;  %v695_v1 = vpop.xlane.xlu1 %694  ;;  %v1042_v3 = vpop.eup %1041  ;;  %vm586_vm2 = vweird.f32 %v1040_v63  ;;  %v748_v61 = vld [vmem:[%s433_s22] sm:$0xff] }
 0x2ab   : > { %1043 = vrcp.f32 %v695_v1  ;;  %v649_v7 = vmul.f32 %v1042_v3, %v627_v62  ;;  %vm587_vm4 = vmor %vm585_vm3, %vm586_vm2  ;;  %v727_v18 = vand.u32 2147483648, %v695_v1  ;;  %v725_v20 = vand.u32 2147483647, %v695_v1 }
 0x2ac   : > { %v582_v2 = vsub.f32 1.0, %v581_v0  ;;  %vm721_vm7 = vweird.f32 %v695_v1  ;;  %vm654_vm10 = vweird.f32 %v1042_v3  ;;  %1045 = vrcp.f32 %v485_v42 }
 0x2ad   : > { %v650_v15 = vsub.f32 1.0, %v649_v7  ;;  %v728_v24 = vor.u32 1.1754944e-38, %v727_v18  ;;  %vm726_vm9 = vcmp.eq.f32.partialorder %v725_v20, 8.507059e+37  ;;  %vm655_vm12 = vmor %vm653_vm11, %vm654_vm10  ;;  %vm519_vm3 = vcmp.eq.f32.partialorder %v518_v49, 8.507059e+37 }
 0x2ae   : > { %v583_v5 = vmul.f32 %v1040_v63, %v582_v2 }
 0x2af   : > { %v651_v23 = vmul.f32 %v1042_v3, %v650_v15 }
 0x2b0   : > { %v584_v8 = vadd.f32 %v1040_v63, %v583_v5 }
 0x2b1   : > { %v1044_v9 = vpop.eup %1043  ;;  %v652_v30 = vadd.f32 %v1042_v3, %v651_v23 }
 0x2b2   : > { %v717_v11 = vmul.f32 %v1044_v9, %v695_v1  ;;  %v588_v12 = vsel %vm587_vm4, %v1040_v63, %v584_v8  ;;  %vm722_vm6 = vweird.f32 %v1044_v9  ;;  %v1046_v43 = vpop.eup %1045  ;;  %vm746_vm4 = vcmask 195584  }
 0x2b3   : > { %v576_v13 = vpop.f32.mrf.mxu3  ;;  %v593_v14 = vsel %vm590_vm5, %v592_v10, %v588_v12  ;;  %vm723_vm8 = vmor %vm721_vm7, %vm722_vm6  ;;  %v656_v34 = vsel %vm655_vm12, %v1042_v3, %v652_v30  ;;  %v510_v44 = vmul.f32 %v1046_v43, %v485_v42  ;;  %vm515_vm14 = vweird.f32 %v1046_v43 }
 0x2b4   : > { %v718_v16 = vsub.f32 1.0, %v717_v11  ;;  %v595_v17 = vmul.f32 %v593_v14, %v576_v13  ;;  %v661_v37 = vsel %vm658_vm13, %v660_v35, %v656_v34  ;;  %vm516_vm2 = vmor %vm514_vm15, %vm515_vm14  ;;  %vm766_vm5 = vcmask 261120  }
 0x2b5   : > { %v511_v45 = vsub.f32 1.0, %v510_v44  ;;  %v1081_v3 = vmov 32.0  }
 0x2b6   : > { %733 = vrot.lane.b32.xlu1 %v595_v17, %s1078_s30  ;;  %v719_v19 = vmul.f32 %v1044_v9, %v718_v16  ;;  %1047 = vrcp.f32 %v1081_v3 }
 0x2b7   : > { %v512_v46 = vmul.f32 %v1046_v43, %v511_v45 }
 0x2b8   : > { %v712_v21 = vpop.f32.mrf.mxu2  ;;  %v720_v22 = vadd.f32 %v1044_v9, %v719_v19 }
 0x2b9   : > { %v513_v47 = vadd.f32 %v1046_v43, %v512_v46 }
 0x2ba   : > { %v724_v25 = vsel %vm723_vm8, %v1044_v9, %v720_v22 }
 0x2bb   : > { %v729_v26 = vsel %vm726_vm9, %v728_v24, %v724_v25  ;;  %v578_v27 = vpop.f32.mrf.mxu3  ;;  %v517_v51 = vsel %vm516_vm2, %v1046_v43, %v513_v47  ;;  %v1029_v24 = vld [vmem:[%s1240_s7] ss:$0 sm:$0xff] }
 0x2bc   : > { %v731_v28 = vmul.f32 %v729_v26, %v712_v21  ;;  %v522_v53 = vsel %vm519_vm3, %v521_v52, %v517_v51  ;;  %v1048_v4 = vpop.eup %1047  ;;  %v1030_v26 = vld [vmem:[%s1241_s8] ss:$0 sm:$0xff] }
 0x2bd   : > { %v524_v54 = vmul.f32 %v522_v53, %v1181_v29  ;;  %v1028_v29 = vld [vmem:[%s1239_s6] ss:$0 sm:$0xff]  ;;  %v795_v5 = vmul.f32 32.0, %v1048_v4 }
 0x2be   : > { %741 = vrot.lane.b32.xlu2 %v731_v28, %s1079_s14  ;;  %s440_s14 = scalar_lea.vmem %s1242_s9, %s1150_s13 }
 0x2bf   : > { %v796_v6 = vsub.f32 1.0, %v795_v5 }
 0x2c0   : > { %v714_v33 = vpop.f32.mrf.mxu2 }
 0x2c1   : > { %v797_v7 = vmul.f32 %v1048_v4, %v796_v6 }
 0x2c3   : > { %v644_v36 = vpop.f32.mrf.mxu3  ;;  %v798_v8 = vadd.f32 %v1048_v4, %v797_v7 }
 0x2c4   : > { %v663_v38 = vmul.f32 %v661_v37, %v644_v36 }
 0x2c6   : > { %737 = vrot.lane.b32.xlu1 %v663_v38, %s1080_s15 }
 0x2cb   : > { %v646_v39 = vpop.f32.mrf.mxu3 }
 0x318   : > { %v742_v57 = vpop.permute.xlu2 %741 }
 0x328   : > { %v734_v50 = vpop.permute.xlu1 %733 }
 0x329   : > { %v744_v55 = vsel %vm456_vm0, %v524_v54, %v734_v50  ;;  %vm799_vm0 = vweird.f32 %v1048_v4 }
 0x32a   : > { %v800_v9 = vsel %vm799_vm0, %v1048_v4, %v798_v8 }
 0x338   : > { %v738_v56 = vpop.permute.xlu1 %737 }
 0x339   : > { %v745_v58 = vsel %vm476_vm1, %v744_v55, %v738_v56 }
 0x33a   : > { %v747_v59 = vsel %vm746_vm4, %v745_v58, %v742_v57 }
 0x33b   : > { %v753_v60 = vpack.c.bf16 %v747_v59, %v747_v59 }
 0x33d   : > { %987 = vmatmul.msk.bf16.vlgmr.msra.gmra.mxu1 %vm766_vm5, %v753_v60 }
 0x3ba   : > { %v779_v62 = vpop.f32.mrf.mxu1 }
 0x3bb   : > { %v783_v63 = vadd.f32 %v779_v62, %v748_v61 }
 0x3bd   : > { %v788_v0 = vadd.f32 %v1028_v29, %v783_v63 }
 0x3bf   : > { %v791_v1 = vsel %vm766_vm5, %v788_v0, 0.0 }
 0x3c0   : > { %792 = vadd.xlane.f32.xlu1 %v791_v1 }
 0x3c2   : > { %v781_v2 = vpop.f32.mrf.mxu1 }
 0x433   : > { %v793_v10 = vpop.xlane.xlu1 %792 }
 0x434   : > { %v801_v11 = vmul.f32 %v800_v9, %v793_v10 }
 0x436   : > { %v802_v12 = vsub.f32 %v788_v0, %v801_v11 }
 0x438   : > { %v803_v13 = vmul.f32 %v802_v12, %v802_v12 }
 0x43a   : > { %v804_v14 = vsel %vm766_vm5, %v803_v13, 0.0 }
 0x43b   : > { %805 = vadd.xlane.f32.xlu0 %v804_v14 }
 0x4ae   : > { %v806_v15 = vpop.xlane.xlu0 %805 }
 0x4af   : > { %v807_v16 = vmul.f32 %v806_v15, %v800_v9 }
 0x4b1   : > { %v808_v17 = vadd.f32 1e-05, %v807_v16 }
 0x4b3   : > { %1049 = vrsqrt.f32 %v808_v17  ;;  %vm815_vm6 = vweird.f32 %v808_v17 }
 0x4b9   : > { %v1050_v18 = vpop.eup %1049 }
 0x4ba   : > { %v810_v19 = vmul.f32 %v1050_v18, %v808_v17  ;;  %vm816_vm1 = vweird.f32 %v1050_v18 }
 0x4bb   : > { %vm817_vm7 = vmor %vm815_vm6, %vm816_vm1 }
 0x4bc   : > { %v811_v20 = vmul.f32 %v1050_v18, %v810_v19 }
 0x4be   : > { %v812_v21 = vmul.f32 0.5, %v811_v20 }
 0x4c0   : > { %v813_v22 = vsub.f32 1.5, %v812_v21 }
 0x4c2   : > { %v814_v23 = vmul.f32 %v1050_v18, %v813_v22 }
 0x4c4   : > { %v818_v25 = vsel %vm817_vm7, %v1050_v18, %v814_v23 }
 0x4c5   : > { %v819_v27 = vmul.f32 %v818_v25, %v802_v12 }
 0x4c7   : > { %v823_v28 = vmul.f32 %v1029_v24, %v819_v27 }
 0x4c9   : > { %v827_v30 = vadd.f32 %v1030_v26, %v823_v28 }
 0x4cb   : > { %828 = vst.msk [vmem:[%s440_s14] sm:$0xff] %vm766_vm5, %v827_v30 }
 0x4cc PF: > { %s19_s11 = sadd.s32 1, %s1073_s11   ;;  %s1243_s30 = smov %s1069_s10 }
 0x4cd   : > { %p16_p5 = scmp.ge.s32.totalorder %s19_s11, 4   ;;  %s1244_s10 = smov %s1246_s12 }
 0x4cf   :  { %18 = sbr.rel (!%p16_p5) target bundleno = 2 (0x2), region = 98 }

// kernel: sep_transformer_forward.59
= control target key start
LH: loop header
LB: loop body
LE: loop exit
PB: predicated region body
PF: predicated region fallthrough
CT: control target
= control target key end

     0   :  { %vm49_vm0 = vcmask 261120   ;;  %vm100_vm1 = vcmask 523264   ;;  %v208_v20 = vmov 32.0   ;;  %s289_s1 = inlined_call_operand.vmem [shape: bf16[32,64], index: 1, kind: input, shape index: {}]   ;;  %s290_s0 = inlined_call_operand.vmem [shape: f32[8,32], index: 0, kind: input, shape index: {}]   ;;  %s291_s3 = inlined_call_operand.vmem [shape: bf16[64,32], index: 3, kind: input, shape index: {}]   ;;  %s292_s2 = inlined_call_operand.vmem [shape: f32[1,64], index: 2, kind: input, shape index: {}]   ;;  %s293_s4 = inlined_call_operand.vmem [shape: f32[1,32], index: 4, kind: input, shape index: {}]   ;;  %s294_s5 = inlined_call_operand.vmem [shape: f32[1,32], index: 5, kind: input, shape index: {}]   ;;  %s295_s6 = inlined_call_operand.vmem [shape: f32[1,32], index: 6, kind: input, shape index: {}]   ;;  %s296_s7 = inlined_call_operand.vmem [shape: f32[8,32], index: 7, kind: output, shape index: {}]  }
   0x1   :  { %v194_v0 = vld [vmem:[%s289_s1 + $0x8] sm:$0xff]  ;;  %v198_v1 = vld [vmem:[%s291_s3 + $0x18] sm:$0xff]  ;;  %v193_v2 = vld [vmem:[%s289_s1] sm:$0xff]  ;;  %204 = vrcp.f32 %v208_v20 }
   0x2   :  { %59 = vmatpush.bf16.msra.mxu0 %v194_v0  ;;  %v27_v3 = vld [vmem:[%s290_s0] sm:$0xff]  ;;  %108 = vmatpush.bf16.msra.mxu1 %v198_v1  ;;  %v197_v4 = vld [vmem:[%s291_s3 + $0x10] sm:$0xff]  ;;  %v196_v6 = vld [vmem:[%s291_s3 + $0x8] sm:$0xff] }
   0x3   :  { %v32_v5 = vpack.c.bf16 %v27_v3, %v27_v3  ;;  %v195_v7 = vld [vmem:[%s291_s3] sm:$0xff] }
   0x4   :  { %v200_v8 = vld [vmem:[%s292_s2] ss:$0 sm:$0xff] }
   0x5   :  { %v201_v14 = vld [vmem:[%s293_s4] ss:$0 sm:$0xff] }
   0x6   :  { %60 = vmatpush.bf16.msra.mxu0 %v193_v2  ;;  %109 = vmatpush.bf16.msra.mxu1 %v197_v4  ;;  %v202_v41 = vld [vmem:[%s294_s5] ss:$0 sm:$0xff] }
   0x7   :  { %v205_v21 = vpop.eup %204  ;;  %v203_v43 = vld [vmem:[%s295_s6] ss:$0 sm:$0xff] }
   0x8   :  { %v129_v22 = vmul.f32 32.0, %v205_v21  ;;  %vm133_vm2 = vweird.f32 %v205_v21 }
   0x9   :  { %175 = vmatmul.msk.bf16.vlgmr.msra.gmra.mxu0 %vm49_vm0, %v32_v5 }
   0xa   :  { %110 = vmatpush.bf16.msra.mxu1 %v196_v6  ;;  %v130_v23 = vsub.f32 1.0, %v129_v22 }
   0xc   :  { %v131_v24 = vmul.f32 %v205_v21, %v130_v23 }
   0xe   :  { %111 = vmatpush.bf16.msra.mxu1 %v195_v7  ;;  %v132_v25 = vadd.f32 %v205_v21, %v131_v24 }
  0x10   :  { %v134_v26 = vsel %vm133_vm2, %v205_v21, %v132_v25 }
  0x86   :  { %v62_v9 = vpop.f32.mrf.mxu0 }
  0x87   :  { %v63_v10 = vadd.f32 %v200_v8, %v62_v9 }
  0x89   :  { %v66_v11 = vmax.f32 %v63_v10, 0.0 }
  0x8b   :  { %v75_v12 = vpack.c.bf16 %v66_v11, %v66_v11 }
  0x8d   :  { %192 = vmatmul.msk.bf16.vlgmr.msra.gmra.mxu1 %vm100_vm1, %v75_v12 }
  0x8e   :  { %v64_v13 = vpop.f32.mrf.mxu0 }
 0x10a   :  { %v113_v15 = vpop.f32.mrf.mxu1 }
 0x10b   :  { %v117_v16 = vadd.f32 %v113_v15, %v27_v3 }
 0x10d   :  { %v122_v17 = vadd.f32 %v201_v14, %v117_v16 }
 0x10f   :  { %v125_v18 = vsel %vm49_vm0, %v122_v17, 0.0 }
 0x110   :  { %126 = vadd.xlane.f32.xlu0 %v125_v18 }
 0x112   :  { %v115_v19 = vpop.f32.mrf.mxu1 }
 0x183   :  { %v127_v27 = vpop.xlane.xlu0 %126 }
 0x184   :  { %v135_v28 = vmul.f32 %v134_v26, %v127_v27 }
 0x186   :  { %v136_v29 = vsub.f32 %v122_v17, %v135_v28 }
 0x188   :  { %v137_v30 = vmul.f32 %v136_v29, %v136_v29 }
 0x18a   :  { %v138_v31 = vsel %vm49_vm0, %v137_v30, 0.0 }
 0x18b   :  { %139 = vadd.xlane.f32.xlu0 %v138_v31 }
 0x1fe   :  { %v140_v32 = vpop.xlane.xlu0 %139 }
 0x1ff   :  { %v141_v33 = vmul.f32 %v140_v32, %v134_v26 }
 0x201   :  { %v142_v34 = vadd.f32 1e-05, %v141_v33 }
 0x203   :  { %206 = vrsqrt.f32 %v142_v34  ;;  %vm149_vm4 = vweird.f32 %v142_v34 }
 0x209   :  { %v207_v35 = vpop.eup %206 }
 0x20a   :  { %v144_v36 = vmul.f32 %v207_v35, %v142_v34  ;;  %vm150_vm3 = vweird.f32 %v207_v35 }
 0x20b   :  { %vm151_vm5 = vmor %vm149_vm4, %vm150_vm3 }
 0x20c   :  { %v145_v37 = vmul.f32 %v207_v35, %v144_v36 }
 0x20e   :  { %v146_v38 = vmul.f32 0.5, %v145_v37 }
 0x210   :  { %v147_v39 = vsub.f32 1.5, %v146_v38 }
 0x212   :  { %v148_v40 = vmul.f32 %v207_v35, %v147_v39 }
 0x214   :  { %v152_v42 = vsel %vm151_vm5, %v207_v35, %v148_v40 }
 0x215   :  { %v153_v44 = vmul.f32 %v152_v42, %v136_v29 }
 0x217   :  { %v157_v45 = vmul.f32 %v202_v41, %v153_v44 }
 0x219   :  { %v161_v46 = vadd.f32 %v203_v43, %v157_v45 }
 0x21b   :  { %162 = vst.msk [vmem:[%s296_s7] sm:$0xff] %vm49_vm0, %v161_v46 }

</bundles_post_ra>
